<compile_context>
chip_gen: v7x
topology: tpu7x:2x2x1
jax: 0.10.0
libtpu: 0.0.40
codegen_flags: <defaults>
</compile_context>

<pallas_src>
import jax
import jax.numpy as jnp
from jax.experimental import pallas as pl
from jax.experimental.pallas import tpu as pltpu

NUM_CLASSES = 3
MBOX = [4, 6, 6, 4]          # anchors per cell for each source feature map
FEAT_SIZES = [8, 4, 2, 1]    # spatial size of each source feature map
IMG = 16                     # input spatial size
IN_CH = 4                    # input channels

PAD = 24                     # zero border rows above/below staged image (>= W_max + 1, mult of 8)
CMAX = 32                    # max channel count of any staged activation
HEAD_COUT = 128              # head (loc|conf) output channels zero-padded to a full lane tile
OUT_ROWS = 88                # 64 + 16 + 4 + 1 head rows per image, rounded up to a multiple of 8
BF16 = jnp.bfloat16


# ---------------------------------------------------------------------------
# In-kernel building blocks (trace-time helpers; all operate on 2-D slabs)
# ---------------------------------------------------------------------------
def _edge_masks(H, W):
    """Per-resolution f32 (H*W, 1) masks zeroing the left / right image column.

    Built ONCE per resolution and reused by every conv at that (H, W); only
    two mask multiplies per staged activation are needed (source-side edge
    zeroing), the vertical boundary is handled by real zero border rows.
    """
    ox = jax.lax.broadcasted_iota(jnp.int32, (H * W, 1), 0) & (W - 1)
    not_left = (ox != 0).astype(jnp.float32)
    not_right = (ox != W - 1).astype(jnp.float32)
    return not_left, not_right


def _stage(pad_ref, x, masks):
    """Stage activation x (H*W, C) into the zero-bordered scratch.

    Column group 0: plain copy            (used by dx == 0 taps)
    Column group 1: left-column zeroed    (used by dx == +1 taps)
    Column group 2: right-column zeroed   (used by dx == -1 taps)
    Tail rows are re-zeroed so shifted reads past the image see real zeros.
    """
    R, C = x.shape
    not_left, not_right = masks
    pad_ref[PAD:PAD + R, 0:C] = x
    pad_ref[PAD:PAD + R, CMAX:CMAX + C] = x * not_left
    pad_ref[PAD:PAD + R, 2 * CMAX:2 * CMAX + C] = x * not_right
    pad_ref[PAD + R:PAD + R + PAD, :] = jnp.zeros((PAD, 3 * CMAX), jnp.float32)


def _conv3x3(pad_ref, s_ref, w_ref, b_ref, H, W, Cin, relu):
    """3x3 'same' conv on the staged activation: ONE MXU dot with K = 9*Cin.

    The 9 shifted views are copied lane-contiguously (as bf16) into the
    (R, 9*Cin) im2col scratch, then a single dot against the (9*Cin, Cout)
    packed bf16 weights with f32 accumulation.
    """
    R = H * W
    t = 0
    for dy in (-1, 0, 1):
        for dx in (-1, 0, 1):
            grp = 0 if dx == 0 else (CMAX if dx == 1 else 2 * CMAX)
            off = PAD + dy * W + dx
            s_ref[0:R, t * Cin:(t + 1) * Cin] = (
                pad_ref[off:off + R, grp:grp + Cin].astype(BF16))
            t += 1
    acc = jnp.dot(s_ref[0:R, 0:9 * Cin], w_ref[...],
                  preferred_element_type=jnp.float32)
    acc = acc + b_ref[...]
    if relu:
        acc = jnp.maximum(acc, 0.0)
    return acc


def _conv1x1(x, w_ref, b_ref, relu):
    acc = jnp.dot(x.astype(BF16), w_ref[...],
                  preferred_element_type=jnp.float32) + b_ref[...]
    if relu:
        acc = jnp.maximum(acc, 0.0)
    return acc


def _maxpool2x2(pad_ref, y, H, W):
    """2x2 / stride-2 max-pool via strided sublane slices (no selection matmul)."""
    R, C = y.shape
    pad_ref[PAD:PAD + R, 0:C] = y
    Hn, Wn = H // 2, W // 2
    rows = []
    for yo in range(Hn):
        base = PAD + 2 * yo * W
        a = pad_ref[pl.ds(base, Wn, stride=2), 0:C]          # (2yo,   even x)
        b = pad_ref[pl.ds(base + 1, Wn, stride=2), 0:C]      # (2yo,   odd  x)
        c = pad_ref[pl.ds(base + W, Wn, stride=2), 0:C]      # (2yo+1, even x)
        d = pad_ref[pl.ds(base + W + 1, Wn, stride=2), 0:C]  # (2yo+1, odd  x)
        rows.append(jnp.maximum(jnp.maximum(a, b), jnp.maximum(c, d)))
    return rows[0] if len(rows) == 1 else jnp.concatenate(rows, axis=0)


def _stride2_pick(pad_ref, y, H, W):
    """Pick rows with even (y, x): emulates a stride-2 conv from its same-conv."""
    R, C = y.shape
    pad_ref[PAD:PAD + R, 0:C] = y
    Hn, Wn = H // 2, W // 2
    rows = []
    for yo in range(Hn):
        base = PAD + 2 * yo * W
        if Wn == 1:
            rows.append(pad_ref[base:base + 1, 0:C])
        else:
            rows.append(pad_ref[pl.ds(base, Wn, stride=2), 0:C])
    return rows[0] if len(rows) == 1 else jnp.concatenate(rows, axis=0)


def _l2norm(x, w_ref):
    ss = jnp.sum(x * x, axis=-1, keepdims=True)
    return x * jax.lax.rsqrt(ss + 1e-10) * w_ref[...]        # EUP rsqrt


# ---------------------------------------------------------------------------
# The fused SSD kernel (one grid step == one image)
# ---------------------------------------------------------------------------
def _ssd_kernel(
    x_ref,
    w0_ref, b0_ref,
    w3_ref, b3_ref, l2w_ref,
    w6_ref, b6_ref,
    we0_ref, be0_ref, we1_ref, be1_ref,
    we2_ref, be2_ref, we3_ref, be3_ref,
    wh0_ref, bh0_ref, wh1_ref, bh1_ref,
    wh2_ref, bh2_ref, wh3_ref, bh3_ref,
    out_ref,
    pad_ref, s_ref,
):
    # Zero the staging scratch (top border rows in particular are never written
    # again); tails are re-zeroed on every _stage call.
    pad_ref[...] = jnp.zeros(pad_ref.shape, pad_ref.dtype)

    # Edge masks, built once per resolution and reused by every conv there.
    m16 = _edge_masks(16, 16)
    m8 = _edge_masks(8, 8)
    m4 = _edge_masks(4, 4)
    m2 = _edge_masks(2, 2)

    x = x_ref[...]                                                 # (256, 4)

    # --- backbone chunk 1 (vgg[:23] analogue) ---
    _stage(pad_ref, x, m16)
    y = _conv3x3(pad_ref, s_ref, w0_ref, b0_ref, 16, 16, 4, True)  # (256, 8)
    p = _maxpool2x2(pad_ref, y, 16, 16)                            # (64, 8)
    _stage(pad_ref, p, m8)
    y = _conv3x3(pad_ref, s_ref, w3_ref, b3_ref, 8, 8, 8, True)    # (64, 16)
    s0 = _l2norm(y, l2w_ref)                                       # source 0

    # --- backbone chunk 2 (vgg[23:] analogue) ---
    p = _maxpool2x2(pad_ref, y, 8, 8)                              # (16, 16)
    _stage(pad_ref, p, m4)
    s1 = _conv3x3(pad_ref, s_ref, w6_ref, b6_ref, 4, 4, 16, True)  # (16, 32) source 1

    # --- extras: relu after each; sources at odd k (VGG backbone) ---
    y = _conv1x1(s1, we0_ref, be0_ref, True)                       # (16, 8)
    _stage(pad_ref, y, m4)
    y = _conv3x3(pad_ref, s_ref, we1_ref, be1_ref, 4, 4, 8, True)  # (16, 16)
    s2 = _stride2_pick(pad_ref, y, 4, 4)                           # (4, 16) source 2
    y = _conv1x1(s2, we2_ref, be2_ref, True)                       # (4, 8)
    _stage(pad_ref, y, m2)
    y = _conv3x3(pad_ref, s_ref, we3_ref, be3_ref, 2, 2, 8, True)  # (4, 16)
    s3 = _stride2_pick(pad_ref, y, 2, 2)                           # (1, 16) source 3

    # --- fused loc+conf heads (Cout zero-padded to 128 -> lane-dense stores) ---
    _stage(pad_ref, s0, m8)
    out_ref[0:64, :] = _conv3x3(pad_ref, s_ref, wh0_ref, bh0_ref, 8, 8, 16, False)
    _stage(pad_ref, s1, m4)
    out_ref[64:80, :] = _conv3x3(pad_ref, s_ref, wh1_ref, bh1_ref, 4, 4, 32, False)
    _stage(pad_ref, s2, m2)
    h2 = _conv3x3(pad_ref, s_ref, wh2_ref, bh2_ref, 2, 2, 16, False)   # (4, 128)
    # 1x1 source: only the centre tap of the padded 3x3 head touches it.
    h3 = jnp.dot(s3.astype(BF16), wh3_ref[4 * 16:5 * 16, :],
                 preferred_element_type=jnp.float32) + bh3_ref[...]    # (1, 128)
    out_ref[80:88, :] = jnp.concatenate(
        [h2, h3, jnp.zeros((3, HEAD_COUT), jnp.float32)], axis=0)


# ---------------------------------------------------------------------------
# Parameters (deterministic, synthetic) — pre-packed into kernel layout
# ---------------------------------------------------------------------------
def _init_conv(key, cin, cout, k):
    k1, k2 = jax.random.split(key)
    fan_in = cin * k * k
    w = jax.random.normal(k1, (cout, cin, k, k), jnp.float32) / jnp.sqrt(float(fan_in))
    b = jax.random.normal(k2, (cout,), jnp.float32) * 0.01
    return w, b


def _pack3x3(w_oihw):
    # (Cout, Cin, 3, 3) -> (9*Cin, Cout) bf16; row index = t*Cin + c with
    # tap t = (dy+1)*3 + (dx+1), matching the im2col staging order.
    cout, cin = w_oihw.shape[0], w_oihw.shape[1]
    w = jnp.transpose(w_oihw, (2, 3, 1, 0)).reshape(9 * cin, cout)
    return w.astype(BF16)


def _pack1x1(w_oihw):
    return jnp.transpose(w_oihw[:, :, 0, 0], (1, 0)).astype(BF16)   # (Cin, Cout)


def make_params(key):
    keys = jax.random.split(key, 16)
    raw = {}
    raw["vgg0"] = _init_conv(keys[0], 4, 8, 3)
    raw["vgg3"] = _init_conv(keys[1], 8, 16, 3)
    raw["vgg6"] = _init_conv(keys[2], 16, 32, 3)
    raw["ex0"] = _init_conv(keys[3], 32, 8, 1)
    raw["ex1"] = _init_conv(keys[4], 8, 16, 3)
    raw["ex2"] = _init_conv(keys[5], 16, 8, 1)
    raw["ex3"] = _init_conv(keys[6], 8, 16, 3)
    src_ch = [16, 32, 16, 16]
    for i, (c, m) in enumerate(zip(src_ch, MBOX)):
        raw[f"loc{i}"] = _init_conv(keys[7 + i], c, m * 4, 3)
        raw[f"conf{i}"] = _init_conv(keys[11 + i], c, m * NUM_CLASSES, 3)

    p = {}
    for name in ("vgg0", "vgg3", "vgg6", "ex1", "ex3"):
        w, b = raw[name]
        p[name] = (_pack3x3(w), b.reshape(1, -1))
    for name in ("ex0", "ex2"):
        w, b = raw[name]
        p[name] = (_pack1x1(w), b.reshape(1, -1))
    # fused loc+conf heads: concat along Cout (loc first), pad Cout to 128
    for i in range(4):
        wl, bl = raw[f"loc{i}"]
        wc, bc = raw[f"conf{i}"]
        w = _pack3x3(jnp.concatenate([wl, wc], axis=0))
        b = jnp.concatenate([bl, bc]).reshape(1, -1)
        cols = w.shape[1]
        p[f"head{i}"] = (jnp.pad(w, ((0, 0), (0, HEAD_COUT - cols))),
                         jnp.pad(b, ((0, 0), (0, HEAD_COUT - cols))))
    # L2Norm(C=16, scale=20) — weight initialized to the scale constant
    p["l2norm_w"] = jnp.full((1, 16), 20.0, jnp.float32)
    return p


def make_priors():
    # Deterministic PriorBox stand-in: [cx, cy, w, h] per anchor, normalized.
    priors = []
    for f, m in zip(FEAT_SIZES, MBOX):
        for i in range(f):
            for j in range(f):
                cx = (j + 0.5) / f
                cy = (i + 0.5) / f
                for a in range(m):
                    s = (a + 1.0) / (m + 1.0)
                    priors.append([cx, cy, s, s])
    return jnp.clip(jnp.asarray(priors, jnp.float32), 0.0, 1.0)


# ---------------------------------------------------------------------------
# SSD forward (phase == 'train')
# ---------------------------------------------------------------------------
@jax.jit
def ssd_forward(params, x_nchw):
    B = x_nchw.shape[0]
    # NCHW -> NHWC -> flat (B*H*W, C) slab (channels on the lane axis).
    x = jnp.transpose(x_nchw, (0, 2, 3, 1)).astype(jnp.float32)
    x = x.reshape(B * IMG * IMG, IN_CH)

    inputs = [
        x,
        params["vgg0"][0], params["vgg0"][1],
        params["vgg3"][0], params["vgg3"][1], params["l2norm_w"],
        params["vgg6"][0], params["vgg6"][1],
        params["ex0"][0], params["ex0"][1],
        params["ex1"][0], params["ex1"][1],
        params["ex2"][0], params["ex2"][1],
        params["ex3"][0], params["ex3"][1],
        params["head0"][0], params["head0"][1],
        params["head1"][0], params["head1"][1],
        params["head2"][0], params["head2"][1],
        params["head3"][0], params["head3"][1],
    ]

    in_specs = [pl.BlockSpec((IMG * IMG, IN_CH), lambda b: (b, 0))]
    in_specs += [pl.BlockSpec(a.shape, lambda b: (0, 0)) for a in inputs[1:]]

    out = pl.pallas_call(
        _ssd_kernel,
        out_shape=jax.ShapeDtypeStruct((B * OUT_ROWS, HEAD_COUT), jnp.float32),
        grid_spec=pltpu.PrefetchScalarGridSpec(
            num_scalar_prefetch=0,
            grid=(B,),
            in_specs=in_specs,
            out_specs=pl.BlockSpec((OUT_ROWS, HEAD_COUT), lambda b: (b, 0)),
            scratch_shapes=[
                pltpu.VMEM((2 * PAD + IMG * IMG, 3 * CMAX), jnp.float32),  # padded stage
                pltpu.VMEM((IMG * IMG, 9 * CMAX), BF16),                   # im2col stage
            ],
        ),
        compiler_params=pltpu.CompilerParams(
            dimension_semantics=("parallel",),
            vmem_limit_bytes=16 * 1024 * 1024,
        ),
    )(*inputs)

    # Split the fused (loc | conf | zero-pad) lanes and flatten exactly like the
    # reference permute(0,2,3,1).view(B,-1) + cat.
    out = out.reshape(B, OUT_ROWS, HEAD_COUT)
    locs, confs = [], []
    row = 0
    for f, m in zip(FEAT_SIZES, MBOX):
        n = f * f
        h = out[:, row:row + n, :]
        locs.append(h[:, :, :m * 4].reshape(B, -1))
        confs.append(h[:, :, m * 4:m * (4 + NUM_CLASSES)].reshape(B, -1))
        row += n
    loc = jnp.concatenate(locs, axis=1).reshape(B, -1, 4)
    conf = jnp.concatenate(confs, axis=1).reshape(B, -1, NUM_CLASSES)
    return loc, conf, make_priors()


# ---------------------------------------------------------------------------
if __name__ == "__main__":
    key = jax.random.PRNGKey(0)
    pkey, xkey = jax.random.split(key)
    params = make_params(pkey)
    x = jax.random.normal(xkey, (2, IN_CH, IMG, IMG), jnp.float32)   # NCHW input

    loc, conf, priors = ssd_forward(params, x)
    jax.block_until_ready((loc, conf, priors))

    n_priors = sum(f * f * m for f, m in zip(FEAT_SIZES, MBOX))
    assert loc.shape == (2, n_priors, 4), loc.shape
    assert conf.shape == (2, n_priors, NUM_CLASSES), conf.shape
    assert priors.shape == (n_priors, 4), priors.shape
    assert bool(jnp.all(jnp.isfinite(loc))) and bool(jnp.all(jnp.isfinite(conf)))
    print("KERNEL_OK")
</pallas_src>

<mosaic_0001>
module attributes {stable_mosaic.version = 11 : i64} {
  func.func @_ssd_kernel(%arg0: i32, %arg1: memref<256x4xf32, #tpu.memory_space<vmem>>, %arg2: memref<36x8xbf16, #tpu.memory_space<vmem>>, %arg3: memref<1x8xf32, #tpu.memory_space<vmem>>, %arg4: memref<72x16xbf16, #tpu.memory_space<vmem>>, %arg5: memref<1x16xf32, #tpu.memory_space<vmem>>, %arg6: memref<1x16xf32, #tpu.memory_space<vmem>>, %arg7: memref<144x32xbf16, #tpu.memory_space<vmem>>, %arg8: memref<1x32xf32, #tpu.memory_space<vmem>>, %arg9: memref<32x8xbf16, #tpu.memory_space<vmem>>, %arg10: memref<1x8xf32, #tpu.memory_space<vmem>>, %arg11: memref<72x16xbf16, #tpu.memory_space<vmem>>, %arg12: memref<1x16xf32, #tpu.memory_space<vmem>>, %arg13: memref<16x8xbf16, #tpu.memory_space<vmem>>, %arg14: memref<1x8xf32, #tpu.memory_space<vmem>>, %arg15: memref<72x16xbf16, #tpu.memory_space<vmem>>, %arg16: memref<1x16xf32, #tpu.memory_space<vmem>>, %arg17: memref<144x128xbf16, #tpu.memory_space<vmem>>, %arg18: memref<1x128xf32, #tpu.memory_space<vmem>>, %arg19: memref<288x128xbf16, #tpu.memory_space<vmem>>, %arg20: memref<1x128xf32, #tpu.memory_space<vmem>>, %arg21: memref<144x128xbf16, #tpu.memory_space<vmem>>, %arg22: memref<1x128xf32, #tpu.memory_space<vmem>>, %arg23: memref<144x128xbf16, #tpu.memory_space<vmem>>, %arg24: memref<1x128xf32, #tpu.memory_space<vmem>>, %arg25: memref<88x128xf32, #tpu.memory_space<vmem>>, %arg26: memref<304x96xf32, #tpu.memory_space<vmem>>, %arg27: memref<256x288xbf16, #tpu.memory_space<vmem>>) attributes {dimension_semantics = [#tpu.dimension_semantics<parallel>], iteration_bounds = array<i64: 2>, scalar_prefetch = 0 : i64, scratch_operands = 2 : i64, tpu.core_type = #tpu.core_type<tc>, window_params = [{transform_indices = @transform_0, window_bounds = array<i64: 256, 4>}, {pipeline_mode = #tpu.pipeline_mode<synchronous>, transform_indices = @transform_1, window_bounds = array<i64: 36, 8>}, {pipeline_mode = #tpu.pipeline_mode<synchronous>, transform_indices = @transform_2, window_bounds = array<i64: 1, 8>}, {pipeline_mode = #tpu.pipeline_mode<synchronous>, transform_indices = @transform_3, window_bounds = array<i64: 72, 16>}, {pipeline_mode = #tpu.pipeline_mode<synchronous>, transform_indices = @transform_4, window_bounds = array<i64: 1, 16>}, {pipeline_mode = #tpu.pipeline_mode<synchronous>, transform_indices = @transform_5, window_bounds = array<i64: 1, 16>}, {pipeline_mode = #tpu.pipeline_mode<synchronous>, transform_indices = @transform_6, window_bounds = array<i64: 144, 32>}, {pipeline_mode = #tpu.pipeline_mode<synchronous>, transform_indices = @transform_7, window_bounds = array<i64: 1, 32>}, {pipeline_mode = #tpu.pipeline_mode<synchronous>, transform_indices = @transform_8, window_bounds = array<i64: 32, 8>}, {pipeline_mode = #tpu.pipeline_mode<synchronous>, transform_indices = @transform_9, window_bounds = array<i64: 1, 8>}, {pipeline_mode = #tpu.pipeline_mode<synchronous>, transform_indices = @transform_10, window_bounds = array<i64: 72, 16>}, {pipeline_mode = #tpu.pipeline_mode<synchronous>, transform_indices = @transform_11, window_bounds = array<i64: 1, 16>}, {pipeline_mode = #tpu.pipeline_mode<synchronous>, transform_indices = @transform_12, window_bounds = array<i64: 16, 8>}, {pipeline_mode = #tpu.pipeline_mode<synchronous>, transform_indices = @transform_13, window_bounds = array<i64: 1, 8>}, {pipeline_mode = #tpu.pipeline_mode<synchronous>, transform_indices = @transform_14, window_bounds = array<i64: 72, 16>}, {pipeline_mode = #tpu.pipeline_mode<synchronous>, transform_indices = @transform_15, window_bounds = array<i64: 1, 16>}, {pipeline_mode = #tpu.pipeline_mode<synchronous>, transform_indices = @transform_16, window_bounds = array<i64: 144, 128>}, {pipeline_mode = #tpu.pipeline_mode<synchronous>, transform_indices = @transform_17, window_bounds = array<i64: 1, 128>}, {pipeline_mode = #tpu.pipeline_mode<synchronous>, transform_indices = @transform_18, window_bounds = array<i64: 288, 128>}, {pipeline_mode = #tpu.pipeline_mode<synchronous>, transform_indices = @transform_19, window_bounds = array<i64: 1, 128>}, {pipeline_mode = #tpu.pipeline_mode<synchronous>, transform_indices = @transform_20, window_bounds = array<i64: 144, 128>}, {pipeline_mode = #tpu.pipeline_mode<synchronous>, transform_indices = @transform_21, window_bounds = array<i64: 1, 128>}, {pipeline_mode = #tpu.pipeline_mode<synchronous>, transform_indices = @transform_22, window_bounds = array<i64: 144, 128>}, {pipeline_mode = #tpu.pipeline_mode<synchronous>, transform_indices = @transform_23, window_bounds = array<i64: 1, 128>}, {transform_indices = @transform_24, window_bounds = array<i64: 88, 128>}]} {
    %cst = arith.constant 0.000000e+00 : f32
    %0 = vector.broadcast %cst : f32 to vector<304x96xf32>
    %c0 = arith.constant 0 : index
    %c0_0 = arith.constant 0 : index
    %1 = vector.load %arg26[%c0, %c0_0] : memref<304x96xf32, #tpu.memory_space<vmem>>, vector<304x96xf32>
    tpu.vector_store %arg26[%c0, %c0_0], %0 {strides = array<i32>} : memref<304x96xf32, #tpu.memory_space<vmem>>, vector<304x96xf32>,
    %2 = tpu.iota {dimensions = array<i32: 0>} : vector<256x1xi32>
    %c15_i32 = arith.constant 15 : i32
    %3 = vector.broadcast %c15_i32 : i32 to vector<256x1xi32>
    %4 = arith.andi %2, %3 : vector<256x1xi32>
    %c0_i32 = arith.constant 0 : i32
    %5 = vector.broadcast %c0_i32 : i32 to vector<256x1xi32>
    %6 = arith.cmpi ne, %4, %5 : vector<256x1xi32>
    %7 = arith.extui %6 : vector<256x1xi1> to vector<256x1xi32>
    %8 = arith.sitofp %7 : vector<256x1xi32> to vector<256x1xf32>
    %c15_i32_1 = arith.constant 15 : i32
    %9 = vector.broadcast %c15_i32_1 : i32 to vector<256x1xi32>
    %10 = arith.cmpi ne, %4, %9 : vector<256x1xi32>
    %11 = arith.extui %10 : vector<256x1xi1> to vector<256x1xi32>
    %12 = arith.sitofp %11 : vector<256x1xi32> to vector<256x1xf32>
    %13 = tpu.iota {dimensions = array<i32: 0>} : vector<64x1xi32>
    %c7_i32 = arith.constant 7 : i32
    %14 = vector.broadcast %c7_i32 : i32 to vector<64x1xi32>
    %15 = arith.andi %13, %14 : vector<64x1xi32>
    %c0_i32_2 = arith.constant 0 : i32
    %16 = vector.broadcast %c0_i32_2 : i32 to vector<64x1xi32>
    %17 = arith.cmpi ne, %15, %16 : vector<64x1xi32>
    %18 = arith.extui %17 : vector<64x1xi1> to vector<64x1xi32>
    %19 = arith.sitofp %18 : vector<64x1xi32> to vector<64x1xf32>
    %c7_i32_3 = arith.constant 7 : i32
    %20 = vector.broadcast %c7_i32_3 : i32 to vector<64x1xi32>
    %21 = arith.cmpi ne, %15, %20 : vector<64x1xi32>
    %22 = arith.extui %21 : vector<64x1xi1> to vector<64x1xi32>
    %23 = arith.sitofp %22 : vector<64x1xi32> to vector<64x1xf32>
    %24 = tpu.iota {dimensions = array<i32: 0>} : vector<16x1xi32>
    %c3_i32 = arith.constant 3 : i32
    %25 = vector.broadcast %c3_i32 : i32 to vector<16x1xi32>
    %26 = arith.andi %24, %25 : vector<16x1xi32>
    %c0_i32_4 = arith.constant 0 : i32
    %27 = vector.broadcast %c0_i32_4 : i32 to vector<16x1xi32>
    %28 = arith.cmpi ne, %26, %27 : vector<16x1xi32>
    %29 = arith.extui %28 : vector<16x1xi1> to vector<16x1xi32>
    %30 = arith.sitofp %29 : vector<16x1xi32> to vector<16x1xf32>
    %c3_i32_5 = arith.constant 3 : i32
    %31 = vector.broadcast %c3_i32_5 : i32 to vector<16x1xi32>
    %32 = arith.cmpi ne, %26, %31 : vector<16x1xi32>
    %33 = arith.extui %32 : vector<16x1xi1> to vector<16x1xi32>
    %34 = arith.sitofp %33 : vector<16x1xi32> to vector<16x1xf32>
    %35 = tpu.iota {dimensions = array<i32: 0>} : vector<4x1xi32>
    %c1_i32 = arith.constant 1 : i32
    %36 = vector.broadcast %c1_i32 : i32 to vector<4x1xi32>
    %37 = arith.andi %35, %36 : vector<4x1xi32>
    %c0_i32_6 = arith.constant 0 : i32
    %38 = vector.broadcast %c0_i32_6 : i32 to vector<4x1xi32>
    %39 = arith.cmpi ne, %37, %38 : vector<4x1xi32>
    %40 = arith.extui %39 : vector<4x1xi1> to vector<4x1xi32>
    %41 = arith.sitofp %40 : vector<4x1xi32> to vector<4x1xf32>
    %c1_i32_7 = arith.constant 1 : i32
    %42 = vector.broadcast %c1_i32_7 : i32 to vector<4x1xi32>
    %43 = arith.cmpi ne, %37, %42 : vector<4x1xi32>
    %44 = arith.extui %43 : vector<4x1xi1> to vector<4x1xi32>
    %45 = arith.sitofp %44 : vector<4x1xi32> to vector<4x1xf32>
    %c0_8 = arith.constant 0 : index
    %c0_9 = arith.constant 0 : index
    %46 = vector.load %arg1[%c0_8, %c0_9] : memref<256x4xf32, #tpu.memory_space<vmem>>, vector<256x4xf32>
    %c24 = arith.constant 24 : index
    %c0_10 = arith.constant 0 : index
    %47 = vector.load %arg26[%c24, %c0_10] : memref<304x96xf32, #tpu.memory_space<vmem>>, vector<256x4xf32>
    tpu.vector_store %arg26[%c24, %c0_10], %46 {strides = array<i32>} : memref<304x96xf32, #tpu.memory_space<vmem>>, vector<256x4xf32>,
    %48 = vector.broadcast %8 : vector<256x1xf32> to vector<256x4xf32>
    %49 = arith.mulf %46, %48 : vector<256x4xf32>
    %c24_11 = arith.constant 24 : index
    %c32 = arith.constant 32 : index
    %50 = vector.load %arg26[%c24_11, %c32] : memref<304x96xf32, #tpu.memory_space<vmem>>, vector<256x4xf32>
    tpu.vector_store %arg26[%c24_11, %c32], %49 {strides = array<i32>} : memref<304x96xf32, #tpu.memory_space<vmem>>, vector<256x4xf32>,
    %51 = vector.broadcast %12 : vector<256x1xf32> to vector<256x4xf32>
    %52 = arith.mulf %46, %51 : vector<256x4xf32>
    %c24_12 = arith.constant 24 : index
    %c64 = arith.constant 64 : index
    %53 = vector.load %arg26[%c24_12, %c64] : memref<304x96xf32, #tpu.memory_space<vmem>>, vector<256x4xf32>
    tpu.vector_store %arg26[%c24_12, %c64], %52 {strides = array<i32>} : memref<304x96xf32, #tpu.memory_space<vmem>>, vector<256x4xf32>,
    %cst_13 = arith.constant 0.000000e+00 : f32
    %54 = vector.broadcast %cst_13 : f32 to vector<24x96xf32>
    %c280 = arith.constant 280 : index
    %c0_14 = arith.constant 0 : index
    %55 = vector.load %arg26[%c280, %c0_14] : memref<304x96xf32, #tpu.memory_space<vmem>>, vector<24x96xf32>
    tpu.vector_store %arg26[%c280, %c0_14], %54 {strides = array<i32>} : memref<304x96xf32, #tpu.memory_space<vmem>>, vector<24x96xf32>,
    %c7 = arith.constant 7 : index
    %c64_15 = arith.constant 64 : index
    %56 = vector.load %arg26[%c7, %c64_15] : memref<304x96xf32, #tpu.memory_space<vmem>>, vector<256x4xf32>
    %57 = arith.truncf %56 : vector<256x4xf32> to vector<256x4xbf16>
    %c0_16 = arith.constant 0 : index
    %c0_17 = arith.constant 0 : index
    %58 = vector.load %arg27[%c0_16, %c0_17] : memref<256x288xbf16, #tpu.memory_space<vmem>>, vector<256x4xbf16>
    tpu.vector_store %arg27[%c0_16, %c0_17], %57 {strides = array<i32>} : memref<256x288xbf16, #tpu.memory_space<vmem>>, vector<256x4xbf16>,
    %c8 = arith.constant 8 : index
    %c0_18 = arith.constant 0 : index
    %59 = vector.load %arg26[%c8, %c0_18] : memref<304x96xf32, #tpu.memory_space<vmem>>, vector<256x4xf32>
    %60 = arith.truncf %59 : vector<256x4xf32> to vector<256x4xbf16>
    %c0_19 = arith.constant 0 : index
    %c4 = arith.constant 4 : index
    %61 = vector.load %arg27[%c0_19, %c4] : memref<256x288xbf16, #tpu.memory_space<vmem>>, vector<256x4xbf16>
    tpu.vector_store %arg27[%c0_19, %c4], %60 {strides = array<i32>} : memref<256x288xbf16, #tpu.memory_space<vmem>>, vector<256x4xbf16>,
    %c9 = arith.constant 9 : index
    %c32_20 = arith.constant 32 : index
    %62 = vector.load %arg26[%c9, %c32_20] : memref<304x96xf32, #tpu.memory_space<vmem>>, vector<256x4xf32>
    %63 = arith.truncf %62 : vector<256x4xf32> to vector<256x4xbf16>
    %c0_21 = arith.constant 0 : index
    %c8_22 = arith.constant 8 : index
    %64 = vector.load %arg27[%c0_21, %c8_22] : memref<256x288xbf16, #tpu.memory_space<vmem>>, vector<256x4xbf16>
    tpu.vector_store %arg27[%c0_21, %c8_22], %63 {strides = array<i32>} : memref<256x288xbf16, #tpu.memory_space<vmem>>, vector<256x4xbf16>,
    %c23 = arith.constant 23 : index
    %c64_23 = arith.constant 64 : index
    %65 = vector.load %arg26[%c23, %c64_23] : memref<304x96xf32, #tpu.memory_space<vmem>>, vector<256x4xf32>
    %66 = arith.truncf %65 : vector<256x4xf32> to vector<256x4xbf16>
    %c0_24 = arith.constant 0 : index
    %c12 = arith.constant 12 : index
    %67 = vector.load %arg27[%c0_24, %c12] : memref<256x288xbf16, #tpu.memory_space<vmem>>, vector<256x4xbf16>
    tpu.vector_store %arg27[%c0_24, %c12], %66 {strides = array<i32>} : memref<256x288xbf16, #tpu.memory_space<vmem>>, vector<256x4xbf16>,
    %c24_25 = arith.constant 24 : index
    %c0_26 = arith.constant 0 : index
    %68 = vector.load %arg26[%c24_25, %c0_26] : memref<304x96xf32, #tpu.memory_space<vmem>>, vector<256x4xf32>
    %69 = arith.truncf %68 : vector<256x4xf32> to vector<256x4xbf16>
    %c0_27 = arith.constant 0 : index
    %c16 = arith.constant 16 : index
    %70 = vector.load %arg27[%c0_27, %c16] : memref<256x288xbf16, #tpu.memory_space<vmem>>, vector<256x4xbf16>
    tpu.vector_store %arg27[%c0_27, %c16], %69 {strides = array<i32>} : memref<256x288xbf16, #tpu.memory_space<vmem>>, vector<256x4xbf16>,
    %c25 = arith.constant 25 : index
    %c32_28 = arith.constant 32 : index
    %71 = vector.load %arg26[%c25, %c32_28] : memref<304x96xf32, #tpu.memory_space<vmem>>, vector<256x4xf32>
    %72 = arith.truncf %71 : vector<256x4xf32> to vector<256x4xbf16>
    %c0_29 = arith.constant 0 : index
    %c20 = arith.constant 20 : index
    %73 = vector.load %arg27[%c0_29, %c20] : memref<256x288xbf16, #tpu.memory_space<vmem>>, vector<256x4xbf16>
    tpu.vector_store %arg27[%c0_29, %c20], %72 {strides = array<i32>} : memref<256x288xbf16, #tpu.memory_space<vmem>>, vector<256x4xbf16>,
    %c39 = arith.constant 39 : index
    %c64_30 = arith.constant 64 : index
    %74 = vector.load %arg26[%c39, %c64_30] : memref<304x96xf32, #tpu.memory_space<vmem>>, vector<256x4xf32>
    %75 = arith.truncf %74 : vector<256x4xf32> to vector<256x4xbf16>
    %c0_31 = arith.constant 0 : index
    %c24_32 = arith.constant 24 : index
    %76 = vector.load %arg27[%c0_31, %c24_32] : memref<256x288xbf16, #tpu.memory_space<vmem>>, vector<256x4xbf16>
    tpu.vector_store %arg27[%c0_31, %c24_32], %75 {strides = array<i32>} : memref<256x288xbf16, #tpu.memory_space<vmem>>, vector<256x4xbf16>,
    %c40 = arith.constant 40 : index
    %c0_33 = arith.constant 0 : index
    %77 = vector.load %arg26[%c40, %c0_33] : memref<304x96xf32, #tpu.memory_space<vmem>>, vector<256x4xf32>
    %78 = arith.truncf %77 : vector<256x4xf32> to vector<256x4xbf16>
    %c0_34 = arith.constant 0 : index
    %c28 = arith.constant 28 : index
    %79 = vector.load %arg27[%c0_34, %c28] : memref<256x288xbf16, #tpu.memory_space<vmem>>, vector<256x4xbf16>
    tpu.vector_store %arg27[%c0_34, %c28], %78 {strides = array<i32>} : memref<256x288xbf16, #tpu.memory_space<vmem>>, vector<256x4xbf16>,
    %c41 = arith.constant 41 : index
    %c32_35 = arith.constant 32 : index
    %80 = vector.load %arg26[%c41, %c32_35] : memref<304x96xf32, #tpu.memory_space<vmem>>, vector<256x4xf32>
    %81 = arith.truncf %80 : vector<256x4xf32> to vector<256x4xbf16>
    %c0_36 = arith.constant 0 : index
    %c32_37 = arith.constant 32 : index
    %82 = vector.load %arg27[%c0_36, %c32_37] : memref<256x288xbf16, #tpu.memory_space<vmem>>, vector<256x4xbf16>
    tpu.vector_store %arg27[%c0_36, %c32_37], %81 {strides = array<i32>} : memref<256x288xbf16, #tpu.memory_space<vmem>>, vector<256x4xbf16>,
    %c0_38 = arith.constant 0 : index
    %c0_39 = arith.constant 0 : index
    %83 = vector.load %arg27[%c0_38, %c0_39] : memref<256x288xbf16, #tpu.memory_space<vmem>>, vector<256x36xbf16>
    %c0_40 = arith.constant 0 : index
    %c0_41 = arith.constant 0 : index
    %84 = vector.load %arg2[%c0_40, %c0_41] : memref<36x8xbf16, #tpu.memory_space<vmem>>, vector<36x8xbf16>
    %cst_42 = arith.constant dense<0.000000e+00> : vector<256x8xf32>
    %85 = tpu.matmul %83, %84, %cst_42 {dimension_numbers = #tpu.dot_dimension_numbers<[1], [0], [0], [1], [0, 0, 1, 1], [], []>} : vector<256x36xbf16>, vector<36x8xbf16>, vector<256x8xf32> -> vector<256x8xf32>
    %c0_43 = arith.constant 0 : index
    %c0_44 = arith.constant 0 : index
    %86 = vector.load %arg3[%c0_43, %c0_44] : memref<1x8xf32, #tpu.memory_space<vmem>>, vector<1x8xf32>
    %87 = vector.broadcast %86 : vector<1x8xf32> to vector<256x8xf32>
    %88 = arith.addf %85, %87 : vector<256x8xf32>
    %cst_45 = arith.constant 0.000000e+00 : f32
    %89 = vector.broadcast %cst_45 : f32 to vector<256x8xf32>
    %90 = arith.maximumf %88, %89 : vector<256x8xf32>
    %c24_46 = arith.constant 24 : index
    %c0_47 = arith.constant 0 : index
    %91 = vector.load %arg26[%c24_46, %c0_47] : memref<304x96xf32, #tpu.memory_space<vmem>>, vector<256x8xf32>
    tpu.vector_store %arg26[%c24_46, %c0_47], %90 {strides = array<i32>} : memref<304x96xf32, #tpu.memory_space<vmem>>, vector<256x8xf32>,
    %c24_48 = arith.constant 24 : index
    %c0_49 = arith.constant 0 : index
    %92 = tpu.strided_load %arg26[%c24_48, %c0_49] {strides = array<i32: 2, 1>} : memref<304x96xf32, #tpu.memory_space<vmem>>, vector<8x8xf32>
    %c25_50 = arith.constant 25 : index
    %c0_51 = arith.constant 0 : index
    %93 = tpu.strided_load %arg26[%c25_50, %c0_51] {strides = array<i32: 2, 1>} : memref<304x96xf32, #tpu.memory_space<vmem>>, vector<8x8xf32>
    %c40_52 = arith.constant 40 : index
    %c0_53 = arith.constant 0 : index
    %94 = tpu.strided_load %arg26[%c40_52, %c0_53] {strides = array<i32: 2, 1>} : memref<304x96xf32, #tpu.memory_space<vmem>>, vector<8x8xf32>
    %c41_54 = arith.constant 41 : index
    %c0_55 = arith.constant 0 : index
    %95 = tpu.strided_load %arg26[%c41_54, %c0_55] {strides = array<i32: 2, 1>} : memref<304x96xf32, #tpu.memory_space<vmem>>, vector<8x8xf32>
    %96 = arith.maximumf %92, %93 : vector<8x8xf32>
    %97 = arith.maximumf %94, %95 : vector<8x8xf32>
    %98 = arith.maximumf %96, %97 : vector<8x8xf32>
    %c56 = arith.constant 56 : index
    %c0_56 = arith.constant 0 : index
    %99 = tpu.strided_load %arg26[%c56, %c0_56] {strides = array<i32: 2, 1>} : memref<304x96xf32, #tpu.memory_space<vmem>>, vector<8x8xf32>
    %c57 = arith.constant 57 : index
    %c0_57 = arith.constant 0 : index
    %100 = tpu.strided_load %arg26[%c57, %c0_57] {strides = array<i32: 2, 1>} : memref<304x96xf32, #tpu.memory_space<vmem>>, vector<8x8xf32>
    %c72 = arith.constant 72 : index
    %c0_58 = arith.constant 0 : index
    %101 = tpu.strided_load %arg26[%c72, %c0_58] {strides = array<i32: 2, 1>} : memref<304x96xf32, #tpu.memory_space<vmem>>, vector<8x8xf32>
    %c73 = arith.constant 73 : index
    %c0_59 = arith.constant 0 : index
    %102 = tpu.strided_load %arg26[%c73, %c0_59] {strides = array<i32: 2, 1>} : memref<304x96xf32, #tpu.memory_space<vmem>>, vector<8x8xf32>
    %103 = arith.maximumf %99, %100 : vector<8x8xf32>
    %104 = arith.maximumf %101, %102 : vector<8x8xf32>
    %105 = arith.maximumf %103, %104 : vector<8x8xf32>
    %c88 = arith.constant 88 : index
    %c0_60 = arith.constant 0 : index
    %106 = tpu.strided_load %arg26[%c88, %c0_60] {strides = array<i32: 2, 1>} : memref<304x96xf32, #tpu.memory_space<vmem>>, vector<8x8xf32>
    %c89 = arith.constant 89 : index
    %c0_61 = arith.constant 0 : index
    %107 = tpu.strided_load %arg26[%c89, %c0_61] {strides = array<i32: 2, 1>} : memref<304x96xf32, #tpu.memory_space<vmem>>, vector<8x8xf32>
    %c104 = arith.constant 104 : index
    %c0_62 = arith.constant 0 : index
    %108 = tpu.strided_load %arg26[%c104, %c0_62] {strides = array<i32: 2, 1>} : memref<304x96xf32, #tpu.memory_space<vmem>>, vector<8x8xf32>
    %c105 = arith.constant 105 : index
    %c0_63 = arith.constant 0 : index
    %109 = tpu.strided_load %arg26[%c105, %c0_63] {strides = array<i32: 2, 1>} : memref<304x96xf32, #tpu.memory_space<vmem>>, vector<8x8xf32>
    %110 = arith.maximumf %106, %107 : vector<8x8xf32>
    %111 = arith.maximumf %108, %109 : vector<8x8xf32>
    %112 = arith.maximumf %110, %111 : vector<8x8xf32>
    %c120 = arith.constant 120 : index
    %c0_64 = arith.constant 0 : index
    %113 = tpu.strided_load %arg26[%c120, %c0_64] {strides = array<i32: 2, 1>} : memref<304x96xf32, #tpu.memory_space<vmem>>, vector<8x8xf32>
    %c121 = arith.constant 121 : index
    %c0_65 = arith.constant 0 : index
    %114 = tpu.strided_load %arg26[%c121, %c0_65] {strides = array<i32: 2, 1>} : memref<304x96xf32, #tpu.memory_space<vmem>>, vector<8x8xf32>
    %c136 = arith.constant 136 : index
    %c0_66 = arith.constant 0 : index
    %115 = tpu.strided_load %arg26[%c136, %c0_66] {strides = array<i32: 2, 1>} : memref<304x96xf32, #tpu.memory_space<vmem>>, vector<8x8xf32>
    %c137 = arith.constant 137 : index
    %c0_67 = arith.constant 0 : index
    %116 = tpu.strided_load %arg26[%c137, %c0_67] {strides = array<i32: 2, 1>} : memref<304x96xf32, #tpu.memory_space<vmem>>, vector<8x8xf32>
    %117 = arith.maximumf %113, %114 : vector<8x8xf32>
    %118 = arith.maximumf %115, %116 : vector<8x8xf32>
    %119 = arith.maximumf %117, %118 : vector<8x8xf32>
    %c152 = arith.constant 152 : index
    %c0_68 = arith.constant 0 : index
    %120 = tpu.strided_load %arg26[%c152, %c0_68] {strides = array<i32: 2, 1>} : memref<304x96xf32, #tpu.memory_space<vmem>>, vector<8x8xf32>
    %c153 = arith.constant 153 : index
    %c0_69 = arith.constant 0 : index
    %121 = tpu.strided_load %arg26[%c153, %c0_69] {strides = array<i32: 2, 1>} : memref<304x96xf32, #tpu.memory_space<vmem>>, vector<8x8xf32>
    %c168 = arith.constant 168 : index
    %c0_70 = arith.constant 0 : index
    %122 = tpu.strided_load %arg26[%c168, %c0_70] {strides = array<i32: 2, 1>} : memref<304x96xf32, #tpu.memory_space<vmem>>, vector<8x8xf32>
    %c169 = arith.constant 169 : index
    %c0_71 = arith.constant 0 : index
    %123 = tpu.strided_load %arg26[%c169, %c0_71] {strides = array<i32: 2, 1>} : memref<304x96xf32, #tpu.memory_space<vmem>>, vector<8x8xf32>
    %124 = arith.maximumf %120, %121 : vector<8x8xf32>
    %125 = arith.maximumf %122, %123 : vector<8x8xf32>
    %126 = arith.maximumf %124, %125 : vector<8x8xf32>
    %c184 = arith.constant 184 : index
    %c0_72 = arith.constant 0 : index
    %127 = tpu.strided_load %arg26[%c184, %c0_72] {strides = array<i32: 2, 1>} : memref<304x96xf32, #tpu.memory_space<vmem>>, vector<8x8xf32>
    %c185 = arith.constant 185 : index
    %c0_73 = arith.constant 0 : index
    %128 = tpu.strided_load %arg26[%c185, %c0_73] {strides = array<i32: 2, 1>} : memref<304x96xf32, #tpu.memory_space<vmem>>, vector<8x8xf32>
    %c200 = arith.constant 200 : index
    %c0_74 = arith.constant 0 : index
    %129 = tpu.strided_load %arg26[%c200, %c0_74] {strides = array<i32: 2, 1>} : memref<304x96xf32, #tpu.memory_space<vmem>>, vector<8x8xf32>
    %c201 = arith.constant 201 : index
    %c0_75 = arith.constant 0 : index
    %130 = tpu.strided_load %arg26[%c201, %c0_75] {strides = array<i32: 2, 1>} : memref<304x96xf32, #tpu.memory_space<vmem>>, vector<8x8xf32>
    %131 = arith.maximumf %127, %128 : vector<8x8xf32>
    %132 = arith.maximumf %129, %130 : vector<8x8xf32>
    %133 = arith.maximumf %131, %132 : vector<8x8xf32>
    %c216 = arith.constant 216 : index
    %c0_76 = arith.constant 0 : index
    %134 = tpu.strided_load %arg26[%c216, %c0_76] {strides = array<i32: 2, 1>} : memref<304x96xf32, #tpu.memory_space<vmem>>, vector<8x8xf32>
    %c217 = arith.constant 217 : index
    %c0_77 = arith.constant 0 : index
    %135 = tpu.strided_load %arg26[%c217, %c0_77] {strides = array<i32: 2, 1>} : memref<304x96xf32, #tpu.memory_space<vmem>>, vector<8x8xf32>
    %c232 = arith.constant 232 : index
    %c0_78 = arith.constant 0 : index
    %136 = tpu.strided_load %arg26[%c232, %c0_78] {strides = array<i32: 2, 1>} : memref<304x96xf32, #tpu.memory_space<vmem>>, vector<8x8xf32>
    %c233 = arith.constant 233 : index
    %c0_79 = arith.constant 0 : index
    %137 = tpu.strided_load %arg26[%c233, %c0_79] {strides = array<i32: 2, 1>} : memref<304x96xf32, #tpu.memory_space<vmem>>, vector<8x8xf32>
    %138 = arith.maximumf %134, %135 : vector<8x8xf32>
    %139 = arith.maximumf %136, %137 : vector<8x8xf32>
    %140 = arith.maximumf %138, %139 : vector<8x8xf32>
    %c248 = arith.constant 248 : index
    %c0_80 = arith.constant 0 : index
    %141 = tpu.strided_load %arg26[%c248, %c0_80] {strides = array<i32: 2, 1>} : memref<304x96xf32, #tpu.memory_space<vmem>>, vector<8x8xf32>
    %c249 = arith.constant 249 : index
    %c0_81 = arith.constant 0 : index
    %142 = tpu.strided_load %arg26[%c249, %c0_81] {strides = array<i32: 2, 1>} : memref<304x96xf32, #tpu.memory_space<vmem>>, vector<8x8xf32>
    %c264 = arith.constant 264 : index
    %c0_82 = arith.constant 0 : index
    %143 = tpu.strided_load %arg26[%c264, %c0_82] {strides = array<i32: 2, 1>} : memref<304x96xf32, #tpu.memory_space<vmem>>, vector<8x8xf32>
    %c265 = arith.constant 265 : index
    %c0_83 = arith.constant 0 : index
    %144 = tpu.strided_load %arg26[%c265, %c0_83] {strides = array<i32: 2, 1>} : memref<304x96xf32, #tpu.memory_space<vmem>>, vector<8x8xf32>
    %145 = arith.maximumf %141, %142 : vector<8x8xf32>
    %146 = arith.maximumf %143, %144 : vector<8x8xf32>
    %147 = arith.maximumf %145, %146 : vector<8x8xf32>
    %148 = tpu.concatenate %98, %105, %112, %119, %126, %133, %140, %147 in 0 : vector<8x8xf32>, vector<8x8xf32>, vector<8x8xf32>, vector<8x8xf32>, vector<8x8xf32>, vector<8x8xf32>, vector<8x8xf32>, vector<8x8xf32> -> vector<64x8xf32>
    %c24_84 = arith.constant 24 : index
    %c0_85 = arith.constant 0 : index
    %149 = vector.load %arg26[%c24_84, %c0_85] : memref<304x96xf32, #tpu.memory_space<vmem>>, vector<64x8xf32>
    tpu.vector_store %arg26[%c24_84, %c0_85], %148 {strides = array<i32>} : memref<304x96xf32, #tpu.memory_space<vmem>>, vector<64x8xf32>,
    %150 = vector.broadcast %19 : vector<64x1xf32> to vector<64x8xf32>
    %151 = arith.mulf %148, %150 : vector<64x8xf32>
    %c24_86 = arith.constant 24 : index
    %c32_87 = arith.constant 32 : index
    %152 = vector.load %arg26[%c24_86, %c32_87] : memref<304x96xf32, #tpu.memory_space<vmem>>, vector<64x8xf32>
    tpu.vector_store %arg26[%c24_86, %c32_87], %151 {strides = array<i32>} : memref<304x96xf32, #tpu.memory_space<vmem>>, vector<64x8xf32>,
    %153 = vector.broadcast %23 : vector<64x1xf32> to vector<64x8xf32>
    %154 = arith.mulf %148, %153 : vector<64x8xf32>
    %c24_88 = arith.constant 24 : index
    %c64_89 = arith.constant 64 : index
    %155 = vector.load %arg26[%c24_88, %c64_89] : memref<304x96xf32, #tpu.memory_space<vmem>>, vector<64x8xf32>
    tpu.vector_store %arg26[%c24_88, %c64_89], %154 {strides = array<i32>} : memref<304x96xf32, #tpu.memory_space<vmem>>, vector<64x8xf32>,
    %cst_90 = arith.constant 0.000000e+00 : f32
    %156 = vector.broadcast %cst_90 : f32 to vector<24x96xf32>
    %c88_91 = arith.constant 88 : index
    %c0_92 = arith.constant 0 : index
    %157 = vector.load %arg26[%c88_91, %c0_92] : memref<304x96xf32, #tpu.memory_space<vmem>>, vector<24x96xf32>
    tpu.vector_store %arg26[%c88_91, %c0_92], %156 {strides = array<i32>} : memref<304x96xf32, #tpu.memory_space<vmem>>, vector<24x96xf32>,
    %c15 = arith.constant 15 : index
    %c64_93 = arith.constant 64 : index
    %158 = vector.load %arg26[%c15, %c64_93] : memref<304x96xf32, #tpu.memory_space<vmem>>, vector<64x8xf32>
    %159 = arith.truncf %158 : vector<64x8xf32> to vector<64x8xbf16>
    %c0_94 = arith.constant 0 : index
    %c0_95 = arith.constant 0 : index
    %160 = vector.load %arg27[%c0_94, %c0_95] : memref<256x288xbf16, #tpu.memory_space<vmem>>, vector<64x8xbf16>
    tpu.vector_store %arg27[%c0_94, %c0_95], %159 {strides = array<i32>} : memref<256x288xbf16, #tpu.memory_space<vmem>>, vector<64x8xbf16>,
    %c16_96 = arith.constant 16 : index
    %c0_97 = arith.constant 0 : index
    %161 = vector.load %arg26[%c16_96, %c0_97] : memref<304x96xf32, #tpu.memory_space<vmem>>, vector<64x8xf32>
    %162 = arith.truncf %161 : vector<64x8xf32> to vector<64x8xbf16>
    %c0_98 = arith.constant 0 : index
    %c8_99 = arith.constant 8 : index
    %163 = vector.load %arg27[%c0_98, %c8_99] : memref<256x288xbf16, #tpu.memory_space<vmem>>, vector<64x8xbf16>
    tpu.vector_store %arg27[%c0_98, %c8_99], %162 {strides = array<i32>} : memref<256x288xbf16, #tpu.memory_space<vmem>>, vector<64x8xbf16>,
    %c17 = arith.constant 17 : index
    %c32_100 = arith.constant 32 : index
    %164 = vector.load %arg26[%c17, %c32_100] : memref<304x96xf32, #tpu.memory_space<vmem>>, vector<64x8xf32>
    %165 = arith.truncf %164 : vector<64x8xf32> to vector<64x8xbf16>
    %c0_101 = arith.constant 0 : index
    %c16_102 = arith.constant 16 : index
    %166 = vector.load %arg27[%c0_101, %c16_102] : memref<256x288xbf16, #tpu.memory_space<vmem>>, vector<64x8xbf16>
    tpu.vector_store %arg27[%c0_101, %c16_102], %165 {strides = array<i32>} : memref<256x288xbf16, #tpu.memory_space<vmem>>, vector<64x8xbf16>,
    %c23_103 = arith.constant 23 : index
    %c64_104 = arith.constant 64 : index
    %167 = vector.load %arg26[%c23_103, %c64_104] : memref<304x96xf32, #tpu.memory_space<vmem>>, vector<64x8xf32>
    %168 = arith.truncf %167 : vector<64x8xf32> to vector<64x8xbf16>
    %c0_105 = arith.constant 0 : index
    %c24_106 = arith.constant 24 : index
    %169 = vector.load %arg27[%c0_105, %c24_106] : memref<256x288xbf16, #tpu.memory_space<vmem>>, vector<64x8xbf16>
    tpu.vector_store %arg27[%c0_105, %c24_106], %168 {strides = array<i32>} : memref<256x288xbf16, #tpu.memory_space<vmem>>, vector<64x8xbf16>,
    %c24_107 = arith.constant 24 : index
    %c0_108 = arith.constant 0 : index
    %170 = vector.load %arg26[%c24_107, %c0_108] : memref<304x96xf32, #tpu.memory_space<vmem>>, vector<64x8xf32>
    %171 = arith.truncf %170 : vector<64x8xf32> to vector<64x8xbf16>
    %c0_109 = arith.constant 0 : index
    %c32_110 = arith.constant 32 : index
    %172 = vector.load %arg27[%c0_109, %c32_110] : memref<256x288xbf16, #tpu.memory_space<vmem>>, vector<64x8xbf16>
    tpu.vector_store %arg27[%c0_109, %c32_110], %171 {strides = array<i32>} : memref<256x288xbf16, #tpu.memory_space<vmem>>, vector<64x8xbf16>,
    %c25_111 = arith.constant 25 : index
    %c32_112 = arith.constant 32 : index
    %173 = vector.load %arg26[%c25_111, %c32_112] : memref<304x96xf32, #tpu.memory_space<vmem>>, vector<64x8xf32>
    %174 = arith.truncf %173 : vector<64x8xf32> to vector<64x8xbf16>
    %c0_113 = arith.constant 0 : index
    %c40_114 = arith.constant 40 : index
    %175 = vector.load %arg27[%c0_113, %c40_114] : memref<256x288xbf16, #tpu.memory_space<vmem>>, vector<64x8xbf16>
    tpu.vector_store %arg27[%c0_113, %c40_114], %174 {strides = array<i32>} : memref<256x288xbf16, #tpu.memory_space<vmem>>, vector<64x8xbf16>,
    %c31 = arith.constant 31 : index
    %c64_115 = arith.constant 64 : index
    %176 = vector.load %arg26[%c31, %c64_115] : memref<304x96xf32, #tpu.memory_space<vmem>>, vector<64x8xf32>
    %177 = arith.truncf %176 : vector<64x8xf32> to vector<64x8xbf16>
    %c0_116 = arith.constant 0 : index
    %c48 = arith.constant 48 : index
    %178 = vector.load %arg27[%c0_116, %c48] : memref<256x288xbf16, #tpu.memory_space<vmem>>, vector<64x8xbf16>
    tpu.vector_store %arg27[%c0_116, %c48], %177 {strides = array<i32>} : memref<256x288xbf16, #tpu.memory_space<vmem>>, vector<64x8xbf16>,
    %c32_117 = arith.constant 32 : index
    %c0_118 = arith.constant 0 : index
    %179 = vector.load %arg26[%c32_117, %c0_118] : memref<304x96xf32, #tpu.memory_space<vmem>>, vector<64x8xf32>
    %180 = arith.truncf %179 : vector<64x8xf32> to vector<64x8xbf16>
    %c0_119 = arith.constant 0 : index
    %c56_120 = arith.constant 56 : index
    %181 = vector.load %arg27[%c0_119, %c56_120] : memref<256x288xbf16, #tpu.memory_space<vmem>>, vector<64x8xbf16>
    tpu.vector_store %arg27[%c0_119, %c56_120], %180 {strides = array<i32>} : memref<256x288xbf16, #tpu.memory_space<vmem>>, vector<64x8xbf16>,
    %c33 = arith.constant 33 : index
    %c32_121 = arith.constant 32 : index
    %182 = vector.load %arg26[%c33, %c32_121] : memref<304x96xf32, #tpu.memory_space<vmem>>, vector<64x8xf32>
    %183 = arith.truncf %182 : vector<64x8xf32> to vector<64x8xbf16>
    %c0_122 = arith.constant 0 : index
    %c64_123 = arith.constant 64 : index
    %184 = vector.load %arg27[%c0_122, %c64_123] : memref<256x288xbf16, #tpu.memory_space<vmem>>, vector<64x8xbf16>
    tpu.vector_store %arg27[%c0_122, %c64_123], %183 {strides = array<i32>} : memref<256x288xbf16, #tpu.memory_space<vmem>>, vector<64x8xbf16>,
    %c0_124 = arith.constant 0 : index
    %c0_125 = arith.constant 0 : index
    %185 = vector.load %arg27[%c0_124, %c0_125] : memref<256x288xbf16, #tpu.memory_space<vmem>>, vector<64x72xbf16>
    %c0_126 = arith.constant 0 : index
    %c0_127 = arith.constant 0 : index
    %186 = vector.load %arg4[%c0_126, %c0_127] : memref<72x16xbf16, #tpu.memory_space<vmem>>, vector<72x16xbf16>
    %cst_128 = arith.constant dense<0.000000e+00> : vector<64x16xf32>
    %187 = tpu.matmul %185, %186, %cst_128 {dimension_numbers = #tpu.dot_dimension_numbers<[1], [0], [0], [1], [0, 0, 1, 1], [], []>} : vector<64x72xbf16>, vector<72x16xbf16>, vector<64x16xf32> -> vector<64x16xf32>
    %c0_129 = arith.constant 0 : index
    %c0_130 = arith.constant 0 : index
    %188 = vector.load %arg5[%c0_129, %c0_130] : memref<1x16xf32, #tpu.memory_space<vmem>>, vector<1x16xf32>
    %189 = vector.broadcast %188 : vector<1x16xf32> to vector<64x16xf32>
    %190 = arith.addf %187, %189 : vector<64x16xf32>
    %cst_131 = arith.constant 0.000000e+00 : f32
    %191 = vector.broadcast %cst_131 : f32 to vector<64x16xf32>
    %192 = arith.maximumf %190, %191 : vector<64x16xf32>
    %193 = arith.mulf %192, %192 : vector<64x16xf32>
    %cst_132 = arith.constant dense<0.000000e+00> : vector<64xf32>
    %194 = vector.multi_reduction <add>, %193, %cst_132 [1] : vector<64x16xf32> to vector<64xf32>
    %195 = vector.shape_cast %194 : vector<64xf32> to vector<64x1xf32>
    %cst_133 = arith.constant 1.000000e-10 : f32
    %196 = vector.broadcast %cst_133 : f32 to vector<64x1xf32>
    %197 = arith.addf %195, %196 : vector<64x1xf32>
    %198 = math.rsqrt %197 : vector<64x1xf32>
    %199 = vector.broadcast %198 : vector<64x1xf32> to vector<64x16xf32>
    %200 = arith.mulf %192, %199 : vector<64x16xf32>
    %c0_134 = arith.constant 0 : index
    %c0_135 = arith.constant 0 : index
    %201 = vector.load %arg6[%c0_134, %c0_135] : memref<1x16xf32, #tpu.memory_space<vmem>>, vector<1x16xf32>
    %202 = vector.broadcast %201 : vector<1x16xf32> to vector<64x16xf32>
    %203 = arith.mulf %200, %202 : vector<64x16xf32>
    %c24_136 = arith.constant 24 : index
    %c0_137 = arith.constant 0 : index
    %204 = vector.load %arg26[%c24_136, %c0_137] : memref<304x96xf32, #tpu.memory_space<vmem>>, vector<64x16xf32>
    tpu.vector_store %arg26[%c24_136, %c0_137], %192 {strides = array<i32>} : memref<304x96xf32, #tpu.memory_space<vmem>>, vector<64x16xf32>,
    %c24_138 = arith.constant 24 : index
    %c0_139 = arith.constant 0 : index
    %205 = tpu.strided_load %arg26[%c24_138, %c0_139] {strides = array<i32: 2, 1>} : memref<304x96xf32, #tpu.memory_space<vmem>>, vector<4x16xf32>
    %c25_140 = arith.constant 25 : index
    %c0_141 = arith.constant 0 : index
    %206 = tpu.strided_load %arg26[%c25_140, %c0_141] {strides = array<i32: 2, 1>} : memref<304x96xf32, #tpu.memory_space<vmem>>, vector<4x16xf32>
    %c32_142 = arith.constant 32 : index
    %c0_143 = arith.constant 0 : index
    %207 = tpu.strided_load %arg26[%c32_142, %c0_143] {strides = array<i32: 2, 1>} : memref<304x96xf32, #tpu.memory_space<vmem>>, vector<4x16xf32>
    %c33_144 = arith.constant 33 : index
    %c0_145 = arith.constant 0 : index
    %208 = tpu.strided_load %arg26[%c33_144, %c0_145] {strides = array<i32: 2, 1>} : memref<304x96xf32, #tpu.memory_space<vmem>>, vector<4x16xf32>
    %209 = arith.maximumf %205, %206 : vector<4x16xf32>
    %210 = arith.maximumf %207, %208 : vector<4x16xf32>
    %211 = arith.maximumf %209, %210 : vector<4x16xf32>
    %c40_146 = arith.constant 40 : index
    %c0_147 = arith.constant 0 : index
    %212 = tpu.strided_load %arg26[%c40_146, %c0_147] {strides = array<i32: 2, 1>} : memref<304x96xf32, #tpu.memory_space<vmem>>, vector<4x16xf32>
    %c41_148 = arith.constant 41 : index
    %c0_149 = arith.constant 0 : index
    %213 = tpu.strided_load %arg26[%c41_148, %c0_149] {strides = array<i32: 2, 1>} : memref<304x96xf32, #tpu.memory_space<vmem>>, vector<4x16xf32>
    %c48_150 = arith.constant 48 : index
    %c0_151 = arith.constant 0 : index
    %214 = tpu.strided_load %arg26[%c48_150, %c0_151] {strides = array<i32: 2, 1>} : memref<304x96xf32, #tpu.memory_space<vmem>>, vector<4x16xf32>
    %c49 = arith.constant 49 : index
    %c0_152 = arith.constant 0 : index
    %215 = tpu.strided_load %arg26[%c49, %c0_152] {strides = array<i32: 2, 1>} : memref<304x96xf32, #tpu.memory_space<vmem>>, vector<4x16xf32>
    %216 = arith.maximumf %212, %213 : vector<4x16xf32>
    %217 = arith.maximumf %214, %215 : vector<4x16xf32>
    %218 = arith.maximumf %216, %217 : vector<4x16xf32>
    %c56_153 = arith.constant 56 : index
    %c0_154 = arith.constant 0 : index
    %219 = tpu.strided_load %arg26[%c56_153, %c0_154] {strides = array<i32: 2, 1>} : memref<304x96xf32, #tpu.memory_space<vmem>>, vector<4x16xf32>
    %c57_155 = arith.constant 57 : index
    %c0_156 = arith.constant 0 : index
    %220 = tpu.strided_load %arg26[%c57_155, %c0_156] {strides = array<i32: 2, 1>} : memref<304x96xf32, #tpu.memory_space<vmem>>, vector<4x16xf32>
    %c64_157 = arith.constant 64 : index
    %c0_158 = arith.constant 0 : index
    %221 = tpu.strided_load %arg26[%c64_157, %c0_158] {strides = array<i32: 2, 1>} : memref<304x96xf32, #tpu.memory_space<vmem>>, vector<4x16xf32>
    %c65 = arith.constant 65 : index
    %c0_159 = arith.constant 0 : index
    %222 = tpu.strided_load %arg26[%c65, %c0_159] {strides = array<i32: 2, 1>} : memref<304x96xf32, #tpu.memory_space<vmem>>, vector<4x16xf32>
    %223 = arith.maximumf %219, %220 : vector<4x16xf32>
    %224 = arith.maximumf %221, %222 : vector<4x16xf32>
    %225 = arith.maximumf %223, %224 : vector<4x16xf32>
    %c72_160 = arith.constant 72 : index
    %c0_161 = arith.constant 0 : index
    %226 = tpu.strided_load %arg26[%c72_160, %c0_161] {strides = array<i32: 2, 1>} : memref<304x96xf32, #tpu.memory_space<vmem>>, vector<4x16xf32>
    %c73_162 = arith.constant 73 : index
    %c0_163 = arith.constant 0 : index
    %227 = tpu.strided_load %arg26[%c73_162, %c0_163] {strides = array<i32: 2, 1>} : memref<304x96xf32, #tpu.memory_space<vmem>>, vector<4x16xf32>
    %c80 = arith.constant 80 : index
    %c0_164 = arith.constant 0 : index
    %228 = tpu.strided_load %arg26[%c80, %c0_164] {strides = array<i32: 2, 1>} : memref<304x96xf32, #tpu.memory_space<vmem>>, vector<4x16xf32>
    %c81 = arith.constant 81 : index
    %c0_165 = arith.constant 0 : index
    %229 = tpu.strided_load %arg26[%c81, %c0_165] {strides = array<i32: 2, 1>} : memref<304x96xf32, #tpu.memory_space<vmem>>, vector<4x16xf32>
    %230 = arith.maximumf %226, %227 : vector<4x16xf32>
    %231 = arith.maximumf %228, %229 : vector<4x16xf32>
    %232 = arith.maximumf %230, %231 : vector<4x16xf32>
    %233 = tpu.concatenate %211, %218, %225, %232 in 0 : vector<4x16xf32>, vector<4x16xf32>, vector<4x16xf32>, vector<4x16xf32> -> vector<16x16xf32>
    %c24_166 = arith.constant 24 : index
    %c0_167 = arith.constant 0 : index
    %234 = vector.load %arg26[%c24_166, %c0_167] : memref<304x96xf32, #tpu.memory_space<vmem>>, vector<16x16xf32>
    tpu.vector_store %arg26[%c24_166, %c0_167], %233 {strides = array<i32>} : memref<304x96xf32, #tpu.memory_space<vmem>>, vector<16x16xf32>,
    %235 = vector.broadcast %30 : vector<16x1xf32> to vector<16x16xf32>
    %236 = arith.mulf %233, %235 : vector<16x16xf32>
    %c24_168 = arith.constant 24 : index
    %c32_169 = arith.constant 32 : index
    %237 = vector.load %arg26[%c24_168, %c32_169] : memref<304x96xf32, #tpu.memory_space<vmem>>, vector<16x16xf32>
    tpu.vector_store %arg26[%c24_168, %c32_169], %236 {strides = array<i32>} : memref<304x96xf32, #tpu.memory_space<vmem>>, vector<16x16xf32>,
    %238 = vector.broadcast %34 : vector<16x1xf32> to vector<16x16xf32>
    %239 = arith.mulf %233, %238 : vector<16x16xf32>
    %c24_170 = arith.constant 24 : index
    %c64_171 = arith.constant 64 : index
    %240 = vector.load %arg26[%c24_170, %c64_171] : memref<304x96xf32, #tpu.memory_space<vmem>>, vector<16x16xf32>
    tpu.vector_store %arg26[%c24_170, %c64_171], %239 {strides = array<i32>} : memref<304x96xf32, #tpu.memory_space<vmem>>, vector<16x16xf32>,
    %cst_172 = arith.constant 0.000000e+00 : f32
    %241 = vector.broadcast %cst_172 : f32 to vector<24x96xf32>
    %c40_173 = arith.constant 40 : index
    %c0_174 = arith.constant 0 : index
    %242 = vector.load %arg26[%c40_173, %c0_174] : memref<304x96xf32, #tpu.memory_space<vmem>>, vector<24x96xf32>
    tpu.vector_store %arg26[%c40_173, %c0_174], %241 {strides = array<i32>} : memref<304x96xf32, #tpu.memory_space<vmem>>, vector<24x96xf32>,
    %c19 = arith.constant 19 : index
    %c64_175 = arith.constant 64 : index
    %243 = vector.load %arg26[%c19, %c64_175] : memref<304x96xf32, #tpu.memory_space<vmem>>, vector<16x16xf32>
    %244 = arith.truncf %243 : vector<16x16xf32> to vector<16x16xbf16>
    %c0_176 = arith.constant 0 : index
    %c0_177 = arith.constant 0 : index
    %245 = vector.load %arg27[%c0_176, %c0_177] : memref<256x288xbf16, #tpu.memory_space<vmem>>, vector<16x16xbf16>
    tpu.vector_store %arg27[%c0_176, %c0_177], %244 {strides = array<i32>} : memref<256x288xbf16, #tpu.memory_space<vmem>>, vector<16x16xbf16>,
    %c20_178 = arith.constant 20 : index
    %c0_179 = arith.constant 0 : index
    %246 = vector.load %arg26[%c20_178, %c0_179] : memref<304x96xf32, #tpu.memory_space<vmem>>, vector<16x16xf32>
    %247 = arith.truncf %246 : vector<16x16xf32> to vector<16x16xbf16>
    %c0_180 = arith.constant 0 : index
    %c16_181 = arith.constant 16 : index
    %248 = vector.load %arg27[%c0_180, %c16_181] : memref<256x288xbf16, #tpu.memory_space<vmem>>, vector<16x16xbf16>
    tpu.vector_store %arg27[%c0_180, %c16_181], %247 {strides = array<i32>} : memref<256x288xbf16, #tpu.memory_space<vmem>>, vector<16x16xbf16>,
    %c21 = arith.constant 21 : index
    %c32_182 = arith.constant 32 : index
    %249 = vector.load %arg26[%c21, %c32_182] : memref<304x96xf32, #tpu.memory_space<vmem>>, vector<16x16xf32>
    %250 = arith.truncf %249 : vector<16x16xf32> to vector<16x16xbf16>
    %c0_183 = arith.constant 0 : index
    %c32_184 = arith.constant 32 : index
    %251 = vector.load %arg27[%c0_183, %c32_184] : memref<256x288xbf16, #tpu.memory_space<vmem>>, vector<16x16xbf16>
    tpu.vector_store %arg27[%c0_183, %c32_184], %250 {strides = array<i32>} : memref<256x288xbf16, #tpu.memory_space<vmem>>, vector<16x16xbf16>,
    %c23_185 = arith.constant 23 : index
    %c64_186 = arith.constant 64 : index
    %252 = vector.load %arg26[%c23_185, %c64_186] : memref<304x96xf32, #tpu.memory_space<vmem>>, vector<16x16xf32>
    %253 = arith.truncf %252 : vector<16x16xf32> to vector<16x16xbf16>
    %c0_187 = arith.constant 0 : index
    %c48_188 = arith.constant 48 : index
    %254 = vector.load %arg27[%c0_187, %c48_188] : memref<256x288xbf16, #tpu.memory_space<vmem>>, vector<16x16xbf16>
    tpu.vector_store %arg27[%c0_187, %c48_188], %253 {strides = array<i32>} : memref<256x288xbf16, #tpu.memory_space<vmem>>, vector<16x16xbf16>,
    %c24_189 = arith.constant 24 : index
    %c0_190 = arith.constant 0 : index
    %255 = vector.load %arg26[%c24_189, %c0_190] : memref<304x96xf32, #tpu.memory_space<vmem>>, vector<16x16xf32>
    %256 = arith.truncf %255 : vector<16x16xf32> to vector<16x16xbf16>
    %c0_191 = arith.constant 0 : index
    %c64_192 = arith.constant 64 : index
    %257 = vector.load %arg27[%c0_191, %c64_192] : memref<256x288xbf16, #tpu.memory_space<vmem>>, vector<16x16xbf16>
    tpu.vector_store %arg27[%c0_191, %c64_192], %256 {strides = array<i32>} : memref<256x288xbf16, #tpu.memory_space<vmem>>, vector<16x16xbf16>,
    %c25_193 = arith.constant 25 : index
    %c32_194 = arith.constant 32 : index
    %258 = vector.load %arg26[%c25_193, %c32_194] : memref<304x96xf32, #tpu.memory_space<vmem>>, vector<16x16xf32>
    %259 = arith.truncf %258 : vector<16x16xf32> to vector<16x16xbf16>
    %c0_195 = arith.constant 0 : index
    %c80_196 = arith.constant 80 : index
    %260 = vector.load %arg27[%c0_195, %c80_196] : memref<256x288xbf16, #tpu.memory_space<vmem>>, vector<16x16xbf16>
    tpu.vector_store %arg27[%c0_195, %c80_196], %259 {strides = array<i32>} : memref<256x288xbf16, #tpu.memory_space<vmem>>, vector<16x16xbf16>,
    %c27 = arith.constant 27 : index
    %c64_197 = arith.constant 64 : index
    %261 = vector.load %arg26[%c27, %c64_197] : memref<304x96xf32, #tpu.memory_space<vmem>>, vector<16x16xf32>
    %262 = arith.truncf %261 : vector<16x16xf32> to vector<16x16xbf16>
    %c0_198 = arith.constant 0 : index
    %c96 = arith.constant 96 : index
    %263 = vector.load %arg27[%c0_198, %c96] : memref<256x288xbf16, #tpu.memory_space<vmem>>, vector<16x16xbf16>
    tpu.vector_store %arg27[%c0_198, %c96], %262 {strides = array<i32>} : memref<256x288xbf16, #tpu.memory_space<vmem>>, vector<16x16xbf16>,
    %c28_199 = arith.constant 28 : index
    %c0_200 = arith.constant 0 : index
    %264 = vector.load %arg26[%c28_199, %c0_200] : memref<304x96xf32, #tpu.memory_space<vmem>>, vector<16x16xf32>
    %265 = arith.truncf %264 : vector<16x16xf32> to vector<16x16xbf16>
    %c0_201 = arith.constant 0 : index
    %c112 = arith.constant 112 : index
    %266 = vector.load %arg27[%c0_201, %c112] : memref<256x288xbf16, #tpu.memory_space<vmem>>, vector<16x16xbf16>
    tpu.vector_store %arg27[%c0_201, %c112], %265 {strides = array<i32>} : memref<256x288xbf16, #tpu.memory_space<vmem>>, vector<16x16xbf16>,
    %c29 = arith.constant 29 : index
    %c32_202 = arith.constant 32 : index
    %267 = vector.load %arg26[%c29, %c32_202] : memref<304x96xf32, #tpu.memory_space<vmem>>, vector<16x16xf32>
    %268 = arith.truncf %267 : vector<16x16xf32> to vector<16x16xbf16>
    %c0_203 = arith.constant 0 : index
    %c128 = arith.constant 128 : index
    %269 = vector.load %arg27[%c0_203, %c128] : memref<256x288xbf16, #tpu.memory_space<vmem>>, vector<16x16xbf16>
    tpu.vector_store %arg27[%c0_203, %c128], %268 {strides = array<i32>} : memref<256x288xbf16, #tpu.memory_space<vmem>>, vector<16x16xbf16>,
    %c0_204 = arith.constant 0 : index
    %c0_205 = arith.constant 0 : index
    %270 = vector.load %arg27[%c0_204, %c0_205] : memref<256x288xbf16, #tpu.memory_space<vmem>>, vector<16x144xbf16>
    %c0_206 = arith.constant 0 : index
    %c0_207 = arith.constant 0 : index
    %271 = vector.load %arg7[%c0_206, %c0_207] : memref<144x32xbf16, #tpu.memory_space<vmem>>, vector<144x32xbf16>
    %cst_208 = arith.constant dense<0.000000e+00> : vector<16x32xf32>
    %272 = tpu.matmul %270, %271, %cst_208 {dimension_numbers = #tpu.dot_dimension_numbers<[1], [0], [0], [1], [0, 0, 1, 1], [], []>} : vector<16x144xbf16>, vector<144x32xbf16>, vector<16x32xf32> -> vector<16x32xf32>
    %c0_209 = arith.constant 0 : index
    %c0_210 = arith.constant 0 : index
    %273 = vector.load %arg8[%c0_209, %c0_210] : memref<1x32xf32, #tpu.memory_space<vmem>>, vector<1x32xf32>
    %274 = vector.broadcast %273 : vector<1x32xf32> to vector<16x32xf32>
    %275 = arith.addf %272, %274 : vector<16x32xf32>
    %cst_211 = arith.constant 0.000000e+00 : f32
    %276 = vector.broadcast %cst_211 : f32 to vector<16x32xf32>
    %277 = arith.maximumf %275, %276 : vector<16x32xf32>
    %278 = arith.truncf %277 : vector<16x32xf32> to vector<16x32xbf16>
    %c0_212 = arith.constant 0 : index
    %c0_213 = arith.constant 0 : index
    %279 = vector.load %arg9[%c0_212, %c0_213] : memref<32x8xbf16, #tpu.memory_space<vmem>>, vector<32x8xbf16>
    %cst_214 = arith.constant dense<0.000000e+00> : vector<16x8xf32>
    %280 = tpu.matmul %278, %279, %cst_214 {dimension_numbers = #tpu.dot_dimension_numbers<[1], [0], [0], [1], [0, 0, 1, 1], [], []>} : vector<16x32xbf16>, vector<32x8xbf16>, vector<16x8xf32> -> vector<16x8xf32>
    %c0_215 = arith.constant 0 : index
    %c0_216 = arith.constant 0 : index
    %281 = vector.load %arg10[%c0_215, %c0_216] : memref<1x8xf32, #tpu.memory_space<vmem>>, vector<1x8xf32>
    %282 = vector.broadcast %281 : vector<1x8xf32> to vector<16x8xf32>
    %283 = arith.addf %280, %282 : vector<16x8xf32>
    %cst_217 = arith.constant 0.000000e+00 : f32
    %284 = vector.broadcast %cst_217 : f32 to vector<16x8xf32>
    %285 = arith.maximumf %283, %284 : vector<16x8xf32>
    %c24_218 = arith.constant 24 : index
    %c0_219 = arith.constant 0 : index
    %286 = vector.load %arg26[%c24_218, %c0_219] : memref<304x96xf32, #tpu.memory_space<vmem>>, vector<16x8xf32>
    tpu.vector_store %arg26[%c24_218, %c0_219], %285 {strides = array<i32>} : memref<304x96xf32, #tpu.memory_space<vmem>>, vector<16x8xf32>,
    %287 = vector.broadcast %30 : vector<16x1xf32> to vector<16x8xf32>
    %288 = arith.mulf %285, %287 : vector<16x8xf32>
    %c24_220 = arith.constant 24 : index
    %c32_221 = arith.constant 32 : index
    %289 = vector.load %arg26[%c24_220, %c32_221] : memref<304x96xf32, #tpu.memory_space<vmem>>, vector<16x8xf32>
    tpu.vector_store %arg26[%c24_220, %c32_221], %288 {strides = array<i32>} : memref<304x96xf32, #tpu.memory_space<vmem>>, vector<16x8xf32>,
    %290 = vector.broadcast %34 : vector<16x1xf32> to vector<16x8xf32>
    %291 = arith.mulf %285, %290 : vector<16x8xf32>
    %c24_222 = arith.constant 24 : index
    %c64_223 = arith.constant 64 : index
    %292 = vector.load %arg26[%c24_222, %c64_223] : memref<304x96xf32, #tpu.memory_space<vmem>>, vector<16x8xf32>
    tpu.vector_store %arg26[%c24_222, %c64_223], %291 {strides = array<i32>} : memref<304x96xf32, #tpu.memory_space<vmem>>, vector<16x8xf32>,
    %cst_224 = arith.constant 0.000000e+00 : f32
    %293 = vector.broadcast %cst_224 : f32 to vector<24x96xf32>
    %c40_225 = arith.constant 40 : index
    %c0_226 = arith.constant 0 : index
    %294 = vector.load %arg26[%c40_225, %c0_226] : memref<304x96xf32, #tpu.memory_space<vmem>>, vector<24x96xf32>
    tpu.vector_store %arg26[%c40_225, %c0_226], %293 {strides = array<i32>} : memref<304x96xf32, #tpu.memory_space<vmem>>, vector<24x96xf32>,
    %c19_227 = arith.constant 19 : index
    %c64_228 = arith.constant 64 : index
    %295 = vector.load %arg26[%c19_227, %c64_228] : memref<304x96xf32, #tpu.memory_space<vmem>>, vector<16x8xf32>
    %296 = arith.truncf %295 : vector<16x8xf32> to vector<16x8xbf16>
    %c0_229 = arith.constant 0 : index
    %c0_230 = arith.constant 0 : index
    %297 = vector.load %arg27[%c0_229, %c0_230] : memref<256x288xbf16, #tpu.memory_space<vmem>>, vector<16x8xbf16>
    tpu.vector_store %arg27[%c0_229, %c0_230], %296 {strides = array<i32>} : memref<256x288xbf16, #tpu.memory_space<vmem>>, vector<16x8xbf16>,
    %c20_231 = arith.constant 20 : index
    %c0_232 = arith.constant 0 : index
    %298 = vector.load %arg26[%c20_231, %c0_232] : memref<304x96xf32, #tpu.memory_space<vmem>>, vector<16x8xf32>
    %299 = arith.truncf %298 : vector<16x8xf32> to vector<16x8xbf16>
    %c0_233 = arith.constant 0 : index
    %c8_234 = arith.constant 8 : index
    %300 = vector.load %arg27[%c0_233, %c8_234] : memref<256x288xbf16, #tpu.memory_space<vmem>>, vector<16x8xbf16>
    tpu.vector_store %arg27[%c0_233, %c8_234], %299 {strides = array<i32>} : memref<256x288xbf16, #tpu.memory_space<vmem>>, vector<16x8xbf16>,
    %c21_235 = arith.constant 21 : index
    %c32_236 = arith.constant 32 : index
    %301 = vector.load %arg26[%c21_235, %c32_236] : memref<304x96xf32, #tpu.memory_space<vmem>>, vector<16x8xf32>
    %302 = arith.truncf %301 : vector<16x8xf32> to vector<16x8xbf16>
    %c0_237 = arith.constant 0 : index
    %c16_238 = arith.constant 16 : index
    %303 = vector.load %arg27[%c0_237, %c16_238] : memref<256x288xbf16, #tpu.memory_space<vmem>>, vector<16x8xbf16>
    tpu.vector_store %arg27[%c0_237, %c16_238], %302 {strides = array<i32>} : memref<256x288xbf16, #tpu.memory_space<vmem>>, vector<16x8xbf16>,
    %c23_239 = arith.constant 23 : index
    %c64_240 = arith.constant 64 : index
    %304 = vector.load %arg26[%c23_239, %c64_240] : memref<304x96xf32, #tpu.memory_space<vmem>>, vector<16x8xf32>
    %305 = arith.truncf %304 : vector<16x8xf32> to vector<16x8xbf16>
    %c0_241 = arith.constant 0 : index
    %c24_242 = arith.constant 24 : index
    %306 = vector.load %arg27[%c0_241, %c24_242] : memref<256x288xbf16, #tpu.memory_space<vmem>>, vector<16x8xbf16>
    tpu.vector_store %arg27[%c0_241, %c24_242], %305 {strides = array<i32>} : memref<256x288xbf16, #tpu.memory_space<vmem>>, vector<16x8xbf16>,
    %c24_243 = arith.constant 24 : index
    %c0_244 = arith.constant 0 : index
    %307 = vector.load %arg26[%c24_243, %c0_244] : memref<304x96xf32, #tpu.memory_space<vmem>>, vector<16x8xf32>
    %308 = arith.truncf %307 : vector<16x8xf32> to vector<16x8xbf16>
    %c0_245 = arith.constant 0 : index
    %c32_246 = arith.constant 32 : index
    %309 = vector.load %arg27[%c0_245, %c32_246] : memref<256x288xbf16, #tpu.memory_space<vmem>>, vector<16x8xbf16>
    tpu.vector_store %arg27[%c0_245, %c32_246], %308 {strides = array<i32>} : memref<256x288xbf16, #tpu.memory_space<vmem>>, vector<16x8xbf16>,
    %c25_247 = arith.constant 25 : index
    %c32_248 = arith.constant 32 : index
    %310 = vector.load %arg26[%c25_247, %c32_248] : memref<304x96xf32, #tpu.memory_space<vmem>>, vector<16x8xf32>
    %311 = arith.truncf %310 : vector<16x8xf32> to vector<16x8xbf16>
    %c0_249 = arith.constant 0 : index
    %c40_250 = arith.constant 40 : index
    %312 = vector.load %arg27[%c0_249, %c40_250] : memref<256x288xbf16, #tpu.memory_space<vmem>>, vector<16x8xbf16>
    tpu.vector_store %arg27[%c0_249, %c40_250], %311 {strides = array<i32>} : memref<256x288xbf16, #tpu.memory_space<vmem>>, vector<16x8xbf16>,
    %c27_251 = arith.constant 27 : index
    %c64_252 = arith.constant 64 : index
    %313 = vector.load %arg26[%c27_251, %c64_252] : memref<304x96xf32, #tpu.memory_space<vmem>>, vector<16x8xf32>
    %314 = arith.truncf %313 : vector<16x8xf32> to vector<16x8xbf16>
    %c0_253 = arith.constant 0 : index
    %c48_254 = arith.constant 48 : index
    %315 = vector.load %arg27[%c0_253, %c48_254] : memref<256x288xbf16, #tpu.memory_space<vmem>>, vector<16x8xbf16>
    tpu.vector_store %arg27[%c0_253, %c48_254], %314 {strides = array<i32>} : memref<256x288xbf16, #tpu.memory_space<vmem>>, vector<16x8xbf16>,
    %c28_255 = arith.constant 28 : index
    %c0_256 = arith.constant 0 : index
    %316 = vector.load %arg26[%c28_255, %c0_256] : memref<304x96xf32, #tpu.memory_space<vmem>>, vector<16x8xf32>
    %317 = arith.truncf %316 : vector<16x8xf32> to vector<16x8xbf16>
    %c0_257 = arith.constant 0 : index
    %c56_258 = arith.constant 56 : index
    %318 = vector.load %arg27[%c0_257, %c56_258] : memref<256x288xbf16, #tpu.memory_space<vmem>>, vector<16x8xbf16>
    tpu.vector_store %arg27[%c0_257, %c56_258], %317 {strides = array<i32>} : memref<256x288xbf16, #tpu.memory_space<vmem>>, vector<16x8xbf16>,
    %c29_259 = arith.constant 29 : index
    %c32_260 = arith.constant 32 : index
    %319 = vector.load %arg26[%c29_259, %c32_260] : memref<304x96xf32, #tpu.memory_space<vmem>>, vector<16x8xf32>
    %320 = arith.truncf %319 : vector<16x8xf32> to vector<16x8xbf16>
    %c0_261 = arith.constant 0 : index
    %c64_262 = arith.constant 64 : index
    %321 = vector.load %arg27[%c0_261, %c64_262] : memref<256x288xbf16, #tpu.memory_space<vmem>>, vector<16x8xbf16>
    tpu.vector_store %arg27[%c0_261, %c64_262], %320 {strides = array<i32>} : memref<256x288xbf16, #tpu.memory_space<vmem>>, vector<16x8xbf16>,
    %c0_263 = arith.constant 0 : index
    %c0_264 = arith.constant 0 : index
    %322 = vector.load %arg27[%c0_263, %c0_264] : memref<256x288xbf16, #tpu.memory_space<vmem>>, vector<16x72xbf16>
    %c0_265 = arith.constant 0 : index
    %c0_266 = arith.constant 0 : index
    %323 = vector.load %arg11[%c0_265, %c0_266] : memref<72x16xbf16, #tpu.memory_space<vmem>>, vector<72x16xbf16>
    %cst_267 = arith.constant dense<0.000000e+00> : vector<16x16xf32>
    %324 = tpu.matmul %322, %323, %cst_267 {dimension_numbers = #tpu.dot_dimension_numbers<[1], [0], [0], [1], [0, 0, 1, 1], [], []>} : vector<16x72xbf16>, vector<72x16xbf16>, vector<16x16xf32> -> vector<16x16xf32>
    %c0_268 = arith.constant 0 : index
    %c0_269 = arith.constant 0 : index
    %325 = vector.load %arg12[%c0_268, %c0_269] : memref<1x16xf32, #tpu.memory_space<vmem>>, vector<1x16xf32>
    %326 = vector.broadcast %325 : vector<1x16xf32> to vector<16x16xf32>
    %327 = arith.addf %324, %326 : vector<16x16xf32>
    %cst_270 = arith.constant 0.000000e+00 : f32
    %328 = vector.broadcast %cst_270 : f32 to vector<16x16xf32>
    %329 = arith.maximumf %327, %328 : vector<16x16xf32>
    %c24_271 = arith.constant 24 : index
    %c0_272 = arith.constant 0 : index
    %330 = vector.load %arg26[%c24_271, %c0_272] : memref<304x96xf32, #tpu.memory_space<vmem>>, vector<16x16xf32>
    tpu.vector_store %arg26[%c24_271, %c0_272], %329 {strides = array<i32>} : memref<304x96xf32, #tpu.memory_space<vmem>>, vector<16x16xf32>,
    %c24_273 = arith.constant 24 : index
    %c0_274 = arith.constant 0 : index
    %331 = tpu.strided_load %arg26[%c24_273, %c0_274] {strides = array<i32: 2, 1>} : memref<304x96xf32, #tpu.memory_space<vmem>>, vector<2x16xf32>
    %c32_275 = arith.constant 32 : index
    %c0_276 = arith.constant 0 : index
    %332 = tpu.strided_load %arg26[%c32_275, %c0_276] {strides = array<i32: 2, 1>} : memref<304x96xf32, #tpu.memory_space<vmem>>, vector<2x16xf32>
    %333 = tpu.concatenate %331, %332 in 0 : vector<2x16xf32>, vector<2x16xf32> -> vector<4x16xf32>
    %334 = arith.truncf %333 : vector<4x16xf32> to vector<4x16xbf16>
    %c0_277 = arith.constant 0 : index
    %c0_278 = arith.constant 0 : index
    %335 = vector.load %arg13[%c0_277, %c0_278] : memref<16x8xbf16, #tpu.memory_space<vmem>>, vector<16x8xbf16>
    %cst_279 = arith.constant dense<0.000000e+00> : vector<4x8xf32>
    %336 = tpu.matmul %334, %335, %cst_279 {dimension_numbers = #tpu.dot_dimension_numbers<[1], [0], [0], [1], [0, 0, 1, 1], [], []>} : vector<4x16xbf16>, vector<16x8xbf16>, vector<4x8xf32> -> vector<4x8xf32>
    %c0_280 = arith.constant 0 : index
    %c0_281 = arith.constant 0 : index
    %337 = vector.load %arg14[%c0_280, %c0_281] : memref<1x8xf32, #tpu.memory_space<vmem>>, vector<1x8xf32>
    %338 = vector.broadcast %337 : vector<1x8xf32> to vector<4x8xf32>
    %339 = arith.addf %336, %338 : vector<4x8xf32>
    %cst_282 = arith.constant 0.000000e+00 : f32
    %340 = vector.broadcast %cst_282 : f32 to vector<4x8xf32>
    %341 = arith.maximumf %339, %340 : vector<4x8xf32>
    %c24_283 = arith.constant 24 : index
    %c0_284 = arith.constant 0 : index
    %342 = vector.load %arg26[%c24_283, %c0_284] : memref<304x96xf32, #tpu.memory_space<vmem>>, vector<4x8xf32>
    tpu.vector_store %arg26[%c24_283, %c0_284], %341 {strides = array<i32>} : memref<304x96xf32, #tpu.memory_space<vmem>>, vector<4x8xf32>,
    %343 = vector.broadcast %41 : vector<4x1xf32> to vector<4x8xf32>
    %344 = arith.mulf %341, %343 : vector<4x8xf32>
    %c24_285 = arith.constant 24 : index
    %c32_286 = arith.constant 32 : index
    %345 = vector.load %arg26[%c24_285, %c32_286] : memref<304x96xf32, #tpu.memory_space<vmem>>, vector<4x8xf32>
    tpu.vector_store %arg26[%c24_285, %c32_286], %344 {strides = array<i32>} : memref<304x96xf32, #tpu.memory_space<vmem>>, vector<4x8xf32>,
    %346 = vector.broadcast %45 : vector<4x1xf32> to vector<4x8xf32>
    %347 = arith.mulf %341, %346 : vector<4x8xf32>
    %c24_287 = arith.constant 24 : index
    %c64_288 = arith.constant 64 : index
    %348 = vector.load %arg26[%c24_287, %c64_288] : memref<304x96xf32, #tpu.memory_space<vmem>>, vector<4x8xf32>
    tpu.vector_store %arg26[%c24_287, %c64_288], %347 {strides = array<i32>} : memref<304x96xf32, #tpu.memory_space<vmem>>, vector<4x8xf32>,
    %cst_289 = arith.constant 0.000000e+00 : f32
    %349 = vector.broadcast %cst_289 : f32 to vector<24x96xf32>
    %c28_290 = arith.constant 28 : index
    %c0_291 = arith.constant 0 : index
    %350 = vector.load %arg26[%c28_290, %c0_291] : memref<304x96xf32, #tpu.memory_space<vmem>>, vector<24x96xf32>
    tpu.vector_store %arg26[%c28_290, %c0_291], %349 {strides = array<i32>} : memref<304x96xf32, #tpu.memory_space<vmem>>, vector<24x96xf32>,
    %c21_292 = arith.constant 21 : index
    %c64_293 = arith.constant 64 : index
    %351 = vector.load %arg26[%c21_292, %c64_293] : memref<304x96xf32, #tpu.memory_space<vmem>>, vector<4x8xf32>
    %352 = arith.truncf %351 : vector<4x8xf32> to vector<4x8xbf16>
    %c0_294 = arith.constant 0 : index
    %c0_295 = arith.constant 0 : index
    %353 = vector.load %arg27[%c0_294, %c0_295] : memref<256x288xbf16, #tpu.memory_space<vmem>>, vector<4x8xbf16>
    tpu.vector_store %arg27[%c0_294, %c0_295], %352 {strides = array<i32>} : memref<256x288xbf16, #tpu.memory_space<vmem>>, vector<4x8xbf16>,
    %c22 = arith.constant 22 : index
    %c0_296 = arith.constant 0 : index
    %354 = vector.load %arg26[%c22, %c0_296] : memref<304x96xf32, #tpu.memory_space<vmem>>, vector<4x8xf32>
    %355 = arith.truncf %354 : vector<4x8xf32> to vector<4x8xbf16>
    %c0_297 = arith.constant 0 : index
    %c8_298 = arith.constant 8 : index
    %356 = vector.load %arg27[%c0_297, %c8_298] : memref<256x288xbf16, #tpu.memory_space<vmem>>, vector<4x8xbf16>
    tpu.vector_store %arg27[%c0_297, %c8_298], %355 {strides = array<i32>} : memref<256x288xbf16, #tpu.memory_space<vmem>>, vector<4x8xbf16>,
    %c23_299 = arith.constant 23 : index
    %c32_300 = arith.constant 32 : index
    %357 = vector.load %arg26[%c23_299, %c32_300] : memref<304x96xf32, #tpu.memory_space<vmem>>, vector<4x8xf32>
    %358 = arith.truncf %357 : vector<4x8xf32> to vector<4x8xbf16>
    %c0_301 = arith.constant 0 : index
    %c16_302 = arith.constant 16 : index
    %359 = vector.load %arg27[%c0_301, %c16_302] : memref<256x288xbf16, #tpu.memory_space<vmem>>, vector<4x8xbf16>
    tpu.vector_store %arg27[%c0_301, %c16_302], %358 {strides = array<i32>} : memref<256x288xbf16, #tpu.memory_space<vmem>>, vector<4x8xbf16>,
    %c23_303 = arith.constant 23 : index
    %c64_304 = arith.constant 64 : index
    %360 = vector.load %arg26[%c23_303, %c64_304] : memref<304x96xf32, #tpu.memory_space<vmem>>, vector<4x8xf32>
    %361 = arith.truncf %360 : vector<4x8xf32> to vector<4x8xbf16>
    %c0_305 = arith.constant 0 : index
    %c24_306 = arith.constant 24 : index
    %362 = vector.load %arg27[%c0_305, %c24_306] : memref<256x288xbf16, #tpu.memory_space<vmem>>, vector<4x8xbf16>
    tpu.vector_store %arg27[%c0_305, %c24_306], %361 {strides = array<i32>} : memref<256x288xbf16, #tpu.memory_space<vmem>>, vector<4x8xbf16>,
    %c24_307 = arith.constant 24 : index
    %c0_308 = arith.constant 0 : index
    %363 = vector.load %arg26[%c24_307, %c0_308] : memref<304x96xf32, #tpu.memory_space<vmem>>, vector<4x8xf32>
    %364 = arith.truncf %363 : vector<4x8xf32> to vector<4x8xbf16>
    %c0_309 = arith.constant 0 : index
    %c32_310 = arith.constant 32 : index
    %365 = vector.load %arg27[%c0_309, %c32_310] : memref<256x288xbf16, #tpu.memory_space<vmem>>, vector<4x8xbf16>
    tpu.vector_store %arg27[%c0_309, %c32_310], %364 {strides = array<i32>} : memref<256x288xbf16, #tpu.memory_space<vmem>>, vector<4x8xbf16>,
    %c25_311 = arith.constant 25 : index
    %c32_312 = arith.constant 32 : index
    %366 = vector.load %arg26[%c25_311, %c32_312] : memref<304x96xf32, #tpu.memory_space<vmem>>, vector<4x8xf32>
    %367 = arith.truncf %366 : vector<4x8xf32> to vector<4x8xbf16>
    %c0_313 = arith.constant 0 : index
    %c40_314 = arith.constant 40 : index
    %368 = vector.load %arg27[%c0_313, %c40_314] : memref<256x288xbf16, #tpu.memory_space<vmem>>, vector<4x8xbf16>
    tpu.vector_store %arg27[%c0_313, %c40_314], %367 {strides = array<i32>} : memref<256x288xbf16, #tpu.memory_space<vmem>>, vector<4x8xbf16>,
    %c25_315 = arith.constant 25 : index
    %c64_316 = arith.constant 64 : index
    %369 = vector.load %arg26[%c25_315, %c64_316] : memref<304x96xf32, #tpu.memory_space<vmem>>, vector<4x8xf32>
    %370 = arith.truncf %369 : vector<4x8xf32> to vector<4x8xbf16>
    %c0_317 = arith.constant 0 : index
    %c48_318 = arith.constant 48 : index
    %371 = vector.load %arg27[%c0_317, %c48_318] : memref<256x288xbf16, #tpu.memory_space<vmem>>, vector<4x8xbf16>
    tpu.vector_store %arg27[%c0_317, %c48_318], %370 {strides = array<i32>} : memref<256x288xbf16, #tpu.memory_space<vmem>>, vector<4x8xbf16>,
    %c26 = arith.constant 26 : index
    %c0_319 = arith.constant 0 : index
    %372 = vector.load %arg26[%c26, %c0_319] : memref<304x96xf32, #tpu.memory_space<vmem>>, vector<4x8xf32>
    %373 = arith.truncf %372 : vector<4x8xf32> to vector<4x8xbf16>
    %c0_320 = arith.constant 0 : index
    %c56_321 = arith.constant 56 : index
    %374 = vector.load %arg27[%c0_320, %c56_321] : memref<256x288xbf16, #tpu.memory_space<vmem>>, vector<4x8xbf16>
    tpu.vector_store %arg27[%c0_320, %c56_321], %373 {strides = array<i32>} : memref<256x288xbf16, #tpu.memory_space<vmem>>, vector<4x8xbf16>,
    %c27_322 = arith.constant 27 : index
    %c32_323 = arith.constant 32 : index
    %375 = vector.load %arg26[%c27_322, %c32_323] : memref<304x96xf32, #tpu.memory_space<vmem>>, vector<4x8xf32>
    %376 = arith.truncf %375 : vector<4x8xf32> to vector<4x8xbf16>
    %c0_324 = arith.constant 0 : index
    %c64_325 = arith.constant 64 : index
    %377 = vector.load %arg27[%c0_324, %c64_325] : memref<256x288xbf16, #tpu.memory_space<vmem>>, vector<4x8xbf16>
    tpu.vector_store %arg27[%c0_324, %c64_325], %376 {strides = array<i32>} : memref<256x288xbf16, #tpu.memory_space<vmem>>, vector<4x8xbf16>,
    %c0_326 = arith.constant 0 : index
    %c0_327 = arith.constant 0 : index
    %378 = vector.load %arg27[%c0_326, %c0_327] : memref<256x288xbf16, #tpu.memory_space<vmem>>, vector<4x72xbf16>
    %c0_328 = arith.constant 0 : index
    %c0_329 = arith.constant 0 : index
    %379 = vector.load %arg15[%c0_328, %c0_329] : memref<72x16xbf16, #tpu.memory_space<vmem>>, vector<72x16xbf16>
    %cst_330 = arith.constant dense<0.000000e+00> : vector<4x16xf32>
    %380 = tpu.matmul %378, %379, %cst_330 {dimension_numbers = #tpu.dot_dimension_numbers<[1], [0], [0], [1], [0, 0, 1, 1], [], []>} : vector<4x72xbf16>, vector<72x16xbf16>, vector<4x16xf32> -> vector<4x16xf32>
    %c0_331 = arith.constant 0 : index
    %c0_332 = arith.constant 0 : index
    %381 = vector.load %arg16[%c0_331, %c0_332] : memref<1x16xf32, #tpu.memory_space<vmem>>, vector<1x16xf32>
    %382 = vector.broadcast %381 : vector<1x16xf32> to vector<4x16xf32>
    %383 = arith.addf %380, %382 : vector<4x16xf32>
    %cst_333 = arith.constant 0.000000e+00 : f32
    %384 = vector.broadcast %cst_333 : f32 to vector<4x16xf32>
    %385 = arith.maximumf %383, %384 : vector<4x16xf32>
    %c24_334 = arith.constant 24 : index
    %c0_335 = arith.constant 0 : index
    %386 = vector.load %arg26[%c24_334, %c0_335] : memref<304x96xf32, #tpu.memory_space<vmem>>, vector<4x16xf32>
    tpu.vector_store %arg26[%c24_334, %c0_335], %385 {strides = array<i32>} : memref<304x96xf32, #tpu.memory_space<vmem>>, vector<4x16xf32>,
    %c24_336 = arith.constant 24 : index
    %c0_337 = arith.constant 0 : index
    %387 = vector.load %arg26[%c24_336, %c0_337] : memref<304x96xf32, #tpu.memory_space<vmem>>, vector<1x16xf32>
    %c24_338 = arith.constant 24 : index
    %c0_339 = arith.constant 0 : index
    %388 = vector.load %arg26[%c24_338, %c0_339] : memref<304x96xf32, #tpu.memory_space<vmem>>, vector<64x16xf32>
    tpu.vector_store %arg26[%c24_338, %c0_339], %203 {strides = array<i32>} : memref<304x96xf32, #tpu.memory_space<vmem>>, vector<64x16xf32>,
    %389 = vector.broadcast %19 : vector<64x1xf32> to vector<64x16xf32>
    %390 = arith.mulf %203, %389 : vector<64x16xf32>
    %c24_340 = arith.constant 24 : index
    %c32_341 = arith.constant 32 : index
    %391 = vector.load %arg26[%c24_340, %c32_341] : memref<304x96xf32, #tpu.memory_space<vmem>>, vector<64x16xf32>
    tpu.vector_store %arg26[%c24_340, %c32_341], %390 {strides = array<i32>} : memref<304x96xf32, #tpu.memory_space<vmem>>, vector<64x16xf32>,
    %392 = vector.broadcast %23 : vector<64x1xf32> to vector<64x16xf32>
    %393 = arith.mulf %203, %392 : vector<64x16xf32>
    %c24_342 = arith.constant 24 : index
    %c64_343 = arith.constant 64 : index
    %394 = vector.load %arg26[%c24_342, %c64_343] : memref<304x96xf32, #tpu.memory_space<vmem>>, vector<64x16xf32>
    tpu.vector_store %arg26[%c24_342, %c64_343], %393 {strides = array<i32>} : memref<304x96xf32, #tpu.memory_space<vmem>>, vector<64x16xf32>,
    %cst_344 = arith.constant 0.000000e+00 : f32
    %395 = vector.broadcast %cst_344 : f32 to vector<24x96xf32>
    %c88_345 = arith.constant 88 : index
    %c0_346 = arith.constant 0 : index
    %396 = vector.load %arg26[%c88_345, %c0_346] : memref<304x96xf32, #tpu.memory_space<vmem>>, vector<24x96xf32>
    tpu.vector_store %arg26[%c88_345, %c0_346], %395 {strides = array<i32>} : memref<304x96xf32, #tpu.memory_space<vmem>>, vector<24x96xf32>,
    %c15_347 = arith.constant 15 : index
    %c64_348 = arith.constant 64 : index
    %397 = vector.load %arg26[%c15_347, %c64_348] : memref<304x96xf32, #tpu.memory_space<vmem>>, vector<64x16xf32>
    %398 = arith.truncf %397 : vector<64x16xf32> to vector<64x16xbf16>
    %c0_349 = arith.constant 0 : index
    %c0_350 = arith.constant 0 : index
    %399 = vector.load %arg27[%c0_349, %c0_350] : memref<256x288xbf16, #tpu.memory_space<vmem>>, vector<64x16xbf16>
    tpu.vector_store %arg27[%c0_349, %c0_350], %398 {strides = array<i32>} : memref<256x288xbf16, #tpu.memory_space<vmem>>, vector<64x16xbf16>,
    %c16_351 = arith.constant 16 : index
    %c0_352 = arith.constant 0 : index
    %400 = vector.load %arg26[%c16_351, %c0_352] : memref<304x96xf32, #tpu.memory_space<vmem>>, vector<64x16xf32>
    %401 = arith.truncf %400 : vector<64x16xf32> to vector<64x16xbf16>
    %c0_353 = arith.constant 0 : index
    %c16_354 = arith.constant 16 : index
    %402 = vector.load %arg27[%c0_353, %c16_354] : memref<256x288xbf16, #tpu.memory_space<vmem>>, vector<64x16xbf16>
    tpu.vector_store %arg27[%c0_353, %c16_354], %401 {strides = array<i32>} : memref<256x288xbf16, #tpu.memory_space<vmem>>, vector<64x16xbf16>,
    %c17_355 = arith.constant 17 : index
    %c32_356 = arith.constant 32 : index
    %403 = vector.load %arg26[%c17_355, %c32_356] : memref<304x96xf32, #tpu.memory_space<vmem>>, vector<64x16xf32>
    %404 = arith.truncf %403 : vector<64x16xf32> to vector<64x16xbf16>
    %c0_357 = arith.constant 0 : index
    %c32_358 = arith.constant 32 : index
    %405 = vector.load %arg27[%c0_357, %c32_358] : memref<256x288xbf16, #tpu.memory_space<vmem>>, vector<64x16xbf16>
    tpu.vector_store %arg27[%c0_357, %c32_358], %404 {strides = array<i32>} : memref<256x288xbf16, #tpu.memory_space<vmem>>, vector<64x16xbf16>,
    %c23_359 = arith.constant 23 : index
    %c64_360 = arith.constant 64 : index
    %406 = vector.load %arg26[%c23_359, %c64_360] : memref<304x96xf32, #tpu.memory_space<vmem>>, vector<64x16xf32>
    %407 = arith.truncf %406 : vector<64x16xf32> to vector<64x16xbf16>
    %c0_361 = arith.constant 0 : index
    %c48_362 = arith.constant 48 : index
    %408 = vector.load %arg27[%c0_361, %c48_362] : memref<256x288xbf16, #tpu.memory_space<vmem>>, vector<64x16xbf16>
    tpu.vector_store %arg27[%c0_361, %c48_362], %407 {strides = array<i32>} : memref<256x288xbf16, #tpu.memory_space<vmem>>, vector<64x16xbf16>,
    %c24_363 = arith.constant 24 : index
    %c0_364 = arith.constant 0 : index
    %409 = vector.load %arg26[%c24_363, %c0_364] : memref<304x96xf32, #tpu.memory_space<vmem>>, vector<64x16xf32>
    %410 = arith.truncf %409 : vector<64x16xf32> to vector<64x16xbf16>
    %c0_365 = arith.constant 0 : index
    %c64_366 = arith.constant 64 : index
    %411 = vector.load %arg27[%c0_365, %c64_366] : memref<256x288xbf16, #tpu.memory_space<vmem>>, vector<64x16xbf16>
    tpu.vector_store %arg27[%c0_365, %c64_366], %410 {strides = array<i32>} : memref<256x288xbf16, #tpu.memory_space<vmem>>, vector<64x16xbf16>,
    %c25_367 = arith.constant 25 : index
    %c32_368 = arith.constant 32 : index
    %412 = vector.load %arg26[%c25_367, %c32_368] : memref<304x96xf32, #tpu.memory_space<vmem>>, vector<64x16xf32>
    %413 = arith.truncf %412 : vector<64x16xf32> to vector<64x16xbf16>
    %c0_369 = arith.constant 0 : index
    %c80_370 = arith.constant 80 : index
    %414 = vector.load %arg27[%c0_369, %c80_370] : memref<256x288xbf16, #tpu.memory_space<vmem>>, vector<64x16xbf16>
    tpu.vector_store %arg27[%c0_369, %c80_370], %413 {strides = array<i32>} : memref<256x288xbf16, #tpu.memory_space<vmem>>, vector<64x16xbf16>,
    %c31_371 = arith.constant 31 : index
    %c64_372 = arith.constant 64 : index
    %415 = vector.load %arg26[%c31_371, %c64_372] : memref<304x96xf32, #tpu.memory_space<vmem>>, vector<64x16xf32>
    %416 = arith.truncf %415 : vector<64x16xf32> to vector<64x16xbf16>
    %c0_373 = arith.constant 0 : index
    %c96_374 = arith.constant 96 : index
    %417 = vector.load %arg27[%c0_373, %c96_374] : memref<256x288xbf16, #tpu.memory_space<vmem>>, vector<64x16xbf16>
    tpu.vector_store %arg27[%c0_373, %c96_374], %416 {strides = array<i32>} : memref<256x288xbf16, #tpu.memory_space<vmem>>, vector<64x16xbf16>,
    %c32_375 = arith.constant 32 : index
    %c0_376 = arith.constant 0 : index
    %418 = vector.load %arg26[%c32_375, %c0_376] : memref<304x96xf32, #tpu.memory_space<vmem>>, vector<64x16xf32>
    %419 = arith.truncf %418 : vector<64x16xf32> to vector<64x16xbf16>
    %c0_377 = arith.constant 0 : index
    %c112_378 = arith.constant 112 : index
    %420 = vector.load %arg27[%c0_377, %c112_378] : memref<256x288xbf16, #tpu.memory_space<vmem>>, vector<64x16xbf16>
    tpu.vector_store %arg27[%c0_377, %c112_378], %419 {strides = array<i32>} : memref<256x288xbf16, #tpu.memory_space<vmem>>, vector<64x16xbf16>,
    %c33_379 = arith.constant 33 : index
    %c32_380 = arith.constant 32 : index
    %421 = vector.load %arg26[%c33_379, %c32_380] : memref<304x96xf32, #tpu.memory_space<vmem>>, vector<64x16xf32>
    %422 = arith.truncf %421 : vector<64x16xf32> to vector<64x16xbf16>
    %c0_381 = arith.constant 0 : index
    %c128_382 = arith.constant 128 : index
    %423 = vector.load %arg27[%c0_381, %c128_382] : memref<256x288xbf16, #tpu.memory_space<vmem>>, vector<64x16xbf16>
    tpu.vector_store %arg27[%c0_381, %c128_382], %422 {strides = array<i32>} : memref<256x288xbf16, #tpu.memory_space<vmem>>, vector<64x16xbf16>,
    %c0_383 = arith.constant 0 : index
    %c0_384 = arith.constant 0 : index
    %424 = vector.load %arg27[%c0_383, %c0_384] : memref<256x288xbf16, #tpu.memory_space<vmem>>, vector<64x144xbf16>
    %c0_385 = arith.constant 0 : index
    %c0_386 = arith.constant 0 : index
    %425 = vector.load %arg17[%c0_385, %c0_386] : memref<144x128xbf16, #tpu.memory_space<vmem>>, vector<144x128xbf16>
    %cst_387 = arith.constant dense<0.000000e+00> : vector<64x128xf32>
    %426 = tpu.matmul %424, %425, %cst_387 {dimension_numbers = #tpu.dot_dimension_numbers<[1], [0], [0], [1], [0, 0, 1, 1], [], []>} : vector<64x144xbf16>, vector<144x128xbf16>, vector<64x128xf32> -> vector<64x128xf32>
    %c0_388 = arith.constant 0 : index
    %c0_389 = arith.constant 0 : index
    %427 = vector.load %arg18[%c0_388, %c0_389] : memref<1x128xf32, #tpu.memory_space<vmem>>, vector<1x128xf32>
    %428 = vector.broadcast %427 : vector<1x128xf32> to vector<64x128xf32>
    %429 = arith.addf %426, %428 : vector<64x128xf32>
    %c0_390 = arith.constant 0 : index
    %c0_391 = arith.constant 0 : index
    %430 = vector.load %arg25[%c0_390, %c0_391] : memref<88x128xf32, #tpu.memory_space<vmem>>, vector<64x128xf32>
    tpu.vector_store %arg25[%c0_390, %c0_391], %429 {strides = array<i32>} : memref<88x128xf32, #tpu.memory_space<vmem>>, vector<64x128xf32>,
    %c24_392 = arith.constant 24 : index
    %c0_393 = arith.constant 0 : index
    %431 = vector.load %arg26[%c24_392, %c0_393] : memref<304x96xf32, #tpu.memory_space<vmem>>, vector<16x32xf32>
    tpu.vector_store %arg26[%c24_392, %c0_393], %277 {strides = array<i32>} : memref<304x96xf32, #tpu.memory_space<vmem>>, vector<16x32xf32>,
    %432 = vector.broadcast %30 : vector<16x1xf32> to vector<16x32xf32>
    %433 = arith.mulf %277, %432 : vector<16x32xf32>
    %c24_394 = arith.constant 24 : index
    %c32_395 = arith.constant 32 : index
    %434 = vector.load %arg26[%c24_394, %c32_395] : memref<304x96xf32, #tpu.memory_space<vmem>>, vector<16x32xf32>
    tpu.vector_store %arg26[%c24_394, %c32_395], %433 {strides = array<i32>} : memref<304x96xf32, #tpu.memory_space<vmem>>, vector<16x32xf32>,
    %435 = vector.broadcast %34 : vector<16x1xf32> to vector<16x32xf32>
    %436 = arith.mulf %277, %435 : vector<16x32xf32>
    %c24_396 = arith.constant 24 : index
    %c64_397 = arith.constant 64 : index
    %437 = vector.load %arg26[%c24_396, %c64_397] : memref<304x96xf32, #tpu.memory_space<vmem>>, vector<16x32xf32>
    tpu.vector_store %arg26[%c24_396, %c64_397], %436 {strides = array<i32>} : memref<304x96xf32, #tpu.memory_space<vmem>>, vector<16x32xf32>,
    %cst_398 = arith.constant 0.000000e+00 : f32
    %438 = vector.broadcast %cst_398 : f32 to vector<24x96xf32>
    %c40_399 = arith.constant 40 : index
    %c0_400 = arith.constant 0 : index
    %439 = vector.load %arg26[%c40_399, %c0_400] : memref<304x96xf32, #tpu.memory_space<vmem>>, vector<24x96xf32>
    tpu.vector_store %arg26[%c40_399, %c0_400], %438 {strides = array<i32>} : memref<304x96xf32, #tpu.memory_space<vmem>>, vector<24x96xf32>,
    %c19_401 = arith.constant 19 : index
    %c64_402 = arith.constant 64 : index
    %440 = vector.load %arg26[%c19_401, %c64_402] : memref<304x96xf32, #tpu.memory_space<vmem>>, vector<16x32xf32>
    %441 = arith.truncf %440 : vector<16x32xf32> to vector<16x32xbf16>
    %c0_403 = arith.constant 0 : index
    %c0_404 = arith.constant 0 : index
    %442 = vector.load %arg27[%c0_403, %c0_404] : memref<256x288xbf16, #tpu.memory_space<vmem>>, vector<16x32xbf16>
    tpu.vector_store %arg27[%c0_403, %c0_404], %441 {strides = array<i32>} : memref<256x288xbf16, #tpu.memory_space<vmem>>, vector<16x32xbf16>,
    %c20_405 = arith.constant 20 : index
    %c0_406 = arith.constant 0 : index
    %443 = vector.load %arg26[%c20_405, %c0_406] : memref<304x96xf32, #tpu.memory_space<vmem>>, vector<16x32xf32>
    %444 = arith.truncf %443 : vector<16x32xf32> to vector<16x32xbf16>
    %c0_407 = arith.constant 0 : index
    %c32_408 = arith.constant 32 : index
    %445 = vector.load %arg27[%c0_407, %c32_408] : memref<256x288xbf16, #tpu.memory_space<vmem>>, vector<16x32xbf16>
    tpu.vector_store %arg27[%c0_407, %c32_408], %444 {strides = array<i32>} : memref<256x288xbf16, #tpu.memory_space<vmem>>, vector<16x32xbf16>,
    %c21_409 = arith.constant 21 : index
    %c32_410 = arith.constant 32 : index
    %446 = vector.load %arg26[%c21_409, %c32_410] : memref<304x96xf32, #tpu.memory_space<vmem>>, vector<16x32xf32>
    %447 = arith.truncf %446 : vector<16x32xf32> to vector<16x32xbf16>
    %c0_411 = arith.constant 0 : index
    %c64_412 = arith.constant 64 : index
    %448 = vector.load %arg27[%c0_411, %c64_412] : memref<256x288xbf16, #tpu.memory_space<vmem>>, vector<16x32xbf16>
    tpu.vector_store %arg27[%c0_411, %c64_412], %447 {strides = array<i32>} : memref<256x288xbf16, #tpu.memory_space<vmem>>, vector<16x32xbf16>,
    %c23_413 = arith.constant 23 : index
    %c64_414 = arith.constant 64 : index
    %449 = vector.load %arg26[%c23_413, %c64_414] : memref<304x96xf32, #tpu.memory_space<vmem>>, vector<16x32xf32>
    %450 = arith.truncf %449 : vector<16x32xf32> to vector<16x32xbf16>
    %c0_415 = arith.constant 0 : index
    %c96_416 = arith.constant 96 : index
    %451 = vector.load %arg27[%c0_415, %c96_416] : memref<256x288xbf16, #tpu.memory_space<vmem>>, vector<16x32xbf16>
    tpu.vector_store %arg27[%c0_415, %c96_416], %450 {strides = array<i32>} : memref<256x288xbf16, #tpu.memory_space<vmem>>, vector<16x32xbf16>,
    %c24_417 = arith.constant 24 : index
    %c0_418 = arith.constant 0 : index
    %452 = vector.load %arg26[%c24_417, %c0_418] : memref<304x96xf32, #tpu.memory_space<vmem>>, vector<16x32xf32>
    %453 = arith.truncf %452 : vector<16x32xf32> to vector<16x32xbf16>
    %c0_419 = arith.constant 0 : index
    %c128_420 = arith.constant 128 : index
    %454 = vector.load %arg27[%c0_419, %c128_420] : memref<256x288xbf16, #tpu.memory_space<vmem>>, vector<16x32xbf16>
    tpu.vector_store %arg27[%c0_419, %c128_420], %453 {strides = array<i32>} : memref<256x288xbf16, #tpu.memory_space<vmem>>, vector<16x32xbf16>,
    %c25_421 = arith.constant 25 : index
    %c32_422 = arith.constant 32 : index
    %455 = vector.load %arg26[%c25_421, %c32_422] : memref<304x96xf32, #tpu.memory_space<vmem>>, vector<16x32xf32>
    %456 = arith.truncf %455 : vector<16x32xf32> to vector<16x32xbf16>
    %c0_423 = arith.constant 0 : index
    %c160 = arith.constant 160 : index
    %457 = vector.load %arg27[%c0_423, %c160] : memref<256x288xbf16, #tpu.memory_space<vmem>>, vector<16x32xbf16>
    tpu.vector_store %arg27[%c0_423, %c160], %456 {strides = array<i32>} : memref<256x288xbf16, #tpu.memory_space<vmem>>, vector<16x32xbf16>,
    %c27_424 = arith.constant 27 : index
    %c64_425 = arith.constant 64 : index
    %458 = vector.load %arg26[%c27_424, %c64_425] : memref<304x96xf32, #tpu.memory_space<vmem>>, vector<16x32xf32>
    %459 = arith.truncf %458 : vector<16x32xf32> to vector<16x32xbf16>
    %c0_426 = arith.constant 0 : index
    %c192 = arith.constant 192 : index
    %460 = vector.load %arg27[%c0_426, %c192] : memref<256x288xbf16, #tpu.memory_space<vmem>>, vector<16x32xbf16>
    tpu.vector_store %arg27[%c0_426, %c192], %459 {strides = array<i32>} : memref<256x288xbf16, #tpu.memory_space<vmem>>, vector<16x32xbf16>,
    %c28_427 = arith.constant 28 : index
    %c0_428 = arith.constant 0 : index
    %461 = vector.load %arg26[%c28_427, %c0_428] : memref<304x96xf32, #tpu.memory_space<vmem>>, vector<16x32xf32>
    %462 = arith.truncf %461 : vector<16x32xf32> to vector<16x32xbf16>
    %c0_429 = arith.constant 0 : index
    %c224 = arith.constant 224 : index
    %463 = vector.load %arg27[%c0_429, %c224] : memref<256x288xbf16, #tpu.memory_space<vmem>>, vector<16x32xbf16>
    tpu.vector_store %arg27[%c0_429, %c224], %462 {strides = array<i32>} : memref<256x288xbf16, #tpu.memory_space<vmem>>, vector<16x32xbf16>,
    %c29_430 = arith.constant 29 : index
    %c32_431 = arith.constant 32 : index
    %464 = vector.load %arg26[%c29_430, %c32_431] : memref<304x96xf32, #tpu.memory_space<vmem>>, vector<16x32xf32>
    %465 = arith.truncf %464 : vector<16x32xf32> to vector<16x32xbf16>
    %c0_432 = arith.constant 0 : index
    %c256 = arith.constant 256 : index
    %466 = vector.load %arg27[%c0_432, %c256] : memref<256x288xbf16, #tpu.memory_space<vmem>>, vector<16x32xbf16>
    tpu.vector_store %arg27[%c0_432, %c256], %465 {strides = array<i32>} : memref<256x288xbf16, #tpu.memory_space<vmem>>, vector<16x32xbf16>,
    %c0_433 = arith.constant 0 : index
    %c0_434 = arith.constant 0 : index
    %467 = vector.load %arg27[%c0_433, %c0_434] : memref<256x288xbf16, #tpu.memory_space<vmem>>, vector<16x288xbf16>
    %c0_435 = arith.constant 0 : index
    %c0_436 = arith.constant 0 : index
    %468 = vector.load %arg19[%c0_435, %c0_436] : memref<288x128xbf16, #tpu.memory_space<vmem>>, vector<288x128xbf16>
    %cst_437 = arith.constant dense<0.000000e+00> : vector<16x128xf32>
    %469 = tpu.matmul %467, %468, %cst_437 {dimension_numbers = #tpu.dot_dimension_numbers<[1], [0], [0], [1], [0, 0, 1, 1], [], []>} : vector<16x288xbf16>, vector<288x128xbf16>, vector<16x128xf32> -> vector<16x128xf32>
    %c0_438 = arith.constant 0 : index
    %c0_439 = arith.constant 0 : index
    %470 = vector.load %arg20[%c0_438, %c0_439] : memref<1x128xf32, #tpu.memory_space<vmem>>, vector<1x128xf32>
    %471 = vector.broadcast %470 : vector<1x128xf32> to vector<16x128xf32>
    %472 = arith.addf %469, %471 : vector<16x128xf32>
    %c64_440 = arith.constant 64 : index
    %c0_441 = arith.constant 0 : index
    %473 = vector.load %arg25[%c64_440, %c0_441] : memref<88x128xf32, #tpu.memory_space<vmem>>, vector<16x128xf32>
    tpu.vector_store %arg25[%c64_440, %c0_441], %472 {strides = array<i32>} : memref<88x128xf32, #tpu.memory_space<vmem>>, vector<16x128xf32>,
    %c24_442 = arith.constant 24 : index
    %c0_443 = arith.constant 0 : index
    %474 = vector.load %arg26[%c24_442, %c0_443] : memref<304x96xf32, #tpu.memory_space<vmem>>, vector<4x16xf32>
    tpu.vector_store %arg26[%c24_442, %c0_443], %333 {strides = array<i32>} : memref<304x96xf32, #tpu.memory_space<vmem>>, vector<4x16xf32>,
    %475 = vector.broadcast %41 : vector<4x1xf32> to vector<4x16xf32>
    %476 = arith.mulf %333, %475 : vector<4x16xf32>
    %c24_444 = arith.constant 24 : index
    %c32_445 = arith.constant 32 : index
    %477 = vector.load %arg26[%c24_444, %c32_445] : memref<304x96xf32, #tpu.memory_space<vmem>>, vector<4x16xf32>
    tpu.vector_store %arg26[%c24_444, %c32_445], %476 {strides = array<i32>} : memref<304x96xf32, #tpu.memory_space<vmem>>, vector<4x16xf32>,
    %478 = vector.broadcast %45 : vector<4x1xf32> to vector<4x16xf32>
    %479 = arith.mulf %333, %478 : vector<4x16xf32>
    %c24_446 = arith.constant 24 : index
    %c64_447 = arith.constant 64 : index
    %480 = vector.load %arg26[%c24_446, %c64_447] : memref<304x96xf32, #tpu.memory_space<vmem>>, vector<4x16xf32>
    tpu.vector_store %arg26[%c24_446, %c64_447], %479 {strides = array<i32>} : memref<304x96xf32, #tpu.memory_space<vmem>>, vector<4x16xf32>,
    %cst_448 = arith.constant 0.000000e+00 : f32
    %481 = vector.broadcast %cst_448 : f32 to vector<24x96xf32>
    %c28_449 = arith.constant 28 : index
    %c0_450 = arith.constant 0 : index
    %482 = vector.load %arg26[%c28_449, %c0_450] : memref<304x96xf32, #tpu.memory_space<vmem>>, vector<24x96xf32>
    tpu.vector_store %arg26[%c28_449, %c0_450], %481 {strides = array<i32>} : memref<304x96xf32, #tpu.memory_space<vmem>>, vector<24x96xf32>,
    %c21_451 = arith.constant 21 : index
    %c64_452 = arith.constant 64 : index
    %483 = vector.load %arg26[%c21_451, %c64_452] : memref<304x96xf32, #tpu.memory_space<vmem>>, vector<4x16xf32>
    %484 = arith.truncf %483 : vector<4x16xf32> to vector<4x16xbf16>
    %c0_453 = arith.constant 0 : index
    %c0_454 = arith.constant 0 : index
    %485 = vector.load %arg27[%c0_453, %c0_454] : memref<256x288xbf16, #tpu.memory_space<vmem>>, vector<4x16xbf16>
    tpu.vector_store %arg27[%c0_453, %c0_454], %484 {strides = array<i32>} : memref<256x288xbf16, #tpu.memory_space<vmem>>, vector<4x16xbf16>,
    %c22_455 = arith.constant 22 : index
    %c0_456 = arith.constant 0 : index
    %486 = vector.load %arg26[%c22_455, %c0_456] : memref<304x96xf32, #tpu.memory_space<vmem>>, vector<4x16xf32>
    %487 = arith.truncf %486 : vector<4x16xf32> to vector<4x16xbf16>
    %c0_457 = arith.constant 0 : index
    %c16_458 = arith.constant 16 : index
    %488 = vector.load %arg27[%c0_457, %c16_458] : memref<256x288xbf16, #tpu.memory_space<vmem>>, vector<4x16xbf16>
    tpu.vector_store %arg27[%c0_457, %c16_458], %487 {strides = array<i32>} : memref<256x288xbf16, #tpu.memory_space<vmem>>, vector<4x16xbf16>,
    %c23_459 = arith.constant 23 : index
    %c32_460 = arith.constant 32 : index
    %489 = vector.load %arg26[%c23_459, %c32_460] : memref<304x96xf32, #tpu.memory_space<vmem>>, vector<4x16xf32>
    %490 = arith.truncf %489 : vector<4x16xf32> to vector<4x16xbf16>
    %c0_461 = arith.constant 0 : index
    %c32_462 = arith.constant 32 : index
    %491 = vector.load %arg27[%c0_461, %c32_462] : memref<256x288xbf16, #tpu.memory_space<vmem>>, vector<4x16xbf16>
    tpu.vector_store %arg27[%c0_461, %c32_462], %490 {strides = array<i32>} : memref<256x288xbf16, #tpu.memory_space<vmem>>, vector<4x16xbf16>,
    %c23_463 = arith.constant 23 : index
    %c64_464 = arith.constant 64 : index
    %492 = vector.load %arg26[%c23_463, %c64_464] : memref<304x96xf32, #tpu.memory_space<vmem>>, vector<4x16xf32>
    %493 = arith.truncf %492 : vector<4x16xf32> to vector<4x16xbf16>
    %c0_465 = arith.constant 0 : index
    %c48_466 = arith.constant 48 : index
    %494 = vector.load %arg27[%c0_465, %c48_466] : memref<256x288xbf16, #tpu.memory_space<vmem>>, vector<4x16xbf16>
    tpu.vector_store %arg27[%c0_465, %c48_466], %493 {strides = array<i32>} : memref<256x288xbf16, #tpu.memory_space<vmem>>, vector<4x16xbf16>,
    %c24_467 = arith.constant 24 : index
    %c0_468 = arith.constant 0 : index
    %495 = vector.load %arg26[%c24_467, %c0_468] : memref<304x96xf32, #tpu.memory_space<vmem>>, vector<4x16xf32>
    %496 = arith.truncf %495 : vector<4x16xf32> to vector<4x16xbf16>
    %c0_469 = arith.constant 0 : index
    %c64_470 = arith.constant 64 : index
    %497 = vector.load %arg27[%c0_469, %c64_470] : memref<256x288xbf16, #tpu.memory_space<vmem>>, vector<4x16xbf16>
    tpu.vector_store %arg27[%c0_469, %c64_470], %496 {strides = array<i32>} : memref<256x288xbf16, #tpu.memory_space<vmem>>, vector<4x16xbf16>,
    %c25_471 = arith.constant 25 : index
    %c32_472 = arith.constant 32 : index
    %498 = vector.load %arg26[%c25_471, %c32_472] : memref<304x96xf32, #tpu.memory_space<vmem>>, vector<4x16xf32>
    %499 = arith.truncf %498 : vector<4x16xf32> to vector<4x16xbf16>
    %c0_473 = arith.constant 0 : index
    %c80_474 = arith.constant 80 : index
    %500 = vector.load %arg27[%c0_473, %c80_474] : memref<256x288xbf16, #tpu.memory_space<vmem>>, vector<4x16xbf16>
    tpu.vector_store %arg27[%c0_473, %c80_474], %499 {strides = array<i32>} : memref<256x288xbf16, #tpu.memory_space<vmem>>, vector<4x16xbf16>,
    %c25_475 = arith.constant 25 : index
    %c64_476 = arith.constant 64 : index
    %501 = vector.load %arg26[%c25_475, %c64_476] : memref<304x96xf32, #tpu.memory_space<vmem>>, vector<4x16xf32>
    %502 = arith.truncf %501 : vector<4x16xf32> to vector<4x16xbf16>
    %c0_477 = arith.constant 0 : index
    %c96_478 = arith.constant 96 : index
    %503 = vector.load %arg27[%c0_477, %c96_478] : memref<256x288xbf16, #tpu.memory_space<vmem>>, vector<4x16xbf16>
    tpu.vector_store %arg27[%c0_477, %c96_478], %502 {strides = array<i32>} : memref<256x288xbf16, #tpu.memory_space<vmem>>, vector<4x16xbf16>,
    %c26_479 = arith.constant 26 : index
    %c0_480 = arith.constant 0 : index
    %504 = vector.load %arg26[%c26_479, %c0_480] : memref<304x96xf32, #tpu.memory_space<vmem>>, vector<4x16xf32>
    %505 = arith.truncf %504 : vector<4x16xf32> to vector<4x16xbf16>
    %c0_481 = arith.constant 0 : index
    %c112_482 = arith.constant 112 : index
    %506 = vector.load %arg27[%c0_481, %c112_482] : memref<256x288xbf16, #tpu.memory_space<vmem>>, vector<4x16xbf16>
    tpu.vector_store %arg27[%c0_481, %c112_482], %505 {strides = array<i32>} : memref<256x288xbf16, #tpu.memory_space<vmem>>, vector<4x16xbf16>,
    %c27_483 = arith.constant 27 : index
    %c32_484 = arith.constant 32 : index
    %507 = vector.load %arg26[%c27_483, %c32_484] : memref<304x96xf32, #tpu.memory_space<vmem>>, vector<4x16xf32>
    %508 = arith.truncf %507 : vector<4x16xf32> to vector<4x16xbf16>
    %c0_485 = arith.constant 0 : index
    %c128_486 = arith.constant 128 : index
    %509 = vector.load %arg27[%c0_485, %c128_486] : memref<256x288xbf16, #tpu.memory_space<vmem>>, vector<4x16xbf16>
    tpu.vector_store %arg27[%c0_485, %c128_486], %508 {strides = array<i32>} : memref<256x288xbf16, #tpu.memory_space<vmem>>, vector<4x16xbf16>,
    %c0_487 = arith.constant 0 : index
    %c0_488 = arith.constant 0 : index
    %510 = vector.load %arg27[%c0_487, %c0_488] : memref<256x288xbf16, #tpu.memory_space<vmem>>, vector<4x144xbf16>
    %c0_489 = arith.constant 0 : index
    %c0_490 = arith.constant 0 : index
    %511 = vector.load %arg21[%c0_489, %c0_490] : memref<144x128xbf16, #tpu.memory_space<vmem>>, vector<144x128xbf16>
    %cst_491 = arith.constant dense<0.000000e+00> : vector<4x128xf32>
    %512 = tpu.matmul %510, %511, %cst_491 {dimension_numbers = #tpu.dot_dimension_numbers<[1], [0], [0], [1], [0, 0, 1, 1], [], []>} : vector<4x144xbf16>, vector<144x128xbf16>, vector<4x128xf32> -> vector<4x128xf32>
    %c0_492 = arith.constant 0 : index
    %c0_493 = arith.constant 0 : index
    %513 = vector.load %arg22[%c0_492, %c0_493] : memref<1x128xf32, #tpu.memory_space<vmem>>, vector<1x128xf32>
    %514 = vector.broadcast %513 : vector<1x128xf32> to vector<4x128xf32>
    %515 = arith.addf %512, %514 : vector<4x128xf32>
    %516 = arith.truncf %387 : vector<1x16xf32> to vector<1x16xbf16>
    %c64_494 = arith.constant 64 : index
    %c0_495 = arith.constant 0 : index
    %517 = vector.load %arg23[%c64_494, %c0_495] : memref<144x128xbf16, #tpu.memory_space<vmem>>, vector<16x128xbf16>
    %cst_496 = arith.constant dense<0.000000e+00> : vector<1x128xf32>
    %518 = tpu.matmul %516, %517, %cst_496 {dimension_numbers = #tpu.dot_dimension_numbers<[1], [0], [0], [1], [0, 0, 1, 1], [], []>} : vector<1x16xbf16>, vector<16x128xbf16>, vector<1x128xf32> -> vector<1x128xf32>
    %c0_497 = arith.constant 0 : index
    %c0_498 = arith.constant 0 : index
    %519 = vector.load %arg24[%c0_497, %c0_498] : memref<1x128xf32, #tpu.memory_space<vmem>>, vector<1x128xf32>
    %520 = arith.addf %518, %519 : vector<1x128xf32>
    %cst_499 = arith.constant 0.000000e+00 : f32
    %521 = vector.broadcast %cst_499 : f32 to vector<3x128xf32>
    %522 = tpu.concatenate %515, %520, %521 in 0 : vector<4x128xf32>, vector<1x128xf32>, vector<3x128xf32> -> vector<8x128xf32>
    %c80_500 = arith.constant 80 : index
    %c0_501 = arith.constant 0 : index
    %523 = vector.load %arg25[%c80_500, %c0_501] : memref<88x128xf32, #tpu.memory_space<vmem>>, vector<8x128xf32>
    tpu.vector_store %arg25[%c80_500, %c0_501], %522 {strides = array<i32>} : memref<88x128xf32, #tpu.memory_space<vmem>>, vector<8x128xf32>,
    return
  }
  func.func @transform_0(%arg0: i32) -> (i32, i32) {
    %c0_i32 = arith.constant 0 : i32
    %c0_i32_0 = arith.constant 0 : i32
    return %arg0, %c0_i32 : i32, i32
  }
  func.func @transform_1(%arg0: i32) -> (i32, i32) {
    %c0_i32 = arith.constant 0 : i32
    %c0_i32_0 = arith.constant 0 : i32
    %c0_i32_1 = arith.constant 0 : i32
    return %c0_i32, %c0_i32_0 : i32, i32
  }
  func.func @transform_2(%arg0: i32) -> (i32, i32) {
    %c0_i32 = arith.constant 0 : i32
    %c0_i32_0 = arith.constant 0 : i32
    %c0_i32_1 = arith.constant 0 : i32
    return %c0_i32, %c0_i32_0 : i32, i32
  }
  func.func @transform_3(%arg0: i32) -> (i32, i32) {
    %c0_i32 = arith.constant 0 : i32
    %c0_i32_0 = arith.constant 0 : i32
    %c0_i32_1 = arith.constant 0 : i32
    return %c0_i32, %c0_i32_0 : i32, i32
  }
  func.func @transform_4(%arg0: i32) -> (i32, i32) {
    %c0_i32 = arith.constant 0 : i32
    %c0_i32_0 = arith.constant 0 : i32
    %c0_i32_1 = arith.constant 0 : i32
    return %c0_i32, %c0_i32_0 : i32, i32
  }
  func.func @transform_5(%arg0: i32) -> (i32, i32) {
    %c0_i32 = arith.constant 0 : i32
    %c0_i32_0 = arith.constant 0 : i32
    %c0_i32_1 = arith.constant 0 : i32
    return %c0_i32, %c0_i32_0 : i32, i32
  }
  func.func @transform_6(%arg0: i32) -> (i32, i32) {
    %c0_i32 = arith.constant 0 : i32
    %c0_i32_0 = arith.constant 0 : i32
    %c0_i32_1 = arith.constant 0 : i32
    return %c0_i32, %c0_i32_0 : i32, i32
  }
  func.func @transform_7(%arg0: i32) -> (i32, i32) {
    %c0_i32 = arith.constant 0 : i32
    %c0_i32_0 = arith.constant 0 : i32
    %c0_i32_1 = arith.constant 0 : i32
    return %c0_i32, %c0_i32_0 : i32, i32
  }
  func.func @transform_8(%arg0: i32) -> (i32, i32) {
    %c0_i32 = arith.constant 0 : i32
    %c0_i32_0 = arith.constant 0 : i32
    %c0_i32_1 = arith.constant 0 : i32
    return %c0_i32, %c0_i32_0 : i32, i32
  }
  func.func @transform_9(%arg0: i32) -> (i32, i32) {
    %c0_i32 = arith.constant 0 : i32
    %c0_i32_0 = arith.constant 0 : i32
    %c0_i32_1 = arith.constant 0 : i32
    return %c0_i32, %c0_i32_0 : i32, i32
  }
  func.func @transform_10(%arg0: i32) -> (i32, i32) {
    %c0_i32 = arith.constant 0 : i32
    %c0_i32_0 = arith.constant 0 : i32
    %c0_i32_1 = arith.constant 0 : i32
    return %c0_i32, %c0_i32_0 : i32, i32
  }
  func.func @transform_11(%arg0: i32) -> (i32, i32) {
    %c0_i32 = arith.constant 0 : i32
    %c0_i32_0 = arith.constant 0 : i32
    %c0_i32_1 = arith.constant 0 : i32
    return %c0_i32, %c0_i32_0 : i32, i32
  }
  func.func @transform_12(%arg0: i32) -> (i32, i32) {
    %c0_i32 = arith.constant 0 : i32
    %c0_i32_0 = arith.constant 0 : i32
    %c0_i32_1 = arith.constant 0 : i32
    return %c0_i32, %c0_i32_0 : i32, i32
  }
  func.func @transform_13(%arg0: i32) -> (i32, i32) {
    %c0_i32 = arith.constant 0 : i32
    %c0_i32_0 = arith.constant 0 : i32
    %c0_i32_1 = arith.constant 0 : i32
    return %c0_i32, %c0_i32_0 : i32, i32
  }
  func.func @transform_14(%arg0: i32) -> (i32, i32) {
    %c0_i32 = arith.constant 0 : i32
    %c0_i32_0 = arith.constant 0 : i32
    %c0_i32_1 = arith.constant 0 : i32
    return %c0_i32, %c0_i32_0 : i32, i32
  }
  func.func @transform_15(%arg0: i32) -> (i32, i32) {
    %c0_i32 = arith.constant 0 : i32
    %c0_i32_0 = arith.constant 0 : i32
    %c0_i32_1 = arith.constant 0 : i32
    return %c0_i32, %c0_i32_0 : i32, i32
  }
  func.func @transform_16(%arg0: i32) -> (i32, i32) {
    %c0_i32 = arith.constant 0 : i32
    %c0_i32_0 = arith.constant 0 : i32
    %c0_i32_1 = arith.constant 0 : i32
    return %c0_i32, %c0_i32_0 : i32, i32
  }
  func.func @transform_17(%arg0: i32) -> (i32, i32) {
    %c0_i32 = arith.constant 0 : i32
    %c0_i32_0 = arith.constant 0 : i32
    %c0_i32_1 = arith.constant 0 : i32
    return %c0_i32, %c0_i32_0 : i32, i32
  }
  func.func @transform_18(%arg0: i32) -> (i32, i32) {
    %c0_i32 = arith.constant 0 : i32
    %c0_i32_0 = arith.constant 0 : i32
    %c0_i32_1 = arith.constant 0 : i32
    return %c0_i32, %c0_i32_0 : i32, i32
  }
  func.func @transform_19(%arg0: i32) -> (i32, i32) {
    %c0_i32 = arith.constant 0 : i32
    %c0_i32_0 = arith.constant 0 : i32
    %c0_i32_1 = arith.constant 0 : i32
    return %c0_i32, %c0_i32_0 : i32, i32
  }
  func.func @transform_20(%arg0: i32) -> (i32, i32) {
    %c0_i32 = arith.constant 0 : i32
    %c0_i32_0 = arith.constant 0 : i32
    %c0_i32_1 = arith.constant 0 : i32
    return %c0_i32, %c0_i32_0 : i32, i32
  }
  func.func @transform_21(%arg0: i32) -> (i32, i32) {
    %c0_i32 = arith.constant 0 : i32
    %c0_i32_0 = arith.constant 0 : i32
    %c0_i32_1 = arith.constant 0 : i32
    return %c0_i32, %c0_i32_0 : i32, i32
  }
  func.func @transform_22(%arg0: i32) -> (i32, i32) {
    %c0_i32 = arith.constant 0 : i32
    %c0_i32_0 = arith.constant 0 : i32
    %c0_i32_1 = arith.constant 0 : i32
    return %c0_i32, %c0_i32_0 : i32, i32
  }
  func.func @transform_23(%arg0: i32) -> (i32, i32) {
    %c0_i32 = arith.constant 0 : i32
    %c0_i32_0 = arith.constant 0 : i32
    %c0_i32_1 = arith.constant 0 : i32
    return %c0_i32, %c0_i32_0 : i32, i32
  }
  func.func @transform_24(%arg0: i32) -> (i32, i32) {
    %c0_i32 = arith.constant 0 : i32
    %c0_i32_0 = arith.constant 0 : i32
    return %arg0, %c0_i32 : i32, i32
  }
}

</mosaic_0001>

<bundles_post_ra>
// kernel: ssd_forward.1
= control target key start
LH: loop header
LB: loop body
LE: loop exit
PB: predicated region body
PF: predicated region fallthrough
CT: control target
= control target key end

     0   :  { %s8374_s0 = inlined_call_operand.vmem [shape: f32[512,4], index: 0, kind: input, shape index: {}]   ;;  %s8375_s1 = inlined_call_operand.vmem [shape: bf16[36,8], index: 1, kind: input, shape index: {}]   ;;  %s8376_s2 = inlined_call_operand.vmem [shape: f32[1,8], index: 2, kind: input, shape index: {}]   ;;  %s8377_s3 = inlined_call_operand.vmem [shape: bf16[72,16], index: 3, kind: input, shape index: {}]   ;;  %s8378_s4 = inlined_call_operand.vmem [shape: f32[1,16], index: 4, kind: input, shape index: {}]   ;;  %s8379_s5 = inlined_call_operand.vmem [shape: f32[1,16], index: 5, kind: input, shape index: {}]   ;;  %s8380_s6 = inlined_call_operand.vmem [shape: bf16[144,32], index: 6, kind: input, shape index: {}]   ;;  %s8381_s7 = inlined_call_operand.vmem [shape: f32[1,32], index: 7, kind: input, shape index: {}]   ;;  %s8382_s8 = inlined_call_operand.vmem [shape: bf16[32,8], index: 8, kind: input, shape index: {}]   ;;  %s8383_s9 = inlined_call_operand.vmem [shape: f32[1,8], index: 9, kind: input, shape index: {}]   ;;  %s8384_s10 = inlined_call_operand.vmem [shape: bf16[72,16], index: 10, kind: input, shape index: {}]   ;;  %s8385_s11 = inlined_call_operand.vmem [shape: f32[1,16], index: 11, kind: input, shape index: {}]   ;;  %s8386_s12 = inlined_call_operand.vmem [shape: bf16[16,8], index: 12, kind: input, shape index: {}]   ;;  %s8387_s13 = inlined_call_operand.vmem [shape: f32[1,8], index: 13, kind: input, shape index: {}]   ;;  %s8388_s14 = inlined_call_operand.vmem [shape: bf16[72,16], index: 14, kind: input, shape index: {}]   ;;  %s8389_s15 = inlined_call_operand.vmem [shape: f32[1,16], index: 15, kind: input, shape index: {}]   ;;  %s8390_s16 = inlined_call_operand.vmem [shape: bf16[144,128], index: 16, kind: input, shape index: {}]   ;;  %s8391_s17 = inlined_call_operand.vmem [shape: f32[1,128], index: 17, kind: input, shape index: {}]   ;;  %s8392_s18 = inlined_call_operand.vmem [shape: bf16[288,128], index: 18, kind: input, shape index: {}]   ;;  %s8393_s19 = inlined_call_operand.vmem [shape: f32[1,128], index: 19, kind: input, shape index: {}]   ;;  %s8394_s20 = inlined_call_operand.vmem [shape: bf16[144,128], index: 20, kind: input, shape index: {}]   ;;  %s8395_s21 = inlined_call_operand.vmem [shape: f32[1,128], index: 21, kind: input, shape index: {}]   ;;  %s8396_s22 = inlined_call_operand.vmem [shape: bf16[144,128], index: 22, kind: input, shape index: {}]   ;;  %s8397_s23 = inlined_call_operand.vmem [shape: f32[1,128], index: 23, kind: input, shape index: {}]   ;;  %s8398_s24 = inlined_call_operand.vmem [shape: f32[176,128], index: 24, kind: output, shape index: {}]  }
   0x1   :  { %8434 = sst [smem:[#allocation4_spill]] %s8374_s0 }
   0x2   :  { %8435 = sst [smem:[#allocation5_spill]] %s8375_s1 }
   0x3   :  { %8436 = sst [smem:[#allocation6_spill]] %s8376_s2 }
   0x4   :  { %8437 = sst [smem:[#allocation7_spill]] %s8377_s3 }
   0x5   :  { %8438 = sst [smem:[#allocation8_spill]] %s8378_s4 }
   0x6   :  { %8439 = sst [smem:[#allocation9_spill]] %s8379_s5  ;;  %s6314_s5 = smov 0  }
   0x7   :  { %8440 = sst [smem:[#allocation10_spill]] %s8380_s6 }
   0x8   :  { %8441 = sst [smem:[#allocation11_spill]] %s8381_s7 }
   0x9   :  { %8442 = sst [smem:[#allocation12_spill]] %s8382_s8 }
   0xa   :  { %8443 = sst [smem:[#allocation13_spill]] %s8383_s9 }
   0xb   :  { %8444 = sst [smem:[#allocation14_spill]] %s8384_s10 }
   0xc LB: > { %s8403_s26 = sadd.s32 4294967295, %s6170_s5   ;;  %p5700_p0 = scmp.ge.s32.totalorder %s6170_s5, 1  ;;  %s6170_s5 = sphi %s6314_s5, %s34_s5  }
   0xd   : > { %p663_p1 = scmp.lt.s32.totalorder %s6170_s5, 3 }
   0xf   : > { %p664_p2 = pnand %p5700_p0, %p663_p1 }
  0x10   : > { %s6324_s27 = sshll.u32 (!%p664_p2), %s8403_s26, 5  ;;  %v781_v0 = vlaneseq (!%p664_p2)  ;;  %vm742_vm0 = vcmask (!%p664_p2), 785408   ;;  %v6172_v1 = vmov (!%p664_p2), 0.0   ;;  %vm1147_vm1 = vcmask (!%p664_p2), 31744   ;;  %s8445_s29 = sld [smem:[#allocation4_spill]] (!%p664_p2) }
  0x11   : > { %667 = sbr.rel (%p664_p2) target bundleno = 3613 (0xe1d), region = 116  ;;  %p730_p3 = scmp.lt.s32.totalorder (!%p664_p2), %s6324_s27, 63  ;;  %747 = vst.msk [vmem:[#allocation2 + $0x20] sm:$0xff] (!%p664_p2), %vm742_vm0, %v6172_v1  ;;  %743 = vst.msk [vmem:[#allocation2] sm:$0xff] (!%p664_p2), %vm742_vm0, %v6172_v1 }
  0x12   : > { %744 = vst.msk [vmem:[#allocation2 + $0x8] sm:$0xff] (!%p664_p2), %vm742_vm0, %v6172_v1  ;;  %745 = vst.msk [vmem:[#allocation2 + $0x10] sm:$0xff] (!%p664_p2), %vm742_vm0, %v6172_v1  ;;  %v6403_v2 = vshrl.u32 (!%p664_p2), %v781_v0, 7  ;;  %s8421_s7 = smov (!%p664_p2), 32   ;;  %s8425_s30 = smov (!%p664_p2), 64  }
  0x13   : > { %746 = vst.msk [vmem:[#allocation2 + $0x18] sm:$0xff] (!%p664_p2), %vm742_vm0, %v6172_v1  ;;  %748 = vst.msk [vmem:[#allocation2 + $0x28] sm:$0xff] (!%p664_p2), %vm742_vm0, %v6172_v1  ;;  %s6175_s3 = smov (!%p664_p2), 4   ;;  %s6176_s25 = smov (!%p664_p2), 104  }
  0x14   : > { %749 = vst.msk [vmem:[#allocation2 + $0x30] sm:$0xff] (!%p664_p2), %vm742_vm0, %v6172_v1  ;;  %750 = vst.msk [vmem:[#allocation2 + $0x38] sm:$0xff] (!%p664_p2), %vm742_vm0, %v6172_v1  ;;  %v6415_v3 = vadd.s32 (!%p664_p2), 8, %v6403_v2  ;;  %v814_v4 = vand.u32 (!%p664_p2), 15, %v6403_v2  ;;  %v6419_v5 = vadd.s32 (!%p664_p2), 24, %v6403_v2  ;;  %v6422_v6 = vadd.s32 (!%p664_p2), 16, %v6403_v2 }
  0x15   : > { %751 = vst.msk [vmem:[#allocation2 + $0x40] sm:$0xff] (!%p664_p2), %vm742_vm0, %v6172_v1  ;;  %752 = vst.msk [vmem:[#allocation2 + $0x48] sm:$0xff] (!%p664_p2), %vm742_vm0, %v6172_v1  ;;  %v6436_v10 = vadd.s32 (!%p664_p2), 32, %v6403_v2  ;;  %v6462_v20 = vadd.s32 (!%p664_p2), 40, %v6403_v2  ;;  %v6544_v41 = vadd.s32 (!%p664_p2), 48, %v6403_v2  ;;  %v6603_v56 = vadd.s32 (!%p664_p2), 56, %v6403_v2 }
  0x16   : > { %753 = vst.msk [vmem:[#allocation2 + $0x50] sm:$0xff] (!%p664_p2), %vm742_vm0, %v6172_v1  ;;  %754 = vst.msk [vmem:[#allocation2 + $0x58] sm:$0xff] (!%p664_p2), %vm742_vm0, %v6172_v1  ;;  %v815_v7 = vand.u32 (!%p664_p2), 15, %v6415_v3  ;;  %vm6430_vm2 = vcmp.ne.s32.totalorder (!%p664_p2), %v814_v4, 0  ;;  %v817_v9 = vand.u32 (!%p664_p2), 15, %v6419_v5  ;;  %v816_v14 = vand.u32 (!%p664_p2), 15, %v6422_v6 }
  0x17   : > { %755 = vst.msk [vmem:[#allocation2 + $0x60] sm:$0xff] (!%p664_p2), %vm742_vm0, %v6172_v1  ;;  %756 = vst.msk [vmem:[#allocation2 + $0x68] sm:$0xff] (!%p664_p2), %vm742_vm0, %v6172_v1  ;;  %v5704_v18 = vsel (!%p664_p2), %vm6430_vm2, 1.0, %v6172_v1  ;;  %v818_v24 = vand.u32 (!%p664_p2), 15, %v6436_v10  ;;  %v819_v40 = vand.u32 (!%p664_p2), 15, %v6462_v20  ;;  %v820_v55 = vand.u32 (!%p664_p2), 15, %v6544_v41 }
  0x18   : > { %757 = vst.msk [vmem:[#allocation2 + $0x70] sm:$0xff] %vm742_vm0, %v6172_v1  ;;  %758 = vst.msk [vmem:[#allocation2 + $0x78] sm:$0xff] %vm742_vm0, %v6172_v1  ;;  %s8500_s27 = smov (!%p730_p3, %s6324_s27), 63  ;;  %vm943_vm3 = vcmp.ne.s32.totalorder %v815_v7, 15  ;;  %vm6470_vm4 = vcmp.ne.s32.totalorder %v817_v9, 15  ;;  %vm6474_vm5 = vcmp.ne.s32.totalorder %v816_v14, 0 }
  0x19   : > { %759 = vst.msk [vmem:[#allocation2 + $0x80] sm:$0xff] %vm742_vm0, %v6172_v1  ;;  %760 = vst.msk [vmem:[#allocation2 + $0x88] sm:$0xff] %vm742_vm0, %v6172_v1  ;;  %s5702_s28 = sshll.u32 %s8500_s27, 3  ;;  %v5720_v17 = vsel %vm943_vm3, 1.0, %v6172_v1  ;;  %v5721_v35 = vsel %vm6470_vm4, 1.0, %v6172_v1  ;;  %v5705_v36 = vsel %vm6474_vm5, 1.0, %v6172_v1 }
  0x1a   : > { %761 = vst.msk [vmem:[#allocation2 + $0x90] sm:$0xff] %vm742_vm0, %v6172_v1  ;;  %762 = vst.msk [vmem:[#allocation2 + $0x98] sm:$0xff] %vm742_vm0, %v6172_v1  ;;  %s6427_s0 = scalar_lea.vmem %s8445_s29, %s5702_s28  ;;  %vm6538_vm6 = vcmp.ne.s32.totalorder %v818_v24, 0  ;;  %vm6597_vm7 = vcmp.ne.s32.totalorder %v819_v40, 15  ;;  %vm852_vm8 = vcmp.ne.s32.totalorder %v820_v55, 0  ;;  %v821_v4 = vand.u32 15, %v6603_v56 }
  0x1b   : > { %763 = vst.msk [vmem:[#allocation2 + $0xa0] sm:$0xff] %vm742_vm0, %v6172_v1  ;;  %764 = vst.msk [vmem:[#allocation2 + $0xa8] sm:$0xff] %vm742_vm0, %v6172_v1  ;;  %v1116_v11 = vld [vmem:[%s6427_s0 + $0x8] sm:$0xff]  ;;  %v1115_v12 = vld [vmem:[%s6427_s0] sm:$0xff]  ;;  %v5706_v51 = vsel %vm6538_vm6, 1.0, %v6172_v1  ;;  %v5722_v0 = vsel %vm6597_vm7, 1.0, %v6172_v1 }
  0x1c   : > { %765 = vst.msk [vmem:[#allocation2 + $0xb0] sm:$0xff] %vm742_vm0, %v6172_v1  ;;  %766 = vst.msk [vmem:[#allocation2 + $0xb8] sm:$0xff] %vm742_vm0, %v6172_v1  ;;  %v6441_v13 = vld [vmem:[%s6427_s0 + $0x10] sm:$0xff]  ;;  %1246 = vrot.lane.b32.xlu0 %v1116_v11, %s8421_s7  ;;  %1437 = vrot.lane.b32.xlu1 %v1115_v12, %s8425_s30  ;;  %v1118_v15 = vld [vmem:[%s6427_s0 + $0x18] sm:$0xff]  ;;  %v1374_v31 = vmul.f32 %v5720_v17, %v1116_v11  ;;  %v1180_v32 = vmul.f32 %v5704_v18, %v1115_v12  ;;  %v790_v7 = vadd.s32 64, %v6403_v2  ;;  %s6177_s8 = smov 76  }
  0x1d   : > { %767 = vst.msk [vmem:[#allocation2 + $0xc0] sm:$0xff] %vm742_vm0, %v6172_v1  ;;  %768 = vst.msk [vmem:[#allocation2 + $0xc8] sm:$0xff] %vm742_vm0, %v6172_v1  ;;  %v6448_v16 = vld [vmem:[%s6427_s0 + $0x28] sm:$0xff]  ;;  %v6459_v19 = vld [vmem:[%s6427_s0 + $0x20] sm:$0xff]  ;;  %v1376_v47 = vmul.f32 %v5721_v35, %v1118_v15  ;;  %v1182_v48 = vmul.f32 %v5705_v36, %v6441_v13  ;;  %v5707_v9 = vsel %vm852_vm8, 1.0, %v6172_v1  ;;  %vm949_vm9 = vcmp.ne.s32.totalorder %v821_v4, 15 }
  0x1e   : > { %769 = vst.msk [vmem:[#allocation2 + $0xd0] sm:$0xff] %vm742_vm0, %v6172_v1  ;;  %770 = vst.msk [vmem:[#allocation2 + $0xd8] sm:$0xff] %vm742_vm0, %v6172_v1  ;;  %v6465_v21 = vld [vmem:[%s6427_s0 + $0x38] sm:$0xff]  ;;  %v6480_v25 = vld [vmem:[%s6427_s0 + $0x30] sm:$0xff]  ;;  %v1184_v62 = vmul.f32 %v5706_v51, %v6459_v19  ;;  %v1378_v8 = vmul.f32 %v5722_v0, %v6448_v16  ;;  %v5723_v14 = vsel %vm949_vm9, 1.0, %v6172_v1  ;;  %v792_v17 = vadd.s32 80, %v6403_v2 }
  0x1f   : > { %771 = vst.msk [vmem:[#allocation2 + $0xe0] sm:$0xff] %vm742_vm0, %v6172_v1  ;;  %772 = vst.msk [vmem:[#allocation2 + $0xe8] sm:$0xff] %vm742_vm0, %v6172_v1  ;;  %v6483_v26 = vld [vmem:[%s6427_s0 + $0x48] sm:$0xff]  ;;  %v6486_v27 = vld [vmem:[%s6427_s0 + $0x40] sm:$0xff]  ;;  %v794_v18 = vadd.s32 96, %v6403_v2  ;;  %v795_v22 = vadd.s32 104, %v6403_v2 }
  0x20   : > { %773 = vst.msk [vmem:[#allocation2 + $0xf0] sm:$0xff] %vm742_vm0, %v6172_v1  ;;  %774 = vst.msk [vmem:[#allocation2 + $0xf8] sm:$0xff] %vm742_vm0, %v6172_v1  ;;  %v6493_v28 = vld [vmem:[%s6427_s0 + $0x58] sm:$0xff]  ;;  %v6496_v29 = vld [vmem:[%s6427_s0 + $0x50] sm:$0xff]  ;;  %1441 = vrot.lane.b32.xlu0 %v6441_v13, %s8425_s30  ;;  %1250 = vrot.lane.b32.xlu1 %v1118_v15, %s8421_s7  ;;  %v796_v23 = vadd.s32 112, %v6403_v2  ;;  %v799_v51 = vadd.s32 136, %v6403_v2 }
  0x21   : > { %775 = vst.msk [vmem:[#allocation2 + $0x100] sm:$0xff] %vm742_vm0, %v6172_v1  ;;  %776 = vst.msk [vmem:[#allocation2 + $0x108] sm:$0xff] %vm742_vm0, %v6172_v1  ;;  %v6499_v30 = vld [vmem:[%s6427_s0 + $0x68] sm:$0xff]  ;;  %v6511_v33 = vld [vmem:[%s6427_s0 + $0x60] sm:$0xff]  ;;  %v826_v35 = vand.u32 15, %v794_v18  ;;  %v827_v36 = vand.u32 15, %v795_v22 }
  0x22   : > { %777 = vst.msk [vmem:[#allocation2 + $0x110] sm:$0xff] %vm742_vm0, %v6172_v1  ;;  %778 = vst.msk [vmem:[#allocation2 + $0x118] sm:$0xff] %vm742_vm0, %v6172_v1  ;;  %v6514_v34 = vld [vmem:[%s6427_s0 + $0x78] sm:$0xff]  ;;  %v6529_v37 = vld [vmem:[%s6427_s0 + $0x70] sm:$0xff]  ;;  %v828_v40 = vand.u32 15, %v796_v23  ;;  %s8404_s4 = smov 16  }
  0x23   : > { %779 = vst.msk [vmem:[#allocation2 + $0x120] sm:$0xff] %vm742_vm0, %v6172_v1  ;;  %780 = vst.msk [vmem:[#allocation2 + $0x128] sm:$0xff] %vm742_vm0, %v6172_v1  ;;  %v6532_v38 = vld [vmem:[%s6427_s0 + $0x88] sm:$0xff]  ;;  %v6547_v42 = vld [vmem:[%s6427_s0 + $0x80] sm:$0xff]  ;;  %vm858_vm14 = vcmp.ne.s32.totalorder %v826_v35, 0  ;;  %vm955_vm15 = vcmp.ne.s32.totalorder %v827_v36, 15 }
  0x24   : > { %1566 = vst.msk [vmem:[#allocation2 + $0x118] sm:$0xff] %vm742_vm0, %v6172_v1  ;;  %1567 = vst.msk [vmem:[#allocation2 + $0x120] sm:$0xff] %vm742_vm0, %v6172_v1  ;;  %v6550_v43 = vld [vmem:[%s6427_s0 + $0x98] sm:$0xff]  ;;  %v6557_v44 = vld [vmem:[%s6427_s0 + $0x90] sm:$0xff]  ;;  %1439 = vrot.lane.b32.xlu1 %v1374_v31, %s8425_s30  ;;  %1244 = vrot.lane.b32.xlu0 %v1180_v32, %s8421_s7  ;;  %v824_v31 = vand.u32 15, %v792_v17  ;;  %vm860_vm2 = vcmp.ne.s32.totalorder %v828_v40, 0 }
  0x25   : > { %1568 = vst.msk [vmem:[#allocation2 + $0x128] sm:$0xff] %vm742_vm0, %v6172_v1  ;;  %v6560_v45 = vld [vmem:[%s6427_s0 + $0xa8] sm:$0xff]  ;;  %v6563_v46 = vld [vmem:[%s6427_s0 + $0xa0] sm:$0xff]  ;;  %v6573_v49 = vld [vmem:[%s6427_s0 + $0xb8] sm:$0xff]  ;;  %v5710_v0 = vsel %vm858_vm14, 1.0, %v6172_v1  ;;  %v5726_v4 = vsel %vm955_vm15, 1.0, %v6172_v1 }
  0x26   : > { %1149 = vst.msk [vmem:[#allocation2 + $0x20] sm:$0xff] %vm1147_vm1, %v1116_v11  ;;  %1148 = vst.msk [vmem:[#allocation2 + $0x18] sm:$0xff] %vm1147_vm1, %v1115_v12  ;;  %v6576_v50 = vld [vmem:[%s6427_s0 + $0xb0] sm:$0xff]  ;;  %v6588_v52 = vld [vmem:[%s6427_s0 + $0xc8] sm:$0xff]  ;;  %v822_v11 = vand.u32 15, %v790_v7  ;;  %v791_v12 = vadd.s32 72, %v6403_v2  ;;  %v1192_v17 = vmul.f32 %v5710_v0, %v6511_v33 }
  0x27   : > { %1150 = vst.msk [vmem:[#allocation2 + $0x28] sm:$0xff] %vm1147_vm1, %v6441_v13  ;;  %1151 = vst.msk [vmem:[#allocation2 + $0x30] sm:$0xff] %vm1147_vm1, %v1118_v15  ;;  %v6591_v53 = vld [vmem:[%s6427_s0 + $0xc0] sm:$0xff]  ;;  %v6606_v57 = vld [vmem:[%s6427_s0 + $0xd8] sm:$0xff]  ;;  %v1186_v13 = vmul.f32 %v5707_v9, %v6480_v25  ;;  %vm856_vm12 = vcmp.ne.s32.totalorder %v824_v31, 0  ;;  %v5711_v7 = vsel %vm860_vm2, 1.0, %v6172_v1 }
  0x28   : > { %1153 = vst.msk [vmem:[#allocation2 + $0x40] sm:$0xff] %vm1147_vm1, %v6448_v16  ;;  %1152 = vst.msk [vmem:[#allocation2 + $0x38] sm:$0xff] %vm1147_vm1, %v6459_v19  ;;  %v6609_v58 = vld [vmem:[%s6427_s0 + $0xd0] sm:$0xff]  ;;  %v6616_v59 = vld [vmem:[%s6427_s0 + $0xe8] sm:$0xff]  ;;  %1443 = vrot.lane.b32.xlu1 %v1376_v47, %s8425_s30  ;;  %1248 = vrot.lane.b32.xlu0 %v1182_v48, %s8421_s7  ;;  %vm854_vm10 = vcmp.ne.s32.totalorder %v822_v11, 0  ;;  %v823_v15 = vand.u32 15, %v791_v12 }
  0x29   : > { %1155 = vst.msk [vmem:[#allocation2 + $0x50] sm:$0xff] %vm1147_vm1, %v6465_v21  ;;  %1154 = vst.msk [vmem:[#allocation2 + $0x48] sm:$0xff] %vm1147_vm1, %v6480_v25  ;;  %v6619_v60 = vld [vmem:[%s6427_s0 + $0xe0] sm:$0xff]  ;;  %v6626_v61 = vld [vmem:[%s6427_s0 + $0xf8] sm:$0xff]  ;;  %v5708_v24 = vsel %vm854_vm10, 1.0, %v6172_v1  ;;  %v798_v48 = vadd.s32 128, %v6403_v2 }
  0x2a   : > { %1156 = vst.msk [vmem:[#allocation2 + $0x58] sm:$0xff] %vm1147_vm1, %v6486_v27  ;;  %1157 = vst.msk [vmem:[#allocation2 + $0x60] sm:$0xff] %vm1147_vm1, %v6483_v26  ;;  %v6638_v63 = vld [vmem:[%s6427_s0 + $0xf0] sm:$0xff]  ;;  %vm951_vm11 = vcmp.ne.s32.totalorder %v823_v15, 15  ;;  %v1188_v39 = vmul.f32 %v5708_v24, %v6486_v27  ;;  %v5709_v54 = vsel %vm856_vm12, 1.0, %v6172_v1  ;;  %v831_v9 = vand.u32 15, %v799_v51 }
  0x2b   : > { %1158 = vst.msk [vmem:[#allocation2 + $0x68] sm:$0xff] %vm1147_vm1, %v6496_v29  ;;  %1159 = vst.msk [vmem:[#allocation2 + $0x70] sm:$0xff] %vm1147_vm1, %v6493_v28  ;;  %v5724_v47 = vsel %vm951_vm11, 1.0, %v6172_v1  ;;  %v800_v11 = vadd.s32 144, %v6403_v2  ;;  %v801_v12 = vadd.s32 152, %v6403_v2  ;;  %v803_v15 = vadd.s32 168, %v6403_v2 }
  0x2c   : > { %1161 = vst.msk [vmem:[#allocation2 + $0x80] sm:$0xff] %vm1147_vm1, %v6499_v30  ;;  %1160 = vst.msk [vmem:[#allocation2 + $0x78] sm:$0xff] %vm1147_vm1, %v6511_v33  ;;  %1254 = vrot.lane.b32.xlu1 %v6448_v16, %s8421_s7  ;;  %1252 = vrot.lane.b32.xlu0 %v1184_v62, %s8421_s7  ;;  %v793_v16 = vadd.s32 88, %v6403_v2  ;;  %vm959_vm5 = vcmp.ne.s32.totalorder %v831_v9, 15  ;;  %v805_v40 = vadd.s32 184, %v6403_v2  ;;  %v808_v0 = vadd.s32 208, %v6403_v2 }
  0x2d   : > { %1163 = vst.msk [vmem:[#allocation2 + $0x90] sm:$0xff] %vm1147_vm1, %v6514_v34  ;;  %1162 = vst.msk [vmem:[#allocation2 + $0x88] sm:$0xff] %vm1147_vm1, %v6529_v37  ;;  %v832_v18 = vand.u32 15, %v800_v11  ;;  %v5728_v22 = vsel %vm959_vm5, 1.0, %v6172_v1  ;;  %v810_v11 = vadd.s32 224, %v6403_v2  ;;  %vm1340_vm5 = vcmask 294144  }
  0x2e   : > { %1165 = vst.msk [vmem:[#allocation2 + $0xa0] sm:$0xff] %vm1147_vm1, %v6532_v38  ;;  %1164 = vst.msk [vmem:[#allocation2 + $0x98] sm:$0xff] %vm1147_vm1, %v6547_v42  ;;  %v825_v32 = vand.u32 15, %v793_v16  ;;  %v1390_v31 = vmul.f32 %v5728_v22, %v6532_v38  ;;  %s8456_s28 = sld [smem:[#allocation5_spill]]  ;;  %s6179_s29 = smov 116  }
  0x2f   : > { %1167 = vst.msk [vmem:[#allocation2 + $0xb0] sm:$0xff] %vm1147_vm1, %v6550_v43  ;;  %1166 = vst.msk [vmem:[#allocation2 + $0xa8] sm:$0xff] %vm1147_vm1, %v6557_v44  ;;  %vm864_vm6 = vcmp.ne.s32.totalorder %v832_v18, 0  ;;  %s8423_s0 = smov 88   ;;  %s6181_s6 = smov 28  }
  0x30   : > { %1168 = vst.msk [vmem:[#allocation2 + $0xb8] sm:$0xff] %vm1147_vm1, %v6563_v46  ;;  %1169 = vst.msk [vmem:[#allocation2 + $0xc0] sm:$0xff] %vm1147_vm1, %v6560_v45  ;;  %1447 = vrot.lane.b32.xlu1 %v1378_v8, %s8425_s30  ;;  %1445 = vrot.lane.b32.xlu0 %v6459_v19, %s8425_s30  ;;  %v1380_v19 = vmul.f32 %v5723_v14, %v6465_v21  ;;  %vm953_vm13 = vcmp.ne.s32.totalorder %v825_v32, 15  ;;  %v830_v8 = vand.u32 15, %v798_v48  ;;  %v5713_v24 = vsel %vm864_vm6, 1.0, %v6172_v1  ;;  %s8430_s2 = smov 8  }
  0x31   : > { %1170 = vst.msk [vmem:[#allocation2 + $0xc8] sm:$0xff] %vm1147_vm1, %v6576_v50  ;;  %1171 = vst.msk [vmem:[#allocation2 + $0xd0] sm:$0xff] %vm1147_vm1, %v6573_v49  ;;  %v5725_v62 = vsel %vm953_vm13, 1.0, %v6172_v1  ;;  %v804_v32 = vadd.s32 176, %v6403_v2  ;;  %v806_v48 = vadd.s32 192, %v6403_v2  ;;  %s8459_s1 = sld [smem:[#allocation8_spill]] }
  0x32   : > { %1172 = vst.msk [vmem:[#allocation2 + $0xd8] sm:$0xff] %vm1147_vm1, %v6591_v53  ;;  %1173 = vst.msk [vmem:[#allocation2 + $0xe0] sm:$0xff] %vm1147_vm1, %v6588_v52  ;;  %v1384_v14 = vmul.f32 %v5725_v62, %v6493_v28  ;;  %vm862_vm4 = vcmp.ne.s32.totalorder %v830_v8, 0  ;;  %s8413_s26 = smov 48   ;;  %s8462_s27 = sld [smem:[#allocation12_spill]] }
  0x33   : > { %1174 = vst.msk [vmem:[#allocation2 + $0xe8] sm:$0xff] %vm1147_vm1, %v6609_v58  ;;  %1175 = vst.msk [vmem:[#allocation2 + $0xf0] sm:$0xff] %vm1147_vm1, %v6606_v57  ;;  %v5712_v16 = vsel %vm862_vm4, 1.0, %v6172_v1  ;;  %v838_v51 = vand.u32 15, %v806_v48  ;;  %s8464_s9 = sld [smem:[#allocation13_spill]]  ;;  %s8465_s10 = sld [smem:[#allocation14_spill]] }
  0x34   : > { %1176 = vst.msk [vmem:[#allocation2 + $0xf8] sm:$0xff] %vm1147_vm1, %v6619_v60  ;;  %1177 = vst.msk [vmem:[#allocation2 + $0x100] sm:$0xff] %vm1147_vm1, %v6616_v59  ;;  %1258 = vrot.lane.b32.xlu1 %v6465_v21, %s8421_s7  ;;  %1256 = vrot.lane.b32.xlu0 %v1186_v13, %s8421_s7  ;;  %v797_v21 = vadd.s32 120, %v6403_v2  ;;  %v802_v13 = vadd.s32 160, %v6403_v2 }
  0x35   : > { %1179 = vst.msk [vmem:[#allocation2 + $0x110] sm:$0xff] %vm1147_vm1, %v6626_v61  ;;  %1178 = vst.msk [vmem:[#allocation2 + $0x108] sm:$0xff] %vm1147_vm1, %v6638_v63  ;;  %vm870_vm12 = vcmp.ne.s32.totalorder %v838_v51, 0 }
  0x36   : > { %v829_v55 = vand.u32 15, %v797_v21  ;;  %v834_v23 = vand.u32 15, %v802_v13  ;;  %v837_v21 = vand.u32 15, %v805_v40  ;;  %v842_v13 = vand.u32 15, %v810_v11 }
  0x38   : > { %1451 = vrot.lane.b32.xlu1 %v1380_v19, %s8425_s30  ;;  %1449 = vrot.lane.b32.xlu0 %v6480_v25, %s8425_s30  ;;  %v1382_v25 = vmul.f32 %v5724_v47, %v6483_v26  ;;  %vm957_vm3 = vcmp.ne.s32.totalorder %v829_v55, 15  ;;  %v833_v19 = vand.u32 15, %v801_v12  ;;  %vm866_vm8 = vcmp.ne.s32.totalorder %v834_v23, 0 }
  0x39   : > { %v5714_v36 = vsel %vm866_vm8, 1.0, %v6172_v1  ;;  %vm965_vm11 = vcmp.ne.s32.totalorder %v837_v21, 15  ;;  %vm874_vm2 = vcmp.ne.s32.totalorder %v842_v13, 0  ;;  %v1826_v21 = vld [vmem:[#allocation2 + $0x9] sm:$0xff]  ;;  %v6081_v13 = vld [vmem:[%s8456_s28] sm:$0xff]   ;;  %vm8408_vm8 = vcmask 1041408  }
  0x3a   : > { %vm961_vm7 = vcmp.ne.s32.totalorder %v833_v19, 15  ;;  %v5731_v55 = vsel %vm965_vm11, 1.0, %v6172_v1  ;;  %5942 = vmatprep.subr.bf16.mxu0 %v6081_v13  ;;  %vm2067_vm11 = vcmask 130144  }
  0x3b   : > { %v5729_v35 = vsel %vm961_vm7, 1.0, %v6172_v1  ;;  %vm1533_vm7 = vcmask 556544   ;;  %5943 = vmatpush3.bf16.msra.mxu0 %v6081_v13 }
  0x3c   : > { %1262 = vrot.lane.b32.xlu1 %v6483_v26, %s8421_s7  ;;  %1260 = vrot.lane.b32.xlu0 %v1188_v39, %s8421_s7  ;;  %v1190_v26 = vmul.f32 %v5709_v54, %v6496_v29  ;;  %v836_v39 = vand.u32 15, %v804_v32  ;;  %v1570_v32 = vld [vmem:[#allocation2 + $0xf] sm:$0xff] }
  0x3e   : > { %vm868_vm10 = vcmp.ne.s32.totalorder %v836_v39, 0 }
  0x40   : > { %1455 = vrot.lane.b32.xlu1 %v1382_v25, %s8425_s30  ;;  %1453 = vrot.lane.b32.xlu0 %v6486_v27, %s8425_s30  ;;  %v5727_v27 = vsel %vm957_vm3, 1.0, %v6172_v1  ;;  %v5715_v25 = vsel %vm868_vm10, 1.0, %v6172_v1  ;;  %vm1938_vm10 = vcmask 97344  }
  0x41   : > { %v1202_v54 = vmul.f32 %v5715_v25, %v6576_v50 }
  0x44   : > { %1266 = vrot.lane.b32.xlu1 %v6493_v28, %s8421_s7  ;;  %1264 = vrot.lane.b32.xlu0 %v1190_v26, %s8421_s7  ;;  %v1386_v28 = vmul.f32 %v5726_v4, %v6499_v30  ;;  %v5716_v4 = vsel %vm870_vm12, 1.0, %v6172_v1  ;;  %vm2196_vm12 = vcmask 162944  }
  0x45   : > { %v1204_v26 = vmul.f32 %v5716_v4, %v6591_v53 }
  0x48   : > { %1459 = vrot.lane.b32.xlu1 %v1384_v14, %s8425_s30  ;;  %1457 = vrot.lane.b32.xlu0 %v6496_v29, %s8425_s30  ;;  %v1194_v29 = vmul.f32 %v5711_v7, %v6529_v37  ;;  %v840_v7 = vand.u32 15, %v808_v0 }
  0x4a   : > { %vm872_vm14 = vcmp.ne.s32.totalorder %v840_v7, 0 }
  0x4b   : > { %v5717_v12 = vsel %vm872_vm14, 1.0, %v6172_v1  ;;  %vm2454_vm14 = vcmask 228544  }
  0x4c   : > { %1270 = vrot.lane.b32.xlu1 %v6499_v30, %s8421_s7  ;;  %1268 = vrot.lane.b32.xlu0 %v1192_v17, %s8421_s7  ;;  %v1388_v30 = vmul.f32 %v5727_v27, %v6514_v34  ;;  %v1206_v14 = vmul.f32 %v5717_v12, %v6609_v58  ;;  %v812_v17 = vadd.s32 240, %v6403_v2 }
  0x50   : > { %1463 = vrot.lane.b32.xlu1 %v1386_v28, %s8425_s30  ;;  %1461 = vrot.lane.b32.xlu0 %v6511_v33, %s8425_s30  ;;  %v1196_v33 = vmul.f32 %v5712_v16, %v6547_v42  ;;  %v5718_v28 = vsel %vm874_vm2, 1.0, %v6172_v1  ;;  %v844_v16 = vand.u32 15, %v812_v17  ;;  %v6082_v17 = vld [vmem:[%s8456_s28 + $0x8] sm:$0xff]   ;;  %vm2707_vm2 = vcmask 293888  }
  0x51   : > { %v1208_v18 = vmul.f32 %v5718_v28, %v6619_v60  ;;  %5944 = vmatprep.subr.bf16.mxu0 %v6082_v17 }
  0x52   : > { %vm876_vm4 = vcmp.ne.s32.totalorder %v844_v16, 0  ;;  %5945 = vmatpush3.bf16.msra.mxu0 %v6082_v17 }
  0x53   : > { %v5719_v19 = vsel %vm876_vm4, 1.0, %v6172_v1 }
  0x54   : > { %1274 = vrot.lane.b32.xlu1 %v6514_v34, %s8421_s7  ;;  %1272 = vrot.lane.b32.xlu0 %v1194_v29, %s8421_s7  ;;  %v835_v34 = vand.u32 15, %v803_v15 }
  0x56   : > { %vm963_vm9 = vcmp.ne.s32.totalorder %v835_v34, 15  ;;  %v1569_v34 = vld [vmem:[#allocation2 + $0x7] sm:$0xff] }
  0x57   : > { %v5730_v47 = vsel %vm963_vm9, 1.0, %v6172_v1  ;;  %vm1809_vm9 = vcmask 64544  }
  0x58   : > { %1467 = vrot.lane.b32.xlu1 %v1388_v30, %s8425_s30  ;;  %1465 = vrot.lane.b32.xlu0 %v6529_v37, %s8425_s30  ;;  %v1198_v37 = vmul.f32 %v5713_v24, %v6557_v44 }
  0x5c   : > { %1278 = vrot.lane.b32.xlu1 %v6532_v38, %s8421_s7  ;;  %1276 = vrot.lane.b32.xlu0 %v1196_v33, %s8421_s7  ;;  %v1392_v38 = vmul.f32 %v5729_v35, %v6550_v43  ;;  %v1601_v35 = vpack.c.bf16 %v1570_v32, %v1569_v34 }
  0x60   : > { %1471 = vrot.lane.b32.xlu1 %v1390_v31, %s8425_s30  ;;  %1469 = vrot.lane.b32.xlu0 %v6547_v42, %s8425_s30  ;;  %v1200_v42 = vmul.f32 %v5714_v36, %v6563_v46  ;;  %v1698_v36 = vld [vmem:[#allocation2 + $0x10] sm:$0xff] }
  0x64   : > { %1282 = vrot.lane.b32.xlu1 %v6550_v43, %s8421_s7  ;;  %1280 = vrot.lane.b32.xlu0 %v1198_v37, %s8421_s7  ;;  %v1394_v43 = vmul.f32 %v5730_v47, %v6560_v45 }
  0x68   : > { %1475 = vrot.lane.b32.xlu1 %v1392_v38, %s8425_s30  ;;  %1473 = vrot.lane.b32.xlu0 %v6557_v44, %s8425_s30  ;;  %v807_v44 = vadd.s32 200, %v6403_v2  ;;  %v1697_v38 = vld [vmem:[#allocation2 + $0x8] sm:$0xff] }
  0x69   : > { %v1729_v40 = vpack.c.bf16 %v1698_v36, %v1697_v38 }
  0x6a   : > { %v839_v62 = vand.u32 15, %v807_v44 }
  0x6c   : > { %1286 = vrot.lane.b32.xlu1 %v6560_v45, %s8421_s7  ;;  %1284 = vrot.lane.b32.xlu0 %v1200_v42, %s8421_s7  ;;  %v1396_v45 = vmul.f32 %v5731_v55, %v6573_v49  ;;  %vm967_vm13 = vcmp.ne.s32.totalorder %v839_v62, 15 }
  0x6d   : > { %v5732_v8 = vsel %vm967_vm13, 1.0, %v6172_v1  ;;  %vm2325_vm13 = vcmask 195744  }
  0x70   : > { %1479 = vrot.lane.b32.xlu1 %v1394_v43, %s8425_s30  ;;  %1477 = vrot.lane.b32.xlu0 %v6563_v46, %s8425_s30  ;;  %v809_v46 = vadd.s32 216, %v6403_v2 }
  0x72   : > { %v841_v9 = vand.u32 15, %v809_v46 }
  0x74   : > { %1290 = vrot.lane.b32.xlu1 %v6573_v49, %s8421_s7  ;;  %1288 = vrot.lane.b32.xlu0 %v1202_v54, %s8421_s7  ;;  %v1398_v49 = vmul.f32 %v5732_v8, %v6588_v52  ;;  %vm969_vm15 = vcmp.ne.s32.totalorder %v841_v9, 15 }
  0x75   : > { %v5733_v27 = vsel %vm969_vm15, 1.0, %v6172_v1  ;;  %vm2583_vm15 = vcmask 261344  }
  0x78   : > { %1483 = vrot.lane.b32.xlu1 %v1396_v45, %s8425_s30  ;;  %1481 = vrot.lane.b32.xlu0 %v6576_v50, %s8425_s30  ;;  %v811_v50 = vadd.s32 232, %v6403_v2 }
  0x7a   : > { %v843_v15 = vand.u32 15, %v811_v50 }
  0x7c   : > { %1294 = vrot.lane.b32.xlu1 %v6588_v52, %s8421_s7  ;;  %1292 = vrot.lane.b32.xlu0 %v1204_v26, %s8421_s7  ;;  %v1400_v52 = vmul.f32 %v5733_v27, %v6606_v57  ;;  %vm971_vm3 = vcmp.ne.s32.totalorder %v843_v15, 15 }
  0x7d   : > { %v5734_v29 = vsel %vm971_vm3, 1.0, %v6172_v1 }
  0x80   : > { %1487 = vrot.lane.b32.xlu1 %v1398_v49, %s8425_s30  ;;  %1485 = vrot.lane.b32.xlu0 %v6591_v53, %s8425_s30  ;;  %v813_v53 = vadd.s32 248, %v6403_v2 }
  0x82   : > { %v845_v22 = vand.u32 15, %v813_v53 }
  0x84   : > { %1298 = vrot.lane.b32.xlu1 %v6606_v57, %s8421_s7  ;;  %1296 = vrot.lane.b32.xlu0 %v1206_v14, %s8421_s7  ;;  %v1402_v57 = vmul.f32 %v5734_v29, %v6616_v59  ;;  %vm973_vm6 = vcmp.ne.s32.totalorder %v845_v22, 15  ;;  %v6083_v22 = vld [vmem:[%s8456_s28 + $0x10] ss:$0 sps:$4 sm:$0x33]  }
  0x85   : > { %v5735_v33 = vsel %vm973_vm6, 1.0, %v6172_v1  ;;  %6054 = vmatprep.subr.msk.bf16.mxu0 %vm8408_vm8, %v6083_v22 }
  0x88   : > { %1491 = vrot.lane.b32.xlu1 %v1400_v52, %s8425_s30  ;;  %1489 = vrot.lane.b32.xlu0 %v6609_v58, %s8425_s30  ;;  %v1210_v58 = vmul.f32 %v5719_v19, %v6638_v63 }
  0x8c   : > { %1302 = vrot.lane.b32.xlu1 %v6616_v59, %s8421_s7  ;;  %1300 = vrot.lane.b32.xlu0 %v1208_v18, %s8421_s7  ;;  %v1404_v59 = vmul.f32 %v5735_v33, %v6626_v61 }
  0x8e   : > { %v1247_v30 = vpop.permute.xlu0 %1246  ;;  %v1438_v23 = vpop.permute.xlu1 %1437 }
  0x8f   : > { %1342 = vst.msk [vmem:[#allocation2 + $0x20] sm:$0xff] %vm1340_vm5, %v1247_v30 }
  0x90   : > { %1495 = vrot.lane.b32.xlu1 %v1402_v57, %s8425_s30  ;;  %1493 = vrot.lane.b32.xlu0 %v6619_v60, %s8425_s30 }
  0x92   : > { %v1442_v24 = vpop.permute.xlu0 %1441  ;;  %v1251_v31 = vpop.permute.xlu1 %1250 }
  0x93   : > { %1344 = vst.msk [vmem:[#allocation2 + $0x30] sm:$0xff] %vm1340_vm5, %v1251_v31 }
  0x94   : > { %1306 = vrot.lane.b32.xlu1 %v6626_v61, %s8421_s7  ;;  %1304 = vrot.lane.b32.xlu0 %v1210_v58, %s8421_s7  ;;  %v2758_v58 = vsel %vm8408_vm8, %v6083_v22, 0  ;;  %vm8429_vm8 = vcmask 261248  }
  0x95   : > { %5947 = vmatpush3.bf16.msra.mxu0 %v2758_v58 }
  0x96   : > { %v1440_v37 = vpop.permute.xlu1 %1439  ;;  %v1245_v60 = vpop.permute.xlu0 %1244  ;;  %6006 = vmatprep.subr.bf16.mxu0 %v6172_v1 }
  0x97   : > { %1535 = vst.msk [vmem:[#allocation2 + $0x20] sm:$0xff] %vm1533_vm7, %v1440_v37 }
  0x98   : > { %1341 = vst.msk [vmem:[#allocation2 + $0x18] sm:$0xff] %vm1340_vm5, %v1245_v60  ;;  %1499 = vrot.lane.b32.xlu1 %v1404_v59, %s8425_s30  ;;  %1497 = vrot.lane.b32.xlu0 %v6638_v63, %s8425_s30 }
  0x99   : > { %1534 = vst.msk [vmem:[#allocation2 + $0x18] sm:$0xff] %vm1533_vm7, %v1438_v23 }
  0x9a   : > { %v1444_v39 = vpop.permute.xlu1 %1443  ;;  %v1249_v61 = vpop.permute.xlu0 %1248 }
  0x9b   : > { %1537 = vst.msk [vmem:[#allocation2 + $0x30] sm:$0xff] %vm1533_vm7, %v1444_v39 }
  0x9c   : > { %1343 = vst.msk [vmem:[#allocation2 + $0x28] sm:$0xff] %vm1340_vm5, %v1249_v61  ;;  %1633 = vrot.lane.b32.xlu0 %v1601_v35, %s8425_s30 }
  0x9d   : > { %1536 = vst.msk [vmem:[#allocation2 + $0x28] sm:$0xff] %vm1533_vm7, %v1442_v24 }
  0x9e   : > { %v1255_v42 = vpop.permute.xlu1 %1254  ;;  %v1253_v47 = vpop.permute.xlu0 %1252  ;;  %v1700_v44 = vld [vmem:[#allocation2 + $0x20] sm:$0xff] }
  0x9f   : > { %1346 = vst.msk [vmem:[#allocation2 + $0x40] sm:$0xff] %vm1340_vm5, %v1255_v42  ;;  %1345 = vst.msk [vmem:[#allocation2 + $0x38] sm:$0xff] %vm1340_vm5, %v1253_v47 }
  0xa0   : > { %v1571_v48 = vld [vmem:[#allocation2 + $0x17] sm:$0xff]  ;;  %v1572_v43 = vld [vmem:[#allocation2 + $0x1f] sm:$0xff]  ;;  %1761 = vrot.lane.b32.xlu0 %v1729_v40, %s6175_s3 }
  0xa1   : > { %v1827_v63 = vld [vmem:[#allocation2 + $0x11] sm:$0xff]  ;;  %v1602_v25 = vpack.c.bf16 %v1572_v43, %v1571_v48  ;;  %v1828_v46 = vld [vmem:[#allocation2 + $0x19] sm:$0xff] }
  0xa2   : > { %v1699_v51 = vld [vmem:[#allocation2 + $0x18] sm:$0xff]  ;;  %v1448_v54 = vpop.permute.xlu1 %1447  ;;  %v1446_v55 = vpop.permute.xlu0 %1445  ;;  %v1858_v62 = vpack.c.bf16 %v1827_v63, %v1826_v21  ;;  %v2087_v14 = vld [vmem:[#allocation2 + $0x30] sm:$0xff] }
  0xa3   : > { %1635 = vrot.lane.b32.xlu1 %v1602_v25, %s8425_s30  ;;  %1539 = vst.msk [vmem:[#allocation2 + $0x40] sm:$0xff] %vm1533_vm7, %v1448_v54  ;;  %1538 = vst.msk [vmem:[#allocation2 + $0x38] sm:$0xff] %vm1533_vm7, %v1446_v55  ;;  %v1730_v0 = vpack.c.bf16 %v1700_v44, %v1699_v51 }
  0xa4   : > { %1890 = vrot.lane.b32.xlu0 %v1858_v62, %s6176_s25  ;;  %v1829_v45 = vld [vmem:[#allocation2 + $0x21] sm:$0xff]  ;;  %v1574_v9 = vld [vmem:[#allocation2 + $0x2f] sm:$0xff] }
  0xa5   : > { %v1859_v26 = vpack.c.bf16 %v1829_v45, %v1828_v46  ;;  %v1573_v8 = vld [vmem:[#allocation2 + $0x27] sm:$0xff] }
  0xa6   : > { %v1259_v4 = vpop.permute.xlu1 %1258  ;;  %v1257_v7 = vpop.permute.xlu0 %1256  ;;  %v1988_v12 = vpack.c.bf16 %v1574_v9, %v1573_v8  ;;  %v2086_v50 = vld [vmem:[#allocation2 + $0x28] sm:$0xff] }
  0xa7   : > { %1763 = vrot.lane.b32.xlu1 %v1730_v0, %s6175_s3  ;;  %1348 = vst.msk [vmem:[#allocation2 + $0x50] sm:$0xff] %vm1340_vm5, %v1259_v4  ;;  %1347 = vst.msk [vmem:[#allocation2 + $0x48] sm:$0xff] %vm1340_vm5, %v1257_v7  ;;  %v2117_v52 = vpack.c.bf16 %v2087_v14, %v2086_v50  ;;  %v1830_v18 = vld [vmem:[#allocation2 + $0x29] sm:$0xff] }
  0xa8   : > { %2019 = vrot.lane.b32.xlu0 %v1602_v25, %s6177_s8 }
  0xaa   : > { %v1452_v11 = vpop.permute.xlu1 %1451  ;;  %v1450_v49 = vpop.permute.xlu0 %1449  ;;  %v1831_v28 = vld [vmem:[#allocation2 + $0x31] sm:$0xff]  ;;  %v1576_v19 = vld [vmem:[#allocation2 + $0x3f] sm:$0xff] }
  0xab   : > { %1892 = vrot.lane.b32.xlu1 %v1859_v26, %s6176_s25  ;;  %1541 = vst.msk [vmem:[#allocation2 + $0x50] sm:$0xff] %vm1533_vm7, %v1452_v11  ;;  %1540 = vst.msk [vmem:[#allocation2 + $0x48] sm:$0xff] %vm1533_vm7, %v1450_v49  ;;  %v6845_v29 = vpack.c.bf16 %v1831_v28, %v1830_v18  ;;  %v1575_v57 = vld [vmem:[#allocation2 + $0x37] sm:$0xff]  ;;  %v2474_v24 = vld [vmem:[#allocation2 + $0x40] sm:$0xff] }
  0xac   : > { %2148 = vrot.lane.b32.xlu0 %v1730_v0, %s8404_s4  ;;  %v2473_v33 = vld [vmem:[#allocation2 + $0x38] sm:$0xff]  ;;  %v2375_v31 = vpack.c.bf16 %v1576_v19, %v1575_v57 }
  0xad   : > { %v2504_v32 = vpack.c.bf16 %v2474_v24, %v2473_v33  ;;  %v1832_v40 = vld [vmem:[#allocation2 + $0x39] sm:$0xff] }
  0xae   : > { %v1263_v27 = vpop.permute.xlu1 %1262  ;;  %v1261_v15 = vpop.permute.xlu0 %1260 }
  0xaf   : > { %2021 = vrot.lane.b32.xlu1 %v1988_v12, %s6177_s8  ;;  %1350 = vst.msk [vmem:[#allocation2 + $0x60] sm:$0xff] %vm1340_vm5, %v1263_v27  ;;  %1349 = vst.msk [vmem:[#allocation2 + $0x58] sm:$0xff] %vm1340_vm5, %v1261_v15 }
  0xb0   : > { %2277 = vrot.lane.b32.xlu0 %v1859_v26, %s6179_s29 }
  0xb2   : > { %v1456_v16 = vpop.permute.xlu1 %1455  ;;  %v1454_v53 = vpop.permute.xlu0 %1453  ;;  %v1833_v36 = vld [vmem:[#allocation2 + $0x41] sm:$0xff]  ;;  %v1578_v21 = vld [vmem:[#allocation2 + $0x4f] sm:$0xff] }
  0xb3   : > { %2150 = vrot.lane.b32.xlu1 %v2117_v52, %s8404_s4  ;;  %1543 = vst.msk [vmem:[#allocation2 + $0x60] sm:$0xff] %vm1533_vm7, %v1456_v16  ;;  %1542 = vst.msk [vmem:[#allocation2 + $0x58] sm:$0xff] %vm1533_vm7, %v1454_v53  ;;  %v6875_v42 = vpack.c.bf16 %v1833_v36, %v1832_v40  ;;  %v1577_v47 = vld [vmem:[#allocation2 + $0x47] sm:$0xff]  ;;  %v2091_v51 = vld [vmem:[#allocation2 + $0x50] sm:$0xff] }
  0xb4   : > { %2406 = vrot.lane.b32.xlu0 %v1988_v12, %s8423_s0  ;;  %v1990_v63 = vpack.c.bf16 %v1578_v21, %v1577_v47  ;;  %v2090_v25 = vld [vmem:[#allocation2 + $0x48] sm:$0xff] }
  0xb5   : > { %v2119_v55 = vpack.c.bf16 %v2091_v51, %v2090_v25  ;;  %v1834_v4 = vld [vmem:[#allocation2 + $0x49] sm:$0xff] }
  0xb6   : > { %v1267_v30 = vpop.permute.xlu1 %1266  ;;  %v1265_v23 = vpop.permute.xlu0 %1264 }
  0xb7   : > { %2279 = vrot.lane.b32.xlu1 %v6845_v29, %s6179_s29  ;;  %1352 = vst.msk [vmem:[#allocation2 + $0x70] sm:$0xff] %vm1340_vm5, %v1267_v30  ;;  %1351 = vst.msk [vmem:[#allocation2 + $0x68] sm:$0xff] %vm1340_vm5, %v1265_v23 }
  0xb8   : > { %2535 = vrot.lane.b32.xlu0 %v2117_v52, %s6181_s6 }
  0xba   : > { %v1460_v59 = vpop.permute.xlu1 %1459  ;;  %v1458_v34 = vpop.permute.xlu0 %1457  ;;  %v1835_v62 = vld [vmem:[#allocation2 + $0x51] sm:$0xff]  ;;  %v2349_v26 = vld [vmem:[#allocation2 + $0x5f] sm:$0xff] }
  0xbb   : > { %2408 = vrot.lane.b32.xlu1 %v2375_v31, %s8423_s0  ;;  %1545 = vst.msk [vmem:[#allocation2 + $0x70] sm:$0xff] %vm1533_vm7, %v1460_v59  ;;  %1544 = vst.msk [vmem:[#allocation2 + $0x68] sm:$0xff] %vm1533_vm7, %v1458_v34  ;;  %v6891_v7 = vpack.c.bf16 %v1835_v62, %v1834_v4  ;;  %v1579_v46 = vld [vmem:[#allocation2 + $0x57] sm:$0xff]  ;;  %v2478_v49 = vld [vmem:[#allocation2 + $0x60] sm:$0xff] }
  0xbc   : > { %2537 = vrot.lane.b32.xlu0 %v2504_v32, %s6181_s6  ;;  %v2477_v11 = vld [vmem:[#allocation2 + $0x58] sm:$0xff] }
  0xbd   : > { %v2506_v14 = vpack.c.bf16 %v2478_v49, %v2477_v11  ;;  %v1836_v18 = vld [vmem:[#allocation2 + $0x59] sm:$0xff] }
  0xbe   : > { %v1271_v37 = vpop.permute.xlu1 %1270  ;;  %v1269_v60 = vpop.permute.xlu0 %1268 }
  0xbf   : > { %1637 = vrot.lane.b32.xlu1 %v1988_v12, %s8425_s30  ;;  %1354 = vst.msk [vmem:[#allocation2 + $0x80] sm:$0xff] %vm1340_vm5, %v1271_v37  ;;  %1353 = vst.msk [vmem:[#allocation2 + $0x78] sm:$0xff] %vm1340_vm5, %v1269_v60  ;;  %v2377_v12 = vpack.c.bf16 %v2349_v26, %v1579_v46 }
  0xc0   : > { %1765 = vrot.lane.b32.xlu0 %v2117_v52, %s6175_s3 }
  0xc2   : > { %v1464_v35 = vpop.permute.xlu1 %1463  ;;  %v1462_v38 = vpop.permute.xlu0 %1461  ;;  %v1837_v28 = vld [vmem:[#allocation2 + $0x61] sm:$0xff]  ;;  %v1966_v19 = vld [vmem:[#allocation2 + $0x6f] sm:$0xff] }
  0xc3   : > { %1639 = vrot.lane.b32.xlu1 %v2375_v31, %s8425_s30  ;;  %1547 = vst.msk [vmem:[#allocation2 + $0x80] sm:$0xff] %vm1533_vm7, %v1464_v35  ;;  %1546 = vst.msk [vmem:[#allocation2 + $0x78] sm:$0xff] %vm1533_vm7, %v1462_v38  ;;  %v6915_v22 = vpack.c.bf16 %v1837_v28, %v1836_v18  ;;  %v1965_v57 = vld [vmem:[#allocation2 + $0x67] sm:$0xff]  ;;  %v2095_v24 = vld [vmem:[#allocation2 + $0x70] sm:$0xff] }
  0xc4   : > { %1894 = vrot.lane.b32.xlu0 %v6845_v29, %s6176_s25  ;;  %v1992_v58 = vpack.c.bf16 %v1966_v19, %v1965_v57  ;;  %v2094_v33 = vld [vmem:[#allocation2 + $0x68] sm:$0xff] }
  0xc5   : > { %v2121_v34 = vpack.c.bf16 %v2095_v24, %v2094_v33  ;;  %v2223_v35 = vld [vmem:[#allocation2 + $0x69] sm:$0xff] }
  0xc6   : > { %v1275_v39 = vpop.permute.xlu1 %1274  ;;  %v1273_v61 = vpop.permute.xlu0 %1272 }
  0xc7   : > { %1767 = vrot.lane.b32.xlu1 %v2504_v32, %s6175_s3  ;;  %1356 = vst.msk [vmem:[#allocation2 + $0x90] sm:$0xff] %vm1340_vm5, %v1275_v39  ;;  %1355 = vst.msk [vmem:[#allocation2 + $0x88] sm:$0xff] %vm1340_vm5, %v1273_v61 }
  0xc8   : > { %2023 = vrot.lane.b32.xlu0 %v2375_v31, %s6177_s8 }
  0xca   : > { %v1468_v48 = vpop.permute.xlu1 %1467  ;;  %v1466_v43 = vpop.permute.xlu0 %1465  ;;  %v2352_v36 = vld [vmem:[#allocation2 + $0x77] sm:$0xff]  ;;  %v2353_v39 = vld [vmem:[#allocation2 + $0x7f] sm:$0xff] }
  0xcb   : > { %1896 = vrot.lane.b32.xlu1 %v6875_v42, %s6176_s25  ;;  %1549 = vst.msk [vmem:[#allocation2 + $0x90] sm:$0xff] %vm1533_vm7, %v1468_v48  ;;  %1548 = vst.msk [vmem:[#allocation2 + $0x88] sm:$0xff] %vm1533_vm7, %v1466_v43  ;;  %v2481_v47 = vld [vmem:[#allocation2 + $0x78] sm:$0xff]  ;;  %v2482_v21 = vld [vmem:[#allocation2 + $0x80] sm:$0xff]  ;;  %v2379_v48 = vpack.c.bf16 %v2353_v39, %v2352_v36 }
  0xcc   : > { %2152 = vrot.lane.b32.xlu0 %v2504_v32, %s8404_s4  ;;  %v2224_v32 = vld [vmem:[#allocation2 + $0x71] sm:$0xff]  ;;  %v2508_v25 = vpack.c.bf16 %v2482_v21, %v2481_v47  ;;  %v1840_v4 = vld [vmem:[#allocation2 + $0x79] sm:$0xff] }
  0xcd   : > { %v6931_v38 = vpack.c.bf16 %v2224_v32, %v2223_v35 }
  0xce   : > { %v1279_v44 = vpop.permute.xlu1 %1278  ;;  %v1277_v54 = vpop.permute.xlu0 %1276 }
  0xcf   : > { %2025 = vrot.lane.b32.xlu1 %v1990_v63, %s6177_s8  ;;  %1358 = vst.msk [vmem:[#allocation2 + $0xa0] sm:$0xff] %vm1340_vm5, %v1279_v44  ;;  %1357 = vst.msk [vmem:[#allocation2 + $0x98] sm:$0xff] %vm1340_vm5, %v1277_v54 }
  0xd0   : > { %2281 = vrot.lane.b32.xlu0 %v6875_v42, %s6179_s29 }
  0xd2   : > { %v1472_v0 = vpop.permute.xlu1 %1471  ;;  %v1470_v45 = vpop.permute.xlu0 %1469  ;;  %v1841_v62 = vld [vmem:[#allocation2 + $0x81] sm:$0xff] }
  0xd3   : > { %2154 = vrot.lane.b32.xlu1 %v2119_v55, %s8404_s4  ;;  %1551 = vst.msk [vmem:[#allocation2 + $0xa0] sm:$0xff] %vm1533_vm7, %v1472_v0  ;;  %1550 = vst.msk [vmem:[#allocation2 + $0x98] sm:$0xff] %vm1533_vm7, %v1470_v45  ;;  %v6955_v46 = vpack.c.bf16 %v1841_v62, %v1840_v4  ;;  %v1969_v26 = vld [vmem:[#allocation2 + $0x87] sm:$0xff] }
  0xd4   : > { %2410 = vrot.lane.b32.xlu0 %v1990_v63, %s8423_s0 }
  0xd6   : > { %v1283_v8 = vpop.permute.xlu1 %1282  ;;  %v1281_v9 = vpop.permute.xlu0 %1280 }
  0xd7   : > { %2283 = vrot.lane.b32.xlu1 %v6891_v7, %s6179_s29  ;;  %1360 = vst.msk [vmem:[#allocation2 + $0xb0] sm:$0xff] %vm1340_vm5, %v1283_v8  ;;  %1359 = vst.msk [vmem:[#allocation2 + $0xa8] sm:$0xff] %vm1340_vm5, %v1281_v9  ;;  %v1970_v8 = vld [vmem:[#allocation2 + $0x8f] sm:$0xff] }
  0xd8   : > { %2539 = vrot.lane.b32.xlu0 %v2119_v55, %s6181_s6  ;;  %v1994_v49 = vpack.c.bf16 %v1970_v8, %v1969_v26 }
  0xda   : > { %v1476_v13 = vpop.permute.xlu1 %1475  ;;  %v1474_v50 = vpop.permute.xlu0 %1473  ;;  %v2485_v57 = vld [vmem:[#allocation2 + $0x98] sm:$0xff]  ;;  %v2486_v19 = vld [vmem:[#allocation2 + $0xa0] sm:$0xff] }
  0xdb   : > { %2412 = vrot.lane.b32.xlu1 %v2377_v12, %s8423_s0  ;;  %1553 = vst.msk [vmem:[#allocation2 + $0xb0] sm:$0xff] %vm1533_vm7, %v1476_v13  ;;  %1552 = vst.msk [vmem:[#allocation2 + $0xa8] sm:$0xff] %vm1533_vm7, %v1474_v50  ;;  %v2099_v13 = vld [vmem:[#allocation2 + $0x90] sm:$0xff]  ;;  %v2510_v33 = vpack.c.bf16 %v2486_v19, %v2485_v57  ;;  %v1844_v35 = vld [vmem:[#allocation2 + $0x99] sm:$0xff] }
  0xdc   : > { %2541 = vrot.lane.b32.xlu0 %v2506_v14, %s6181_s6 }
  0xde   : > { %v1287_v27 = vpop.permute.xlu1 %1286  ;;  %v1285_v15 = vpop.permute.xlu0 %1284 }
  0xdf   : > { %1641 = vrot.lane.b32.xlu1 %v1990_v63, %s8425_s30  ;;  %1362 = vst.msk [vmem:[#allocation2 + $0xc0] sm:$0xff] %vm1340_vm5, %v1287_v27  ;;  %1361 = vst.msk [vmem:[#allocation2 + $0xb8] sm:$0xff] %vm1340_vm5, %v1285_v15  ;;  %v2228_v27 = vld [vmem:[#allocation2 + $0x91] sm:$0xff] }
  0xe0   : > { %1769 = vrot.lane.b32.xlu0 %v2119_v55, %s6175_s3 }
  0xe2   : > { %v1480_v17 = vpop.permute.xlu1 %1479  ;;  %v1478_v52 = vpop.permute.xlu0 %1477  ;;  %v2231_v62 = vld [vmem:[#allocation2 + $0xa9] sm:$0xff] }
  0xe3   : > { %1643 = vrot.lane.b32.xlu1 %v2377_v12, %s8425_s30  ;;  %1555 = vst.msk [vmem:[#allocation2 + $0xc0] sm:$0xff] %vm1533_vm7, %v1480_v17  ;;  %1554 = vst.msk [vmem:[#allocation2 + $0xb8] sm:$0xff] %vm1533_vm7, %v1478_v52  ;;  %v2227_v17 = vld [vmem:[#allocation2 + $0x89] sm:$0xff] }
  0xe4   : > { %1898 = vrot.lane.b32.xlu0 %v6891_v7, %s6176_s25  ;;  %v6969_v28 = vpack.c.bf16 %v2228_v27, %v2227_v17 }
  0xe6   : > { %v1291_v16 = vpop.permute.xlu1 %1290  ;;  %v1289_v53 = vpop.permute.xlu0 %1288 }
  0xe7   : > { %1771 = vrot.lane.b32.xlu1 %v2506_v14, %s6175_s3  ;;  %1364 = vst.msk [vmem:[#allocation2 + $0xd0] sm:$0xff] %vm1340_vm5, %v1291_v16  ;;  %1363 = vst.msk [vmem:[#allocation2 + $0xc8] sm:$0xff] %vm1340_vm5, %v1289_v53  ;;  %v2356_v16 = vld [vmem:[#allocation2 + $0x97] sm:$0xff]  ;;  %v2357_v53 = vld [vmem:[#allocation2 + $0x9f] sm:$0xff] }
  0xe8   : > { %2027 = vrot.lane.b32.xlu0 %v2377_v12, %s6177_s8  ;;  %v2098_v12 = vld [vmem:[#allocation2 + $0x88] sm:$0xff] }
  0xea   : > { %v1484_v30 = vpop.permute.xlu1 %1483  ;;  %v1482_v23 = vpop.permute.xlu0 %1481  ;;  %v2361_v4 = vld [vmem:[#allocation2 + $0xbf] sm:$0xff] }
  0xeb   : > { %1900 = vrot.lane.b32.xlu1 %v6915_v22, %s6176_s25  ;;  %1557 = vst.msk [vmem:[#allocation2 + $0xd0] sm:$0xff] %vm1533_vm7, %v1484_v30  ;;  %1556 = vst.msk [vmem:[#allocation2 + $0xc8] sm:$0xff] %vm1533_vm7, %v1482_v23  ;;  %v2381_v23 = vpack.c.bf16 %v2357_v53, %v2356_v16 }
  0xec   : > { %2156 = vrot.lane.b32.xlu0 %v2506_v14, %s8404_s4  ;;  %v2123_v14 = vpack.c.bf16 %v2099_v13, %v2098_v12 }
  0xee   : > { %v1295_v31 = vpop.permute.xlu1 %1294  ;;  %v1293_v59 = vpop.permute.xlu0 %1292 }
  0xef   : > { %2029 = vrot.lane.b32.xlu1 %v1992_v58, %s6177_s8  ;;  %1366 = vst.msk [vmem:[#allocation2 + $0xe0] sm:$0xff] %vm1340_vm5, %v1295_v31  ;;  %1365 = vst.msk [vmem:[#allocation2 + $0xd8] sm:$0xff] %vm1340_vm5, %v1293_v59 }
  0xf0   : > { %2285 = vrot.lane.b32.xlu0 %v6915_v22, %s6179_s29 }
  0xf2   : > { %v1488_v37 = vpop.permute.xlu1 %1487  ;;  %v1486_v60 = vpop.permute.xlu0 %1485  ;;  %v1849_v16 = vld [vmem:[#allocation2 + $0xc1] sm:$0xff] }
  0xf3   : > { %2158 = vrot.lane.b32.xlu1 %v2121_v34, %s8404_s4  ;;  %1559 = vst.msk [vmem:[#allocation2 + $0xe0] sm:$0xff] %vm1533_vm7, %v1488_v37  ;;  %1558 = vst.msk [vmem:[#allocation2 + $0xd8] sm:$0xff] %vm1533_vm7, %v1486_v60  ;;  %v1845_v37 = vld [vmem:[#allocation2 + $0xa1] sm:$0xff] }
  0xf4   : > { %2414 = vrot.lane.b32.xlu0 %v1992_v58, %s8423_s0  ;;  %v6993_v39 = vpack.c.bf16 %v1845_v37, %v1844_v35 }
  0xf6   : > { %v1299_v61 = vpop.permute.xlu1 %1298  ;;  %v1297_v40 = vpop.permute.xlu0 %1296 }
  0xf7   : > { %2287 = vrot.lane.b32.xlu1 %v6931_v38, %s6179_s29  ;;  %1368 = vst.msk [vmem:[#allocation2 + $0xf0] sm:$0xff] %vm1340_vm5, %v1299_v61  ;;  %1367 = vst.msk [vmem:[#allocation2 + $0xe8] sm:$0xff] %vm1340_vm5, %v1297_v40  ;;  %v1973_v61 = vld [vmem:[#allocation2 + $0xa7] sm:$0xff]  ;;  %v1974_v40 = vld [vmem:[#allocation2 + $0xaf] sm:$0xff] }
  0xf8   : > { %2543 = vrot.lane.b32.xlu0 %v2121_v34, %s6181_s6 }
  0xfa   : > { %v1492_v43 = vpop.permute.xlu1 %1491  ;;  %v1490_v63 = vpop.permute.xlu0 %1489  ;;  %v2236_v37 = vld [vmem:[#allocation2 + $0xd1] sm:$0xff] }
  0xfb   : > { %2416 = vrot.lane.b32.xlu1 %v2379_v48, %s8423_s0  ;;  %1561 = vst.msk [vmem:[#allocation2 + $0xf0] sm:$0xff] %vm1533_vm7, %v1492_v43  ;;  %1560 = vst.msk [vmem:[#allocation2 + $0xe8] sm:$0xff] %vm1533_vm7, %v1490_v63  ;;  %v2102_v43 = vld [vmem:[#allocation2 + $0xa8] sm:$0xff]  ;;  %v2103_v63 = vld [vmem:[#allocation2 + $0xb0] sm:$0xff] }
  0xfc   : > { %2545 = vrot.lane.b32.xlu0 %v2508_v25, %s6181_s6 }
  0xfe   : > { %v1303_v51 = vpop.permute.xlu1 %1302  ;;  %v1301_v44 = vpop.permute.xlu0 %1300 }
  0xff   : > { %1645 = vrot.lane.b32.xlu1 %v1992_v58, %s8425_s30  ;;  %1370 = vst.msk [vmem:[#allocation2 + $0x100] sm:$0xff] %vm1340_vm5, %v1303_v51  ;;  %1369 = vst.msk [vmem:[#allocation2 + $0xf8] sm:$0xff] %vm1340_vm5, %v1301_v44  ;;  %v2125_v51 = vpack.c.bf16 %v2103_v63, %v2102_v43  ;;  %v2232_v44 = vld [vmem:[#allocation2 + $0xb1] sm:$0xff]  ;;  %v2494_v63 = vld [vmem:[#allocation2 + $0xe0] sm:$0xff] }
 0x100   : > { %1773 = vrot.lane.b32.xlu0 %v2121_v34, %s6175_s3  ;;  %v2493_v43 = vld [vmem:[#allocation2 + $0xd8] sm:$0xff] }
 0x102   : > { %v1496_v54 = vpop.permute.xlu1 %1495  ;;  %v1494_v55 = vpop.permute.xlu0 %1493 }
 0x103   : > { %1647 = vrot.lane.b32.xlu1 %v2379_v48, %s8425_s30  ;;  %1563 = vst.msk [vmem:[#allocation2 + $0x100] sm:$0xff] %vm1533_vm7, %v1496_v54  ;;  %1562 = vst.msk [vmem:[#allocation2 + $0xf8] sm:$0xff] %vm1533_vm7, %v1494_v55 }
 0x104   : > { %1902 = vrot.lane.b32.xlu0 %v6931_v38, %s6176_s25 }
 0x106   : > { %v1307_v0 = vpop.permute.xlu1 %1306  ;;  %v1305_v45 = vpop.permute.xlu0 %1304 }
 0x107   : > { %1775 = vrot.lane.b32.xlu1 %v2508_v25, %s6175_s3  ;;  %1372 = vst.msk [vmem:[#allocation2 + $0x110] sm:$0xff] %vm1340_vm5, %v1307_v0  ;;  %1371 = vst.msk [vmem:[#allocation2 + $0x108] sm:$0xff] %vm1340_vm5, %v1305_v45  ;;  %v7014_v0 = vpack.c.bf16 %v2232_v44, %v2231_v62  ;;  %v2360_v45 = vld [vmem:[#allocation2 + $0xb7] sm:$0xff]  ;;  %v2514_v44 = vpack.c.bf16 %v2494_v63, %v2493_v43 }
 0x108   : > { %2031 = vrot.lane.b32.xlu0 %v2379_v48, %s6177_s8  ;;  %v1996_v48 = vpack.c.bf16 %v1974_v40, %v1973_v61  ;;  %v2383_v12 = vpack.c.bf16 %v2361_v4, %v2360_v45  ;;  %v2364_v40 = vld [vmem:[#allocation2 + $0xd7] sm:$0xff]  ;;  %v1853_v4 = vld [vmem:[#allocation2 + $0xe1] sm:$0xff] }
 0x10a   : > { %v1500_v9 = vpop.permute.xlu1 %1499  ;;  %v1498_v11 = vpop.permute.xlu0 %1497 }
 0x10b   : > { %1904 = vrot.lane.b32.xlu1 %v6955_v46, %s6176_s25  ;;  %1565 = vst.msk [vmem:[#allocation2 + $0x110] sm:$0xff] %vm1533_vm7, %v1500_v9  ;;  %1564 = vst.msk [vmem:[#allocation2 + $0x108] sm:$0xff] %vm1533_vm7, %v1498_v11  ;;  %v2489_v9 = vld [vmem:[#allocation2 + $0xb8] sm:$0xff]  ;;  %v2490_v11 = vld [vmem:[#allocation2 + $0xc0] sm:$0xff] }
 0x10c   : > { %2160 = vrot.lane.b32.xlu0 %v2508_v25, %s8404_s4 }
 0x10e   : > { %v1634_v50 = vpop.permute.xlu0 %1633 }
 0x10f   : > { %2033 = vrot.lane.b32.xlu1 %v1994_v49, %s6177_s8  ;;  %1681 = vst.msk [vmem:[#allocation3] sm:$0xff] %vm1147_vm1, %v1634_v50  ;;  %v2512_v50 = vpack.c.bf16 %v2490_v11, %v2489_v9 }
 0x110   : > { %2289 = vrot.lane.b32.xlu0 %v6955_v46, %s6179_s29 }
 0x112   : > { %v1762_v15 = vpop.permute.xlu0 %1761 }
 0x113   : > { %2162 = vrot.lane.b32.xlu1 %v2123_v14, %s8404_s4  ;;  %1810 = vst.msk [vmem:[#allocation3] sm:$0xff] %vm1809_vm9, %v1762_v15 }
 0x114   : > { %2418 = vrot.lane.b32.xlu0 %v1994_v49, %s8423_s0 }
 0x115   : > { %v1636_v52 = vpop.permute.xlu1 %1635 }
 0x116   : > { %1682 = vst.msk [vmem:[#allocation3 + $0x18] sm:$0xff] %vm1147_vm1, %v1636_v52  ;;  %v1891_v18 = vpop.permute.xlu0 %1890 }
 0x117   : > { %2291 = vrot.lane.b32.xlu1 %v6969_v28, %s6179_s29  ;;  %1939 = vst.msk [vmem:[#allocation3] sm:$0xff] %vm1938_vm10, %v1891_v18  ;;  %v1848_v18 = vld [vmem:[#allocation2 + $0xb9] sm:$0xff] }
 0x118   : > { %2547 = vrot.lane.b32.xlu0 %v2123_v14, %s6181_s6  ;;  %v7039_v19 = vpack.c.bf16 %v1849_v16, %v1848_v18  ;;  %v2240_v16 = vld [vmem:[#allocation2 + $0xf1] sm:$0xff] }
 0x119   : > { %v1764_v30 = vpop.permute.xlu1 %1763 }
 0x11a   : > { %1811 = vst.msk [vmem:[#allocation3 + $0x18] sm:$0xff] %vm1809_vm9, %v1764_v30  ;;  %v2020_v58 = vpop.permute.xlu0 %2019  ;;  %v1977_v30 = vld [vmem:[#allocation2 + $0xc7] sm:$0xff] }
 0x11b   : > { %2420 = vrot.lane.b32.xlu1 %v2381_v23, %s8423_s0  ;;  %2068 = vst.msk [vmem:[#allocation3] sm:$0xff] %vm2067_vm11, %v2020_v58 }
 0x11c   : > { %2549 = vrot.lane.b32.xlu0 %v2510_v33, %s6181_s6 }
 0x11d   : > { %v1893_v24 = vpop.permute.xlu1 %1892 }
 0x11e   : > { %1940 = vst.msk [vmem:[#allocation3 + $0x18] sm:$0xff] %vm1938_vm10, %v1893_v24  ;;  %v2149_v31 = vpop.permute.xlu0 %2148 }
 0x11f   : > { %1649 = vrot.lane.b32.xlu1 %v1994_v49, %s8425_s30  ;;  %2197 = vst.msk [vmem:[#allocation3] sm:$0xff] %vm2196_vm12, %v2149_v31  ;;  %v2106_v31 = vld [vmem:[#allocation2 + $0xc8] sm:$0xff] }
 0x120   : > { %1777 = vrot.lane.b32.xlu0 %v2123_v14, %s6175_s3 }
 0x121   : > { %v2022_v59 = vpop.permute.xlu1 %2021 }
 0x122   : > { %2069 = vst.msk [vmem:[#allocation3 + $0x18] sm:$0xff] %vm2067_vm11, %v2022_v59  ;;  %v2278_v34 = vpop.permute.xlu0 %2277  ;;  %v2107_v59 = vld [vmem:[#allocation2 + $0xd0] sm:$0xff] }
 0x123   : > { %1651 = vrot.lane.b32.xlu1 %v2381_v23, %s8425_s30  ;;  %2326 = vst.msk [vmem:[#allocation3] sm:$0xff] %vm2325_vm13, %v2278_v34 }
 0x124   : > { %1906 = vrot.lane.b32.xlu0 %v6969_v28, %s6176_s25 }
 0x125   : > { %v2151_v32 = vpop.permute.xlu1 %2150 }
 0x126   : > { %2198 = vst.msk [vmem:[#allocation3 + $0x18] sm:$0xff] %vm2196_vm12, %v2151_v32  ;;  %v2407_v60 = vpop.permute.xlu0 %2406  ;;  %v2127_v32 = vpack.c.bf16 %v2107_v59, %v2106_v31  ;;  %v2497_v31 = vld [vmem:[#allocation2 + $0xf8] sm:$0xff]  ;;  %v2498_v59 = vld [vmem:[#allocation2 + $0x100] sm:$0xff] }
 0x127   : > { %1779 = vrot.lane.b32.xlu1 %v2510_v33, %s6175_s3  ;;  %2455 = vst.msk [vmem:[#allocation3] sm:$0xff] %vm2454_vm14, %v2407_v60 }
 0x128   : > { %2035 = vrot.lane.b32.xlu0 %v2381_v23, %s6177_s8  ;;  %v1978_v23 = vld [vmem:[#allocation2 + $0xcf] sm:$0xff] }
 0x129   : > { %v2280_v36 = vpop.permute.xlu1 %2279  ;;  %v1998_v24 = vpack.c.bf16 %v1978_v23, %v1977_v30  ;;  %v2368_v23 = vld [vmem:[#allocation2 + $0xf7] sm:$0xff] }
 0x12a   : > { %2327 = vst.msk [vmem:[#allocation3 + $0x18] sm:$0xff] %vm2325_vm13, %v2280_v36  ;;  %v2536_v47 = vpop.permute.xlu0 %2535  ;;  %v2235_v36 = vld [vmem:[#allocation2 + $0xc9] sm:$0xff] }
 0x12b   : > { %1908 = vrot.lane.b32.xlu1 %v6993_v39, %s6176_s25  ;;  %2584 = vst.msk [vmem:[#allocation3] sm:$0xff] %vm2583_vm15, %v2536_v47  ;;  %v7060_v61 = vpack.c.bf16 %v2236_v37, %v2235_v36  ;;  %v2365_v47 = vld [vmem:[#allocation2 + $0xdf] sm:$0xff]  ;;  %v2516_v37 = vpack.c.bf16 %v2498_v59, %v2497_v31 }
 0x12c   : > { %2648 = vst.msk [vmem:[#allocation3] sm:$0xff] %vm1340_vm5, %v6845_v29  ;;  %2164 = vrot.lane.b32.xlu0 %v2510_v33, %s8404_s4 }
 0x12d   : > { %v2409_v21 = vpop.permute.xlu1 %2408 }
 0x12e   : > { %2456 = vst.msk [vmem:[#allocation3 + $0x18] sm:$0xff] %vm2454_vm14, %v2409_v21  ;;  %v2538_v25 = vpop.permute.xlu0 %2537 }
 0x12f   : > { %2037 = vrot.lane.b32.xlu1 %v1996_v48, %s6177_s8  ;;  %2585 = vst.msk [vmem:[#allocation3 + $0x18] sm:$0xff] %vm2583_vm15, %v2538_v25 }
 0x130   : > { %2649 = vst.msk [vmem:[#allocation3 + $0x18] sm:$0xff] %vm1340_vm5, %v6875_v42  ;;  %2293 = vrot.lane.b32.xlu0 %v6993_v39, %s6179_s29 }
 0x131   : > { %v1638_v29 = vpop.permute.xlu1 %1637 }
 0x132   : > { %1683 = vst.msk [vmem:[#allocation3 + $0x30] sm:$0xff] %vm1147_vm1, %v1638_v29  ;;  %v1766_v54 = vpop.permute.xlu0 %1765  ;;  %v2385_v29 = vpack.c.bf16 %v2365_v47, %v2364_v40  ;;  %v1857_v47 = vld [vmem:[#allocation2 + $0x101] sm:$0xff] }
 0x133   : > { %2166 = vrot.lane.b32.xlu1 %v2125_v51, %s8404_s4  ;;  %1812 = vst.msk [vmem:[#allocation3 + $0x30] sm:$0xff] %vm1809_vm9, %v1766_v54  ;;  %v2664_v55 = vld [vmem:[#allocation3] sm:$0xff] }
 0x134   : > { %2422 = vrot.lane.b32.xlu0 %v1996_v48, %s8423_s0  ;;  %5948 = vmatprep.mubr.msk.bf16.mxu0 %vm2707_vm2, %v2664_v55 }
 0x135   : > { %v1640_v42 = vpop.permute.xlu1 %1639 }
 0x136   : > { %1684 = vst.msk [vmem:[#allocation3 + $0x48] sm:$0xff] %vm1147_vm1, %v1640_v42  ;;  %v1895_v26 = vpop.permute.xlu0 %1894 }
 0x137   : > { %2295 = vrot.lane.b32.xlu1 %v7014_v0, %s6179_s29  ;;  %1941 = vst.msk [vmem:[#allocation3 + $0x30] sm:$0xff] %vm1938_vm10, %v1895_v26  ;;  %v2665_v8 = vld [vmem:[#allocation3 + $0x18] sm:$0xff] }
 0x138   : > { %2551 = vrot.lane.b32.xlu0 %v2125_v51, %s6181_s6  ;;  %5949 = vmatmul.mubr.msk.bf16.vlgmr.msra.gmra.mrb[0].mxu0 %vm2707_vm2, %v2665_v8  ;;  %v1852_v8 = vld [vmem:[#allocation2 + $0xd9] sm:$0xff] }
 0x139   : > { %v1768_v49 = vpop.permute.xlu1 %1767  ;;  %v7085_v11 = vpack.c.bf16 %v1853_v4, %v1852_v8  ;;  %v2243_v4 = vld [vmem:[#allocation2 + $0x109] sm:$0xff] }
 0x13a   : > { %1813 = vst.msk [vmem:[#allocation3 + $0x48] sm:$0xff] %vm1809_vm9, %v1768_v49  ;;  %v2024_v13 = vpop.permute.xlu0 %2023  ;;  %v1981_v49 = vld [vmem:[#allocation2 + $0xe7] sm:$0xff] }
 0x13b   : > { %2424 = vrot.lane.b32.xlu1 %v2383_v12, %s8423_s0  ;;  %2070 = vst.msk [vmem:[#allocation3 + $0x30] sm:$0xff] %vm2067_vm11, %v2024_v13 }
 0x13c   : > { %2553 = vrot.lane.b32.xlu0 %v2512_v50, %s6181_s6 }
 0x13d   : > { %v1897_v14 = vpop.permute.xlu1 %1896 }
 0x13e   : > { %1942 = vst.msk [vmem:[#allocation3 + $0x48] sm:$0xff] %vm1938_vm10, %v1897_v14  ;;  %v2153_v27 = vpop.permute.xlu0 %2152 }
 0x13f   : > { %1653 = vrot.lane.b32.xlu1 %v1996_v48, %s8425_s30  ;;  %2199 = vst.msk [vmem:[#allocation3 + $0x30] sm:$0xff] %vm2196_vm12, %v2153_v27  ;;  %v2110_v27 = vld [vmem:[#allocation2 + $0xe8] sm:$0xff] }
 0x140   : > { %1781 = vrot.lane.b32.xlu0 %v2125_v51, %s6175_s3 }
 0x141   : > { %v2026_v15 = vpop.permute.xlu1 %2025 }
 0x142   : > { %2071 = vst.msk [vmem:[#allocation3 + $0x48] sm:$0xff] %vm2067_vm11, %v2026_v15  ;;  %v2282_v17 = vpop.permute.xlu0 %2281  ;;  %v2111_v15 = vld [vmem:[#allocation2 + $0xf0] sm:$0xff] }
 0x143   : > { %1655 = vrot.lane.b32.xlu1 %v2383_v12, %s8425_s30  ;;  %2328 = vst.msk [vmem:[#allocation3 + $0x30] sm:$0xff] %vm2325_vm13, %v2282_v17 }
 0x144   : > { %1910 = vrot.lane.b32.xlu0 %v7014_v0, %s6176_s25 }
 0x145   : > { %v2155_v52 = vpop.permute.xlu1 %2154 }
 0x146   : > { %2200 = vst.msk [vmem:[#allocation3 + $0x48] sm:$0xff] %vm2196_vm12, %v2155_v52  ;;  %v2411_v53 = vpop.permute.xlu0 %2410  ;;  %v2129_v52 = vpack.c.bf16 %v2111_v15, %v2110_v27  ;;  %v2501_v27 = vld [vmem:[#allocation2 + $0x118] sm:$0xff]  ;;  %v2502_v15 = vld [vmem:[#allocation2 + $0x120] sm:$0xff] }
 0x147   : > { %1783 = vrot.lane.b32.xlu1 %v2512_v50, %s6175_s3  ;;  %2457 = vst.msk [vmem:[#allocation3 + $0x30] sm:$0xff] %vm2454_vm14, %v2411_v53 }
 0x148   : > { %2039 = vrot.lane.b32.xlu0 %v2383_v12, %s6177_s8  ;;  %v1982_v12 = vld [vmem:[#allocation2 + $0xef] sm:$0xff] }
 0x149   : > { %v2284_v57 = vpop.permute.xlu1 %2283  ;;  %v2000_v14 = vpack.c.bf16 %v1982_v12, %v1981_v49  ;;  %v2372_v12 = vld [vmem:[#allocation2 + $0x117] sm:$0xff] }
 0x14a   : > { %2329 = vst.msk [vmem:[#allocation3 + $0x48] sm:$0xff] %vm2325_vm13, %v2284_v57  ;;  %v2540_v58 = vpop.permute.xlu0 %2539  ;;  %v2239_v57 = vld [vmem:[#allocation2 + $0xe9] sm:$0xff] }
 0x14b   : > { %1912 = vrot.lane.b32.xlu1 %v7039_v19, %s6176_s25  ;;  %2586 = vst.msk [vmem:[#allocation3 + $0x30] sm:$0xff] %vm2583_vm15, %v2540_v58  ;;  %v7106_v30 = vpack.c.bf16 %v2240_v16, %v2239_v57  ;;  %v2369_v58 = vld [vmem:[#allocation2 + $0xff] sm:$0xff]  ;;  %v2518_v16 = vpack.c.bf16 %v2502_v15, %v2501_v27 }
 0x14c   : > { %2650 = vst.msk [vmem:[#allocation3 + $0x30] sm:$0xff] %vm1340_vm5, %v6891_v7  ;;  %2168 = vrot.lane.b32.xlu0 %v2512_v50, %s8404_s4 }
 0x14d   : > { %v2413_v33 = vpop.permute.xlu1 %2412 }
 0x14e   : > { %2458 = vst.msk [vmem:[#allocation3 + $0x48] sm:$0xff] %vm2454_vm14, %v2413_v33  ;;  %v2542_v34 = vpop.permute.xlu0 %2541 }
 0x14f   : > { %2041 = vrot.lane.b32.xlu1 %v1998_v24, %s6177_s8  ;;  %2587 = vst.msk [vmem:[#allocation3 + $0x48] sm:$0xff] %vm2583_vm15, %v2542_v34 }
 0x150   : > { %2651 = vst.msk [vmem:[#allocation3 + $0x48] sm:$0xff] %vm1340_vm5, %v6915_v22  ;;  %2297 = vrot.lane.b32.xlu0 %v7039_v19, %s6179_s29 }
 0x151   : > { %v1642_v7 = vpop.permute.xlu1 %1641 }
 0x152   : > { %1685 = vst.msk [vmem:[#allocation3 + $0x60] sm:$0xff] %vm1147_vm1, %v1642_v7  ;;  %v1770_v60 = vpop.permute.xlu0 %1769  ;;  %v2387_v7 = vpack.c.bf16 %v2369_v58, %v2368_v23 }
 0x153   : > { %2170 = vrot.lane.b32.xlu1 %v2127_v32, %s8404_s4  ;;  %1814 = vst.msk [vmem:[#allocation3 + $0x60] sm:$0xff] %vm1809_vm9, %v1770_v60  ;;  %v2666_v35 = vld [vmem:[#allocation3 + $0x30] sm:$0xff] }
 0x154   : > { %2426 = vrot.lane.b32.xlu0 %v1998_v24, %s8423_s0  ;;  %5952 = vmatprep.mubr.msk.bf16.mxu0 %vm2707_vm2, %v2666_v35 }
 0x155   : > { %v1644_v22 = vpop.permute.xlu1 %1643 }
 0x156   : > { %1686 = vst.msk [vmem:[#allocation3 + $0x78] sm:$0xff] %vm1147_vm1, %v1644_v22  ;;  %v1899_v21 = vpop.permute.xlu0 %1898 }
 0x157   : > { %2299 = vrot.lane.b32.xlu1 %v7060_v61, %s6179_s29  ;;  %1943 = vst.msk [vmem:[#allocation3 + $0x60] sm:$0xff] %vm1938_vm10, %v1899_v21  ;;  %v2667_v48 = vld [vmem:[#allocation3 + $0x48] sm:$0xff] }
 0x158   : > { %2555 = vrot.lane.b32.xlu0 %v2127_v32, %s6181_s6  ;;  %5953 = vmatmul.mubr.msk.bf16.gmra.mrb[4].mxu0 %vm2707_vm2, %v2667_v48  ;;  %v1856_v48 = vld [vmem:[#allocation2 + $0xf9] sm:$0xff] }
 0x159   : > { %v1772_v25 = vpop.permute.xlu1 %1771  ;;  %v7131_v63 = vpack.c.bf16 %v1857_v47, %v1856_v48 }
 0x15a   : > { %1815 = vst.msk [vmem:[#allocation3 + $0x78] sm:$0xff] %vm1809_vm9, %v1772_v25  ;;  %v2028_v51 = vpop.permute.xlu0 %2027  ;;  %v1985_v25 = vld [vmem:[#allocation2 + $0x107] sm:$0xff] }
 0x15b   : > { %2428 = vrot.lane.b32.xlu1 %v2385_v29, %s8423_s0  ;;  %2072 = vst.msk [vmem:[#allocation3 + $0x60] sm:$0xff] %vm2067_vm11, %v2028_v51 }
 0x15c   : > { %2557 = vrot.lane.b32.xlu0 %v2514_v44, %s6181_s6 }
 0x15d   : > { %v1901_v54 = vpop.permute.xlu1 %1900 }
 0x15e   : > { %1944 = vst.msk [vmem:[#allocation3 + $0x78] sm:$0xff] %vm1938_vm10, %v1901_v54  ;;  %v2157_v55 = vpop.permute.xlu0 %2156 }
 0x15f   : > { %1657 = vrot.lane.b32.xlu1 %v1998_v24, %s8425_s30  ;;  %2201 = vst.msk [vmem:[#allocation3 + $0x60] sm:$0xff] %vm2196_vm12, %v2157_v55  ;;  %v2114_v55 = vld [vmem:[#allocation2 + $0x108] sm:$0xff] }
 0x160   : > { %1785 = vrot.lane.b32.xlu0 %v2127_v32, %s6175_s3 }
 0x161   : > { %v2030_v62 = vpop.permute.xlu1 %2029 }
 0x162   : > { %2073 = vst.msk [vmem:[#allocation3 + $0x78] sm:$0xff] %vm2067_vm11, %v2030_v62  ;;  %v2286_v42 = vpop.permute.xlu0 %2285  ;;  %v2115_v62 = vld [vmem:[#allocation2 + $0x110] sm:$0xff] }
 0x163   : > { %1659 = vrot.lane.b32.xlu1 %v2385_v29, %s8425_s30  ;;  %2330 = vst.msk [vmem:[#allocation3 + $0x60] sm:$0xff] %vm2325_vm13, %v2286_v42 }
 0x164   : > { %1914 = vrot.lane.b32.xlu0 %v7060_v61, %s6176_s25 }
 0x165   : > { %v2159_v45 = vpop.permute.xlu1 %2158 }
 0x166   : > { %2202 = vst.msk [vmem:[#allocation3 + $0x78] sm:$0xff] %vm2196_vm12, %v2159_v45  ;;  %v2415_v26 = vpop.permute.xlu0 %2414  ;;  %v2131_v45 = vpack.c.bf16 %v2115_v62, %v2114_v55 }
 0x167   : > { %1787 = vrot.lane.b32.xlu1 %v2514_v44, %s6175_s3  ;;  %2459 = vst.msk [vmem:[#allocation3 + $0x60] sm:$0xff] %vm2454_vm14, %v2415_v26  ;;  %v2244_v26 = vld [vmem:[#allocation2 + $0x111] sm:$0xff] }
 0x168   : > { %2043 = vrot.lane.b32.xlu0 %v2385_v29, %s6177_s8  ;;  %v1986_v29 = vld [vmem:[#allocation2 + $0x10f] sm:$0xff]  ;;  %v7152_v49 = vpack.c.bf16 %v2244_v26, %v2243_v4 }
 0x169   : > { %v2288_v9 = vpop.permute.xlu1 %2287  ;;  %v2002_v54 = vpack.c.bf16 %v1986_v29, %v1985_v25 }
 0x16a   : > { %2331 = vst.msk [vmem:[#allocation3 + $0x78] sm:$0xff] %vm2325_vm13, %v2288_v9  ;;  %v2544_v13 = vpop.permute.xlu0 %2543 }
 0x16b   : > { %1916 = vrot.lane.b32.xlu1 %v7085_v11, %s6176_s25  ;;  %2588 = vst.msk [vmem:[#allocation3 + $0x60] sm:$0xff] %vm2583_vm15, %v2544_v13  ;;  %v2373_v13 = vld [vmem:[#allocation2 + $0x11f] sm:$0xff] }
 0x16c   : > { %2652 = vst.msk [vmem:[#allocation3 + $0x60] sm:$0xff] %vm1340_vm5, %v6931_v38  ;;  %2172 = vrot.lane.b32.xlu0 %v2514_v44, %s8404_s4 }
 0x16d   : > { %v2417_v50 = vpop.permute.xlu1 %2416 }
 0x16e   : > { %2460 = vst.msk [vmem:[#allocation3 + $0x78] sm:$0xff] %vm2454_vm14, %v2417_v50  ;;  %v2546_v17 = vpop.permute.xlu0 %2545 }
 0x16f   : > { %2045 = vrot.lane.b32.xlu1 %v2000_v14, %s6177_s8  ;;  %2589 = vst.msk [vmem:[#allocation3 + $0x78] sm:$0xff] %vm2583_vm15, %v2546_v17 }
 0x170   : > { %2653 = vst.msk [vmem:[#allocation3 + $0x78] sm:$0xff] %vm1340_vm5, %v6955_v46  ;;  %2301 = vrot.lane.b32.xlu0 %v7085_v11, %s6179_s29 }
 0x171   : > { %v1646_v38 = vpop.permute.xlu1 %1645 }
 0x172   : > { %1687 = vst.msk [vmem:[#allocation3 + $0x90] sm:$0xff] %vm1147_vm1, %v1646_v38  ;;  %v1774_v53 = vpop.permute.xlu0 %1773  ;;  %v2389_v38 = vpack.c.bf16 %v2373_v13, %v2372_v12 }
 0x173   : > { %2174 = vrot.lane.b32.xlu1 %v2129_v52, %s8404_s4  ;;  %1816 = vst.msk [vmem:[#allocation3 + $0x90] sm:$0xff] %vm1809_vm9, %v1774_v53  ;;  %v2668_v18 = vld [vmem:[#allocation3 + $0x60] sm:$0xff] }
 0x174   : > { %2430 = vrot.lane.b32.xlu0 %v2000_v14, %s8423_s0  ;;  %5956 = vmatprep.mubr.msk.bf16.mxu0 %vm2707_vm2, %v2668_v18 }
 0x175   : > { %v1648_v46 = vpop.permute.xlu1 %1647 }
 0x176   : > { %1688 = vst.msk [vmem:[#allocation3 + $0xa8] sm:$0xff] %vm1147_vm1, %v1648_v46  ;;  %v1903_v33 = vpop.permute.xlu0 %1902 }
 0x177   : > { %2303 = vrot.lane.b32.xlu1 %v7106_v30, %s6179_s29  ;;  %1945 = vst.msk [vmem:[#allocation3 + $0x90] sm:$0xff] %vm1938_vm10, %v1903_v33  ;;  %v2669_v24 = vld [vmem:[#allocation3 + $0x78] sm:$0xff] }
 0x178   : > { %2559 = vrot.lane.b32.xlu0 %v2129_v52, %s6181_s6  ;;  %5957 = vmatmul.mubr.msk.bf16.gmra.mrb[8].mxu0 %vm2707_vm2, %v2669_v24 }
 0x179   : > { %v1776_v34 = vpop.permute.xlu1 %1775 }
 0x17a   : > { %1817 = vst.msk [vmem:[#allocation3 + $0xa8] sm:$0xff] %vm1809_vm9, %v1776_v34  ;;  %v2032_v32 = vpop.permute.xlu0 %2031 }
 0x17b   : > { %2432 = vrot.lane.b32.xlu1 %v2387_v7, %s8423_s0  ;;  %2074 = vst.msk [vmem:[#allocation3 + $0x90] sm:$0xff] %vm2067_vm11, %v2032_v32 }
 0x17c   : > { %2561 = vrot.lane.b32.xlu0 %v2516_v37, %s6181_s6 }
 0x17d   : > { %v1905_v60 = vpop.permute.xlu1 %1904 }
 0x17e   : > { %1946 = vst.msk [vmem:[#allocation3 + $0xa8] sm:$0xff] %vm1938_vm10, %v1905_v60  ;;  %v2161_v35 = vpop.permute.xlu0 %2160 }
 0x17f   : > { %1661 = vrot.lane.b32.xlu1 %v2000_v14, %s8425_s30  ;;  %2203 = vst.msk [vmem:[#allocation3 + $0x90] sm:$0xff] %vm2196_vm12, %v2161_v35 }
 0x180   : > { %1789 = vrot.lane.b32.xlu0 %v2129_v52, %s6175_s3 }
 0x181   : > { %v2034_v36 = vpop.permute.xlu1 %2033 }
 0x182   : > { %2075 = vst.msk [vmem:[#allocation3 + $0xa8] sm:$0xff] %vm2067_vm11, %v2034_v36  ;;  %v2290_v22 = vpop.permute.xlu0 %2289 }
 0x183   : > { %1663 = vrot.lane.b32.xlu1 %v2387_v7, %s8425_s30  ;;  %2332 = vst.msk [vmem:[#allocation3 + $0x90] sm:$0xff] %vm2325_vm13, %v2290_v22 }
 0x184   : > { %1918 = vrot.lane.b32.xlu0 %v7106_v30, %s6176_s25 }
 0x185   : > { %v2163_v40 = vpop.permute.xlu1 %2162 }
 0x186   : > { %2204 = vst.msk [vmem:[#allocation3 + $0xa8] sm:$0xff] %vm2196_vm12, %v2163_v40  ;;  %v2419_v21 = vpop.permute.xlu0 %2418 }
 0x187   : > { %1791 = vrot.lane.b32.xlu1 %v2516_v37, %s6175_s3  ;;  %2461 = vst.msk [vmem:[#allocation3 + $0x90] sm:$0xff] %vm2454_vm14, %v2419_v21  ;;  %s8415_s3 = smov 96  }
 0x188   : > { %2047 = vrot.lane.b32.xlu0 %v2387_v7, %s6177_s8 }
 0x189   : > { %v2292_v43 = vpop.permute.xlu1 %2291 }
 0x18a   : > { %2333 = vst.msk [vmem:[#allocation3 + $0xa8] sm:$0xff] %vm2325_vm13, %v2292_v43  ;;  %v2548_v51 = vpop.permute.xlu0 %2547 }
 0x18b   : > { %1920 = vrot.lane.b32.xlu1 %v7131_v63, %s6176_s25  ;;  %2590 = vst.msk [vmem:[#allocation3 + $0x90] sm:$0xff] %vm2583_vm15, %v2548_v51  ;;  %s8468_s25 = smov 112  }
 0x18c   : > { %2654 = vst.msk [vmem:[#allocation3 + $0x90] sm:$0xff] %vm1340_vm5, %v6969_v28  ;;  %2176 = vrot.lane.b32.xlu0 %v2516_v37, %s8404_s4 }
 0x18d   : > { %v2421_v44 = vpop.permute.xlu1 %2420 }
 0x18e   : > { %2462 = vst.msk [vmem:[#allocation3 + $0xa8] sm:$0xff] %vm2454_vm14, %v2421_v44  ;;  %v2550_v42 = vpop.permute.xlu0 %2549 }
 0x18f   : > { %2049 = vrot.lane.b32.xlu1 %v2002_v54, %s6177_s8  ;;  %2591 = vst.msk [vmem:[#allocation3 + $0xa8] sm:$0xff] %vm2583_vm15, %v2550_v42  ;;  %s8457_s8 = sld [smem:[#allocation6_spill]] }
 0x190   : > { %2655 = vst.msk [vmem:[#allocation3 + $0xa8] sm:$0xff] %vm1340_vm5, %v6993_v39  ;;  %2305 = vrot.lane.b32.xlu0 %v7131_v63, %s6179_s29 }
 0x191   : > { %v1650_v28 = vpop.permute.xlu1 %1649 }
 0x192   : > { %1689 = vst.msk [vmem:[#allocation3 + $0xc0] sm:$0xff] %vm1147_vm1, %v1650_v28  ;;  %v1778_v8 = vpop.permute.xlu0 %1777 }
 0x193   : > { %2178 = vrot.lane.b32.xlu1 %v2131_v45, %s8404_s4  ;;  %1818 = vst.msk [vmem:[#allocation3 + $0xc0] sm:$0xff] %vm1809_vm9, %v1778_v8  ;;  %v2670_v9 = vld [vmem:[#allocation3 + $0x90] sm:$0xff]  ;;  %s8460_s4 = sld [smem:[#allocation10_spill]] }
 0x194   : > { %2434 = vrot.lane.b32.xlu0 %v2002_v54, %s8423_s0  ;;  %5960 = vmatprep.mubr.msk.bf16.mxu0 %vm2707_vm2, %v2670_v9 }
 0x195   : > { %v1652_v39 = vpop.permute.xlu1 %1651 }
 0x196   : > { %1690 = vst.msk [vmem:[#allocation3 + $0xd8] sm:$0xff] %vm1147_vm1, %v1652_v39  ;;  %v1907_v50 = vpop.permute.xlu0 %1906 }
 0x197   : > { %2307 = vrot.lane.b32.xlu1 %v7152_v49, %s6179_s29  ;;  %1947 = vst.msk [vmem:[#allocation3 + $0xc0] sm:$0xff] %vm1938_vm10, %v1907_v50  ;;  %v2671_v14 = vld [vmem:[#allocation3 + $0xa8] sm:$0xff]  ;;  %s8418_s29 = smov 112  }
 0x198   : > { %2563 = vrot.lane.b32.xlu0 %v2131_v45, %s6181_s6  ;;  %5961 = vmatmul.mubr.msk.bf16.gmra.mrb[12].mxu0 %vm2707_vm2, %v2671_v14 }
 0x199   : > { %v1780_v17 = vpop.permute.xlu1 %1779 }
 0x19a   : > { %1819 = vst.msk [vmem:[#allocation3 + $0xd8] sm:$0xff] %vm1809_vm9, %v1780_v17  ;;  %v2036_v52 = vpop.permute.xlu0 %2035 }
 0x19b   : > { %2436 = vrot.lane.b32.xlu1 %v2389_v38, %s8423_s0  ;;  %2076 = vst.msk [vmem:[#allocation3 + $0xc0] sm:$0xff] %vm2067_vm11, %v2036_v52 }
 0x19d   : > { %v1909_v53 = vpop.permute.xlu1 %1908 }
 0x19e   : > { %1948 = vst.msk [vmem:[#allocation3 + $0xd8] sm:$0xff] %vm1938_vm10, %v1909_v53  ;;  %v2165_v18 = vpop.permute.xlu0 %2164 }
 0x19f   : > { %2565 = vrot.lane.b32.xlu1 %v2518_v16, %s6181_s6  ;;  %2205 = vst.msk [vmem:[#allocation3 + $0xc0] sm:$0xff] %vm2196_vm12, %v2165_v18  ;;  %s8458_s6 = sld [smem:[#allocation7_spill]] }
 0x1a1   : > { %v2038_v57 = vpop.permute.xlu1 %2037 }
 0x1a2   : > { %2077 = vst.msk [vmem:[#allocation3 + $0xd8] sm:$0xff] %vm2067_vm11, %v2038_v57  ;;  %v2294_v46 = vpop.permute.xlu0 %2293 }
 0x1a3   : > { %2334 = vst.msk [vmem:[#allocation3 + $0xc0] sm:$0xff] %vm2325_vm13, %v2294_v46 }
 0x1a5   : > { %v2167_v23 = vpop.permute.xlu1 %2166 }
 0x1a6   : > { %2206 = vst.msk [vmem:[#allocation3 + $0xd8] sm:$0xff] %vm2196_vm12, %v2167_v23  ;;  %v2423_v58 = vpop.permute.xlu0 %2422 }
 0x1a7   : > { %2463 = vst.msk [vmem:[#allocation3 + $0xc0] sm:$0xff] %vm2454_vm14, %v2423_v58 }
 0x1a9   : > { %v2296_v33 = vpop.permute.xlu1 %2295 }
 0x1aa   : > { %2335 = vst.msk [vmem:[#allocation3 + $0xd8] sm:$0xff] %vm2325_vm13, %v2296_v33  ;;  %v2552_v24 = vpop.permute.xlu0 %2551 }
 0x1ab   : > { %2592 = vst.msk [vmem:[#allocation3 + $0xc0] sm:$0xff] %vm2583_vm15, %v2552_v24  ;;  %v7240_v24 = vld [vmem:[%s8457_s8] ss:$0 sm:$0xff]  ;;  %s8406_s8 = smov 56  }
 0x1ac   : > { %2656 = vst.msk [vmem:[#allocation3 + $0xc0] sm:$0xff] %vm1340_vm5, %v7014_v0 }
 0x1ad   : > { %v2425_v31 = vpop.permute.xlu1 %2424 }
 0x1ae   : > { %2464 = vst.msk [vmem:[#allocation3 + $0xd8] sm:$0xff] %vm2454_vm14, %v2425_v31  ;;  %v2554_v59 = vpop.permute.xlu0 %2553 }
 0x1af   : > { %2593 = vst.msk [vmem:[#allocation3 + $0xd8] sm:$0xff] %vm2583_vm15, %v2554_v59 }
 0x1b0   : > { %2657 = vst.msk [vmem:[#allocation3 + $0xd8] sm:$0xff] %vm1340_vm5, %v7039_v19 }
 0x1b1   : > { %v1654_v34 = vpop.permute.xlu1 %1653 }
 0x1b2   : > { %1691 = vst.msk [vmem:[#allocation3 + $0xf0] sm:$0xff] %vm1147_vm1, %v1654_v34  ;;  %v1782_v7 = vpop.permute.xlu0 %1781  ;;  %v2630_v34 = vld [vmem:[#allocation2 + $0x119] sm:$0xff] }
 0x1b3   : > { %1820 = vst.msk [vmem:[#allocation3 + $0xf0] sm:$0xff] %vm1809_vm9, %v1782_v7  ;;  %v2672_v32 = vld [vmem:[#allocation3 + $0xc0] sm:$0xff]  ;;  %v2631_v7 = vld [vmem:[#allocation2 + $0x121] sm:$0xff] }
 0x1b4   : > { %5964 = vmatprep.mubr.msk.bf16.mxu0 %vm2707_vm2, %v2672_v32 }
 0x1b5   : > { %v1656_v37 = vpop.permute.xlu1 %1655 }
 0x1b6   : > { %1692 = vst.msk [vmem:[#allocation3 + $0x108] sm:$0xff] %vm1147_vm1, %v1656_v37  ;;  %v1911_v0 = vpop.permute.xlu0 %1910 }
 0x1b7   : > { %1949 = vst.msk [vmem:[#allocation3 + $0xf0] sm:$0xff] %vm1938_vm10, %v1911_v0  ;;  %v2673_v60 = vld [vmem:[#allocation3 + $0xd8] sm:$0xff] }
 0x1b8   : > { %5965 = vmatmul.mubr.msk.bf16.gmra.mrb[16].mxu0 %vm2707_vm2, %v2673_v60 }
 0x1b9   : > { %v1784_v35 = vpop.permute.xlu1 %1783 }
 0x1ba   : > { %1821 = vst.msk [vmem:[#allocation3 + $0x108] sm:$0xff] %vm1809_vm9, %v1784_v35  ;;  %v2040_v19 = vpop.permute.xlu0 %2039 }
 0x1bb   : > { %2078 = vst.msk [vmem:[#allocation3 + $0xf0] sm:$0xff] %vm2067_vm11, %v2040_v19 }
 0x1bd   : > { %v1913_v36 = vpop.permute.xlu1 %1912 }
 0x1be   : > { %1950 = vst.msk [vmem:[#allocation3 + $0x108] sm:$0xff] %vm1938_vm10, %v1913_v36  ;;  %v2169_v22 = vpop.permute.xlu0 %2168 }
 0x1bf   : > { %2207 = vst.msk [vmem:[#allocation3 + $0xf0] sm:$0xff] %vm2196_vm12, %v2169_v22 }
 0x1c1   : > { %v2042_v40 = vpop.permute.xlu1 %2041 }
 0x1c2   : > { %2079 = vst.msk [vmem:[#allocation3 + $0x108] sm:$0xff] %vm2067_vm11, %v2042_v40  ;;  %v2298_v47 = vpop.permute.xlu0 %2297  ;;  %v2647_v40 = vpack.c.bf16 %v2631_v7, %v2630_v34 }
 0x1c3   : > { %2336 = vst.msk [vmem:[#allocation3 + $0xf0] sm:$0xff] %vm2325_vm13, %v2298_v47 }
 0x1c5   : > { %v2171_v21 = vpop.permute.xlu1 %2170 }
 0x1c6   : > { %2208 = vst.msk [vmem:[#allocation3 + $0x108] sm:$0xff] %vm2196_vm12, %v2171_v21  ;;  %v2427_v48 = vpop.permute.xlu0 %2426 }
 0x1c7   : > { %2465 = vst.msk [vmem:[#allocation3 + $0xf0] sm:$0xff] %vm2454_vm14, %v2427_v48 }
 0x1c9   : > { %v2300_v43 = vpop.permute.xlu1 %2299 }
 0x1ca   : > { %2337 = vst.msk [vmem:[#allocation3 + $0x108] sm:$0xff] %vm2325_vm13, %v2300_v43  ;;  %v2556_v25 = vpop.permute.xlu0 %2555 }
 0x1cb   : > { %2594 = vst.msk [vmem:[#allocation3 + $0xf0] sm:$0xff] %vm2583_vm15, %v2556_v25 }
 0x1cc   : > { %2658 = vst.msk [vmem:[#allocation3 + $0xf0] sm:$0xff] %vm1340_vm5, %v7060_v61 }
 0x1cd   : > { %v2429_v29 = vpop.permute.xlu1 %2428 }
 0x1ce   : > { %2466 = vst.msk [vmem:[#allocation3 + $0x108] sm:$0xff] %vm2454_vm14, %v2429_v29  ;;  %v2558_v51 = vpop.permute.xlu0 %2557  ;;  %v1038_v29 = vand.u32 7, %v6403_v2 }
 0x1cf   : > { %2595 = vst.msk [vmem:[#allocation3 + $0x108] sm:$0xff] %vm2583_vm15, %v2558_v51 }
 0x1d0   : > { %2659 = vst.msk [vmem:[#allocation3 + $0x108] sm:$0xff] %vm1340_vm5, %v7085_v11  ;;  %vm1046_vm3 = vcmp.ne.s32.totalorder %v1038_v29, 0  ;;  %vm1070_vm4 = vcmp.ne.s32.totalorder %v1038_v29, 7 }
 0x1d1   : > { %v1658_v44 = vpop.permute.xlu1 %1657 }
 0x1d2   : > { %1693 = vst.msk [vmem:[#allocation3 + $0x120] sm:$0xff] %vm1147_vm1, %v1658_v44  ;;  %v1786_v54 = vpop.permute.xlu0 %1785 }
 0x1d3   : > { %1822 = vst.msk [vmem:[#allocation3 + $0x120] sm:$0xff] %vm1809_vm9, %v1786_v54  ;;  %v2674_v55 = vld [vmem:[#allocation3 + $0xf0] sm:$0xff] }
 0x1d4   : > { %5968 = vmatprep.mubr.msk.bf16.mxu0 %vm2707_vm2, %v2674_v55 }
 0x1d5   : > { %v1660_v62 = vpop.permute.xlu1 %1659 }
 0x1d6   : > { %1694 = vst.msk [vmem:[#allocation3 + $0x138] sm:$0xff] %vm1147_vm1, %v1660_v62  ;;  %v1915_v61 = vpop.permute.xlu0 %1914 }
 0x1d7   : > { %1951 = vst.msk [vmem:[#allocation3 + $0x120] sm:$0xff] %vm1938_vm10, %v1915_v61  ;;  %v2675_v42 = vld [vmem:[#allocation3 + $0x108] sm:$0xff] }
 0x1d8   : > { %5969 = vmatmul.mubr.msk.bf16.gmra.mrb[20].mxu0 %vm2707_vm2, %v2675_v42 }
 0x1d9   : > { %v1788_v28 = vpop.permute.xlu1 %1787 }
 0x1da   : > { %1823 = vst.msk [vmem:[#allocation3 + $0x138] sm:$0xff] %vm1809_vm9, %v1788_v28  ;;  %v2044_v11 = vpop.permute.xlu0 %2043  ;;  %v7260_v28 = vsel %vm1046_vm3, 1.0, %v6172_v1 }
 0x1db   : > { %2080 = vst.msk [vmem:[#allocation3 + $0x120] sm:$0xff] %vm2067_vm11, %v2044_v11  ;;  %v7263_v11 = vsel %vm1070_vm4, 1.0, %v6172_v1 }
 0x1dd   : > { %v1917_v45 = vpop.permute.xlu1 %1916 }
 0x1de   : > { %1952 = vst.msk [vmem:[#allocation3 + $0x138] sm:$0xff] %vm1938_vm10, %v1917_v45  ;;  %v2173_v4 = vpop.permute.xlu0 %2172 }
 0x1df   : > { %2209 = vst.msk [vmem:[#allocation3 + $0x120] sm:$0xff] %vm2196_vm12, %v2173_v4 }
 0x1e1   : > { %v2046_v26 = vpop.permute.xlu1 %2045 }
 0x1e2   : > { %2081 = vst.msk [vmem:[#allocation3 + $0x138] sm:$0xff] %vm2067_vm11, %v2046_v26  ;;  %v2302_v8 = vpop.permute.xlu0 %2301 }
 0x1e3   : > { %2338 = vst.msk [vmem:[#allocation3 + $0x120] sm:$0xff] %vm2325_vm13, %v2302_v8 }
 0x1e5   : > { %v2175_v9 = vpop.permute.xlu1 %2174 }
 0x1e6   : > { %2210 = vst.msk [vmem:[#allocation3 + $0x138] sm:$0xff] %vm2196_vm12, %v2175_v9  ;;  %v2431_v39 = vpop.permute.xlu0 %2430 }
 0x1e7   : > { %2467 = vst.msk [vmem:[#allocation3 + $0x120] sm:$0xff] %vm2454_vm14, %v2431_v39 }
 0x1e9   : > { %v2304_v12 = vpop.permute.xlu1 %2303 }
 0x1ea   : > { %2339 = vst.msk [vmem:[#allocation3 + $0x138] sm:$0xff] %vm2325_vm13, %v2304_v12  ;;  %v2560_v13 = vpop.permute.xlu0 %2559 }
 0x1eb   : > { %2596 = vst.msk [vmem:[#allocation3 + $0x120] sm:$0xff] %vm2583_vm15, %v2560_v13 }
 0x1ec   : > { %2660 = vst.msk [vmem:[#allocation3 + $0x120] sm:$0xff] %vm1340_vm5, %v7106_v30 }
 0x1ed   : > { %v2433_v50 = vpop.permute.xlu1 %2432 }
 0x1ee   : > { %2468 = vst.msk [vmem:[#allocation3 + $0x138] sm:$0xff] %vm2454_vm14, %v2433_v50  ;;  %v2562_v14 = vpop.permute.xlu0 %2561 }
 0x1ef   : > { %2597 = vst.msk [vmem:[#allocation3 + $0x138] sm:$0xff] %vm2583_vm15, %v2562_v14 }
 0x1f0   : > { %2661 = vst.msk [vmem:[#allocation3 + $0x138] sm:$0xff] %vm1340_vm5, %v7131_v63 }
 0x1f1   : > { %v1662_v27 = vpop.permute.xlu1 %1661 }
 0x1f2   : > { %1695 = vst.msk [vmem:[#allocation3 + $0x150] sm:$0xff] %vm1147_vm1, %v1662_v27  ;;  %v1790_v15 = vpop.permute.xlu0 %1789 }
 0x1f3   : > { %1824 = vst.msk [vmem:[#allocation3 + $0x150] sm:$0xff] %vm1809_vm9, %v1790_v15  ;;  %v2676_v17 = vld [vmem:[#allocation3 + $0x120] sm:$0xff] }
 0x1f4   : > { %5972 = vmatprep.mubr.msk.bf16.mxu0 %vm2707_vm2, %v2676_v17 }
 0x1f5   : > { %v1664_v38 = vpop.permute.xlu1 %1663 }
 0x1f6   : > { %1696 = vst.msk [vmem:[#allocation3 + $0x168] sm:$0xff] %vm1147_vm1, %v1664_v38  ;;  %v1919_v30 = vpop.permute.xlu0 %1918  ;;  %vm2953_vm1 = vcmask 64512  }
 0x1f7   : > { %1953 = vst.msk [vmem:[#allocation3 + $0x150] sm:$0xff] %vm1938_vm10, %v1919_v30  ;;  %v2677_v52 = vld [vmem:[#allocation3 + $0x138] sm:$0xff] }
 0x1f8   : > { %5973 = vmatmul.mubr.msk.bf16.gmra.mrb[24].mxu0 %vm2707_vm2, %v2677_v52  ;;  %v1039_v52 = vand.u32 7, %v6415_v3 }
 0x1f9   : > { %v1792_v16 = vpop.permute.xlu1 %1791 }
 0x1fa   : > { %1825 = vst.msk [vmem:[#allocation3 + $0x168] sm:$0xff] %vm1809_vm9, %v1792_v16  ;;  %v2048_v63 = vpop.permute.xlu0 %2047  ;;  %vm1047_vm6 = vcmp.ne.s32.totalorder %v1039_v52, 0 }
 0x1fb   : > { %2082 = vst.msk [vmem:[#allocation3 + $0x150] sm:$0xff] %vm2067_vm11, %v2048_v63 }
 0x1fd   : > { %v1921_v53 = vpop.permute.xlu1 %1920 }
 0x1fe   : > { %1954 = vst.msk [vmem:[#allocation3 + $0x168] sm:$0xff] %vm1938_vm10, %v1921_v53  ;;  %v2177_v18 = vpop.permute.xlu0 %2176 }
 0x1ff   : > { %2211 = vst.msk [vmem:[#allocation3 + $0x150] sm:$0xff] %vm2196_vm12, %v2177_v18 }
 0x201   : > { %v2050_v57 = vpop.permute.xlu1 %2049 }
 0x202   : > { %2083 = vst.msk [vmem:[#allocation3 + $0x168] sm:$0xff] %vm2067_vm11, %v2050_v57  ;;  %v2306_v46 = vpop.permute.xlu0 %2305 }
 0x203   : > { %2340 = vst.msk [vmem:[#allocation3 + $0x150] sm:$0xff] %vm2325_vm13, %v2306_v46 }
 0x205   : > { %v2179_v23 = vpop.permute.xlu1 %2178 }
 0x206   : > { %2212 = vst.msk [vmem:[#allocation3 + $0x168] sm:$0xff] %vm2196_vm12, %v2179_v23  ;;  %v2435_v58 = vpop.permute.xlu0 %2434  ;;  %vm3122_vm12 = vcmask 326912  }
 0x207   : > { %2469 = vst.msk [vmem:[#allocation3 + $0x150] sm:$0xff] %vm2454_vm14, %v2435_v58  ;;  %v7283_v58 = vsel %vm1047_vm6, 1.0, %v6172_v1 }
 0x209   : > { %v2308_v33 = vpop.permute.xlu1 %2307 }
 0x20a   : > { %2341 = vst.msk [vmem:[#allocation3 + $0x168] sm:$0xff] %vm2325_vm13, %v2308_v33  ;;  %v2564_v31 = vpop.permute.xlu0 %2563  ;;  %vm3171_vm13 = vcmask 589312  }
 0x20b   : > { %2598 = vst.msk [vmem:[#allocation3 + $0x150] sm:$0xff] %vm2583_vm15, %v2564_v31  ;;  %v5950_v59 = vpop.f32.mrb[0].mxu0 }
 0x20c   : > { %2662 = vst.msk [vmem:[#allocation3 + $0x150] sm:$0xff] %vm1340_vm5, %v7152_v49  ;;  %v2803_v32 = vadd.f32 %v5950_v59, %v7240_v24  ;;  %v2794_v37 = vpop.f32.mrb[1].mxu0 }
 0x20d   : > { %v2437_v0 = vpop.permute.xlu1 %2436  ;;  %v2795_v60 = vadd.f32 %v7240_v24, %v2794_v37  ;;  %v5951_v35 = vpop.f32.mrb[2].mxu0 }
 0x20e   : > { %2470 = vst.msk [vmem:[#allocation3 + $0x168] sm:$0xff] %vm2454_vm14, %v2437_v0  ;;  %v2923_v19 = vmax.f32 %v2803_v32, 0.0  ;;  %v2806_v36 = vadd.f32 %v5951_v35, %v7240_v24  ;;  %v2797_v22 = vpop.f32.mrb[3].mxu0 }
 0x20f   : > { %v2921_v47 = vmax.f32 %v2795_v60, 0.0  ;;  %v2798_v21 = vadd.f32 %v7240_v24, %v2797_v22 }
 0x210   : > { %2956 = vst.msk [vmem:[#allocation2 + $0x28] sm:$0xff] %vm2953_vm1, %v2923_v19  ;;  %v2924_v49 = vmax.f32 %v2806_v36, 0.0 }
 0x211   : > { %v2566_v48 = vpop.permute.xlu1 %2565  ;;  %2954 = vst.msk [vmem:[#allocation2 + $0x18] sm:$0xff] %vm2953_vm1, %v2921_v47  ;;  %v2922_v43 = vmax.f32 %v2798_v21, 0.0  ;;  %v1040_v21 = vand.u32 7, %v6422_v6 }
 0x212   : > { %2599 = vst.msk [vmem:[#allocation3 + $0x168] sm:$0xff] %vm2583_vm15, %v2566_v48 }
 0x213   : > { %2957 = vst.msk [vmem:[#allocation2 + $0x30] sm:$0xff] %vm2953_vm1, %v2924_v49  ;;  %2955 = vst.msk [vmem:[#allocation2 + $0x20] sm:$0xff] %vm2953_vm1, %v2922_v43  ;;  %v2678_v25 = vld [vmem:[#allocation3 + $0x150] sm:$0xff]  ;;  %vm1072_vm7 = vcmp.ne.s32.totalorder %v1040_v21, 7  ;;  %vm1048_vm9 = vcmp.ne.s32.totalorder %v1040_v21, 0 }
 0x214   : > { %2663 = vst.msk [vmem:[#allocation3 + $0x168] sm:$0xff] %vm1340_vm5, %v2647_v40  ;;  %5976 = vmatprep.mubr.msk.bf16.mxu0 %vm2707_vm2, %v2678_v25  ;;  %vm1071_vm5 = vcmp.ne.s32.totalorder %v1039_v52, 7  ;;  %v7308_v6 = vsel %vm1072_vm7, 1.0, %v6172_v1 }
 0x215   : > { %v7280_v23 = vsel %vm1071_vm5, 1.0, %v6172_v1 }
 0x21a   : > { %v2991_v44 = vld [vmem:[#allocation2 + $0x28] ss:$2 sm:$0xff]  ;;  %v2993_v54 = vld [vmem:[#allocation2 + $0x29] ss:$2 sm:$0xff]  ;;  %v2987_v55 = vld [vmem:[#allocation2 + $0x18] ss:$2 sm:$0xff] }
 0x21b   : > { %v2679_v51 = vld [vmem:[#allocation3 + $0x168] sm:$0xff]  ;;  %v2995_v61 = vmax.f32 %v2991_v44, %v2993_v54  ;;  %v7311_v44 = vsel %vm1048_vm9, 1.0, %v6172_v1  ;;  %vm3537_vm9 = vcmask 1043456  }
 0x21c   : > { %v2989_v62 = vld [vmem:[#allocation2 + $0x19] ss:$2 sm:$0xff]  ;;  %5977 = vmatmul.mubr.msk.bf16.gmra.mrb[28].mxu0 %vm2707_vm2, %v2679_v51 }
 0x21d   : > { %v2994_v42 = vmax.f32 %v2987_v55, %v2989_v62 }
 0x21f   : > { %v2996_v45 = vmax.f32 %v2994_v42, %v2995_v61 }
 0x221   : > { %v3082_v4 = vmul.f32 %v7260_v28, %v2996_v45  ;;  %3074 = vst.msk [vmem:[#allocation2 + $0x18] sm:$0xff] %vm2953_vm1, %v2996_v45  ;;  %v3131_v26 = vmul.f32 %v7263_v11, %v2996_v45 }
 0x223   : > { %3098 = vrot.lane.b32.xlu0 %v3082_v4, %s8421_s7  ;;  %3147 = vrot.lane.b32.xlu1 %v3131_v26, %s8425_s30 }
 0x22b   : > { %v5954_v8 = vpop.f32.mrb[4].mxu0 }
 0x22c   : > { %v2819_v9 = vadd.f32 %v5954_v8, %v7240_v24  ;;  %v2810_v39 = vpop.f32.mrb[5].mxu0 }
 0x22d   : > { %v2811_v12 = vadd.f32 %v7240_v24, %v2810_v39  ;;  %v5955_v13 = vpop.f32.mrb[6].mxu0 }
 0x22e   : > { %v2927_v50 = vmax.f32 %v2819_v9, 0.0  ;;  %v2822_v14 = vadd.f32 %v5955_v13, %v7240_v24  ;;  %v2813_v27 = vpop.f32.mrb[7].mxu0 }
 0x22f   : > { %v2925_v15 = vmax.f32 %v2811_v12, 0.0  ;;  %v2814_v17 = vadd.f32 %v7240_v24, %v2813_v27  ;;  %v1041_v27 = vand.u32 7, %v6419_v5 }
 0x230   : > { %2960 = vst.msk [vmem:[#allocation2 + $0x48] sm:$0xff] %vm2953_vm1, %v2927_v50  ;;  %v2928_v38 = vmax.f32 %v2822_v14, 0.0 }
 0x231   : > { %2958 = vst.msk [vmem:[#allocation2 + $0x38] sm:$0xff] %vm2953_vm1, %v2925_v15  ;;  %v2926_v30 = vmax.f32 %v2814_v17, 0.0  ;;  %vm1073_vm10 = vcmp.ne.s32.totalorder %v1041_v27, 7  ;;  %vm1049_vm11 = vcmp.ne.s32.totalorder %v1041_v27, 0 }
 0x232   : > { %2961 = vst.msk [vmem:[#allocation2 + $0x50] sm:$0xff] %vm2953_vm1, %v2928_v38 }
 0x233   : > { %2959 = vst.msk [vmem:[#allocation2 + $0x40] sm:$0xff] %vm2953_vm1, %v2926_v30 }
 0x239   : > { %v3002_v16 = vld [vmem:[#allocation2 + $0x48] ss:$2 sm:$0xff]  ;;  %v3004_v63 = vld [vmem:[#allocation2 + $0x49] ss:$2 sm:$0xff] }
 0x23a   : > { %v2998_v53 = vld [vmem:[#allocation2 + $0x38] ss:$2 sm:$0xff]  ;;  %v3000_v18 = vld [vmem:[#allocation2 + $0x39] ss:$2 sm:$0xff]  ;;  %v3006_v57 = vmax.f32 %v3002_v16, %v3004_v63  ;;  %v7328_v63 = vsel %vm1073_vm10, 1.0, %v6172_v1  ;;  %vm3243_vm10 = vcmask 130112  }
 0x23b   : > { %v3005_v46 = vmax.f32 %v2998_v53, %v3000_v18  ;;  %v7331_v53 = vsel %vm1049_vm11, 1.0, %v6172_v1  ;;  %vm3276_vm11 = vcmask 195712  }
 0x23d   : > { %v3007_v33 = vmax.f32 %v3005_v46, %v3006_v57 }
 0x23f   : > { %v3132_v31 = vmul.f32 %v7280_v23, %v3007_v33  ;;  %3075 = vst.msk [vmem:[#allocation2 + $0x20] sm:$0xff] %vm2953_vm1, %v3007_v33  ;;  %v3083_v59 = vmul.f32 %v7283_v58, %v3007_v33 }
 0x241   : > { %3149 = vrot.lane.b32.xlu0 %v3132_v31, %s8425_s30  ;;  %3100 = vrot.lane.b32.xlu1 %v3083_v59, %s8421_s7 }
 0x24b   : > { %v5958_v34 = vpop.f32.mrb[8].mxu0 }
 0x24c   : > { %v2835_v7 = vadd.f32 %v5958_v34, %v7240_v24  ;;  %v2826_v32 = vpop.f32.mrb[9].mxu0 }
 0x24d   : > { %v2827_v37 = vadd.f32 %v7240_v24, %v2826_v32  ;;  %v5959_v0 = vpop.f32.mrb[10].mxu0 }
 0x24e   : > { %v2931_v60 = vmax.f32 %v2835_v7, 0.0  ;;  %v2838_v35 = vadd.f32 %v5959_v0, %v7240_v24  ;;  %v2829_v19 = vpop.f32.mrb[11].mxu0 }
 0x24f   : > { %v2929_v36 = vmax.f32 %v2827_v37, 0.0  ;;  %v2830_v22 = vadd.f32 %v7240_v24, %v2829_v19 }
 0x250   : > { %2964 = vst.msk [vmem:[#allocation2 + $0x68] sm:$0xff] %vm2953_vm1, %v2931_v60  ;;  %v2932_v40 = vmax.f32 %v2838_v35, 0.0 }
 0x251   : > { %2962 = vst.msk [vmem:[#allocation2 + $0x58] sm:$0xff] %vm2953_vm1, %v2929_v36  ;;  %v2930_v47 = vmax.f32 %v2830_v22, 0.0 }
 0x252   : > { %2965 = vst.msk [vmem:[#allocation2 + $0x70] sm:$0xff] %vm2953_vm1, %v2932_v40  ;;  %v1042_v40 = vand.u32 7, %v6436_v10 }
 0x253   : > { %2963 = vst.msk [vmem:[#allocation2 + $0x60] sm:$0xff] %vm2953_vm1, %v2930_v47 }
 0x254   : > { %vm1074_vm14 = vcmp.ne.s32.totalorder %v1042_v40, 7  ;;  %vm1050_vm15 = vcmp.ne.s32.totalorder %v1042_v40, 0 }
 0x259   : > { %v3013_v49 = vld [vmem:[#allocation2 + $0x68] ss:$2 sm:$0xff]  ;;  %v3015_v48 = vld [vmem:[#allocation2 + $0x69] ss:$2 sm:$0xff] }
 0x25a   : > { %v3009_v43 = vld [vmem:[#allocation2 + $0x58] ss:$2 sm:$0xff]  ;;  %v3011_v25 = vld [vmem:[#allocation2 + $0x59] ss:$2 sm:$0xff]  ;;  %v3017_v29 = vmax.f32 %v3013_v49, %v3015_v48  ;;  %3182 = vst.msk [vmem:[#allocation2 + $0x68] sm:$0xff] %vm742_vm0, %v6172_v1 }
 0x25b   : > { %v3016_v51 = vmax.f32 %v3009_v43, %v3011_v25  ;;  %4593 = vst.msk [vmem:[#allocation2 + $0x68] sm:$0xff] %vm742_vm0, %v6172_v1  ;;  %3180 = vst.msk [vmem:[#allocation2 + $0x58] sm:$0xff] %vm742_vm0, %v6172_v1 }
 0x25c   : > { %3181 = vst.msk [vmem:[#allocation2 + $0x60] sm:$0xff] %vm742_vm0, %v6172_v1 }
 0x25d   : > { %v3018_v54 = vmax.f32 %v3016_v51, %v3017_v29  ;;  %v7350_v29 = vsel %vm1074_vm14, 1.0, %v6172_v1  ;;  %v7353_v51 = vsel %vm1050_vm15, 1.0, %v6172_v1  ;;  %vm3309_vm14 = vcmask 261312  }
 0x25e   : > { %vm8412_vm15 = vcmask 392512  }
 0x25f   : > { %v3133_v55 = vmul.f32 %v7308_v6, %v3018_v54  ;;  %3076 = vst.msk [vmem:[#allocation2 + $0x28] sm:$0xff] %vm2953_vm1, %v3018_v54  ;;  %v3084_v62 = vmul.f32 %v7311_v44, %v3018_v54 }
 0x261   : > { %3151 = vrot.lane.b32.xlu1 %v3133_v55, %s8425_s30  ;;  %3102 = vrot.lane.b32.xlu0 %v3084_v62, %s8421_s7 }
 0x26b   : > { %v5962_v61 = vpop.f32.mrb[12].mxu0 }
 0x26c   : > { %v2851_v42 = vadd.f32 %v5962_v61, %v7240_v24  ;;  %v2842_v45 = vpop.f32.mrb[13].mxu0 }
 0x26d   : > { %v2843_v4 = vadd.f32 %v7240_v24, %v2842_v45  ;;  %v5963_v26 = vpop.f32.mrb[14].mxu0 }
 0x26e   : > { %v2935_v8 = vmax.f32 %v2851_v42, 0.0  ;;  %v2854_v9 = vadd.f32 %v5963_v26, %v7240_v24  ;;  %v2845_v39 = vpop.f32.mrb[15].mxu0 }
 0x26f   : > { %v2933_v12 = vmax.f32 %v2843_v4, 0.0  ;;  %v2846_v13 = vadd.f32 %v7240_v24, %v2845_v39 }
 0x270   : > { %2968 = vst.msk [vmem:[#allocation2 + $0x88] sm:$0xff] %vm2953_vm1, %v2935_v8  ;;  %v2936_v50 = vmax.f32 %v2854_v9, 0.0 }
 0x271   : > { %2966 = vst.msk [vmem:[#allocation2 + $0x78] sm:$0xff] %vm2953_vm1, %v2933_v12  ;;  %v2934_v14 = vmax.f32 %v2846_v13, 0.0 }
 0x272   : > { %2969 = vst.msk [vmem:[#allocation2 + $0x90] sm:$0xff] %vm2953_vm1, %v2936_v50 }
 0x273   : > { %2967 = vst.msk [vmem:[#allocation2 + $0x80] sm:$0xff] %vm2953_vm1, %v2934_v14 }
 0x279   : > { %v3024_v15 = vld [vmem:[#allocation2 + $0x88] ss:$2 sm:$0xff]  ;;  %v3026_v17 = vld [vmem:[#allocation2 + $0x89] ss:$2 sm:$0xff] }
 0x27a   : > { %v3020_v38 = vld [vmem:[#allocation2 + $0x78] ss:$2 sm:$0xff]  ;;  %v3022_v30 = vld [vmem:[#allocation2 + $0x79] ss:$2 sm:$0xff]  ;;  %v3028_v52 = vmax.f32 %v3024_v15, %v3026_v17  ;;  %v1043_v15 = vand.u32 7, %v6462_v20 }
 0x27b   : > { %v3027_v16 = vmax.f32 %v3020_v38, %v3022_v30 }
 0x27c   : > { %vm1051_vm2 = vcmp.ne.s32.totalorder %v1043_v15, 0  ;;  %vm1075_vm3 = vcmp.ne.s32.totalorder %v1043_v15, 7 }
 0x27d   : > { %v3029_v18 = vmax.f32 %v3027_v16, %v3028_v52  ;;  %v7377_v20 = vsel %vm1075_vm3, 1.0, %v6172_v1  ;;  %vm8410_vm3 = vcmask 523712  }
 0x27f   : > { %v3134_v57 = vmul.f32 %v7328_v63, %v3029_v18  ;;  %3077 = vst.msk [vmem:[#allocation2 + $0x30] sm:$0xff] %vm2953_vm1, %v3029_v18  ;;  %v3085_v5 = vmul.f32 %v7331_v53, %v3029_v18 }
 0x281   : > { %3153 = vrot.lane.b32.xlu1 %v3134_v57, %s8425_s30  ;;  %3104 = vrot.lane.b32.xlu0 %v3085_v5, %s8421_s7  ;;  %v7372_v57 = vsel %vm1051_vm2, 1.0, %v6172_v1  ;;  %vm8411_vm2 = vcmask 458112  }
 0x28b   : > { %v5966_v46 = vpop.f32.mrb[16].mxu0 }
 0x28c   : > { %v2867_v33 = vadd.f32 %v5966_v46, %v7240_v24  ;;  %v2858_v31 = vpop.f32.mrb[17].mxu0 }
 0x28d   : > { %v2859_v59 = vadd.f32 %v7240_v24, %v2858_v31  ;;  %v5967_v34 = vpop.f32.mrb[18].mxu0 }
 0x28e   : > { %v2939_v7 = vmax.f32 %v2867_v33, 0.0  ;;  %v2870_v32 = vadd.f32 %v5967_v34, %v7240_v24  ;;  %v2861_v37 = vpop.f32.mrb[19].mxu0 }
 0x28f   : > { %v2937_v0 = vmax.f32 %v2859_v59, 0.0  ;;  %v2862_v60 = vadd.f32 %v7240_v24, %v2861_v37 }
 0x290   : > { %2972 = vst.msk [vmem:[#allocation2 + $0xa8] sm:$0xff] %vm2953_vm1, %v2939_v7  ;;  %v2940_v35 = vmax.f32 %v2870_v32, 0.0 }
 0x291   : > { %2970 = vst.msk [vmem:[#allocation2 + $0x98] sm:$0xff] %vm2953_vm1, %v2937_v0  ;;  %v2938_v19 = vmax.f32 %v2862_v60, 0.0 }
 0x292   : > { %2973 = vst.msk [vmem:[#allocation2 + $0xb0] sm:$0xff] %vm2953_vm1, %v2940_v35 }
 0x293   : > { %2971 = vst.msk [vmem:[#allocation2 + $0xa0] sm:$0xff] %vm2953_vm1, %v2938_v19 }
 0x295   : > { %v3099_v36 = vpop.permute.xlu0 %3098  ;;  %v3148_v22 = vpop.permute.xlu1 %3147 }
 0x296   : > { %3123 = vst.msk [vmem:[#allocation2 + $0x18] sm:$0xff] %vm3122_vm12, %v3099_v36 }
 0x297   : > { %3172 = vst.msk [vmem:[#allocation2 + $0x18] sm:$0xff] %vm3171_vm13, %v3148_v22 }
 0x299   : > { %v3035_v47 = vld [vmem:[#allocation2 + $0xa8] ss:$2 sm:$0xff]  ;;  %v3037_v21 = vld [vmem:[#allocation2 + $0xa9] ss:$2 sm:$0xff] }
 0x29a   : > { %v3031_v49 = vld [vmem:[#allocation2 + $0x98] ss:$2 sm:$0xff]  ;;  %v3033_v48 = vld [vmem:[#allocation2 + $0x99] ss:$2 sm:$0xff]  ;;  %v3039_v43 = vmax.f32 %v3035_v47, %v3037_v21  ;;  %v1044_v21 = vand.u32 7, %v6544_v41 }
 0x29b   : > { %v3038_v25 = vmax.f32 %v3031_v49, %v3033_v48 }
 0x29c   : > { %vm1052_vm4 = vcmp.ne.s32.totalorder %v1044_v21, 0  ;;  %vm1076_vm5 = vcmp.ne.s32.totalorder %v1044_v21, 7 }
 0x29d   : > { %v3040_v54 = vmax.f32 %v3038_v25, %v3039_v43  ;;  %v7399_v41 = vsel %vm1076_vm5, 1.0, %v6172_v1  ;;  %vm3622_vm5 = vcmask 130048  }
 0x29f   : > { %v3135_v55 = vmul.f32 %v7350_v29, %v3040_v54  ;;  %3078 = vst.msk [vmem:[#allocation2 + $0x38] sm:$0xff] %vm2953_vm1, %v3040_v54  ;;  %v3086_v10 = vmul.f32 %v7353_v51, %v3040_v54 }
 0x2a1   : > { %3155 = vrot.lane.b32.xlu1 %v3135_v55, %s8425_s30  ;;  %3106 = vrot.lane.b32.xlu0 %v3086_v10, %s8421_s7  ;;  %v7394_v10 = vsel %vm1052_vm4, 1.0, %v6172_v1  ;;  %vm8409_vm4 = vcmask 588800  }
 0x2ab   : > { %v5970_v62 = vpop.f32.mrb[20].mxu0 }
 0x2ac   : > { %v2883_v61 = vadd.f32 %v5970_v62, %v7240_v24  ;;  %v2874_v42 = vpop.f32.mrb[21].mxu0 }
 0x2ad   : > { %v2875_v45 = vadd.f32 %v7240_v24, %v2874_v42  ;;  %v5971_v4 = vpop.f32.mrb[22].mxu0 }
 0x2ae   : > { %v2943_v26 = vmax.f32 %v2883_v61, 0.0  ;;  %v2886_v8 = vadd.f32 %v5971_v4, %v7240_v24  ;;  %v2877_v9 = vpop.f32.mrb[23].mxu0 }
 0x2af   : > { %v2941_v39 = vmax.f32 %v2875_v45, 0.0  ;;  %v2878_v12 = vadd.f32 %v7240_v24, %v2877_v9 }
 0x2b0   : > { %2976 = vst.msk [vmem:[#allocation2 + $0xc8] sm:$0xff] %vm2953_vm1, %v2943_v26  ;;  %v2944_v13 = vmax.f32 %v2886_v8, 0.0 }
 0x2b1   : > { %2974 = vst.msk [vmem:[#allocation2 + $0xb8] sm:$0xff] %vm2953_vm1, %v2941_v39  ;;  %v2942_v50 = vmax.f32 %v2878_v12, 0.0 }
 0x2b2   : > { %2977 = vst.msk [vmem:[#allocation2 + $0xd0] sm:$0xff] %vm2953_vm1, %v2944_v13 }
 0x2b3   : > { %2975 = vst.msk [vmem:[#allocation2 + $0xc0] sm:$0xff] %vm2953_vm1, %v2942_v50  ;;  %v3150_v14 = vpop.permute.xlu0 %3149  ;;  %v3101_v27 = vpop.permute.xlu1 %3100 }
 0x2b4   : > { %3124 = vst.msk [vmem:[#allocation2 + $0x20] sm:$0xff] %vm3122_vm12, %v3101_v27 }
 0x2b5   : > { %3173 = vst.msk [vmem:[#allocation2 + $0x20] sm:$0xff] %vm3171_vm13, %v3150_v14 }
 0x2b9   : > { %v3046_v17 = vld [vmem:[#allocation2 + $0xc8] ss:$2 sm:$0xff]  ;;  %v3048_v38 = vld [vmem:[#allocation2 + $0xc9] ss:$2 sm:$0xff] }
 0x2ba   : > { %v3042_v30 = vld [vmem:[#allocation2 + $0xb8] ss:$2 sm:$0xff]  ;;  %v3044_v52 = vld [vmem:[#allocation2 + $0xb9] ss:$2 sm:$0xff]  ;;  %v3050_v16 = vmax.f32 %v3046_v17, %v3048_v38 }
 0x2bb   : > { %v3049_v18 = vmax.f32 %v3042_v30, %v3044_v52  ;;  %v1045_v30 = vand.u32 7, %v6603_v56 }
 0x2bd   : > { %v3051_v5 = vmax.f32 %v3049_v18, %v3050_v16  ;;  %vm1077_vm6 = vcmp.ne.s32.totalorder %v1045_v30, 7  ;;  %vm1053_vm7 = vcmp.ne.s32.totalorder %v1045_v30, 0  ;;  %v6086_v30 = vld [vmem:[%s8458_s6 + $0x10] sm:$0xff]  }
 0x2bf   : > { %v3087_v46 = vmul.f32 %v7372_v57, %v3051_v5  ;;  %3079 = vst.msk [vmem:[#allocation2 + $0x40] sm:$0xff] %vm2953_vm1, %v3051_v5  ;;  %v3136_v33 = vmul.f32 %v7377_v20, %v3051_v5 }
 0x2c1   : > { %3108 = vrot.lane.b32.xlu0 %v3087_v46, %s8421_s7 }
 0x2c5   : > { %3157 = vrot.lane.b32.xlu0 %v3136_v33, %s8425_s30  ;;  %v7416_v33 = vsel %vm1077_vm6, 1.0, %v6172_v1 }
 0x2cb   : > { %v5974_v31 = vpop.f32.mrb[24].mxu0 }
 0x2cc   : > { %v2899_v59 = vadd.f32 %v5974_v31, %v7240_v24  ;;  %v2890_v34 = vpop.f32.mrb[25].mxu0  ;;  %v7419_v31 = vsel %vm1053_vm7, 1.0, %v6172_v1 }
 0x2cd   : > { %v2891_v7 = vadd.f32 %v7240_v24, %v2890_v34  ;;  %v5975_v32 = vpop.f32.mrb[26].mxu0  ;;  %v7421_v34 = vld [vmem:[#allocation2 + $0x59] sm:$0xff] }
 0x2ce   : > { %v2947_v37 = vmax.f32 %v2899_v59, 0.0  ;;  %v2902_v0 = vadd.f32 %v5975_v32, %v7240_v24  ;;  %v2893_v60 = vpop.f32.mrb[27].mxu0  ;;  %4592 = vst.msk [vmem:[#allocation2 + $0x60] sm:$0xff] %vm742_vm0, %v6172_v1  ;;  %v3184_v32 = vld [vmem:[#allocation2 + $0x17] sm:$0xff] }
 0x2cf   : > { %v2945_v35 = vmax.f32 %v2891_v7, 0.0  ;;  %v2894_v19 = vadd.f32 %v7240_v24, %v2893_v60  ;;  %v3185_v60 = vld [vmem:[#allocation2 + $0x1f] sm:$0xff] }
 0x2d0   : > { %2980 = vst.msk [vmem:[#allocation2 + $0xe8] sm:$0xff] %vm2953_vm1, %v2947_v37  ;;  %v2948_v36 = vmax.f32 %v2902_v0, 0.0  ;;  %v3183_v0 = vld [vmem:[#allocation2 + $0xf] sm:$0xff] }
 0x2d1   : > { %2978 = vst.msk [vmem:[#allocation2 + $0xd8] sm:$0xff] %vm2953_vm1, %v2945_v35  ;;  %v2946_v22 = vmax.f32 %v2894_v19, 0.0  ;;  %v3191_v35 = vpack.c.bf16 %v3184_v32, %v3183_v0 }
 0x2d2   : > { %2981 = vst.msk [vmem:[#allocation2 + $0xf0] sm:$0xff] %vm2953_vm1, %v2948_v36  ;;  %v3215_v36 = vld [vmem:[#allocation2 + $0x10] sm:$0xff] }
 0x2d3   : > { %2979 = vst.msk [vmem:[#allocation2 + $0xe0] sm:$0xff] %vm2953_vm1, %v2946_v22  ;;  %v3103_v40 = vpop.permute.xlu0 %3102  ;;  %v3152_v47 = vpop.permute.xlu1 %3151  ;;  %v3216_v22 = vld [vmem:[#allocation2 + $0x18] sm:$0xff] }
 0x2d4   : > { %3125 = vst.msk [vmem:[#allocation2 + $0x28] sm:$0xff] %vm3122_vm12, %v3103_v40  ;;  %v3223_v21 = vpack.c.bf16 %v3216_v22, %v3215_v36 }
 0x2d5   : > { %3174 = vst.msk [vmem:[#allocation2 + $0x28] sm:$0xff] %vm3171_vm13, %v3152_v47  ;;  %v3217_v47 = vld [vmem:[#allocation2 + $0x20] sm:$0xff] }
 0x2d9   : > { %v3057_v49 = vld [vmem:[#allocation2 + $0xe8] ss:$2 sm:$0xff]  ;;  %v3059_v48 = vld [vmem:[#allocation2 + $0xe9] ss:$2 sm:$0xff] }
 0x2da   : > { %v3053_v43 = vld [vmem:[#allocation2 + $0xd8] ss:$2 sm:$0xff]  ;;  %v3055_v25 = vld [vmem:[#allocation2 + $0xd9] ss:$2 sm:$0xff]  ;;  %v3061_v54 = vmax.f32 %v3057_v49, %v3059_v48 }
 0x2db   : > { %v3060_v55 = vmax.f32 %v3053_v43, %v3055_v25  ;;  %v3249_v48 = vld [vmem:[#allocation2 + $0x19] sm:$0xff]  ;;  %v3248_v25 = vld [vmem:[#allocation2 + $0x11] sm:$0xff] }
 0x2dc   : > { %v3186_v37 = vld [vmem:[#allocation2 + $0x27] sm:$0xff] }
 0x2dd   : > { %v3062_v62 = vmax.f32 %v3060_v55, %v3061_v54  ;;  %v3192_v19 = vpack.c.bf16 %v3186_v37, %v3185_v60  ;;  %v3218_v40 = vld [vmem:[#allocation2 + $0x28] sm:$0xff]  ;;  %v3256_v55 = vpack.c.bf16 %v3249_v48, %v3248_v25 }
 0x2de   : > { %v3224_v49 = vpack.c.bf16 %v3218_v40, %v3217_v47  ;;  %v3250_v54 = vld [vmem:[#allocation2 + $0x21] sm:$0xff] }
 0x2df   : > { %v3088_v61 = vmul.f32 %v7394_v10, %v3062_v62  ;;  %3080 = vst.msk [vmem:[#allocation2 + $0x48] sm:$0xff] %vm2953_vm1, %v3062_v62  ;;  %v3137_v42 = vmul.f32 %v7399_v41, %v3062_v62 }
 0x2e1   : > { %3110 = vrot.lane.b32.xlu1 %v3088_v61, %s8421_s7 }
 0x2e5   : > { %3159 = vrot.lane.b32.xlu1 %v3137_v42, %s8425_s30  ;;  %v3289_v42 = vpack.c.bf16 %v3185_v60, %v3184_v32 }
 0x2ef   : > { %v5978_v45 = vpop.f32.mrb[28].mxu0 }
 0x2f0   : > { %v2915_v4 = vadd.f32 %v5978_v45, %v7240_v24  ;;  %v2906_v26 = vpop.f32.mrb[29].mxu0 }
 0x2f1   : > { %v2907_v8 = vadd.f32 %v7240_v24, %v2906_v26  ;;  %v5979_v9 = vpop.f32.mrb[30].mxu0 }
 0x2f2   : > { %v2951_v39 = vmax.f32 %v2915_v4, 0.0  ;;  %v2918_v12 = vadd.f32 %v5979_v9, %v7240_v24  ;;  %v2909_v13 = vpop.f32.mrb[31].mxu0  ;;  %v3322_v9 = vpack.c.bf16 %v3217_v47, %v3216_v22 }
 0x2f3   : > { %v2949_v50 = vmax.f32 %v2907_v8, 0.0  ;;  %v2910_v14 = vadd.f32 %v7240_v24, %v2909_v13  ;;  %v3105_v17 = vpop.permute.xlu0 %3104  ;;  %v3154_v38 = vpop.permute.xlu1 %3153 }
 0x2f4   : > { %2984 = vst.msk [vmem:[#allocation2 + $0x108] sm:$0xff] %vm2953_vm1, %v2951_v39  ;;  %v2952_v27 = vmax.f32 %v2918_v12, 0.0  ;;  %v3354_v12 = vpack.c.bf16 %v3250_v54, %v3249_v48 }
 0x2f5   : > { %2982 = vst.msk [vmem:[#allocation2 + $0xf8] sm:$0xff] %vm2953_vm1, %v2949_v50  ;;  %v2950_v15 = vmax.f32 %v2910_v14, 0.0 }
 0x2f6   : > { %2985 = vst.msk [vmem:[#allocation2 + $0x110] sm:$0xff] %vm2953_vm1, %v2952_v27  ;;  %v6084_v27 = vld [vmem:[%s8458_s6] sm:$0xff]  }
 0x2f7   : > { %3126 = vst.msk [vmem:[#allocation2 + $0x30] sm:$0xff] %vm3122_vm12, %v3105_v17  ;;  %5980 = vmatprep.subr.bf16.mxu1 %v6084_v27 }
 0x2f8   : > { %2983 = vst.msk [vmem:[#allocation2 + $0x100] sm:$0xff] %vm2953_vm1, %v2950_v15  ;;  %v6085_v15 = vld [vmem:[%s8458_s6 + $0x8] sm:$0xff]   ;;  %5981 = vmatpush3.bf16.msra.mxu1 %v6084_v27 }
 0x2f9   : > { %3175 = vst.msk [vmem:[#allocation2 + $0x30] sm:$0xff] %vm3171_vm13, %v3154_v38  ;;  %5982 = vmatprep.subr.bf16.mxu1 %v6085_v15 }
 0x2fc   : > { %5983 = vmatpush3.bf16.msra.mxu1 %v6085_v15 }
 0x2fd   : > { %v3068_v24 = vld [vmem:[#allocation2 + $0x108] ss:$2 sm:$0xff]  ;;  %v3070_v52 = vld [vmem:[#allocation2 + $0x109] ss:$2 sm:$0xff]  ;;  %5984 = vmatprep.subr.bf16.mxu1 %v6086_v30 }
 0x2fe   : > { %v3072_v5 = vmax.f32 %v3068_v24, %v3070_v52 }
 0x2ff   : > { %v3064_v16 = vld [vmem:[#allocation2 + $0xf8] ss:$2 sm:$0xff]  ;;  %v3066_v18 = vld [vmem:[#allocation2 + $0xf9] ss:$2 sm:$0xff] }
 0x300   : > { %v3071_v46 = vmax.f32 %v3064_v16, %v3066_v18  ;;  %v3251_v43 = vld [vmem:[#allocation2 + $0x29] sm:$0xff]  ;;  %5985 = vmatpush3.bf16.msra.mxu1 %v6086_v30  ;;  %v6087_v16 = vld [vmem:[%s8458_s6 + $0x18] sm:$0xff]  }
 0x301   : > { %v3257_v62 = vpack.c.bf16 %v3251_v43, %v3250_v54  ;;  %v3284_v61 = vld [vmem:[#allocation2 + $0x2f] sm:$0xff]  ;;  %5986 = vmatprep.subr.bf16.mxu1 %v6087_v16 }
 0x302   : > { %v3073_v59 = vmax.f32 %v3071_v46, %v3072_v5  ;;  %v3290_v45 = vpack.c.bf16 %v3284_v61, %v3186_v37  ;;  %v3317_v4 = vld [vmem:[#allocation2 + $0x30] sm:$0xff]  ;;  %v6088_v5 = vld [vmem:[%s8458_s6 + $0x20] ss:$0 sps:$4 sm:$0xff]  }
 0x303   : > { %v3323_v39 = vpack.c.bf16 %v3317_v4, %v3218_v40  ;;  %v3539_v46 = vsel %vm3537_vm9, %v6088_v5, 0 }
 0x304   : > { %v3138_v56 = vmul.f32 %v7416_v33, %v3073_v59  ;;  %3081 = vst.msk [vmem:[#allocation2 + $0x50] sm:$0xff] %vm2953_vm1, %v3073_v59  ;;  %v3089_v7 = vmul.f32 %v7419_v31, %v3073_v59  ;;  %5987 = vmatpush3.bf16.msra.mxu1 %v6087_v16 }
 0x305   : > { %6055 = vmatprep.subr.msk.bf16.mxu1 %vm3537_vm9, %v6088_v5 }
 0x306   : > { %3161 = vrot.lane.b32.xlu1 %v3138_v56, %s8425_s30  ;;  %3112 = vrot.lane.b32.xlu0 %v3089_v7, %s8421_s7 }
 0x308   : > { %5989 = vmatpush3.bf16.msra.mxu1 %v3539_v46 }
 0x30a   : > { %3199 = vrot.lane.b32.xlu0 %v3191_v35, %s8425_s30  ;;  %3201 = vrot.lane.b32.xlu1 %v3192_v19, %s8425_s30 }
 0x30e   : > { %3231 = vrot.lane.b32.xlu0 %v3223_v21, %s8430_s2  ;;  %3233 = vrot.lane.b32.xlu1 %v3224_v49, %s8430_s2 }
 0x312   : > { %3264 = vrot.lane.b32.xlu0 %v3256_v55, %s8418_s29  ;;  %3266 = vrot.lane.b32.xlu1 %v3257_v62, %s8418_s29 }
 0x313   : > { %v3107_v26 = vpop.permute.xlu0 %3106  ;;  %v3156_v8 = vpop.permute.xlu1 %3155 }
 0x314   : > { %3127 = vst.msk [vmem:[#allocation2 + $0x38] sm:$0xff] %vm3122_vm12, %v3107_v26 }
 0x315   : > { %3176 = vst.msk [vmem:[#allocation2 + $0x38] sm:$0xff] %vm3171_vm13, %v3156_v8 }
 0x316   : > { %3297 = vrot.lane.b32.xlu0 %v3289_v42, %s8423_s0  ;;  %3299 = vrot.lane.b32.xlu1 %v3290_v45, %s8423_s0 }
 0x31a   : > { %3330 = vrot.lane.b32.xlu0 %v3322_v9, %s8421_s7  ;;  %3332 = vrot.lane.b32.xlu1 %v3323_v39, %s8421_s7 }
 0x31c   : > { %v3349_v13 = vld [vmem:[#allocation2 + $0x31] sm:$0xff] }
 0x31d   : > { %v3355_v50 = vpack.c.bf16 %v3349_v13, %v3251_v43  ;;  %v3382_v14 = vld [vmem:[#allocation2 + $0x37] sm:$0xff] }
 0x31e   : > { %3362 = vrot.lane.b32.xlu0 %v3354_v12, %s8430_s2  ;;  %3461 = vrot.lane.b32.xlu1 %v3257_v62, %s8421_s7  ;;  %v3388_v17 = vpack.c.bf16 %v3382_v14, %v3284_v61  ;;  %v3415_v38 = vld [vmem:[#allocation2 + $0x38] sm:$0xff] }
 0x31f   : > { %v3421_v24 = vpack.c.bf16 %v3415_v38, %v3317_v4  ;;  %v3419_v4 = vld [vmem:[#allocation2 + $0x58] sm:$0xff] }
 0x322   : > { %3395 = vrot.lane.b32.xlu0 %v3192_v19, %s8418_s29  ;;  %3364 = vrot.lane.b32.xlu1 %v3355_v50, %s8430_s2 }
 0x326   : > { %3428 = vrot.lane.b32.xlu0 %v3224_v49, %s8406_s8  ;;  %3397 = vrot.lane.b32.xlu1 %v3388_v17, %s8418_s29 }
 0x32a   : > { %3430 = vrot.lane.b32.xlu0 %v3421_v24, %s8406_s8  ;;  %3203 = vrot.lane.b32.xlu1 %v3388_v17, %s8425_s30 }
 0x32e   : > { %3235 = vrot.lane.b32.xlu1 %v3421_v24, %s8430_s2 }
 0x333   : > { %v3109_v52 = vpop.permute.xlu0 %3108 }
 0x334   : > { %3128 = vst.msk [vmem:[#allocation2 + $0x40] sm:$0xff] %vm3122_vm12, %v3109_v52 }
 0x337   : > { %v3158_v18 = vpop.permute.xlu0 %3157 }
 0x338   : > { %3177 = vst.msk [vmem:[#allocation2 + $0x40] sm:$0xff] %vm3171_vm13, %v3158_v18 }
 0x33f   : > { %v3448_v59 = vld [vmem:[#allocation2 + $0x39] sm:$0xff] }
 0x340   : > { %v3454_v56 = vpack.c.bf16 %v3448_v59, %v3349_v13  ;;  %v3286_v7 = vld [vmem:[#allocation2 + $0x3f] sm:$0xff] }
 0x341   : > { %v3291_v32 = vpack.c.bf16 %v3286_v7, %v3382_v14  ;;  %v3319_v37 = vld [vmem:[#allocation2 + $0x40] sm:$0xff] }
 0x342   : > { %3463 = vrot.lane.b32.xlu0 %v3454_v56, %s8421_s7  ;;  %v3324_v0 = vpack.c.bf16 %v3319_v37, %v3415_v38 }
 0x346   : > { %3268 = vrot.lane.b32.xlu0 %v3454_v56, %s8418_s29 }
 0x34a   : > { %3301 = vrot.lane.b32.xlu0 %v3291_v32, %s8423_s0 }
 0x34e   : > { %3334 = vrot.lane.b32.xlu0 %v3324_v0, %s8421_s7 }
 0x353   : > { %v3111_v60 = vpop.permute.xlu1 %3110 }
 0x354   : > { %3129 = vst.msk [vmem:[#allocation2 + $0x48] sm:$0xff] %vm3122_vm12, %v3111_v60 }
 0x357   : > { %v3160_v35 = vpop.permute.xlu1 %3159 }
 0x358   : > { %3178 = vst.msk [vmem:[#allocation2 + $0x48] sm:$0xff] %vm3171_vm13, %v3160_v35 }
 0x35f   : > { %v3222_v19 = vld [vmem:[#allocation2 + $0x48] sm:$0xff] }
 0x360   : > { %v3190_v36 = vld [vmem:[#allocation2 + $0x47] sm:$0xff]  ;;  %v3226_v22 = vpack.c.bf16 %v3222_v19, %v3319_v37 }
 0x361   : > { %v3194_v40 = vpack.c.bf16 %v3190_v36, %v3286_v7  ;;  %v3351_v47 = vld [vmem:[#allocation2 + $0x41] sm:$0xff] }
 0x362   : > { %3237 = vrot.lane.b32.xlu1 %v3226_v22, %s8430_s2  ;;  %v3356_v21 = vpack.c.bf16 %v3351_v47, %v3448_v59 }
 0x363   : > { %3205 = vrot.lane.b32.xlu0 %v3194_v40, %s8425_s30 }
 0x367   : > { %3366 = vrot.lane.b32.xlu0 %v3356_v21, %s8430_s2 }
 0x36b   : > { %3399 = vrot.lane.b32.xlu0 %v3194_v40, %s8418_s29 }
 0x36f   : > { %3432 = vrot.lane.b32.xlu0 %v3226_v22, %s8406_s8 }
 0x378   : > { %v3113_v49 = vpop.permute.xlu0 %3112  ;;  %v3162_v48 = vpop.permute.xlu1 %3161 }
 0x379   : > { %3130 = vst.msk [vmem:[#allocation2 + $0x50] sm:$0xff] %vm3122_vm12, %v3113_v49 }
 0x37a   : > { %3179 = vst.msk [vmem:[#allocation2 + $0x50] sm:$0xff] %vm3171_vm13, %v3162_v48 }
 0x37c   : > { %v3200_v43 = vpop.permute.xlu0 %3199  ;;  %v3202_v25 = vpop.permute.xlu1 %3201 }
 0x37d   : > { %3211 = vst.msk [vmem:[#allocation3] sm:$0xff] %vm2953_vm1, %v3200_v43  ;;  %3212 = vst.msk [vmem:[#allocation3 + $0x18] sm:$0xff] %vm2953_vm1, %v3202_v25 }
 0x380   : > { %v3232_v54 = vpop.permute.xlu0 %3231  ;;  %v3234_v55 = vpop.permute.xlu1 %3233 }
 0x381   : > { %3244 = vst.msk [vmem:[#allocation3] sm:$0xff] %vm3243_vm10, %v3232_v54  ;;  %3245 = vst.msk [vmem:[#allocation3 + $0x18] sm:$0xff] %vm3243_vm10, %v3234_v55  ;;  %v3450_v62 = vld [vmem:[#allocation2 + $0x49] sm:$0xff]  ;;  %v3353_v42 = vld [vmem:[#allocation2 + $0x51] sm:$0xff] }
 0x382   : > { %v3455_v61 = vpack.c.bf16 %v3450_v62, %v3351_v47  ;;  %v3386_v45 = vld [vmem:[#allocation2 + $0x57] sm:$0xff]  ;;  %v3288_v26 = vld [vmem:[#allocation2 + $0x4f] sm:$0xff]  ;;  %v3357_v17 = vpack.c.bf16 %v3353_v42, %v3450_v62  ;;  %v3456_v59 = vpack.c.bf16 %v7421_v34, %v3353_v42 }
 0x383   : > { %4591 = vst.msk [vmem:[#allocation2 + $0x58] sm:$0xff] %vm742_vm0, %v6172_v1  ;;  %v3292_v39 = vpack.c.bf16 %v3288_v26, %v3190_v36  ;;  %v3321_v12 = vld [vmem:[#allocation2 + $0x50] sm:$0xff]  ;;  %v3390_v24 = vpack.c.bf16 %v3386_v45, %v3288_v26 }
 0x384   : > { %v3265_v8 = vpop.permute.xlu0 %3264  ;;  %3465 = vrot.lane.b32.xlu0 %v3455_v61, %s8421_s7  ;;  %3270 = vrot.lane.b32.xlu1 %v3455_v61, %s8418_s29  ;;  %v3267_v9 = vpop.permute.xlu1 %3266  ;;  %v3325_v14 = vpack.c.bf16 %v3321_v12, %v3222_v19  ;;  %v3423_v18 = vpack.c.bf16 %v3419_v4, %v3321_v12  ;;  %v5778_v4 = vld [vmem:[%s8459_s1] ss:$0 sm:$0xff]  ;;  %s8463_s1 = sld [smem:[#allocation11_spill]] }
 0x385   : > { %3277 = vst.msk [vmem:[#allocation3] sm:$0xff] %vm3276_vm11, %v3265_v8  ;;  %3278 = vst.msk [vmem:[#allocation3 + $0x18] sm:$0xff] %vm3276_vm11, %v3267_v9 }
 0x388   : > { %v3298_v13 = vpop.permute.xlu0 %3297  ;;  %3303 = vrot.lane.b32.xlu1 %v3292_v39, %s8423_s0  ;;  %v3300_v50 = vpop.permute.xlu1 %3299  ;;  %s8480_s0 = smov 48  }
 0x389   : > { %3310 = vst.msk [vmem:[#allocation3] sm:$0xff] %vm3309_vm14, %v3298_v13  ;;  %3311 = vst.msk [vmem:[#allocation3 + $0x18] sm:$0xff] %vm3309_vm14, %v3300_v50 }
 0x38c   : > { %v3331_v27 = vpop.permute.xlu0 %3330  ;;  %3336 = vrot.lane.b32.xlu1 %v3325_v14, %s8421_s7  ;;  %v3333_v15 = vpop.permute.xlu1 %3332 }
 0x38d   : > { %3342 = vst.msk [vmem:[#allocation3] sm:$0xff] %vm3122_vm12, %v3331_v27  ;;  %3343 = vst.msk [vmem:[#allocation3 + $0x18] sm:$0xff] %vm3122_vm12, %v3333_v15 }
 0x390   : > { %v3363_v38 = vpop.permute.xlu0 %3362  ;;  %3368 = vrot.lane.b32.xlu1 %v3357_v17, %s8430_s2  ;;  %v3462_v30 = vpop.permute.xlu1 %3461 }
 0x391   : > { %3375 = vst.msk [vmem:[#allocation3] sm:$0xff] %vm8412_vm15, %v3363_v38 }
 0x394   : > { %v3396_v52 = vpop.permute.xlu0 %3395  ;;  %3401 = vrot.lane.b32.xlu1 %v3390_v24, %s8418_s29  ;;  %v3365_v16 = vpop.permute.xlu1 %3364 }
 0x395   : > { %3408 = vst.msk [vmem:[#allocation3] sm:$0xff] %vm8411_vm2, %v3396_v52 }
 0x396   : > { %3376 = vst.msk [vmem:[#allocation3 + $0x18] sm:$0xff] %vm8412_vm15, %v3365_v16 }
 0x398   : > { %v3429_v5 = vpop.permute.xlu0 %3428  ;;  %3434 = vrot.lane.b32.xlu1 %v3423_v18, %s8406_s8  ;;  %v3398_v46 = vpop.permute.xlu1 %3397  ;;  %s8461_s8 = smov 16  }
 0x399   : > { %3441 = vst.msk [vmem:[#allocation3] sm:$0xff] %vm8410_vm3, %v3429_v5 }
 0x39a   : > { %3409 = vst.msk [vmem:[#allocation3 + $0x18] sm:$0xff] %vm8411_vm2, %v3398_v46 }
 0x39b   : > { %3473 = vst.msk [vmem:[#allocation3] sm:$0xff] %vm3171_vm13, %v3462_v30  ;;  %v1094_v30 = vand.u32 3, %v6403_v2 }
 0x39c   : > { %v3431_v56 = vpop.permute.xlu0 %3430  ;;  %3467 = vrot.lane.b32.xlu1 %v3456_v59, %s8421_s7  ;;  %v3204_v7 = vpop.permute.xlu1 %3203 }
 0x39d   : > { %3442 = vst.msk [vmem:[#allocation3 + $0x18] sm:$0xff] %vm8410_vm3, %v3431_v56  ;;  %vm1096_vm6 = vcmp.ne.s32.totalorder %v1094_v30, 0  ;;  %vm1102_vm7 = vcmp.ne.s32.totalorder %v1094_v30, 3 }
 0x39e   : > { %3213 = vst.msk [vmem:[#allocation3 + $0x30] sm:$0xff] %vm2953_vm1, %v3204_v7 }
 0x3a0   : > { %v3236_v32 = vpop.permute.xlu1 %3235 }
 0x3a1   : > { %3246 = vst.msk [vmem:[#allocation3 + $0x30] sm:$0xff] %vm3243_vm10, %v3236_v32 }
 0x3a2   : > { %v3477_v37 = vld [vmem:[#allocation3] sm:$0xff] }
 0x3a3   : > { %5990 = vmatprep.mubr.msk.bf16.mxu1 %vm8409_vm4, %v3477_v37 }
 0x3b4   : > { %v3464_v0 = vpop.permute.xlu0 %3463 }
 0x3b5   : > { %3474 = vst.msk [vmem:[#allocation3 + $0x18] sm:$0xff] %vm3171_vm13, %v3464_v0 }
 0x3b8   : > { %v3269_v60 = vpop.permute.xlu0 %3268 }
 0x3b9   : > { %3279 = vst.msk [vmem:[#allocation3 + $0x30] sm:$0xff] %vm3276_vm11, %v3269_v60 }
 0x3bc   : > { %v3302_v34 = vpop.permute.xlu0 %3301  ;;  %v3478_v35 = vld [vmem:[#allocation3 + $0x18] sm:$0xff] }
 0x3bd   : > { %3312 = vst.msk [vmem:[#allocation3 + $0x30] sm:$0xff] %vm3309_vm14, %v3302_v34  ;;  %5991 = vmatmul.mubr.msk.bf16.vlgmr.msra.gmra.mrb[0].mxu1 %vm8409_vm4, %v3478_v35  ;;  %v7561_v35 = vsel %vm1096_vm6, 1.0, %v6172_v1 }
 0x3c0   : > { %v3335_v19 = vpop.permute.xlu0 %3334 }
 0x3c1   : > { %3344 = vst.msk [vmem:[#allocation3 + $0x30] sm:$0xff] %vm3122_vm12, %v3335_v19 }
 0x3d4   : > { %v3238_v22 = vpop.permute.xlu1 %3237 }
 0x3d5   : > { %v3206_v36 = vpop.permute.xlu0 %3205 }
 0x3d6   : > { %3214 = vst.msk [vmem:[#allocation3 + $0x48] sm:$0xff] %vm2953_vm1, %v3206_v36 }
 0x3d7   : > { %3247 = vst.msk [vmem:[#allocation3 + $0x48] sm:$0xff] %vm3243_vm10, %v3238_v22 }
 0x3d9   : > { %v3367_v40 = vpop.permute.xlu0 %3366 }
 0x3da   : > { %3377 = vst.msk [vmem:[#allocation3 + $0x30] sm:$0xff] %vm8412_vm15, %v3367_v40  ;;  %v7567_v40 = vsel %vm1102_vm7, 1.0, %v6172_v1 }
 0x3dd   : > { %v3400_v47 = vpop.permute.xlu0 %3399 }
 0x3de   : > { %3410 = vst.msk [vmem:[#allocation3 + $0x30] sm:$0xff] %vm8411_vm2, %v3400_v47 }
 0x3e1   : > { %v3433_v21 = vpop.permute.xlu0 %3432 }
 0x3e2   : > { %3443 = vst.msk [vmem:[#allocation3 + $0x30] sm:$0xff] %vm8410_vm3, %v3433_v21 }
 0x3f6   : > { %v3466_v49 = vpop.permute.xlu0 %3465  ;;  %v3271_v48 = vpop.permute.xlu1 %3270 }
 0x3f7   : > { %3475 = vst.msk [vmem:[#allocation3 + $0x30] sm:$0xff] %vm3171_vm13, %v3466_v49 }
 0x3f8   : > { %3280 = vst.msk [vmem:[#allocation3 + $0x48] sm:$0xff] %vm3276_vm11, %v3271_v48 }
 0x3fa   : > { %v3304_v43 = vpop.permute.xlu1 %3303 }
 0x3fb   : > { %3313 = vst.msk [vmem:[#allocation3 + $0x48] sm:$0xff] %vm3309_vm14, %v3304_v43 }
 0x3fe   : > { %v3337_v25 = vpop.permute.xlu1 %3336  ;;  %v3479_v54 = vld [vmem:[#allocation3 + $0x30] sm:$0xff] }
 0x3ff   : > { %3345 = vst.msk [vmem:[#allocation3 + $0x48] sm:$0xff] %vm3122_vm12, %v3337_v25  ;;  %5994 = vmatprep.mubr.msk.bf16.mxu1 %vm8409_vm4, %v3479_v54 }
 0x402   : > { %v3369_v55 = vpop.permute.xlu1 %3368 }
 0x403   : > { %3378 = vst.msk [vmem:[#allocation3 + $0x48] sm:$0xff] %vm8412_vm15, %v3369_v55  ;;  %vm8417_vm15 = vcmask 1048448  }
 0x406   : > { %v3402_v62 = vpop.permute.xlu1 %3401 }
 0x407   : > { %3411 = vst.msk [vmem:[#allocation3 + $0x48] sm:$0xff] %vm8411_vm2, %v3402_v62  ;;  %vm8420_vm2 = vcmask 917248  }
 0x40a   : > { %v3435_v61 = vpop.permute.xlu1 %3434 }
 0x40b   : > { %3444 = vst.msk [vmem:[#allocation3 + $0x48] sm:$0xff] %vm8410_vm3, %v3435_v61  ;;  %vm8427_vm3 = vcmask 786048  }
 0x40e   : > { %v3468_v42 = vpop.permute.xlu1 %3467 }
 0x40f   : > { %3476 = vst.msk [vmem:[#allocation3 + $0x48] sm:$0xff] %vm3171_vm13, %v3468_v42 }
 0x416   : > { %v3480_v45 = vld [vmem:[#allocation3 + $0x48] sm:$0xff] }
 0x417   : > { %5995 = vmatmul.mubr.msk.bf16.gmra.mrb[4].mxu1 %vm8409_vm4, %v3480_v45  ;;  %vm8428_vm4 = vcmask 523648  }
 0x490   : > { %v5992_v26 = vpop.f32.mrb[0].mxu1 }
 0x491   : > { %v3584_v8 = vadd.f32 %v5992_v26, %v5778_v4  ;;  %v3575_v9 = vpop.f32.mrb[1].mxu1 }
 0x492   : > { %v3576_v39 = vadd.f32 %v5778_v4, %v3575_v9  ;;  %v5993_v12 = vpop.f32.mrb[2].mxu1 }
 0x493   : > { %v7537_v13 = vmax.f32 %v3584_v8, 0.0  ;;  %v3587_v50 = vadd.f32 %v5993_v12, %v5778_v4  ;;  %v3578_v14 = vpop.f32.mrb[3].mxu1  ;;  %v1095_v8 = vand.u32 3, %v6415_v3 }
 0x494   : > { %v7539_v27 = vmax.f32 %v3576_v39, 0.0  ;;  %v3579_v15 = vadd.f32 %v5778_v4, %v3578_v14 }
 0x495   : > { %v7541_v17 = vmax.f32 %v3587_v50, 0.0  ;;  %3688 = vst.msk [vmem:[#allocation2 + $0x28] sm:$0xff] %vm3622_vm5, %v7537_v13  ;;  %vm1097_vm6 = vcmp.ne.s32.totalorder %v1095_v8, 0  ;;  %vm1103_vm7 = vcmp.ne.s32.totalorder %v1095_v8, 3 }
 0x496   : > { %v7545_v38 = vmax.f32 %v3579_v15, 0.0  ;;  %3686 = vst.msk [vmem:[#allocation2 + $0x18] sm:$0xff] %vm3622_vm5, %v7539_v27 }
 0x497   : > { %3689 = vst.msk [vmem:[#allocation2 + $0x30] sm:$0xff] %vm3622_vm5, %v7541_v17 }
 0x498   : > { %3687 = vst.msk [vmem:[#allocation2 + $0x20] sm:$0xff] %vm3622_vm5, %v7545_v38 }
 0x49c   : > { %v3703_v24 = vld [vmem:[#allocation2 + $0x28] ss:$2 sm:$0xf]  ;;  %v3704_v52 = vld [vmem:[#allocation2 + $0x29] ss:$2 sm:$0xf] }
 0x49d   : > { %v3694_v16 = vld [vmem:[#allocation2 + $0x18] ss:$2 sm:$0xf]  ;;  %v3695_v18 = vld [vmem:[#allocation2 + $0x19] ss:$2 sm:$0xf]  ;;  %v3709_v7 = vmax.f32 %v3703_v24, %v3704_v52 }
 0x49e   : > { %3766 = vst.msk [vmem:[#allocation2 + $0x28] sm:$0xff] %vm742_vm0, %v6172_v1  ;;  %v3706_v5 = vld [vmem:[#allocation2 + $0x30] ss:$2 sm:$0xf]  ;;  %v3700_v37 = vmax.f32 %v3694_v16, %v3695_v18 }
 0x49f   : > { %v3708_v46 = vld [vmem:[#allocation2 + $0x31] ss:$2 sm:$0xf]  ;;  %v3697_v59 = vld [vmem:[#allocation2 + $0x20] ss:$2 sm:$0xf] }
 0x4a0   : > { %v3699_v56 = vld [vmem:[#allocation2 + $0x21] ss:$2 sm:$0xf]  ;;  %v3710_v32 = vmax.f32 %v3706_v5, %v3708_v46  ;;  %3767 = vst.msk [vmem:[#allocation2 + $0x30] sm:$0xff] %vm742_vm0, %v6172_v1  ;;  %v7594_v46 = vsel %vm1097_vm6, 1.0, %v6172_v1  ;;  %vm3750_vm6 = vcmask 392448  }
 0x4a1   : > { %v3701_v0 = vmax.f32 %v3697_v59, %v3699_v56  ;;  %4067 = vst.msk [vmem:[#allocation2 + $0x30] sm:$0xff] %vm742_vm0, %v6172_v1 }
 0x4a2   : > { %v3711_v60 = vmax.f32 %v3709_v7, %v3710_v32  ;;  %v7600_v32 = vsel %vm1103_vm7, 1.0, %v6172_v1  ;;  %vm3763_vm7 = vcmask 654848  }
 0x4a3   : > { %v3702_v34 = vmax.f32 %v3700_v37, %v3701_v0  ;;  %v6089_v0 = vld [vmem:[%s8460_s4] sm:$0xff]  }
 0x4a4   : > { %v3731_v19 = vrot.slane %v3711_v60, 4  ;;  %v6185_v60 = vmov 0  }
 0x4a5   : > { %3926 = vmatprep.subr.bf16.mxu1 %v6185_v60 }
 0x4a6   : > { %v3736_v36 = vsel %vm3537_vm9, %v3702_v34, %v3731_v19  ;;  %3927 = vmatpush1.bf16.msra.mxu1 %v6089_v0  ;;  %v6090_v34 = vld [vmem:[%s8460_s4 + $0x8] sm:$0xff]   ;;  %v6091_v19 = vld [vmem:[%s8460_s4 + $0x10] sm:$0xff]  }
 0x4a7   : > { %v3740_v22 = vmul.f32 %v7561_v35, %v3736_v36  ;;  %3738 = vst.msk [vmem:[#allocation2 + $0x18] sm:$0xff] %vm3622_vm5, %v3736_v36  ;;  %v3753_v47 = vmul.f32 %v7567_v40, %v3736_v36  ;;  %3928 = vmatprep.subr.bf16.mxu1 %v6185_v60  ;;  %v6092_v36 = vld [vmem:[%s8460_s4 + $0x18] sm:$0xff]  }
 0x4a9   : > { %3744 = vrot.lane.b32.xlu0 %v3740_v22, %s8421_s7 }
 0x4aa   : > { %3929 = vmatpush1.bf16.msra.mxu1 %v6090_v34 }
 0x4ab   : > { %3930 = vmatprep.subr.bf16.mxu1 %v6185_v60 }
 0x4ad   : > { %3757 = vrot.lane.b32.xlu0 %v3753_v47, %s8425_s30 }
 0x4ae   : > { %3931 = vmatpush1.bf16.msra.mxu1 %v6091_v19 }
 0x4af   : > { %3932 = vmatprep.subr.bf16.mxu1 %v6185_v60 }
 0x4b2   : > { %3933 = vmatpush1.bf16.msra.mxu1 %v6092_v36 }
 0x4b3   : > { %3934 = vmatprep.subr.bf16.mxu1 %v6185_v60 }
 0x4ea   : > { %v5996_v21 = vpop.f32.mrb[4].mxu1 }
 0x4eb   : > { %v3600_v49 = vadd.f32 %v5996_v21, %v5778_v4  ;;  %v3591_v48 = vpop.f32.mrb[5].mxu1 }
 0x4ec   : > { %v3592_v43 = vadd.f32 %v5778_v4, %v3591_v48  ;;  %v5997_v25 = vpop.f32.mrb[6].mxu1  ;;  %v6093_v48 = vld [vmem:[%s8460_s4 + $0x20] sm:$0xff]  }
 0x4ed   : > { %v7572_v54 = vmax.f32 %v3600_v49, 0.0  ;;  %v3603_v55 = vadd.f32 %v5997_v25, %v5778_v4  ;;  %v3594_v62 = vpop.f32.mrb[7].mxu1  ;;  %3935 = vmatpush1.bf16.msra.mxu1 %v6093_v48  ;;  %v6095_v25 = vld [vmem:[%s8460_s4 + $0x30] sm:$0xff]  }
 0x4ee   : > { %v7574_v61 = vmax.f32 %v3592_v43, 0.0  ;;  %v3595_v42 = vadd.f32 %v5778_v4, %v3594_v62  ;;  %3936 = vmatprep.subr.bf16.mxu1 %v6185_v60  ;;  %v6094_v43 = vld [vmem:[%s8460_s4 + $0x28] sm:$0xff]  }
 0x4ef   : > { %3692 = vst.msk [vmem:[#allocation2 + $0x48] sm:$0xff] %vm3622_vm5, %v7572_v54  ;;  %v7578_v45 = vmax.f32 %v3603_v55, 0.0 }
 0x4f0   : > { %3690 = vst.msk [vmem:[#allocation2 + $0x38] sm:$0xff] %vm3622_vm5, %v7574_v61  ;;  %v7582_v26 = vmax.f32 %v3595_v42, 0.0 }
 0x4f1   : > { %3693 = vst.msk [vmem:[#allocation2 + $0x50] sm:$0xff] %vm3622_vm5, %v7578_v45  ;;  %3937 = vmatpush1.bf16.msra.mxu1 %v6094_v43 }
 0x4f2   : > { %3691 = vst.msk [vmem:[#allocation2 + $0x40] sm:$0xff] %vm3622_vm5, %v7582_v26  ;;  %3938 = vmatprep.subr.bf16.mxu1 %v6185_v60 }
 0x4f5   : > { %3939 = vmatpush1.bf16.msra.mxu1 %v6095_v25 }
 0x4f6   : > { %v3721_v9 = vld [vmem:[#allocation2 + $0x48] ss:$2 sm:$0xf]  ;;  %v3722_v4 = vld [vmem:[#allocation2 + $0x49] ss:$2 sm:$0xf]  ;;  %3940 = vmatprep.subr.bf16.mxu1 %v6185_v60 }
 0x4f7   : > { %v3712_v39 = vld [vmem:[#allocation2 + $0x38] ss:$2 sm:$0xf]  ;;  %v3713_v12 = vld [vmem:[#allocation2 + $0x39] ss:$2 sm:$0xf]  ;;  %v3727_v24 = vmax.f32 %v3721_v9, %v3722_v4 }
 0x4f8   : > { %v3724_v50 = vld [vmem:[#allocation2 + $0x50] ss:$2 sm:$0xf]  ;;  %v3726_v14 = vld [vmem:[#allocation2 + $0x51] ss:$2 sm:$0xf]  ;;  %v3718_v16 = vmax.f32 %v3712_v39, %v3713_v12 }
 0x4f9   : > { %3768 = vst.msk [vmem:[#allocation2 + $0x38] sm:$0xff] %vm742_vm0, %v6172_v1  ;;  %v3715_v15 = vld [vmem:[#allocation2 + $0x40] ss:$2 sm:$0xf]  ;;  %v3728_v52 = vmax.f32 %v3724_v50, %v3726_v14 }
 0x4fa   : > { %v3717_v30 = vld [vmem:[#allocation2 + $0x41] ss:$2 sm:$0xf]  ;;  %4068 = vst.msk [vmem:[#allocation2 + $0x38] sm:$0xff] %vm742_vm0, %v6172_v1 }
 0x4fb   : > { %v3719_v18 = vmax.f32 %v3715_v15, %v3717_v30  ;;  %v3729_v3 = vmax.f32 %v3727_v24, %v3728_v52  ;;  %v6096_v24 = vld [vmem:[%s8460_s4 + $0x38] sm:$0xff]  }
 0x4fc   : > { %3941 = vmatpush1.bf16.msra.mxu1 %v6096_v24 }
 0x4fd   : > { %v3720_v5 = vmax.f32 %v3718_v16, %v3719_v18  ;;  %v3734_v59 = vrot.slane %v3729_v3, 4  ;;  %3942 = vmatprep.subr.bf16.mxu1 %v6185_v60 }
 0x4ff   : > { %v3737_v56 = vsel %vm3537_vm9, %v3720_v5, %v3734_v59  ;;  %v6097_v5 = vld [vmem:[%s8460_s4 + $0x40] sm:$0xff]   ;;  %s8476_s4 = smov 8  }
 0x500   : > { %v3741_v7 = vmul.f32 %v7594_v46, %v3737_v56  ;;  %3739 = vst.msk [vmem:[#allocation2 + $0x20] sm:$0xff] %vm3622_vm5, %v3737_v56  ;;  %v3754_v37 = vmul.f32 %v7600_v32, %v3737_v56  ;;  %3943 = vmatpush1.bf16.msra.mxu1 %v6097_v5 }
 0x501   : > { %5998 = vmatprep.subr.bf16.mxu1 %v6172_v1 }
 0x502   : > { %3746 = vrot.lane.b32.xlu1 %v3741_v7, %s8421_s7 }
 0x506   : > { %3759 = vrot.lane.b32.xlu1 %v3754_v37, %s8425_s30 }
 0x51b   : > { %v3745_v22 = vpop.permute.xlu0 %3744 }
 0x51c   : > { %3751 = vst.msk [vmem:[#allocation2 + $0x18] sm:$0xff] %vm3750_vm6, %v3745_v22 }
 0x51f   : > { %v3758_v47 = vpop.permute.xlu0 %3757 }
 0x520   : > { %3764 = vst.msk [vmem:[#allocation2 + $0x18] sm:$0xff] %vm3763_vm7, %v3758_v47 }
 0x527   : > { %v3777_v55 = vld [vmem:[#allocation2 + $0x14] sm:$0xff] }
 0x528   : > { %v3769_v4 = vld [vmem:[#allocation2 + $0x13] sm:$0xff] }
 0x529   : > { %v3799_v52 = vld [vmem:[#allocation2 + $0x18] sm:$0xff] }
 0x52a   : > { %v3790_v16 = vld [vmem:[#allocation2 + $0x17] sm:$0xff] }
 0x52b   : > { %v3786_v36 = vld [vmem:[#allocation2 + $0x15] sm:$0xff] }
 0x574   : > { %v3747_v21 = vpop.permute.xlu1 %3746 }
 0x575   : > { %3752 = vst.msk [vmem:[#allocation2 + $0x20] sm:$0xff] %vm3750_vm6, %v3747_v21 }
 0x578   : > { %v3760_v49 = vpop.permute.xlu1 %3759 }
 0x579   : > { %3765 = vst.msk [vmem:[#allocation2 + $0x20] sm:$0xff] %vm3763_vm7, %v3760_v49 }
 0x580   : > { %v3778_v62 = vld [vmem:[#allocation2 + $0x1c] sm:$0xff]  ;;  %v3835_v15 = vld [vmem:[#allocation2 + $0x25] sm:$0xff] }
 0x581   : > { %v3779_v42 = vpack.c.bf16 %v3778_v62, %v3777_v55  ;;  %v3791_v8 = vld [vmem:[#allocation2 + $0x1f] sm:$0xff] }
 0x582   : > { %v3816_v9 = vld [vmem:[#allocation2 + $0x1b] sm:$0xff]  ;;  %v3817_v12 = vld [vmem:[#allocation2 + $0x23] sm:$0xff]  ;;  %v3792_v3 = vpack.c.bf16 %v3791_v8, %v3790_v16 }
 0x583   : > { %v3808_v39 = vld [vmem:[#allocation2 + $0x21] sm:$0xff]  ;;  %v3771_v50 = vpack.c.bf16 %v3816_v9, %v3769_v4  ;;  %3781 = vrot.lane.b32.xlu1 %v3779_v42, %s8461_s8  ;;  %v3807_v59 = vld [vmem:[#allocation2 + $0x19] sm:$0xff]  ;;  %v3818_v56 = vpack.c.bf16 %v3817_v12, %v3816_v9 }
 0x584   : > { %v3800_v14 = vld [vmem:[#allocation2 + $0x20] sm:$0xff]  ;;  %v3809_v7 = vpack.c.bf16 %v3808_v39, %v3807_v59  ;;  %v6099_v9 = vld [vmem:[%s8462_s27 + $0x8] sm:$0xff]  }
 0x585   : > { %v3826_v30 = vld [vmem:[#allocation2 + $0x24] sm:$0xff]  ;;  %3773 = vrot.lane.b32.xlu0 %v3771_v50, %s8425_s30  ;;  %v3801_v18 = vpack.c.bf16 %v3800_v14, %v3799_v52  ;;  %v5789_v4 = vld [vmem:[%s8463_s1] ss:$0 sm:$0xff]  ;;  %s8469_s1 = smov 32  }
 0x586   : > { %4066 = vst.msk [vmem:[#allocation2 + $0x28] sm:$0xff] %vm742_vm0, %v6172_v1  ;;  %v3787_v37 = vld [vmem:[#allocation2 + $0x1d] sm:$0xff]  ;;  %v3827_v0 = vpack.c.bf16 %v3826_v30, %v3778_v62 }
 0x587   : > { %3803 = vrot.lane.b32.xlu1 %v3801_v18, %s8425_s30  ;;  %v3836_v34 = vpack.c.bf16 %v3835_v15, %v3787_v37  ;;  %v3788_v47 = vpack.c.bf16 %v3787_v37, %v3786_v36  ;;  %v6098_v8 = vld [vmem:[%s8462_s27] sm:$0xff]  }
 0x588   : > { %v5800_v18 = vld [vmem:[%s8464_s9] ss:$0 sm:$0xff]  ;;  %s8498_s9 = sadd.s32 4294967295, %s6170_s5  }
 0x589   : > { %3794 = vrot.lane.b32.xlu0 %v3792_v3, %s8418_s29  ;;  %s735_s6 = smul.u32 11, %s8498_s9 }
 0x58b   : > { %3820 = vrot.lane.b32.xlu1 %v3818_v56, %s8421_s7  ;;  %p736_p4 = scmp.lt.s32.totalorder %s735_s6, 21 }
 0x58d   : > { %3811 = vrot.lane.b32.xlu0 %v3809_v7, %s8413_s26  ;;  %s8502_s6 = smov (!%p736_p4, %s735_s6), 21 }
 0x58f   : > { %3829 = vrot.lane.b32.xlu1 %v3827_v0, %s8418_s29  ;;  %s8470_s29 = smov 56  }
 0x591   : > { %3838 = vrot.lane.b32.xlu0 %v3836_v34, %s8415_s3  ;;  %s8467_s3 = smov 88  }
 0x5f5   : > { %v3782_v19 = vpop.permute.xlu1 %3781 }
 0x5f7   : > { %v3774_v22 = vpop.permute.xlu0 %3773 }
 0x5f8   : > { %3776 = vst.msk [vmem:[#allocation3] sm:$0xff] %vm3622_vm5, %v3774_v22 }
 0x5f9   : > { %3785 = vst.msk [vmem:[#allocation3] sm:$0xff] %vm8429_vm8, %v3782_v19  ;;  %v3804_v21 = vpop.permute.xlu1 %3803  ;;  %vm8473_vm8 = vcmask 523712  }
 0x5fa   : > { %3789 = vst.msk [vmem:[#allocation3] sm:$0xff] %vm3750_vm6, %v3788_v47 }
 0x5fb   : > { %v3795_v49 = vpop.permute.xlu0 %3794 }
 0x5fc   : > { %3798 = vst.msk [vmem:[#allocation3] sm:$0xff] %vm8428_vm4, %v3795_v49  ;;  %v6101_v49 = vld [vmem:[%s8465_s10 + $0x8] sm:$0xff]   ;;  %vm8472_vm4 = vcmask 458112  }
 0x5fd   : > { %3806 = vst.msk [vmem:[#allocation3] sm:$0xff] %vm3763_vm7, %v3804_v21  ;;  %v3821_v48 = vpop.permute.xlu1 %3820  ;;  %v6100_v21 = vld [vmem:[%s8465_s10] sm:$0xff]  }
 0x5fe   : > { %6007 = vmatpush3.bf16.msra.mxu0 %v6100_v21 }
 0x5ff   : > { %v3812_v43 = vpop.permute.xlu0 %3811  ;;  %6008 = vmatprep.subr.bf16.mxu0 %v6172_v1 }
 0x600   : > { %3815 = vst.msk [vmem:[#allocation3] sm:$0xff] %vm8427_vm3, %v3812_v43  ;;  %v6103_v43 = vld [vmem:[%s8465_s10 + $0x18] sm:$0xff]   ;;  %vm8471_vm3 = vcmask 392512  }
 0x601   : > { %3824 = vst.msk [vmem:[#allocation3] sm:$0xff] %vm8420_vm2, %v3821_v48  ;;  %v3830_v25 = vpop.permute.xlu1 %3829  ;;  %vm3993_vm2 = vcmask 261120   ;;  %v6102_v48 = vld [vmem:[%s8465_s10 + $0x10] sm:$0xff]  }
 0x602   : > { %3833 = vst.msk [vmem:[#allocation3] sm:$0xff] %vm8417_vm15, %v3830_v25  ;;  %vm6188_vm15 = vmmov 0   ;;  %6009 = vmatpush3.bf16.msra.mxu0 %v6101_v49 }
 0x603   : > { %v3839_v55 = vpop.permute.xlu0 %3838  ;;  %6016 = vmatprep.mubr.msk.bf16.mxu0 %vm6188_vm15, %v6172_v1  ;;  %6010 = vmatprep.subr.bf16.mxu0 %v6172_v1 }
 0x604   : > { %3841 = vst.msk [vmem:[#allocation3 + $0x8] sm:$0xff] %vm3622_vm5, %v3839_v55 }
 0x606   : > { %6011 = vmatpush3.bf16.msra.mxu0 %v6102_v48 }
 0x607   : > { %6012 = vmatprep.subr.bf16.mxu0 %v6172_v1 }
 0x609   : > { %v3842_v62 = vld [vmem:[#allocation3] sm:$0xff] }
 0x60a   : > { %6013 = vmatpush3.bf16.msra.mxu0 %v6103_v43 }
 0x60b   : > { %v3843_v42 = vld [vmem:[#allocation3 + $0x8] sm:$0xff]  ;;  %6014 = vmatprep.subr.bf16.mxu0 %v6172_v1 }
 0x60c   : > { %5799 = vmatprep.mubr.msk.bf16.mxu1 %vm3622_vm5, %v3843_v42 }
 0x60d   : > { %3959 = vmatmul.mubr.bf16.vlgmr.msra.gmra.mrb[8].mxu1 %v3842_v62 }
 0x60e   : > { %5999 = vmatpush3.bf16.msra.mxu1 %v6098_v8  ;;  %6002 = vmatprep.mubr.msk.bf16.mxu1 %vm6188_vm15, %v6172_v1 }
 0x60f   : > { %6000 = vmatprep.subr.bf16.mxu1 %v6172_v1 }
 0x612   : > { %6001 = vmatpush3.bf16.msra.mxu1 %v6099_v9 }
 0x613   : > { %6020 = vmatprep.subr.bf16.mxu1 %v6172_v1 }
 0x6e0   : > { %v3960_v39 = vpop.f32.mrb[8].mxu1 }
 0x6e1   : > { %v3961_v12 = vadd.f32 %v5789_v4, %v3960_v39  ;;  %v3962_v50 = vpop.f32.mrb[9].mxu1 }
 0x6e2   : > { %v3963_v14 = vpop.f32.mrb[10].mxu1 }
 0x6e3   : > { %v3964_v15 = vadd.f32 %v5789_v4, %v3963_v14  ;;  %v3965_v30 = vpop.f32.mrb[11].mxu1  ;;  %v7681_v24 = vmax.f32 %v3961_v12, 0.0 }
 0x6e5   : > { %v7683_v52 = vmax.f32 %v3964_v15, 0.0 }
 0x6e7   : > { %v3969_v16 = vpack.c.bf16 %v7683_v52, %v7681_v24 }
 0x6e9   : > { %6003 = vmatmul.mubr.msk.bf16.vlgmr.msra.gmra.mrb[12].mxu1 %vm3993_vm2, %v3969_v16  ;;  %v6104_v16 = vld [vmem:[%s8465_s10 + $0x20] ss:$0 sps:$4 sm:$0xff]  }
 0x6ea   : > { %6022 = vmatprep.mubr.msk.bf16.mxu1 %vm6188_vm15, %v6172_v1 }
 0x7bc   : > { %v4031_v3 = vpop.f32.mrb[12].mxu1 }
 0x7bd   : > { %v4032_v5 = vadd.f32 %v5800_v18, %v4031_v3  ;;  %v6004_v59 = vpop.f32.mrb[13].mxu1 }
 0x7be   : > { %v4034_v56 = vpop.f32.mrb[14].mxu1 }
 0x7bf   : > { %v4038_v7 = vmax.f32 %v4032_v5, 0.0  ;;  %v4035_v37 = vadd.f32 %v5800_v18, %v4034_v56  ;;  %v6005_v0 = vpop.f32.mrb[15].mxu1  ;;  %v4189_v56 = vsel %vm3537_vm9, %v6104_v16, 0 }
 0x7c0   : > { %6015 = vmatpush3.bf16.msra.mxu0 %v4189_v56 }
 0x7c1   : > { %4040 = vst.msk [vmem:[#allocation2 + $0x18] sm:$0xff] %vm2953_vm1, %v4038_v7  ;;  %v4042_v34 = vmul.f32 %v7561_v35, %v4038_v7  ;;  %v4039_v19 = vmax.f32 %v4035_v37, 0.0  ;;  %v4054_v22 = vmul.f32 %v7567_v40, %v4038_v7  ;;  %4965 = vmatprep.subr.bf16.mxu0 %v6185_v60 }
 0x7c3   : > { %4041 = vst.msk [vmem:[#allocation2 + $0x20] sm:$0xff] %vm2953_vm1, %v4039_v19  ;;  %v4043_v36 = vmul.f32 %v7594_v46, %v4039_v19  ;;  %4046 = vrot.lane.b32.xlu0 %v4042_v34, %s8421_s7  ;;  %v4055_v47 = vmul.f32 %v7600_v32, %v4039_v19 }
 0x7c5   : > { %4048 = vrot.lane.b32.xlu1 %v4043_v36, %s8421_s7  ;;  %s8466_s7 = smov 64  }
 0x7c7   : > { %4058 = vrot.lane.b32.xlu0 %v4054_v22, %s8425_s30 }
 0x7c9   : > { %4060 = vrot.lane.b32.xlu1 %v4055_v47, %s8425_s30  ;;  %s8479_s30 = smov 96  }
 0x835   : > { %v4047_v25 = vpop.permute.xlu0 %4046 }
 0x836   : > { %4052 = vst.msk [vmem:[#allocation2 + $0x18] sm:$0xff] %vm3122_vm12, %v4047_v25 }
 0x837   : > { %v4049_v55 = vpop.permute.xlu1 %4048 }
 0x838   : > { %4053 = vst.msk [vmem:[#allocation2 + $0x20] sm:$0xff] %vm3122_vm12, %v4049_v55 }
 0x839   : > { %v4059_v62 = vpop.permute.xlu0 %4058 }
 0x83a   : > { %4064 = vst.msk [vmem:[#allocation2 + $0x18] sm:$0xff] %vm3171_vm13, %v4059_v62 }
 0x83b   : > { %v4061_v42 = vpop.permute.xlu1 %4060 }
 0x83c   : > { %4065 = vst.msk [vmem:[#allocation2 + $0x20] sm:$0xff] %vm3171_vm13, %v4061_v42 }
 0x841   : > { %v4077_v8 = vld [vmem:[#allocation2 + $0x14] sm:$0xff] }
 0x842   : > { %v4069_v4 = vld [vmem:[#allocation2 + $0x13] sm:$0xff] }
 0x843   : > { %v4078_v9 = vld [vmem:[#allocation2 + $0x1c] sm:$0xff]  ;;  %v4134_v30 = vld [vmem:[#allocation2 + $0x25] sm:$0xff] }
 0x844   : > { %v4070_v39 = vld [vmem:[#allocation2 + $0x1b] sm:$0xff]  ;;  %v4079_v12 = vpack.c.bf16 %v4078_v9, %v4077_v8  ;;  %4320 = vst.msk [vmem:[#allocation2 + $0x2c] sm:$0xff] %vm742_vm0, %v6172_v1  ;;  %v4126_v22 = vld [vmem:[#allocation2 + $0x24] sm:$0xff] }
 0x845   : > { %v4071_v50 = vpack.c.bf16 %v4070_v39, %v4069_v4  ;;  %v4094_v14 = vld [vmem:[#allocation2 + $0x1f] sm:$0xff]  ;;  %v4093_v18 = vld [vmem:[#allocation2 + $0x17] sm:$0xff]  ;;  %v4127_v21 = vpack.c.bf16 %v4126_v22, %v4078_v9 }
 0x846   : > { %v4086_v15 = vld [vmem:[#allocation2 + $0x1d] sm:$0xff]  ;;  %4081 = vrot.lane.b32.xlu1 %v4079_v12, %s8430_s2  ;;  %v4085_v3 = vld [vmem:[#allocation2 + $0x15] sm:$0xff]  ;;  %v4095_v5 = vpack.c.bf16 %v4094_v14, %v4093_v18 }
 0x847   : > { %4073 = vrot.lane.b32.xlu0 %v4071_v50, %s8466_s7  ;;  %v4087_v59 = vpack.c.bf16 %v4086_v15, %v4085_v3  ;;  %v4109_v7 = vld [vmem:[#allocation2 + $0x19] sm:$0xff]  ;;  %v4110_v37 = vld [vmem:[#allocation2 + $0x21] sm:$0xff]  ;;  %v4135_v48 = vpack.c.bf16 %v4134_v30, %v4086_v15 }
 0x848   : > { %v4102_v0 = vld [vmem:[#allocation2 + $0x20] sm:$0xff]  ;;  %v4101_v34 = vld [vmem:[#allocation2 + $0x18] sm:$0xff]  ;;  %v4111_v19 = vpack.c.bf16 %v4110_v37, %v4109_v7 }
 0x849   : > { %v4103_v36 = vpack.c.bf16 %v4102_v0, %v4101_v34  ;;  %v4118_v47 = vld [vmem:[#allocation2 + $0x23] sm:$0xff]  ;;  %v5804_v14 = vld [vmem:[%s8385_s11] ss:$0 sm:$0xff] }
 0x84a   : > { %4097 = vrot.lane.b32.xlu1 %v4095_v5, %s8467_s3  ;;  %v4119_v49 = vpack.c.bf16 %v4118_v47, %v4070_v39  ;;  %v6105_v50 = vld [vmem:[%s8386_s12] sm:$0xff]  }
 0x84b   : > { %4089 = vrot.lane.b32.xlu0 %v4087_v59, %s8468_s25  ;;  %6021 = vmatpush3.bf16.msra.mxu1 %v6105_v50  ;;  %v5811_v22 = vld [vmem:[%s8387_s13] ss:$0 sm:$0xff] }
 0x84c   : > { %6026 = vmatprep.subr.bf16.mxu1 %v6172_v1 }
 0x84e   : > { %4113 = vrot.lane.b32.xlu1 %v4111_v19, %s8430_s2 }
 0x84f   : > { %4105 = vrot.lane.b32.xlu0 %v4103_v36, %s8469_s1  ;;  %v1108_v36 = vand.u32 1, %v6403_v2 }
 0x852   : > { %4129 = vrot.lane.b32.xlu1 %v4127_v21, %s8470_s29 }
 0x853   : > { %4121 = vrot.lane.b32.xlu0 %v4119_v49, %s8468_s25 }
 0x857   : > { %4137 = vrot.lane.b32.xlu0 %v4135_v48, %s8469_s1 }
 0x8b8   : > { %v4082_v43 = vpop.permute.xlu1 %4081 }
 0x8b9   : > { %v4074_v25 = vpop.permute.xlu0 %4073 }
 0x8ba   : > { %4076 = vst.msk [vmem:[#allocation3] sm:$0xff] %vm2953_vm1, %v4074_v25  ;;  %vm8474_vm1 = vcmask 588800  }
 0x8bb   : > { %4084 = vst.msk [vmem:[#allocation3] sm:$0xff] %vm3243_vm10, %v4082_v43  ;;  %vm4302_vm10 = vcmask 60416  }
 0x8bc   : > { %v4098_v55 = vpop.permute.xlu1 %4097 }
 0x8bd   : > { %v4090_v62 = vpop.permute.xlu0 %4089 }
 0x8be   : > { %4092 = vst.msk [vmem:[#allocation3] sm:$0xff] %vm3276_vm11, %v4090_v62  ;;  %vm4309_vm11 = vcmask 322816  }
 0x8bf   : > { %4100 = vst.msk [vmem:[#allocation3] sm:$0xff] %vm3309_vm14, %v4098_v55  ;;  %vm4316_vm14 = vcmask 585216  }
 0x8c0   : > { %v4114_v42 = vpop.permute.xlu1 %4113 }
 0x8c1   : > { %v4106_v8 = vpop.permute.xlu0 %4105 }
 0x8c2   : > { %4108 = vst.msk [vmem:[#allocation3] sm:$0xff] %vm3122_vm12, %v4106_v8  ;;  %vm1109_vm12 = vcmp.ne.s32.totalorder %v1108_v36, 0 }
 0x8c3   : > { %4116 = vst.msk [vmem:[#allocation3] sm:$0xff] %vm8471_vm3, %v4114_v42  ;;  %v7775_v55 = vsel %vm1109_vm12, 1.0, %v6172_v1  ;;  %vm4327_vm3 = vcmask 58368   ;;  %vm4359_vm12 = vcmask 320768  }
 0x8c4   : > { %v4130_v9 = vpop.permute.xlu1 %4129 }
 0x8c5   : > { %v4122_v4 = vpop.permute.xlu0 %4121 }
 0x8c6   : > { %4124 = vst.msk [vmem:[#allocation3] sm:$0xff] %vm8472_vm4, %v4122_v4  ;;  %v6106_v4 = vld [vmem:[%s8388_s14] sm:$0xff]   ;;  %vm4335_vm4 = vcmask 123968  }
 0x8c7   : > { %4132 = vst.msk [vmem:[#allocation3] sm:$0xff] %vm8473_vm8, %v4130_v9  ;;  %vm8475_vm8 = vcmask 1041408  }
 0x8c9   : > { %v4138_v39 = vpop.permute.xlu0 %4137 }
 0x8ca   : > { %4140 = vst.msk [vmem:[#allocation3] sm:$0xff] %vm3171_vm13, %v4138_v39  ;;  %vm1112_vm13 = vcmp.ne.s32.totalorder %v1108_v36, 1  ;;  %v6107_v39 = vld [vmem:[%s8388_s14 + $0x8] sm:$0xff]  }
 0x8cb   : > { %v7778_v62 = vsel %vm1112_vm13, 1.0, %v6172_v1  ;;  %vm4367_vm13 = vcmask 386368  }
 0x8d1   : > { %v4141_v12 = vld [vmem:[#allocation3] sm:$0xff] }
 0x8d2   : > { %6017 = vmatmul.mubr.msk.bf16.vlgmr.msra.gmra.mrb[32].mxu0 %vm8474_vm1, %v4141_v12  ;;  %vm4343_vm1 = vcmask 189568  }
 0x9a5   : > { %v4225_v15 = vpop.f32.mrb[32].mxu0 }
 0x9a6   : > { %v4226_v30 = vadd.f32 %v5804_v14, %v4225_v15  ;;  %v6018_v16 = vpop.f32.mrb[33].mxu0 }
 0x9a7   : > { %v4228_v18 = vpop.f32.mrb[34].mxu0 }
 0x9a8   : > { %v4232_v3 = vmax.f32 %v4226_v30, 0.0  ;;  %v4229_v5 = vadd.f32 %v5804_v14, %v4228_v18  ;;  %v6019_v59 = vpop.f32.mrb[35].mxu0  ;;  %v6108_v18 = vld [vmem:[%s8388_s14 + $0x10] sm:$0xff]  }
 0x9aa   : > { %4234 = vst.msk [vmem:[#allocation2 + $0x18] sm:$0xff] %vm3622_vm5, %v4232_v3  ;;  %v4233_v56 = vmax.f32 %v4229_v5, 0.0 }
 0x9ac   : > { %4235 = vst.msk [vmem:[#allocation2 + $0x20] sm:$0xff] %vm3622_vm5, %v4233_v56 }
 0x9ad   : > { %4319 = vst.msk [vmem:[#allocation2 + $0x24] sm:$0xff] %vm742_vm0, %v6172_v1 }
 0x9b1   : > { %v4236_v0 = vld [vmem:[#allocation2 + $0x18] ss:$2 sm:$0x3] }
 0x9b3   : > { %v4237_v7 = vld [vmem:[#allocation2 + $0x20] ss:$2 sm:$0x3] }
 0x9b4   : > { %v4239_v37 = vrot.slane %v4237_v7, 6  ;;  %4318 = vst.msk [vmem:[#allocation2 + $0x1c] sm:$0xff] %vm742_vm0, %v6172_v1  ;;  %v6109_v7 = vld [vmem:[%s8388_s14 + $0x18] sm:$0xff]  }
 0x9b6   : > { %v7763_v34 = vsel %vm8475_vm8, %v4236_v0, %v4239_v37  ;;  %v6110_v37 = vld [vmem:[%s8388_s14 + $0x20] ss:$0 sps:$4 sm:$0xff]   ;;  %vm4351_vm8 = vcmask 255168  }
 0x9b7   : > { %v4242_v19 = vpack.c.bf16 %v7763_v34, %v7763_v34 }
 0x9b9   : > { %6023 = vmatmul.mubr.msk.bf16.vlgmr.msra.gmra.mrb[16].mxu1 %vm3622_vm5, %v4242_v19 }
 0x9ba   : > { %6036 = vmatprep.mubr.msk.bf16.mxu1 %vm6188_vm15, %v6172_v1  ;;  %6027 = vmatpush3.bf16.msra.mxu1 %v6106_v4  ;;  %v3615_v4 = vmul.f32 %v7545_v38, %v7545_v38 }
 0x9bb   : > { %6028 = vmatprep.subr.bf16.mxu1 %v6172_v1 }
 0x9be   : > { %6029 = vmatpush3.bf16.msra.mxu1 %v6107_v39 }
 0x9bf   : > { %6030 = vmatprep.subr.bf16.mxu1 %v6172_v1 }
 0x9c2   : > { %6031 = vmatpush3.bf16.msra.mxu1 %v6108_v18  ;;  %v3620_v18 = vmul.f32 %v7572_v54, %v7572_v54 }
 0x9c3   : > { %6032 = vmatprep.subr.bf16.mxu1 %v6172_v1 }
 0x9c6   : > { %6033 = vmatpush3.bf16.msra.mxu1 %v6109_v7 }
 0x9c7   : > { %6034 = vmatprep.subr.bf16.mxu1 %v6172_v1 }
 0xa8c   : > { %v4295_v47 = vpop.f32.mrb[16].mxu1 }
 0xa8d   : > { %v4296_v21 = vadd.f32 %v5811_v22, %v4295_v47  ;;  %v6024_v49 = vpop.f32.mrb[17].mxu1  ;;  %v4441_v47 = vsel %vm3537_vm9, %v6110_v37, 0 }
 0xa8e   : > { %v4298_v48 = vpop.f32.mrb[18].mxu1  ;;  %6035 = vmatpush3.bf16.msra.mxu1 %v4441_v47 }
 0xa8f   : > { %v4301_v43 = vmax.f32 %v4296_v21, 0.0  ;;  %v6025_v25 = vpop.f32.mrb[19].mxu1 }
 0xa90   : > { %v3614_v25 = vmul.f32 %v7539_v27, %v7539_v27 }
 0xa91   : > { %4303 = vst.msk [vmem:[#allocation2 + $0x18] sm:$0xf] %vm4302_vm10, %v4301_v43  ;;  %v4304_v2 = vmul.f32 %v7775_v55, %v4301_v43  ;;  %v4311_v42 = vmul.f32 %v7778_v62, %v4301_v43  ;;  %vm4375_vm10 = vcmask 451968  }
 0xa93   : > { %4313 = vrot.lane.b32.xlu0 %v4311_v42, %s8466_s7  ;;  %4306 = vrot.lane.b32.xlu1 %v4304_v2, %s8469_s1  ;;  %v3623_v2 = vsel %vm3622_vm5, %v3614_v25, 0.0  ;;  %v3616_v42 = vmul.f32 %v7537_v13, %v7537_v13 }
 0xb05   : > { %v4314_v8 = vpop.permute.xlu0 %4313  ;;  %v4307_v9 = vpop.permute.xlu1 %4306 }
 0xb06   : > { %4310 = vst.msk [vmem:[#allocation2 + $0x18] sm:$0xf] %vm4309_vm11, %v4307_v9  ;;  %v3617_v9 = vmul.f32 %v7541_v17, %v7541_v17  ;;  %vm4383_vm11 = vcmask 517568  }
 0xb07   : > { %4317 = vst.msk [vmem:[#allocation2 + $0x18] sm:$0xf] %vm4316_vm14, %v4314_v8  ;;  %v3629_v8 = vsel %vm3622_vm5, %v3616_v42, 0.0  ;;  %vm4391_vm14 = vcmask 583168  }
 0xb08   : > { %v3632_v39 = vsel %vm3622_vm5, %v3617_v9, 0.0 }
 0xb0e   : > { %v4329_v12 = vld [vmem:[#allocation2 + $0x16] sm:$0xf]  ;;  %v4377_v36 = vld [vmem:[#allocation2 + $0x1a] sm:$0xf] }
 0xb0f   : > { %v4321_v50 = vld [vmem:[#allocation2 + $0x15] sm:$0xf]  ;;  %v4330_v14 = vpack.c.bf16 %v4329_v12, %v4329_v12  ;;  %v4361_v59 = vld [vmem:[#allocation2 + $0x19] sm:$0xf]  ;;  %v4378_v21 = vpack.c.bf16 %v4377_v36, %v4377_v36  ;;  %v3619_v12 = vmul.f32 %v7582_v26, %v7582_v26 }
 0xb10   : > { %v4322_v15 = vpack.c.bf16 %v4321_v50, %v4321_v50  ;;  %v4345_v30 = vld [vmem:[#allocation2 + $0x17] sm:$0xf]  ;;  %v4362_v0 = vpack.c.bf16 %v4361_v59, %v4361_v59  ;;  %v4385_v48 = vld [vmem:[#allocation2 + $0x1b] sm:$0xf]  ;;  %v3626_v50 = vsel %vm3622_vm5, %v3615_v4, 0.0 }
 0xb11   : > { %v4337_v16 = vld [vmem:[#allocation2 + $0x17] sm:$0xf]  ;;  %4332 = vrot.lane.b32.xlu0 %v4330_v14, %s8476_s4  ;;  %v4346_v3 = vpack.c.bf16 %v4345_v30, %v4345_v30  ;;  %v4386_v43 = vpack.c.bf16 %v4385_v48, %v4385_v48  ;;  %v3618_v14 = vmul.f32 %v7574_v61, %v7574_v61  ;;  %v3621_v30 = vmul.f32 %v7578_v45, %v7578_v45 }
 0xb12   : > { %4324 = vrot.lane.b32.xlu1 %v4322_v15, %s8466_s7  ;;  %v4338_v5 = vpack.c.bf16 %v4337_v16, %v4337_v16  ;;  %v4353_v56 = vld [vmem:[#allocation2 + $0x18] sm:$0xf]  ;;  %v3638_v15 = vsel %vm3622_vm5, %v3619_v12, 0.0 }
 0xb13   : > { %v4354_v19 = vpack.c.bf16 %v4353_v56, %v4353_v56  ;;  %v4369_v22 = vld [vmem:[#allocation2 + $0x19] sm:$0xf]  ;;  %v3635_v16 = vsel %vm3622_vm5, %v3618_v14, 0.0 }
 0xb14   : > { %v4370_v49 = vpack.c.bf16 %v4369_v22, %v4369_v22 }
 0xb15   : > { %4348 = vrot.lane.b32.xlu0 %v4346_v3, %s8467_s3  ;;  %v3644_v3 = vsel %vm3622_vm5, %v3621_v30, 0.0 }
 0xb16   : > { %4340 = vrot.lane.b32.xlu1 %v4338_v5, %s8468_s25  ;;  %v3641_v5 = vsel %vm3622_vm5, %v3620_v18, 0.0 }
 0xb19   : > { %4364 = vrot.lane.b32.xlu0 %v4362_v0, %s8476_s4  ;;  %s8478_s4 = sld [smem:[#allocation9_spill]] }
 0xb1a   : > { %4356 = vrot.lane.b32.xlu1 %v4354_v19, %s8469_s1 }
 0xb1d   : > { %4380 = vrot.lane.b32.xlu0 %v4378_v21, %s8470_s29 }
 0xb1e   : > { %4372 = vrot.lane.b32.xlu1 %v4370_v49, %s8468_s25 }
 0xb1f   : > { %v5788_v14 = vld [vmem:[%s8478_s4] ss:$0 sm:$0xff]  ;;  %s5703_s4 = sshll.u32 %s8502_s6, 3 }
 0xb22   : > { %4388 = vrot.lane.b32.xlu1 %v4386_v43, %s8469_s1 }
 0xb3c   : > { %3624 = vadd.xlane.f32.xlu0 %v3623_v2 }
 0xb40   : > { %3630 = vadd.xlane.f32.xlu0 %v3629_v8 }
 0xb44   : > { %3633 = vadd.xlane.f32.xlu0 %v3632_v39 }
 0xb46   : > { %3627 = vadd.xlane.f32.xlu1 %v3626_v50 }
 0xb48   : > { %3639 = vadd.xlane.f32.xlu0 %v3638_v15 }
 0xb4a   : > { %3636 = vadd.xlane.f32.xlu1 %v3635_v16 }
 0xb4c   : > { %3645 = vadd.xlane.f32.xlu0 %v3644_v3 }
 0xb4e   : > { %3642 = vadd.xlane.f32.xlu1 %v3641_v5 }
 0xb83   : > { %v4333_v59 = vpop.permute.xlu0 %4332 }
 0xb84   : > { %v4325_v56 = vpop.permute.xlu1 %4324 }
 0xb85   : > { %4328 = vst.msk [vmem:[#allocation3] sm:$0x3] %vm4327_vm3, %v4325_v56  ;;  %vm8477_vm3 = vcmask 588800  }
 0xb86   : > { %4336 = vst.msk [vmem:[#allocation3] sm:$0x3] %vm4335_vm4, %v4333_v59  ;;  %vm4484_vm4 = vcmask 125952  }
 0xb87   : > { %v4349_v7 = vpop.permute.xlu0 %4348 }
 0xb88   : > { %v4341_v37 = vpop.permute.xlu1 %4340 }
 0xb89   : > { %4344 = vst.msk [vmem:[#allocation3] sm:$0x3] %vm4343_vm1, %v4341_v37  ;;  %vm5050_vm1 = vcmask 523520  }
 0xb8a   : > { %4352 = vst.msk [vmem:[#allocation3] sm:$0x3] %vm4351_vm8, %v4349_v7  ;;  %vm5063_vm8 = vcmask 785920  }
 0xb8b   : > { %v4365_v0 = vpop.permute.xlu0 %4364 }
 0xb8c   : > { %v4357_v19 = vpop.permute.xlu1 %4356 }
 0xb8d   : > { %4360 = vst.msk [vmem:[#allocation3] sm:$0x3] %vm4359_vm12, %v4357_v19  ;;  %vm5377_vm12 = vcmask 388352  }
 0xb8e   : > { %4368 = vst.msk [vmem:[#allocation3] sm:$0x3] %vm4367_vm13, %v4365_v0  ;;  %vm5384_vm13 = vcmask 650752  }
 0xb8f   : > { %v4381_v36 = vpop.permute.xlu0 %4380 }
 0xb90   : > { %v4373_v22 = vpop.permute.xlu1 %4372 }
 0xb91   : > { %4376 = vst.msk [vmem:[#allocation3] sm:$0x3] %vm4375_vm10, %v4373_v22  ;;  %vm8482_vm10 = vcmask 523648  }
 0xb92   : > { %4384 = vst.msk [vmem:[#allocation3] sm:$0x3] %vm4383_vm11, %v4381_v36  ;;  %vm8483_vm11 = vcmask 786048  }
 0xb94   : > { %v4389_v47 = vpop.permute.xlu1 %4388 }
 0xb95   : > { %4392 = vst.msk [vmem:[#allocation3] sm:$0x3] %vm4391_vm14, %v4389_v47  ;;  %vm8484_vm14 = vcmask 917248  }
 0xb9c   : > { %v4393_v21 = vld [vmem:[#allocation3] sm:$0x3] }
 0xb9d   : > { %6037 = vmatmul.mubr.msk.bf16.vlgmr.msra.gmra.mrb[20].mxu1 %vm8477_vm3, %v4393_v21  ;;  %vm8485_vm3 = vcmask 1048448  }
 0xbc9   : > { %v3625_v49 = vpop.xlane.xlu0 %3624 }
 0xbca   : > { %v3647_v48 = vadd.f32 1e-10, %v3625_v49 }
 0xbcc   : > { %6148 = vrsqrt.f32 %v3647_v48 }
 0xbcd   : > { %v3631_v43 = vpop.xlane.xlu0 %3630 }
 0xbce   : > { %v3649_v25 = vadd.f32 1e-10, %v3631_v43 }
 0xbd0   : > { %6150 = vrsqrt.f32 %v3649_v25 }
 0xbd1   : > { %v3634_v2 = vpop.xlane.xlu0 %3633 }
 0xbd2   : > { %v3650_v42 = vadd.f32 1e-10, %v3634_v2 }
 0xbd3   : > { %v3628_v8 = vpop.xlane.xlu1 %3627 }
 0xbd4   : > { %v3648_v9 = vadd.f32 1e-10, %v3628_v8  ;;  %6152 = vrsqrt.f32 %v3650_v42 }
 0xbd5   : > { %v3640_v4 = vpop.xlane.xlu0 %3639 }
 0xbd6   : > { %6154 = vrsqrt.f32 %v3648_v9  ;;  %v6149_v39 = vpop.eup %6148  ;;  %v3652_v12 = vadd.f32 1e-10, %v3640_v4 }
 0xbd7   : > { %v3637_v50 = vpop.xlane.xlu1 %3636  ;;  %v3663_v15 = vmul.f32 %v6149_v39, %v7539_v27 }
 0xbd8   : > { %v3651_v30 = vadd.f32 1e-10, %v3637_v50  ;;  %6156 = vrsqrt.f32 %v3652_v12 }
 0xbd9   : > { %v3646_v16 = vpop.xlane.xlu0 %3645  ;;  %v7842_v18 = vmul.f32 %v5788_v14, %v3663_v15 }
 0xbda   : > { %6158 = vrsqrt.f32 %v3651_v30  ;;  %v6151_v3 = vpop.eup %6150  ;;  %v3654_v5 = vadd.f32 1e-10, %v3646_v16 }
 0xbdb   : > { %v3643_v59 = vpop.xlane.xlu1 %3642  ;;  %v3665_v56 = vmul.f32 %v6151_v3, %v7537_v13  ;;  %v4543_v37 = vmul.f32 %v7263_v11, %v7842_v18  ;;  %v4495_v0 = vmul.f32 %v7260_v28, %v7842_v18 }
 0xbdc   : > { %v3653_v7 = vadd.f32 1e-10, %v3643_v59  ;;  %6160 = vrsqrt.f32 %v3654_v5 }
 0xbdd   : > { %4559 = vrot.lane.b32.xlu0 %v4543_v37, %s8466_s7  ;;  %4511 = vrot.lane.b32.xlu1 %v4495_v0, %s8469_s1  ;;  %v3680_v27 = vmul.f32 %v5788_v14, %v3665_v56 }
 0xbde   : > { %6162 = vrsqrt.f32 %v3653_v7  ;;  %v6153_v19 = vpop.eup %6152 }
 0xbdf   : > { %v3666_v22 = vmul.f32 %v6153_v19, %v7541_v17  ;;  %v4497_v13 = vmul.f32 %v7311_v44, %v3680_v27  ;;  %4489 = vst.msk [vmem:[#allocation2 + $0x28] sm:$0xff] %vm3622_vm5, %v3680_v27  ;;  %v4545_v43 = vmul.f32 %v7308_v6, %v3680_v27 }
 0xbe0   : > { %v6155_v36 = vpop.eup %6154 }
 0xbe1   : > { %v3664_v11 = vmul.f32 %v6155_v36, %v7545_v38  ;;  %4515 = vrot.lane.b32.xlu0 %v4497_v13, %s8469_s1  ;;  %v3681_v28 = vmul.f32 %v5788_v14, %v3666_v22  ;;  %v5814_v13 = vld [vmem:[%s8389_s15] ss:$0 sm:$0xff] }
 0xbe2   : > { %v6157_v47 = vpop.eup %6156 }
 0xbe3   : > { %v3679_v21 = vmul.f32 %v5788_v14, %v3664_v11  ;;  %v3668_v48 = vmul.f32 %v6157_v47, %v7582_v26  ;;  %4490 = vst.msk [vmem:[#allocation2 + $0x30] sm:$0xff] %vm3622_vm5, %v3681_v28 }
 0xbe4   : > { %v6159_v49 = vpop.eup %6158 }
 0xbe5   : > { %v3667_v17 = vmul.f32 %v6159_v49, %v7574_v61  ;;  %v4496_v44 = vmul.f32 %v7283_v58, %v3679_v21  ;;  %4488 = vst.msk [vmem:[#allocation2 + $0x20] sm:$0xff] %vm3622_vm5, %v3679_v21  ;;  %4563 = vrot.lane.b32.xlu0 %v4545_v43, %s8466_s7  ;;  %v3683_v38 = vmul.f32 %v5788_v14, %v3668_v48 }
 0xbe6   : > { %v6161_v25 = vpop.eup %6160  ;;  %v4544_v61 = vmul.f32 %v7280_v23, %v3679_v21  ;;  %v4546_v23 = vmul.f32 %v7328_v63, %v3681_v28 }
 0xbe7   : > { %4513 = vrot.lane.b32.xlu1 %v4496_v44, %s8469_s1  ;;  %v3682_v2 = vmul.f32 %v5788_v14, %v3667_v17  ;;  %v3670_v26 = vmul.f32 %v6161_v25, %v7578_v45  ;;  %4492 = vst.msk [vmem:[#allocation2 + $0x40] sm:$0xff] %vm3622_vm5, %v3683_v38  ;;  %v4498_v45 = vmul.f32 %v7331_v53, %v3681_v28 }
 0xbe8   : > { %v6163_v42 = vpop.eup %6162  ;;  %v5053_v53 = vmul.f32 %v7567_v40, %v7681_v24  ;;  %v5054_v40 = vmul.f32 %v7600_v32, %v7683_v52 }
 0xbe9   : > { %v3669_v6 = vmul.f32 %v6163_v42, %v7572_v54  ;;  %v4499_v58 = vmul.f32 %v7353_v51, %v3682_v2  ;;  %4491 = vst.msk [vmem:[#allocation2 + $0x38] sm:$0xff] %vm3622_vm5, %v3682_v2  ;;  %v3685_v8 = vmul.f32 %v5788_v14, %v3670_v26  ;;  %v4547_v4 = vmul.f32 %v7350_v29, %v3682_v2 }
 0xbea   : > { %v5040_v51 = vmul.f32 %v7561_v35, %v7681_v24  ;;  %v4500_v54 = vmul.f32 %v7372_v57, %v3683_v38  ;;  %v4548_v29 = vmul.f32 %v7377_v20, %v3683_v38  ;;  %v5041_v35 = vmul.f32 %v7594_v46, %v7683_v52 }
 0xbeb   : > { %4561 = vrot.lane.b32.xlu1 %v4544_v61, %s8466_s7  ;;  %4519 = vrot.lane.b32.xlu0 %v4499_v58, %s8469_s1  ;;  %v3684_v9 = vmul.f32 %v5788_v14, %v3669_v6  ;;  %4494 = vst.msk [vmem:[#allocation2 + $0x50] sm:$0xff] %vm3622_vm5, %v3685_v8  ;;  %v5372_v20 = vmul.f32 %v7775_v55, %v7763_v34 }
 0xbec   : > { %v5379_v46 = vmul.f32 %v7778_v62, %v7763_v34 }
 0xbed   : > { %4493 = vst.msk [vmem:[#allocation2 + $0x48] sm:$0xff] %vm3622_vm5, %v3684_v9  ;;  %v4501_v63 = vmul.f32 %v7394_v10, %v3684_v9  ;;  %v4549_v57 = vmul.f32 %v7399_v41, %v3684_v9  ;;  %v4502_v10 = vmul.f32 %v7419_v31, %v3685_v8  ;;  %v4550_v41 = vmul.f32 %v7416_v33, %v3685_v8 }
 0xbef   : > { %4517 = vrot.lane.b32.xlu1 %v4498_v45, %s8469_s1  ;;  %4567 = vrot.lane.b32.xlu0 %v4547_v4, %s8466_s7  ;;  %v6111_v4 = vld [vmem:[%s8390_s16] sm:$0xff]  }
 0xbf0   : > { %4966 = vmatpush1.bf16.msra.mxu0 %v6111_v4 }
 0xbf1   : > { %4967 = vmatprep.subr.bf16.mxu0 %v6185_v60 }
 0xbf3   : > { %4565 = vrot.lane.b32.xlu1 %v4546_v23, %s8466_s7  ;;  %5044 = vrot.lane.b32.xlu0 %v5040_v51, %s8469_s1 }
 0xbf7   : > { %4521 = vrot.lane.b32.xlu1 %v4500_v54, %s8469_s1  ;;  %5057 = vrot.lane.b32.xlu0 %v5053_v53, %s8466_s7  ;;  %v6112_v53 = vld [vmem:[%s8390_s16 + $0x8] sm:$0xff]  }
 0xbf8   : > { %4968 = vmatpush1.bf16.msra.mxu0 %v6112_v53  ;;  %v6122_v53 = vld [vmem:[%s8390_s16 + $0x38] sm:$0xff]  }
 0xbf9   : > { %4969 = vmatprep.subr.bf16.mxu0 %v6185_v60 }
 0xbfb   : > { %4569 = vrot.lane.b32.xlu1 %v4548_v29, %s8466_s7  ;;  %4523 = vrot.lane.b32.xlu0 %v4501_v63, %s8469_s1 }
 0xbff   : > { %5046 = vrot.lane.b32.xlu1 %v5041_v35, %s8469_s1  ;;  %4571 = vrot.lane.b32.xlu0 %v4549_v57, %s8466_s7 }
 0xc03   : > { %5059 = vrot.lane.b32.xlu1 %v5054_v40, %s8466_s7  ;;  %5374 = vrot.lane.b32.xlu0 %v5372_v20, %s8469_s1 }
 0xc07   : > { %4525 = vrot.lane.b32.xlu1 %v4502_v10, %s8469_s1 }
 0xc0b   : > { %4573 = vrot.lane.b32.xlu1 %v4550_v41, %s8466_s7  ;;  %v6114_v41 = vld [vmem:[%s8390_s16 + $0x18] sm:$0xff]  }
 0xc0f   : > { %5381 = vrot.lane.b32.xlu1 %v5379_v46, %s8466_s7 }
 0xc4f   : > { %v7910_v32 = vpop.permute.xlu0 %4559  ;;  %v7912_v39 = vpop.permute.xlu1 %4511 }
 0xc53   : > { %v4516_v55 = vpop.permute.xlu0 %4515 }
 0xc54   : > { %4537 = vst.msk [vmem:[#allocation2 + $0x28] sm:$0xff] %vm3750_vm6, %v4516_v55 }
 0xc57   : > { %v4564_v12 = vpop.permute.xlu0 %4563 }
 0xc58   : > { %4585 = vst.msk [vmem:[#allocation2 + $0x28] sm:$0xff] %vm3763_vm7, %v4564_v12 }
 0xc59   : > { %v4514_v31 = vpop.permute.xlu1 %4513 }
 0xc5a   : > { %4536 = vst.msk [vmem:[#allocation2 + $0x20] sm:$0xff] %vm3750_vm6, %v4514_v31 }
 0xc5d   : > { %v4520_v33 = vpop.permute.xlu0 %4519  ;;  %v4562_v50 = vpop.permute.xlu1 %4561 }
 0xc5e   : > { %4539 = vst.msk [vmem:[#allocation2 + $0x38] sm:$0xff] %vm3750_vm6, %v4520_v33 }
 0xc5f   : > { %4584 = vst.msk [vmem:[#allocation2 + $0x20] sm:$0xff] %vm3763_vm7, %v4562_v50  ;;  %v4803_v3 = vld [vmem:[#allocation2 + $0x28] sm:$0xff] }
 0xc61   : > { %v4568_v62 = vpop.permute.xlu0 %4567  ;;  %v4518_v14 = vpop.permute.xlu1 %4517 }
 0xc62   : > { %4587 = vst.msk [vmem:[#allocation2 + $0x38] sm:$0xff] %vm3763_vm7, %v4568_v62 }
 0xc63   : > { %4538 = vst.msk [vmem:[#allocation2 + $0x30] sm:$0xff] %vm3750_vm6, %v4518_v14 }
 0xc65   : > { %v7921_v15 = vpop.permute.xlu0 %5044  ;;  %v4566_v30 = vpop.permute.xlu1 %4565 }
 0xc66   : > { %v7923_v16 = vld [vmem:[#allocation2 + $0x20] sm:$0xff]  ;;  %4586 = vst.msk [vmem:[#allocation2 + $0x30] sm:$0xff] %vm3763_vm7, %v4566_v30 }
 0xc67   : > { %v4810_v5 = vpack.c.bf16 %v4803_v3, %v7923_v16  ;;  %v7931_v7 = vld [vmem:[#allocation2 + $0x21] sm:$0xff] }
 0xc68   : > { %v7934_v37 = vld [vmem:[#allocation2 + $0x27] sm:$0xff] }
 0xc69   : > { %4818 = vrot.lane.b32.xlu1 %v4810_v5, %s8468_s25  ;;  %v7928_v59 = vpop.permute.xlu0 %5057  ;;  %v4522_v56 = vpop.permute.xlu1 %4521  ;;  %v4805_v6 = vld [vmem:[#allocation2 + $0x38] sm:$0xff] }
 0xc6a   : > { %4540 = vst.msk [vmem:[#allocation2 + $0x40] sm:$0xff] %vm3750_vm6, %v4522_v56 }
 0xc6d   : > { %4644 = vrot.lane.b32.xlu1 %v4810_v5, %s8461_s8  ;;  %v4661_v0 = vld [vmem:[#allocation2 + $0x29] sm:$0xff]  ;;  %v4524_v27 = vpop.permute.xlu0 %4523  ;;  %v4570_v19 = vpop.permute.xlu1 %4569  ;;  %v4773_v47 = vld [vmem:[#allocation2 + $0x37] sm:$0xff] }
 0xc6e   : > { %v4709_v36 = vld [vmem:[#allocation2 + $0x30] sm:$0xff]  ;;  %4541 = vst.msk [vmem:[#allocation2 + $0x48] sm:$0xff] %vm3750_vm6, %v4524_v27  ;;  %v7942_v11 = vpack.c.bf16 %v4661_v0, %v7931_v7 }
 0xc6f   : > { %v4772_v22 = vld [vmem:[#allocation2 + $0x2f] sm:$0xff]  ;;  %4588 = vst.msk [vmem:[#allocation2 + $0x40] sm:$0xff] %vm3763_vm7, %v4570_v19  ;;  %v4715_v28 = vpack.c.bf16 %v4709_v36, %v4803_v3  ;;  %v4811_v9 = vpack.c.bf16 %v4805_v6, %v4709_v36  ;;  %v6117_v36 = vld [vmem:[%s8392_s18 + $0x40] sm:$0xff]  }
 0xc70   : > { %5066 = vst.msk [vmem:[#allocation2 + $0x28] sm:$0xff] %vm742_vm0, %v6172_v1  ;;  %v4741_v21 = vld [vmem:[#allocation2 + $0x31] sm:$0xff]  ;;  %v4477_v49 = vpop.f32.mrb[20].mxu1  ;;  %4850 = vrot.lane.b32.xlu0 %v7942_v11, %s8479_s30  ;;  %v4779_v25 = vpack.c.bf16 %v4773_v47, %v4772_v22  ;;  %v4683_v2 = vpack.c.bf16 %v4772_v22, %v7934_v37  ;;  %5915 = vmatprep.subr.bf16.mxu1 %v6117_v36 }
 0xc71   : > { %5067 = vst.msk [vmem:[#allocation2 + $0x30] sm:$0xff] %vm742_vm0, %v6172_v1  ;;  %4724 = vrot.lane.b32.xlu1 %v4715_v28, %s8466_s7  ;;  %v4478_v48 = vadd.f32 %v5814_v13, %v4477_v49  ;;  %v6038_v43 = vpop.f32.mrb[21].mxu1  ;;  %v4572_v17 = vpop.permute.xlu0 %4571  ;;  %v4747_v45 = vpack.c.bf16 %v4741_v21, %v4661_v0  ;;  %v4594_v27 = vld [vmem:[#allocation2 + $0xf] sm:$0xff]  ;;  %v6118_v28 = vld [vmem:[%s8392_s18] sm:$0xff]  }
 0xc72   : > { %4589 = vst.msk [vmem:[#allocation2 + $0x48] sm:$0xff] %vm3763_vm7, %v4572_v17  ;;  %v5047_v44 = vpop.permute.xlu1 %5046  ;;  %v4480_v38 = vpop.f32.mrb[22].mxu1  ;;  %5916 = vmatpush3.bf16.msra.mxu1 %v6118_v28 }
 0xc73   : > { %v4483_v42 = vmax.f32 %v4478_v48, 0.0  ;;  %v6039_v26 = vpop.f32.mrb[23].mxu1 }
 0xc74   : > { %4692 = vrot.lane.b32.xlu0 %v4683_v2, %s8468_s25 }
 0xc75   : > { %4788 = vrot.lane.b32.xlu1 %v4779_v25, %s8469_s1  ;;  %4485 = vst.msk [vmem:[#allocation2 + $0x18] sm:$0xf] %vm4484_vm4, %v4483_v42  ;;  %v5375_v4 = vpop.permute.xlu0 %5374 }
 0xc76   : > { %v4837_v61 = vld [vmem:[#allocation2 + $0x39] sm:$0xff]  ;;  %v5060_v8 = vpop.permute.xlu1 %5059 }
 0xc77   : > { %v4679_v58 = vld [vmem:[#allocation2 + $0x3f] sm:$0xff]  ;;  %v7963_v51 = vpack.c.bf16 %v4837_v61, %v4741_v21 }
 0xc78   : > { %5068 = vst.msk [vmem:[#allocation2 + $0x38] sm:$0xff] %vm742_vm0, %v6172_v1  ;;  %4756 = vrot.lane.b32.xlu0 %v4747_v45, %s8480_s0  ;;  %v4684_v63 = vpack.c.bf16 %v4679_v58, %v4773_v47  ;;  %v4711_v57 = vld [vmem:[#allocation2 + $0x40] sm:$0xff]  ;;  %v6119_v47 = vld [vmem:[%s8390_s16 + $0x30] sm:$0xff]   ;;  %v6121_v45 = vld [vmem:[%s8392_s18 + $0x8] sm:$0xff]  }
 0xc79   : > { %4820 = vrot.lane.b32.xlu1 %v4811_v9, %s8468_s25  ;;  %v4743_v35 = vld [vmem:[#allocation2 + $0x41] sm:$0xff]  ;;  %v4716_v20 = vpack.c.bf16 %v4711_v57, %v4805_v6 }
 0xc7a   : > { %v4526_v23 = vpop.permute.xlu1 %4525  ;;  %v4748_v40 = vpack.c.bf16 %v4743_v35, %v4837_v61  ;;  %v4775_v10 = vld [vmem:[#allocation2 + $0x47] sm:$0xff] }
 0xc7b   : > { %4542 = vst.msk [vmem:[#allocation2 + $0x50] sm:$0xff] %vm3750_vm6, %v4526_v23  ;;  %v4780_v55 = vpack.c.bf16 %v4775_v10, %v4679_v58  ;;  %v4807_v31 = vld [vmem:[#allocation2 + $0x48] sm:$0xff] }
 0xc7c   : > { %v7967_v54 = vld [vmem:[#allocation2 + $0x18] sm:$0x1]  ;;  %4852 = vrot.lane.b32.xlu0 %v7963_v51, %s8479_s30  ;;  %v4812_v14 = vpack.c.bf16 %v4807_v31, %v4711_v57  ;;  %v6125_v57 = vld [vmem:[%s8390_s16 + $0x40] sm:$0xff]  }
 0xc7d   : > { %4646 = vrot.lane.b32.xlu1 %v4811_v9, %s8461_s8  ;;  %4487 = vst.msk [vmem:[#allocation2 + $0x18] sm:$0xff] %vm3622_vm5, %v7842_v18  ;;  %v6113_v18 = vld [vmem:[%s8390_s16 + $0x10] sm:$0xff]   ;;  %v6120_v9 = vld [vmem:[%s8392_s18 + $0x48] sm:$0xff]  }
 0xc7e   : > { %4535 = vst.msk [vmem:[#allocation2 + $0x18] sm:$0xff] %vm3750_vm6, %v7912_v39  ;;  %v4574_v29 = vpop.permute.xlu1 %4573  ;;  %4970 = vmatpush1.bf16.msra.mxu0 %v6113_v18  ;;  %5917 = vmatprep.subr.bf16.mxu1 %v6120_v9 }
 0xc7f   : > { %4583 = vst.msk [vmem:[#allocation2 + $0x18] sm:$0xff] %vm3763_vm7, %v7910_v32  ;;  %4590 = vst.msk [vmem:[#allocation2 + $0x50] sm:$0xff] %vm3763_vm7, %v4574_v29  ;;  %4971 = vmatprep.subr.bf16.mxu0 %v6185_v60  ;;  %5918 = vmatpush3.bf16.msra.mxu1 %v6121_v45 }
 0xc80   : > { %4614 = vrot.lane.b32.xlu0 %v4779_v25, %s8466_s7 }
 0xc81   : > { %4694 = vrot.lane.b32.xlu1 %v4684_v63, %s8468_s25 }
 0xc82   : > { %4972 = vmatpush1.bf16.msra.mxu0 %v6114_v41  ;;  %v5382_v63 = vpop.permute.xlu1 %5381  ;;  %v4841_v41 = vld [vmem:[#allocation2 + $0x59] sm:$0xff] }
 0xc83   : > { %4973 = vmatprep.subr.bf16.mxu0 %v6185_v60 }
 0xc84   : > { %4758 = vrot.lane.b32.xlu0 %v4748_v40, %s8480_s0 }
 0xc85   : > { %4726 = vrot.lane.b32.xlu1 %v4716_v20, %s8466_s7 }
 0xc86   : > { %v7994_v46 = vld [vmem:[#allocation2 + $0x1f] sm:$0xff]  ;;  %v7998_v39 = vld [vmem:[#allocation2 + $0x49] sm:$0xff]  ;;  %v8009_v50 = vld [vmem:[#allocation2 + $0x17] sm:$0xff] }
 0xc87   : > { %v7996_v32 = vld [vmem:[#allocation2 + $0x19] sm:$0xff]  ;;  %v8003_v12 = vpack.c.bf16 %v7998_v39, %v4743_v35  ;;  %v8014_v62 = vld [vmem:[#allocation2 + $0x11] sm:$0xff]  ;;  %v4602_v61 = vpack.c.bf16 %v8009_v50, %v4594_v27  ;;  %v4682_v35 = vpack.c.bf16 %v7994_v46, %v8009_v50  ;;  %v4778_v18 = vpack.c.bf16 %v7934_v37, %v7994_v46  ;;  %v6131_v50 = vld [vmem:[%s8392_s18 + $0x68] sm:$0xff]  }
 0xc88   : > { %5039 = vst.msk [vmem:[#allocation2 + $0x20] sm:$0xff] %vm3993_vm2, %v7683_v52  ;;  %v8005_v33 = vld [vmem:[#allocation2 + $0x18] sm:$0xff]  ;;  %4790 = vrot.lane.b32.xlu0 %v4780_v55, %s8469_s1  ;;  %v6115_v52 = vld [vmem:[%s8390_s16 + $0x20] sm:$0xff]   ;;  %v4666_v30 = vpack.c.bf16 %v7996_v32, %v8014_v62  ;;  %v8027_v3 = vld [vmem:[#allocation2 + $0x4f] sm:$0xff]  ;;  %v4746_v20 = vpack.c.bf16 %v7931_v7, %v7996_v32 }
 0xc89   : > { %5052 = vst.msk [vmem:[#allocation2 + $0x20] sm:$0xff] %vm5050_vm1, %v5047_v44  ;;  %4854 = vrot.lane.b32.xlu1 %v8003_v12, %s8479_s30  ;;  %4974 = vmatpush1.bf16.msra.mxu0 %v6115_v52  ;;  %v4685_v5 = vpack.c.bf16 %v8027_v3, %v4775_v10  ;;  %v8037_v56 = vld [vmem:[#allocation2 + $0x50] sm:$0xff]  ;;  %v4714_v23 = vpack.c.bf16 %v7923_v16, %v8005_v33  ;;  %v6127_v7 = vld [vmem:[%s8392_s18 + $0x18] sm:$0xff]  }
 0xc8a   : > { %5065 = vst.msk [vmem:[#allocation2 + $0x20] sm:$0xff] %vm5063_vm8, %v5060_v8  ;;  %4975 = vmatprep.subr.bf16.mxu0 %v6185_v60  ;;  %v4717_v13 = vpack.c.bf16 %v8037_v56, %v4807_v31  ;;  %v6124_v16 = vld [vmem:[%s8392_s18 + $0x10] sm:$0xff]  }
 0xc8b   : > { %5038 = vst.msk [vmem:[#allocation2 + $0x18] sm:$0xff] %vm3993_vm2, %v7681_v24  ;;  %v6116_v24 = vld [vmem:[%s8390_s16 + $0x28] sm:$0xff]   ;;  %v4745_v40 = vld [vmem:[#allocation2 + $0x51] sm:$0xff] }
 0xc8c   : > { %5051 = vst.msk [vmem:[#allocation2 + $0x18] sm:$0xff] %vm5050_vm1, %v7921_v15  ;;  %4822 = vrot.lane.b32.xlu0 %v4812_v14, %s8468_s25  ;;  %v4626_v15 = vld [vmem:[#allocation2 + $0x10] sm:$0xff]  ;;  %v4749_v10 = vpack.c.bf16 %v4745_v40, %v7998_v39  ;;  %v4845_v46 = vpack.c.bf16 %v4841_v41, %v4745_v40  ;;  %v6128_v39 = vld [vmem:[%s8392_s18 + $0x60] sm:$0xff]  }
 0xc8d   : > { %5064 = vst.msk [vmem:[#allocation2 + $0x18] sm:$0xff] %vm5063_vm8, %v7928_v59  ;;  %4616 = vrot.lane.b32.xlu1 %v4780_v55, %s8466_s7  ;;  %4976 = vmatpush1.bf16.msra.mxu0 %v6116_v24  ;;  %v4634_v21 = vpack.c.bf16 %v8005_v33, %v4626_v15  ;;  %v4777_v37 = vld [vmem:[#allocation2 + $0x57] sm:$0xff]  ;;  %v6129_v33 = vld [vmem:[%s8392_s18 + $0x20] sm:$0xff]  }
 0xc8e   : > { %4977 = vmatprep.subr.bf16.mxu0 %v6185_v60  ;;  %v6126_v55 = vld [vmem:[%s8392_s18 + $0x58] sm:$0xff]   ;;  %v4781_v31 = vpack.c.bf16 %v4777_v37, %v8027_v3  ;;  %v6134_v24 = vld [vmem:[%s8392_s18 + $0x70] sm:$0xff]  }
 0xc8f   : > { %v4809_v15 = vld [vmem:[#allocation2 + $0x58] sm:$0xff]  ;;  %v6135_v27 = vld [vmem:[%s8392_s18 + $0x30] sm:$0xff]  }
 0xc90   : > { %4648 = vrot.lane.b32.xlu0 %v4812_v14, %s8461_s8  ;;  %v6132_v14 = vld [vmem:[%s8392_s18 + $0x28] sm:$0xff]   ;;  %v4813_v28 = vpack.c.bf16 %v4809_v15, %v8037_v56 }
 0xc91   : > { %v8041_v0 = vld [vmem:[#allocation2 + $0x20] sm:$0xff]  ;;  %4696 = vrot.lane.b32.xlu1 %v4685_v5, %s8468_s25  ;;  %4978 = vmatpush1.bf16.msra.mxu0 %v6119_v47 }
 0xc92   : > { %v8043_v59 = vld [vmem:[#allocation2 + $0x23] sm:$0xff]  ;;  %4979 = vmatprep.subr.bf16.mxu0 %v6185_v60 }
 0xc93   : > { %v8046_v19 = vld [vmem:[#allocation2 + $0x25] sm:$0xff] }
 0xc94   : > { %v8051_v22 = vld [vmem:[#allocation2 + $0x21] sm:$0xff]  ;;  %5388 = vst.msk [vmem:[#allocation2 + $0x2c] sm:$0xff] %vm742_vm0, %v6172_v1  ;;  %v8065_v48 = vld [vmem:[#allocation2 + $0x13] sm:$0xff]  ;;  %4728 = vrot.lane.b32.xlu0 %v4717_v13, %s8466_s7 }
 0xc95   : > { %v8063_v49 = vld [vmem:[#allocation2 + $0x24] sm:$0xff]  ;;  %v8067_v43 = vld [vmem:[#allocation2 + $0x1b] sm:$0xff]  ;;  %4642 = vrot.lane.b32.xlu1 %v4634_v21, %s8461_s8  ;;  %4980 = vmatpush1.bf16.msra.mxu0 %v6122_v53 }
 0xc96   : > { %v8070_v17 = vld [vmem:[#allocation2 + $0x1c] sm:$0xff]  ;;  %v8076_v25 = vld [vmem:[#allocation2 + $0x14] sm:$0xff]  ;;  %v5112_v2 = vpack.c.bf16 %v8043_v59, %v8067_v43  ;;  %4981 = vmatprep.subr.bf16.mxu0 %v6185_v60  ;;  %v5071_v3 = vpack.c.bf16 %v8067_v43, %v8065_v48 }
 0xc97   : > { %v8072_v44 = vld [vmem:[#allocation2 + $0x17] sm:$0xff]  ;;  %v8074_v38 = vld [vmem:[#allocation2 + $0x1f] sm:$0xff]  ;;  %v5116_v52 = vpack.c.bf16 %v8063_v49, %v8070_v17  ;;  %v5079_v36 = vpack.c.bf16 %v8070_v17, %v8076_v25 }
 0xc98   : > { %v8081_v42 = vld [vmem:[#allocation2 + $0x15] sm:$0xff]  ;;  %v8083_v26 = vld [vmem:[#allocation2 + $0x1d] sm:$0xff]  ;;  %4610 = vrot.lane.b32.xlu0 %v4602_v61, %s8466_s7  ;;  %v5095_v5 = vpack.c.bf16 %v8074_v38, %v8072_v44 }
 0xc99   : > { %v8085_v6 = vld [vmem:[#allocation2 + $0x18] sm:$0xff]  ;;  %5387 = vst.msk [vmem:[#allocation2 + $0x24] sm:$0xff] %vm742_vm0, %v6172_v1  ;;  %4722 = vrot.lane.b32.xlu1 %v4714_v23, %s8466_s7  ;;  %4982 = vmatpush1.bf16.msra.mxu0 %v6125_v57  ;;  %v5087_v49 = vpack.c.bf16 %v8083_v26, %v8081_v42  ;;  %v5124_v56 = vpack.c.bf16 %v8046_v19, %v8083_v26 }
 0xc9a   : > { %v8088_v58 = vld [vmem:[#allocation2 + $0x19] sm:$0xff]  ;;  %v5104_v8 = vpack.c.bf16 %v8041_v0, %v8085_v6  ;;  %5540 = vmatprep.subr.bf16.mxu0 %v6185_v60 }
 0xc9b   : > { %5371 = vst.msk [vmem:[#allocation2 + $0x18] sm:$0xf] %vm4484_vm4, %v7763_v34  ;;  %v5108_v29 = vpack.c.bf16 %v8051_v22, %v8088_v58  ;;  %v6123_v34 = vld [vmem:[%s8392_s18 + $0x50] sm:$0xff]   ;;  %v6137_v13 = vld [vmem:[%s8392_s18 + $0x78] sm:$0xff]  }
 0xc9c   : > { %5386 = vst.msk [vmem:[#allocation2 + $0x1c] sm:$0xff] %vm742_vm0, %v6172_v1  ;;  %5919 = vmatprep.subr.bf16.mxu1 %v6123_v34  ;;  %4690 = vrot.lane.b32.xlu0 %v4682_v35, %s8468_s25  ;;  %v6138_v21 = vld [vmem:[%s8392_s18 + $0x38] sm:$0xff]   ;;  %vm8481_vm0 = vcmask 261248  }
 0xc9d   : > { %5378 = vst.msk [vmem:[#allocation2 + $0x18] sm:$0xf] %vm5377_vm12, %v5375_v4  ;;  %4786 = vrot.lane.b32.xlu1 %v4778_v18, %s8469_s1  ;;  %5920 = vmatpush3.bf16.msra.mxu1 %v6124_v16  ;;  %vm8486_vm4 = vmmov %vm8481_vm0 }
 0xc9e   : > { %5385 = vst.msk [vmem:[#allocation2 + $0x18] sm:$0xf] %vm5384_vm13, %v5382_v63  ;;  %5921 = vmatprep.subr.bf16.mxu1 %v6126_v55  ;;  %vm8487_vm12 = vmmov %vm8482_vm10 }
 0xc9f   : > { %vm8488_vm13 = vmmov %vm8481_vm0 }
 0xca0   : > { %4754 = vrot.lane.b32.xlu0 %v4746_v20, %s8480_s0 }
 0xca1   : > { %4760 = vrot.lane.b32.xlu1 %v4749_v10, %s8480_s0  ;;  %5922 = vmatpush3.bf16.msra.mxu1 %v6127_v7 }
 0xca2   : > { %5923 = vmatprep.subr.bf16.mxu1 %v6128_v39 }
 0xca4   : > { %4856 = vrot.lane.b32.xlu0 %v4845_v46, %s8479_s30 }
 0xca5   : > { %4792 = vrot.lane.b32.xlu1 %v4781_v31, %s8469_s1  ;;  %5924 = vmatpush3.bf16.msra.mxu1 %v6129_v33  ;;  %v5397_v47 = vld [vmem:[#allocation2 + $0x16] sm:$0xf]  ;;  %v5441_v45 = vld [vmem:[#allocation2 + $0x1a] sm:$0xf] }
 0xca6   : > { %5925 = vmatprep.subr.bf16.mxu1 %v6131_v50  ;;  %v5398_v48 = vpack.c.bf16 %v5397_v47, %v5397_v47  ;;  %v5417_v17 = vld [vmem:[#allocation2 + $0x18] sm:$0xf]  ;;  %v5442_v23 = vpack.c.bf16 %v5441_v45, %v5441_v45 }
 0xca7   : > { %v5418_v44 = vpack.c.bf16 %v5417_v17, %v5417_v17  ;;  %v5389_v38 = vld [vmem:[#allocation2 + $0x15] sm:$0xf]  ;;  %v5433_v25 = vld [vmem:[#allocation2 + $0x19] sm:$0xf] }
 0xca8   : > { %4612 = vrot.lane.b32.xlu0 %v4778_v18, %s8466_s7  ;;  %v5390_v42 = vpack.c.bf16 %v5389_v38, %v5389_v38  ;;  %v5434_v61 = vpack.c.bf16 %v5433_v25, %v5433_v25  ;;  %v5409_v9 = vld [vmem:[#allocation2 + $0x17] sm:$0xf]  ;;  %v5449_v53 = vld [vmem:[#allocation2 + $0x1b] sm:$0xf]  ;;  %v6141_v38 = vld [vmem:[%s8394_s20 + $0x20] sm:$0xff]  }
 0xca9   : > { %5118 = vrot.lane.b32.xlu1 %v5116_v52, %s8479_s30  ;;  %5926 = vmatpush3.bf16.msra.mxu1 %v6132_v14  ;;  %v5410_v4 = vpack.c.bf16 %v5409_v9, %v5409_v9  ;;  %v5425_v19 = vld [vmem:[#allocation2 + $0x19] sm:$0xf]  ;;  %v5450_v63 = vpack.c.bf16 %v5449_v53, %v5449_v53 }
 0xcaa   : > { %5927 = vmatprep.subr.bf16.mxu1 %v6134_v24  ;;  %v5426_v26 = vpack.c.bf16 %v5425_v19, %v5425_v19 }
 0xcac   : > { %5073 = vrot.lane.b32.xlu0 %v5071_v3, %s8466_s7 }
 0xcad   : > { %5097 = vrot.lane.b32.xlu1 %v5095_v5, %s8469_s1  ;;  %5928 = vmatpush3.bf16.msra.mxu1 %v6135_v27  ;;  %v6133_v27 = vld [vmem:[%s8394_s20 + $0x8] sm:$0xff]  }
 0xcae   : > { %5929 = vmatprep.subr.bf16.mxu1 %v6137_v13  ;;  %v6136_v13 = vld [vmem:[%s8394_s20 + $0x10] sm:$0xff]  }
 0xcb0   : > { %5081 = vrot.lane.b32.xlu0 %v5079_v36, %s8469_s1 }
 0xcb1   : > { %4824 = vrot.lane.b32.xlu1 %v4813_v28, %s8468_s25  ;;  %5930 = vmatpush3.bf16.msra.mxu1 %v6138_v21 }
 0xcb2   : > { %6040 = vmatprep.subr.bf16.mxu1 %v6172_v1 }
 0xcb4   : > { %5089 = vrot.lane.b32.xlu0 %v5087_v49, %s8469_s1 }
 0xcb5   : > { %5400 = vrot.lane.b32.xlu1 %v5398_v48, %s8461_s8  ;;  %v6139_v48 = vld [vmem:[%s8394_s20 + $0x18] sm:$0xff]  }
 0xcb8   : > { %5126 = vrot.lane.b32.xlu0 %v5124_v56, %s8479_s30 }
 0xcb9   : > { %5420 = vrot.lane.b32.xlu1 %v5418_v44, %s8466_s7 }
 0xcbc   : > { %5392 = vrot.lane.b32.xlu0 %v5390_v42, %s8466_s7  ;;  %v6140_v42 = vld [vmem:[%s8392_s18 + $0x80] sm:$0xff]  }
 0xcbd   : > { %5436 = vrot.lane.b32.xlu1 %v5434_v61, %s8469_s1  ;;  %v5405_v61 = vld [vmem:[#allocation2 + $0x17] sm:$0xf]  ;;  %s8348_s1 = scalar_lea.vmem %s8398_s24, %s5703_s4 }
 0xcc0   : > { %5412 = vrot.lane.b32.xlu0 %v5410_v4, %s8468_s25  ;;  %v6143_v4 = vld [vmem:[%s8394_s20 + $0x28] sm:$0xff]  }
 0xcc1   : > { %5444 = vrot.lane.b32.xlu1 %v5442_v23, %s8468_s25  ;;  %v5406_v23 = vpack.c.bf16 %v5405_v61, %v5405_v61 }
 0xcc4   : > { %5428 = vrot.lane.b32.xlu0 %v5426_v26, %s8480_s0  ;;  %v6142_v26 = vld [vmem:[%s8392_s18 + $0x88] sm:$0xff]  }
 0xcc8   : > { %5452 = vrot.lane.b32.xlu0 %v5450_v63, %s8479_s30 }
 0xcdb   : > { %v4819_v34 = vpop.permute.xlu1 %4818 }
 0xcdf   : > { %v8201_v16 = vpop.permute.xlu1 %4644 }
 0xce2   : > { %v4851_v35 = vpop.permute.xlu0 %4850 }
 0xce3   : > { %v8203_v57 = vpop.permute.xlu1 %4724  ;;  %4862 = vst.msk [vmem:[#allocation3 + $0x8] sm:$0xff] %vm3622_vm5, %v4851_v35  ;;  %v6145_v35 = vld [vmem:[%s8396_s22 + $0x20] sm:$0xff]  }
 0xce6   : > { %v8206_v18 = vpop.permute.xlu0 %4692 }
 0xce7   : > { %v8208_v40 = vpop.permute.xlu1 %4788 }
 0xcea   : > { %v8210_v20 = vpop.permute.xlu0 %4756  ;;  %v4867_v41 = vld [vmem:[#allocation3 + $0x8] sm:$0xff] }
 0xceb   : > { %v8212_v10 = vpop.permute.xlu1 %4820  ;;  %5831 = vmatprep.mubr.msk.bf16.mxu0 %vm3622_vm5, %v4867_v41  ;;  %5105 = vst.msk [vmem:[#allocation3 + $0x8] sm:$0xff] %vm3993_vm2, %v5104_v8 }
 0xcec   : > { %5109 = vst.msk [vmem:[#allocation3 + $0x8] sm:$0xff] %vm5050_vm1, %v5108_v29 }
 0xced   : > { %5113 = vst.msk [vmem:[#allocation3 + $0x8] sm:$0xff] %vm5063_vm8, %v5112_v2 }
 0xcee   : > { %v4853_v37 = vpop.permute.xlu0 %4852 }
 0xcef   : > { %v4647_v46 = vpop.permute.xlu1 %4646  ;;  %4863 = vst.msk [vmem:[#allocation3 + $0x20] sm:$0xff] %vm3622_vm5, %v4853_v37  ;;  %v6147_v37 = vld [vmem:[%s8394_s20 + $0x40] sm:$0xff]  }
 0xcf2   : > { %v4615_v55 = vpop.permute.xlu0 %4614 }
 0xcf3   : > { %v4695_v31 = vpop.permute.xlu1 %4694  ;;  %4624 = vst.msk [vmem:[#allocation3 + $0x30] sm:$0xff] %vm3622_vm5, %v4615_v55 }
 0xcf4   : > { %4656 = vst.msk [vmem:[#allocation3 + $0x30] sm:$0xff] %vm8481_vm0, %v4647_v46  ;;  %vm8489_vm0 = vmmov %vm8482_vm10  ;;  %v5580_v46 = vpack.c.bf16 %v7967_v54, %v7967_v54 }
 0xcf5   : > { %4672 = vst.msk [vmem:[#allocation3 + $0x30] sm:$0xff] %vm3750_vm6, %v7963_v51 }
 0xcf6   : > { %4704 = vst.msk [vmem:[#allocation3 + $0x30] sm:$0xff] %vm8482_vm10, %v4695_v31  ;;  %v4759_v0 = vpop.permute.xlu0 %4758  ;;  %vm8490_vm10 = vmmov %vm8483_vm11  ;;  %v4869_v5 = vld [vmem:[#allocation3 + $0x20] sm:$0xff] }
 0xcf7   : > { %v4727_v22 = vpop.permute.xlu1 %4726 }
 0xcf8   : > { %4736 = vst.msk [vmem:[#allocation3 + $0x30] sm:$0xff] %vm3763_vm7, %v4727_v22 }
 0xcf9   : > { %4768 = vst.msk [vmem:[#allocation3 + $0x30] sm:$0xff] %vm8483_vm11, %v4759_v0  ;;  %vm8491_vm11 = vmmov %vm8484_vm14 }
 0xcfa   : > { %v4791_v59 = vpop.permute.xlu0 %4790 }
 0xcfb   : > { %4800 = vst.msk [vmem:[#allocation3 + $0x30] sm:$0xff] %vm8484_vm14, %v4791_v59  ;;  %v4855_v43 = vpop.permute.xlu1 %4854  ;;  %vm8492_vm14 = vmmov %vm8490_vm10 }
 0xcfc   : > { %4864 = vst.msk [vmem:[#allocation3 + $0x38] sm:$0xff] %vm3622_vm5, %v4855_v43 }
 0xcfe   : > { %v4823_v2 = vpop.permute.xlu0 %4822 }
 0xcff   : > { %4832 = vst.msk [vmem:[#allocation3 + $0x30] sm:$0xff] %vm8485_vm3, %v4823_v2  ;;  %v4617_v6 = vpop.permute.xlu1 %4616 }
 0xd00   : > { %4625 = vst.msk [vmem:[#allocation3 + $0x48] sm:$0xff] %vm3622_vm5, %v4617_v6 }
 0xd02   : > { %v4649_v51 = vpop.permute.xlu0 %4648 }
 0xd03   : > { %4657 = vst.msk [vmem:[#allocation3 + $0x48] sm:$0xff] %vm8486_vm4, %v4649_v51  ;;  %v4697_v58 = vpop.permute.xlu1 %4696  ;;  %vm8493_vm4 = vmmov %vm8491_vm11  ;;  %v4871_v44 = vld [vmem:[#allocation3 + $0x38] sm:$0xff] }
 0xd04   : > { %4673 = vst.msk [vmem:[#allocation3 + $0x48] sm:$0xff] %vm3750_vm6, %v8003_v12 }
 0xd05   : > { %4705 = vst.msk [vmem:[#allocation3 + $0x48] sm:$0xff] %vm8487_vm12, %v4697_v58  ;;  %vm5100_vm12 = vcmask 1048320  }
 0xd06   : > { %v4729_v8 = vpop.permute.xlu0 %4728  ;;  %v4870_v19 = vld [vmem:[#allocation3 + $0x30] sm:$0xff] }
 0xd07   : > { %4737 = vst.msk [vmem:[#allocation3 + $0x48] sm:$0xff] %vm3763_vm7, %v4729_v8  ;;  %v4643_v29 = vpop.permute.xlu1 %4642 }
 0xd0a   : > { %v4611_v7 = vpop.permute.xlu0 %4610 }
 0xd0b   : > { %4622 = vst.msk [vmem:[#allocation3] sm:$0xff] %vm3622_vm5, %v4611_v7  ;;  %v4723_v39 = vpop.permute.xlu1 %4722 }
 0xd0c   : > { %4654 = vst.msk [vmem:[#allocation3] sm:$0xff] %vm8488_vm13, %v4643_v29 }
 0xd0d   : > { %4670 = vst.msk [vmem:[#allocation3] sm:$0xff] %vm3750_vm6, %v4666_v30  ;;  %v6130_v30 = vld [vmem:[%s8394_s20] sm:$0xff]  }
 0xd0e   : > { %v4691_v33 = vpop.permute.xlu0 %4690 }
 0xd0f   : > { %4702 = vst.msk [vmem:[#allocation3] sm:$0xff] %vm8489_vm0, %v4691_v33  ;;  %v4787_v12 = vpop.permute.xlu1 %4786 }
 0xd10   : > { %4734 = vst.msk [vmem:[#allocation3] sm:$0xff] %vm3763_vm7, %v4723_v39 }
 0xd12   : > { %v4755_v50 = vpop.permute.xlu0 %4754 }
 0xd13   : > { %4766 = vst.msk [vmem:[#allocation3] sm:$0xff] %vm8490_vm10, %v4755_v50  ;;  %v4761_v52 = vpop.permute.xlu1 %4760 }
 0xd14   : > { %4798 = vst.msk [vmem:[#allocation3] sm:$0xff] %vm8491_vm11, %v4787_v12  ;;  %vm8496_vm11 = vmmov %vm8485_vm3 }
 0xd15   : > { %4769 = vst.msk [vmem:[#allocation3 + $0x48] sm:$0xff] %vm8492_vm14, %v4761_v52  ;;  %vm5407_vm14 = vcmask 386304  }
 0xd16   : > { %4830 = vst.msk [vmem:[#allocation3] sm:$0xff] %vm8485_vm3, %v4819_v34  ;;  %v4857_v14 = vpop.permute.xlu0 %4856 }
 0xd17   : > { %4865 = vst.msk [vmem:[#allocation3 + $0x50] sm:$0xff] %vm3622_vm5, %v4857_v14  ;;  %v4793_v32 = vpop.permute.xlu1 %4792 }
 0xd18   : > { %4801 = vst.msk [vmem:[#allocation3 + $0x48] sm:$0xff] %vm8493_vm4, %v4793_v32 }
 0xd1a   : > { %v4613_v62 = vpop.permute.xlu0 %4612 }
 0xd1b   : > { %4623 = vst.msk [vmem:[#allocation3 + $0x18] sm:$0xff] %vm3622_vm5, %v4613_v62  ;;  %v5119_v3 = vpop.permute.xlu1 %5118 }
 0xd1c   : > { %4655 = vst.msk [vmem:[#allocation3 + $0x18] sm:$0xff] %vm8488_vm13, %v8201_v16  ;;  %v6144_v16 = vld [vmem:[%s8394_s20 + $0x30] sm:$0xff]   ;;  %vm5439_vm13 = vcmask 911104  }
 0xd1d   : > { %5121 = vst.msk [vmem:[#allocation3 + $0x8] sm:$0xff] %vm5100_vm12, %v5119_v3  ;;  %v4866_v24 = vld [vmem:[#allocation3] sm:$0xff]  ;;  %v5835_v3 = vld [vmem:[%s8393_s19] ss:$0 sm:$0xff] }
 0xd1e   : > { %4671 = vst.msk [vmem:[#allocation3 + $0x18] sm:$0xff] %vm3750_vm6, %v7942_v11  ;;  %4998 = vmatmul.mubr.bf16.vlgmr.msra.gmra.mrb[36].mxu0 %v4866_v24  ;;  %v5074_v15 = vpop.permute.xlu0 %5073  ;;  %vm8494_vm6 = vmmov %vm8490_vm10  ;;  %v4873_v34 = vld [vmem:[#allocation3 + $0x50] sm:$0xff] }
 0xd1f   : > { %4703 = vst.msk [vmem:[#allocation3 + $0x18] sm:$0xff] %vm8489_vm0, %v8206_v18  ;;  %5832 = vmatprep.mubr.msk.bf16.mxu0 %vm3622_vm5, %v4869_v5  ;;  %5541 = vmatpush1.bf16.msra.mxu0 %v6130_v30  ;;  %v5098_v36 = vpop.permute.xlu1 %5097  ;;  %vm8495_vm10 = vmmov %vm8493_vm4  ;;  %vm5423_vm4 = vcmask 648704   ;;  %vm5447_vm0 = vcmask 1042304  }
 0xd20   : > { %4735 = vst.msk [vmem:[#allocation3 + $0x18] sm:$0xff] %vm3763_vm7, %v8203_v57  ;;  %5542 = vmatprep.subr.bf16.mxu0 %v6185_v60  ;;  %vm8497_vm7 = vmmov %vm8485_vm3  ;;  %vm5415_vm3 = vcmask 517504  }
 0xd21   : > { %5076 = vst.msk [vmem:[#allocation3] sm:$0xff] %vm3993_vm2, %v5074_v15 }
 0xd22   : > { %4767 = vst.msk [vmem:[#allocation3 + $0x18] sm:$0xff] %vm8494_vm6, %v8210_v20  ;;  %v5082_v11 = vpop.permute.xlu0 %5081 }
 0xd23   : > { %4799 = vst.msk [vmem:[#allocation3 + $0x18] sm:$0xff] %vm8495_vm10, %v8208_v40  ;;  %5543 = vmatpush1.bf16.msra.mxu0 %v6133_v27  ;;  %v4825_v28 = vpop.permute.xlu1 %4824  ;;  %v6146_v40 = vld [vmem:[%s8394_s20 + $0x38] sm:$0xff]  }
 0xd24   : > { %4831 = vst.msk [vmem:[#allocation3 + $0x18] sm:$0xff] %vm8496_vm11, %v8212_v10  ;;  %v5131_v47 = vld [vmem:[#allocation3 + $0x8] sm:$0xff]  ;;  %5544 = vmatprep.subr.bf16.mxu0 %v6185_v60 }
 0xd25   : > { %5084 = vst.msk [vmem:[#allocation3] sm:$0xff] %vm5050_vm1, %v5082_v11  ;;  %5319 = vmatprep.mubr.bf16.mxu1 %v5131_v47  ;;  %vm5395_vm1 = vcmask 123904  }
 0xd26   : > { %4833 = vst.msk [vmem:[#allocation3 + $0x48] sm:$0xff] %vm8497_vm7, %v4825_v28  ;;  %v5090_v21 = vpop.permute.xlu0 %5089 }
 0xd27   : > { %5545 = vmatpush1.bf16.msra.mxu0 %v6136_v13  ;;  %5092 = vst.msk [vmem:[#allocation3] sm:$0xff] %vm5063_vm8, %v5090_v21  ;;  %v5401_v49 = vpop.permute.xlu1 %5400  ;;  %vm5403_vm8 = vcmask 255104  }
 0xd28   : > { %5546 = vmatprep.subr.bf16.mxu0 %v6185_v60  ;;  %5101 = vst.msk [vmem:[#allocation3] sm:$0xff] %vm5100_vm12, %v5098_v36  ;;  %vm5431_vm12 = vcmask 779904  }
 0xd2a   : > { %v5127_v56 = vpop.permute.xlu0 %5126 }
 0xd2b   : > { %v4868_v17 = vld [vmem:[#allocation3 + $0x18] sm:$0xff]  ;;  %5129 = vst.msk [vmem:[#allocation3 + $0x10] sm:$0xff] %vm3993_vm2, %v5127_v56  ;;  %5547 = vmatpush1.bf16.msra.mxu0 %v6139_v48  ;;  %v5421_v25 = vpop.permute.xlu1 %5420 }
 0xd2c   : > { %5006 = vmatmul.mubr.bf16.gmra.mrb[40].mxu0 %v4868_v17  ;;  %5548 = vmatprep.subr.bf16.mxu0 %v6185_v60 }
 0xd2d   : > { %5833 = vmatprep.mubr.msk.bf16.mxu0 %vm3622_vm5, %v4871_v44  ;;  %v4872_v10 = vld [vmem:[#allocation3 + $0x48] sm:$0xff] }
 0xd2e   : > { %v5393_v9 = vpop.permute.xlu0 %5392 }
 0xd2f   : > { %v5130_v45 = vld [vmem:[#allocation3] sm:$0xff]  ;;  %5549 = vmatpush1.bf16.msra.mxu0 %v6141_v38  ;;  %v5437_v53 = vpop.permute.xlu1 %5436 }
 0xd30   : > { %5396 = vst.msk [vmem:[#allocation3] sm:$0x3] %vm5395_vm1, %v5393_v9  ;;  %5320 = vmatmul.mubr.bf16.vlgmr.msra.gmra.mrb[24].mxu1 %v5130_v45  ;;  %5550 = vmatprep.subr.bf16.mxu0 %v6185_v60 }
 0xd31   : > { %5404 = vst.msk [vmem:[#allocation3] sm:$0x3] %vm5403_vm8, %v5401_v49  ;;  %6041 = vmatpush3.bf16.msra.mxu1 %v6140_v42  ;;  %6044 = vmatprep.mubr.msk.bf16.mxu1 %vm6188_vm15, %v6172_v1 }
 0xd32   : > { %v5413_v63 = vpop.permute.xlu0 %5412  ;;  %5408 = vst.msk [vmem:[#allocation3] sm:$0x3] %vm5407_vm14, %v5406_v23  ;;  %6042 = vmatprep.subr.bf16.mxu1 %v6172_v1  ;;  %v5132_v18 = vld [vmem:[#allocation3 + $0x10] sm:$0xff] }
 0xd33   : > { %5416 = vst.msk [vmem:[#allocation3] sm:$0x3] %vm5415_vm3, %v5413_v63  ;;  %5551 = vmatpush1.bf16.msra.mxu0 %v6143_v4  ;;  %v5445_v20 = vpop.permute.xlu1 %5444  ;;  %v5855_v4 = vld [vmem:[%s8395_s21] ss:$0 sm:$0xff] }
 0xd34   : > { %5014 = vmatmul.mubr.bf16.gmra.mrb[44].mxu0 %v4870_v19  ;;  %5424 = vst.msk [vmem:[#allocation3] sm:$0x3] %vm5423_vm4, %v5421_v25  ;;  %5552 = vmatprep.subr.bf16.mxu0 %v6185_v60  ;;  %v5583_v25 = vld [vmem:[%s8397_s23] sm:$0x1] }
 0xd35   : > { %5834 = vmatprep.mubr.msk.bf16.mxu0 %vm3622_vm5, %v4873_v34  ;;  %6043 = vmatpush3.bf16.msra.mxu1 %v6142_v26 }
 0xd36   : > { %v5429_v57 = vpop.permute.xlu0 %5428  ;;  %6048 = vmatprep.subr.bf16.mxu1 %v6172_v1 }
 0xd37   : > { %5432 = vst.msk [vmem:[#allocation3] sm:$0x3] %vm5431_vm12, %v5429_v57  ;;  %5553 = vmatpush1.bf16.msra.mxu0 %v6144_v16 }
 0xd38   : > { %5440 = vst.msk [vmem:[#allocation3] sm:$0x3] %vm5439_vm13, %v5437_v53  ;;  %6045 = vmatmul.mubr.msk.bf16.vlgmr.msra.gmra.mrb[28].mxu1 %vm3993_vm2, %v5132_v18  ;;  %5554 = vmatprep.subr.bf16.mxu0 %v6185_v60 }
 0xd39   : > { %5448 = vst.msk [vmem:[#allocation3] sm:$0x3] %vm5447_vm0, %v5445_v20  ;;  %6049 = vmatpush3.bf16.msra.mxu1 %v6145_v35  ;;  %6050 = vmatprep.mubr.msk.bf16.mxu1 %vm6188_vm15, %v6172_v1  ;;  %vm5637_vm15 = vcmask 1044480  }
 0xd3a   : > { %v5453_v41 = vpop.permute.xlu0 %5452 }
 0xd3b   : > { %5455 = vst.msk [vmem:[#allocation3 + $0x8] sm:$0x3] %vm5395_vm1, %v5453_v41  ;;  %5555 = vmatpush1.bf16.msra.mxu0 %v6146_v40 }
 0xd3c   : > { %5022 = vmatmul.mubr.bf16.gmra.mrb[48].mxu0 %v4872_v10  ;;  %5556 = vmatprep.subr.bf16.mxu0 %v6185_v60  ;;  %v5821_v60 = vld [vmem:[%s8391_s17] ss:$0 sm:$0xff] }
 0xd3f   : > { %5557 = vmatpush1.bf16.msra.mxu0 %v6147_v37 }
 0xd40   : > { %6051 = vmatmul.mubr.msk.bf16.vlgmr.msra.gmra.mrb[32].mxu1 %vm3622_vm5, %v5580_v46  ;;  %v5456_v1 = vld [vmem:[#allocation3] sm:$0x3] }
 0xd42   : > { %v5457_v55 = vld [vmem:[#allocation3 + $0x8] sm:$0x3] }
 0xd43   : > { %5865 = vmatprep.mubr.msk.bf16.mxu0 %vm3622_vm5, %v5457_v55 }
 0xd44   : > { %5573 = vmatmul.mubr.bf16.vlgmr.msra.gmra.mrb[52].mxu0 %v5456_v1 }
 0xdf1   : > { %v4999_v54 = vpop.f32.mrb[36].mxu0 }
 0xdf2   : > { %v5000_v31 = vadd.f32 %v5821_v60, %v4999_v54  ;;  %v5001_v0 = vpop.f32.mrb[37].mxu0 }
 0xdf3   : > { %v5002_v22 = vpop.f32.mrb[38].mxu0 }
 0xdf4   : > { %5030 = vst [vmem:[%s8348_s1] sm:$0xff] %v5000_v31  ;;  %v5003_v59 = vadd.f32 %v5821_v60, %v5002_v22  ;;  %v5004_v43 = vpop.f32.mrb[39].mxu0 }
 0xdf6   : > { %5031 = vst [vmem:[%s8348_s1 + $0x8] sm:$0xff] %v5003_v59 }
 0xdff   : > { %v5007_v2 = vpop.f32.mrb[40].mxu0 }
 0xe00   : > { %v5008_v6 = vadd.f32 %v5821_v60, %v5007_v2  ;;  %v5009_v51 = vpop.f32.mrb[41].mxu0 }
 0xe01   : > { %v5010_v58 = vpop.f32.mrb[42].mxu0 }
 0xe02   : > { %5032 = vst [vmem:[%s8348_s1 + $0x10] sm:$0xff] %v5008_v6  ;;  %v5011_v8 = vadd.f32 %v5821_v60, %v5010_v58  ;;  %v5012_v29 = vpop.f32.mrb[43].mxu0 }
 0xe03   : > { %v5931_v7 = vpop.f32.mrb[24].mxu1 }
 0xe04   : > { %5033 = vst [vmem:[%s8348_s1 + $0x18] sm:$0xff] %v5011_v8  ;;  %v5932_v39 = vpop.f32.mrb[25].mxu1 }
 0xe05   : > { %v5933_v33 = vadd.f32 %v5932_v39, %v5931_v7  ;;  %v5934_v50 = vpop.f32.mrb[26].mxu1 }
 0xe06   : > { %v5935_v32 = vpop.f32.mrb[27].mxu1 }
 0xe07   : > { %v5015_v12 = vpop.f32.mrb[44].mxu0  ;;  %v5936_v62 = vadd.f32 %v5935_v32, %v5934_v50  ;;  %v5322_v15 = vadd.f32 %v5933_v33, %v5835_v3 }
 0xe08   : > { %v5016_v52 = vadd.f32 %v5821_v60, %v5015_v12  ;;  %v5017_v14 = vpop.f32.mrb[45].mxu0 }
 0xe09   : > { %v5018_v30 = vpop.f32.mrb[46].mxu0  ;;  %v5325_v13 = vadd.f32 %v5936_v62, %v5835_v3 }
 0xe0a   : > { %5034 = vst [vmem:[%s8348_s1 + $0x20] sm:$0xff] %v5016_v52  ;;  %v5019_v24 = vadd.f32 %v5821_v60, %v5018_v30  ;;  %v5020_v5 = vpop.f32.mrb[47].mxu0 }
 0xe0b   : > { %v5362_v27 = vpop.f32.mrb[28].mxu1 }
 0xe0c   : > { %5035 = vst [vmem:[%s8348_s1 + $0x28] sm:$0xff] %v5019_v24  ;;  %v5363_v36 = vadd.f32 %v5362_v27, %v5322_v15  ;;  %v6046_v11 = vpop.f32.mrb[29].mxu1 }
 0xe0d   : > { %v5365_v47 = vpop.f32.mrb[30].mxu1 }
 0xe0e   : > { %5369 = vst [vmem:[%s8348_s1 + $0x40] sm:$0xff] %v5363_v36  ;;  %v5366_v49 = vadd.f32 %v5365_v47, %v5325_v13  ;;  %v6047_v17 = vpop.f32.mrb[31].mxu1 }
 0xe0f   : > { %v5023_v28 = vpop.f32.mrb[48].mxu0 }
 0xe10   : > { %v5024_v21 = vadd.f32 %v5821_v60, %v5023_v28  ;;  %v5025_v48 = vpop.f32.mrb[49].mxu0  ;;  %5370 = vst [vmem:[%s8348_s1 + $0x48] sm:$0xff] %v5366_v49 }
 0xe11   : > { %v5026_v56 = vpop.f32.mrb[50].mxu0 }
 0xe12   : > { %5036 = vst [vmem:[%s8348_s1 + $0x30] sm:$0xff] %v5024_v21  ;;  %v5027_v44 = vadd.f32 %v5821_v60, %v5026_v56  ;;  %v5028_v38 = vpop.f32.mrb[51].mxu0 }
 0xe13   : > { %v5627_v42 = vpop.f32.mrb[32].mxu1 }
 0xe14   : > { %5037 = vst [vmem:[%s8348_s1 + $0x38] sm:$0xff] %v5027_v44  ;;  %v5628_v61 = vadd.f32 %v5627_v42, %v5583_v25  ;;  %v6052_v9 = vpop.f32.mrb[33].mxu1 }
 0xe15   : > { %v5630_v45 = vpop.f32.mrb[34].mxu1 }
 0xe16   : > { %v6053_v23 = vpop.f32.mrb[35].mxu1  ;;  %v5634_v26 = vrot.slane %v5628_v61, 4 }
 0xe17   : > { %v5574_v19 = vpop.f32.mrb[52].mxu0 }
 0xe18   : > { %v5575_v53 = vadd.f32 %v5855_v4, %v5574_v19  ;;  %v5576_v63 = vpop.f32.mrb[53].mxu0 }
 0xe19   : > { %v5577_v34 = vpop.f32.mrb[54].mxu0 }
 0xe1a   : > { %v5636_v16 = vsel %vm3537_vm9, %v5575_v53, %v5634_v26  ;;  %v5578_v35 = vpop.f32.mrb[55].mxu0 }
 0xe1b   : > { %v5638_v57 = vsel %vm5637_vm15, %v5636_v16, 0.0 }
 0xe1c   : > { %5639 = vst [vmem:[%s8348_s1 + $0x50] sm:$0xff] %v5638_v57 }
 0xe1d PF: > { %s34_s5 = sadd.s32 1, %s6170_s5  }
 0xe1e   : > { %p31_p5 = scmp.ge.s32.totalorder %s34_s5, 4  }
 0xe20   :  { %33 = sbr.rel (!%p31_p5) target bundleno = 12 (0xc), region = 186 }

</bundles_post_ra>
